<compile_context>
chip_gen: v7x
topology: tpu7x:2x2x1
jax: 0.10.0
libtpu: 0.0.40
codegen_flags: <defaults>
</compile_context>

<pallas_src>
import functools

import numpy as np
import jax
import jax.numpy as jnp
from jax.experimental import pallas as pl
from jax.experimental.pallas import tpu as pltpu


def _gg_psf_np(kernel_size: int, beta: float, alpha: float) -> np.ndarray:
    """Generalized Gamma PSF, same math as GGPSFBlur.generate_gg_psf (numpy,
    so the weights become compile-time constants inside the kernel)."""
    k = kernel_size
    coords = np.linspace(-k / 2.0, k / 2.0, k, dtype=np.float32)
    xg, yg = np.meshgrid(coords, coords, indexing="xy")
    r = np.sqrt(xg ** 2 + yg ** 2).astype(np.float32)
    r = r / r.max()
    with np.errstate(divide="ignore", invalid="ignore", over="ignore"):
        psf = r ** (alpha - 1.0) * np.exp(-(r / beta))
    psf = np.nan_to_num(psf, nan=0.0, posinf=0.0, neginf=0.0)
    psf = psf / psf.sum()
    return psf.astype(np.float32)  # (K, K)


def _blur_kernel(x_ref, out_ref, xpad_ref, *, taps, H, W, pad):
    # x_ref:    (nb, 3, H, W)       unpadded input block in VMEM
    # out_ref:  (nb, 3, H, W)       output block in VMEM
    # xpad_ref: (nb, 3, Hp, Wp) f32 VMEM scratch (zero halo + interior copy)
    # taps:     python list of (ky, kx, weight) compile-time constants
    xpad_ref[...] = jnp.zeros_like(xpad_ref)
    xpad_ref[:, :, pad:pad + H, pad:pad + W] = x_ref[...].astype(jnp.float32)

    # Fully unrolled KxK cross-correlation (same semantics as F.conv2d; PSF is
    # radially symmetric anyway).  Zero-weight taps were dropped at trace time.
    ky0, kx0, w0 = taps[0]
    acc = w0 * xpad_ref[:, :, ky0:ky0 + H, kx0:kx0 + W]
    for ky, kx, w in taps[1:]:
        acc = acc + w * xpad_ref[:, :, ky:ky + H, kx:kx + W]

    out_ref[...] = acc.astype(out_ref.dtype)


def _pick_batch_tile(B, H, W, Hp, Wp, itemsize):
    """Largest batch tile that (a) fits a conservative VMEM budget and
    (b) leaves >=2 grid steps when B >= 2 (v7x has 2 TensorCores)."""
    # double-buffered input + output blocks + f32 padded scratch, per batch
    per_batch = 3 * (2 * H * W * itemsize + 2 * H * W * itemsize + Hp * Wp * 4)
    budget = 20 * 1024 * 1024
    cap = max(1, budget // max(per_batch, 1))
    if B >= 2:
        cap = min(cap, max(1, B // 2))
    cap = min(cap, B)
    for nb in range(cap, 0, -1):
        if B % nb == 0:
            return nb
    return 1


def gg_psf_blur(x, kernel_size=13, beta=2.0, alpha=None, return_kernel=False):
    """Pallas implementation of GGPSFBlur.forward (out_of_focus_blur path)."""
    if alpha is None:
        alpha = max(2.0, 1.033 * beta - 0.6217)

    dim_3 = (x.ndim == 3)
    if dim_3:
        x = x[None]
    B, C, H, W = x.shape
    assert C == 3, "groups=3 conv in the reference module requires 3 input channels"

    K = int(kernel_size)
    pad = K // 2
    Hp, Wp = H + K - 1, W + K - 1

    # Compile-time constant PSF weights; skip exact-zero taps (e.g. the center).
    psf = _gg_psf_np(K, float(beta), float(alpha))  # (K, K) numpy f32
    taps = [(ky, kx, float(psf[ky, kx]))
            for ky in range(K) for kx in range(K)
            if float(psf[ky, kx]) != 0.0]

    nb = _pick_batch_tile(B, H, W, Hp, Wp, x.dtype.itemsize)
    grid = (B // nb,)

    kernel_fn = functools.partial(_blur_kernel, taps=taps, H=H, W=W, pad=pad)

    # Unique per-channel blurs: (B, 3, H, W).
    y = pl.pallas_call(
        kernel_fn,
        out_shape=jax.ShapeDtypeStruct((B, 3, H, W), x.dtype),
        grid_spec=pltpu.PrefetchScalarGridSpec(
            num_scalar_prefetch=0,
            grid=grid,
            in_specs=[pl.BlockSpec((nb, 3, H, W), lambda i: (i, 0, 0, 0))],
            out_specs=pl.BlockSpec((nb, 3, H, W), lambda i: (i, 0, 0, 0)),
            scratch_shapes=[pltpu.VMEM((nb, 3, Hp, Wp), jnp.float32)],
        ),
        compiler_params=pltpu.CompilerParams(
            dimension_semantics=("parallel",),
            vmem_limit_bytes=32 * 1024 * 1024),
    )(x)

    # The PyTorch module outputs [B, 3*B, H, W] where output channel oc is the
    # blur of input channel oc // B (all 3B depthwise filters are identical).
    # Replicate the unique result accordingly.
    y_full = jnp.repeat(y, B, axis=1)

    psf_j = jnp.asarray(psf)
    full_kernel = jnp.broadcast_to(psf_j[None, None], (3 * B, 1, K, K))
    if dim_3:
        y_full = y_full[0]
        # (torch's .squeeze(0) on the [3,1,K,K] kernel is a no-op)
    return (y_full, full_kernel) if return_kernel else y_full


def _reference(x, psf, K, pad):
    """Plain-JAX reference matching F.conv2d(..., groups=3) with the repeated PSF."""
    B = x.shape[0]
    w = jnp.broadcast_to(jnp.asarray(psf)[None, None], (3 * B, 1, K, K))
    return jax.lax.conv_general_dilated(
        x, w, window_strides=(1, 1), padding=[(pad, pad), (pad, pad)],
        dimension_numbers=("NCHW", "OIHW", "NCHW"), feature_group_count=3)


if __name__ == "__main__":
    key = jax.random.PRNGKey(0)
    # Small deterministic input: batch=2, channels=3 (required by groups=3), 16x16.
    x = jax.random.uniform(key, (2, 3, 16, 16), dtype=jnp.float32)

    y, kernel = gg_psf_blur(x, kernel_size=13, beta=2.0, return_kernel=True)
    y = jax.block_until_ready(y)

    assert y.shape == (2, 6, 16, 16), y.shape
    assert kernel.shape == (6, 1, 13, 13), kernel.shape

    psf13 = _gg_psf_np(13, 2.0, max(2.0, 1.033 * 2.0 - 0.6217))
    y_ref = _reference(x, psf13, 13, 6)
    assert bool(jnp.allclose(y, y_ref, atol=1e-4, rtol=1e-4)), "mismatch vs reference (4D)"

    # Also exercise the 3-D input path and a different (kernel_size, beta),
    # matching RandomDegradation's out_of_focus_blur config (beta=0.5).
    x3 = jax.random.uniform(jax.random.PRNGKey(1), (3, 16, 16), dtype=jnp.float32)
    y3 = jax.block_until_ready(gg_psf_blur(x3, kernel_size=5, beta=0.5))
    assert y3.shape == (3, 16, 16), y3.shape
    psf5 = _gg_psf_np(5, 0.5, max(2.0, 1.033 * 0.5 - 0.6217))
    y3_ref = _reference(x3[None], psf5, 5, 2)[0]
    assert bool(jnp.allclose(y3, y3_ref, atol=1e-4, rtol=1e-4)), "mismatch vs reference (3D)"

    # TODO(synk): RandomDegradation's host-side random dispatch, JPEGArtifacts
    # (PIL encode/decode) and the gaussian/motion-blur variants have no clean
    # Pallas equivalent; only the GGPSFBlur path is implemented here.
    print("KERNEL_OK")
</pallas_src>

<mosaic_0001>
module attributes {stable_mosaic.version = 11 : i64} {
  func.func @_blur_kernel(%arg0: i32, %arg1: memref<1x3x16x16xf32, #tpu.memory_space<vmem>>, %arg2: memref<1x3x16x16xf32, #tpu.memory_space<vmem>>, %arg3: memref<1x3x28x28xf32, #tpu.memory_space<vmem>>) attributes {dimension_semantics = [#tpu.dimension_semantics<parallel>], iteration_bounds = array<i64: 2>, scalar_prefetch = 0 : i64, scratch_operands = 1 : i64, tpu.core_type = #tpu.core_type<tc>, window_params = [{transform_indices = @transform_0, window_bounds = array<i64: 1, 3, 16, 16>}, {transform_indices = @transform_1, window_bounds = array<i64: 1, 3, 16, 16>}]} {
    %cst = arith.constant 0.000000e+00 : f32
    %0 = vector.broadcast %cst : f32 to vector<1x3x28x28xf32>
    %c0 = arith.constant 0 : index
    %c0_0 = arith.constant 0 : index
    %c0_1 = arith.constant 0 : index
    %c0_2 = arith.constant 0 : index
    %1 = vector.load %arg3[%c0, %c0_0, %c0_1, %c0_2] : memref<1x3x28x28xf32, #tpu.memory_space<vmem>>, vector<1x3x28x28xf32>
    tpu.vector_store %arg3[%c0, %c0_0, %c0_1, %c0_2], %0 {strides = array<i32>} : memref<1x3x28x28xf32, #tpu.memory_space<vmem>>, vector<1x3x28x28xf32>,
    %c0_3 = arith.constant 0 : index
    %c0_4 = arith.constant 0 : index
    %c0_5 = arith.constant 0 : index
    %c0_6 = arith.constant 0 : index
    %2 = vector.load %arg1[%c0_3, %c0_4, %c0_5, %c0_6] : memref<1x3x16x16xf32, #tpu.memory_space<vmem>>, vector<1x3x16x16xf32>
    %c0_7 = arith.constant 0 : index
    %c0_8 = arith.constant 0 : index
    %c6 = arith.constant 6 : index
    %c6_9 = arith.constant 6 : index
    %3 = vector.load %arg3[%c0_7, %c0_8, %c6, %c6_9] : memref<1x3x28x28xf32, #tpu.memory_space<vmem>>, vector<1x3x16x16xf32>
    tpu.vector_store %arg3[%c0_7, %c0_8, %c6, %c6_9], %2 {strides = array<i32>} : memref<1x3x28x28xf32, #tpu.memory_space<vmem>>, vector<1x3x16x16xf32>,
    %c0_10 = arith.constant 0 : index
    %c0_11 = arith.constant 0 : index
    %c0_12 = arith.constant 0 : index
    %c0_13 = arith.constant 0 : index
    %4 = vector.load %arg3[%c0_10, %c0_11, %c0_12, %c0_13] : memref<1x3x28x28xf32, #tpu.memory_space<vmem>>, vector<1x3x16x16xf32>
    %cst_14 = arith.constant 0.00852281693 : f32
    %5 = vector.broadcast %cst_14 : f32 to vector<1x3x16x16xf32>
    %6 = arith.mulf %5, %4 : vector<1x3x16x16xf32>
    %c0_15 = arith.constant 0 : index
    %c0_16 = arith.constant 0 : index
    %c0_17 = arith.constant 0 : index
    %c1 = arith.constant 1 : index
    %7 = vector.load %arg3[%c0_15, %c0_16, %c0_17, %c1] : memref<1x3x28x28xf32, #tpu.memory_space<vmem>>, vector<1x3x16x16xf32>
    %cst_18 = arith.constant 0.00816312712 : f32
    %8 = vector.broadcast %cst_18 : f32 to vector<1x3x16x16xf32>
    %9 = arith.mulf %8, %7 : vector<1x3x16x16xf32>
    %10 = arith.addf %6, %9 : vector<1x3x16x16xf32>
    %c0_19 = arith.constant 0 : index
    %c0_20 = arith.constant 0 : index
    %c0_21 = arith.constant 0 : index
    %c2 = arith.constant 2 : index
    %11 = vector.load %arg3[%c0_19, %c0_20, %c0_21, %c2] : memref<1x3x28x28xf32, #tpu.memory_space<vmem>>, vector<1x3x16x16xf32>
    %cst_22 = arith.constant 0.00780775445 : f32
    %12 = vector.broadcast %cst_22 : f32 to vector<1x3x16x16xf32>
    %13 = arith.mulf %12, %11 : vector<1x3x16x16xf32>
    %14 = arith.addf %10, %13 : vector<1x3x16x16xf32>
    %c0_23 = arith.constant 0 : index
    %c0_24 = arith.constant 0 : index
    %c0_25 = arith.constant 0 : index
    %c3 = arith.constant 3 : index
    %15 = vector.load %arg3[%c0_23, %c0_24, %c0_25, %c3] : memref<1x3x28x28xf32, #tpu.memory_space<vmem>>, vector<1x3x16x16xf32>
    %cst_26 = arith.constant 0.00748170214 : f32
    %16 = vector.broadcast %cst_26 : f32 to vector<1x3x16x16xf32>
    %17 = arith.mulf %16, %15 : vector<1x3x16x16xf32>
    %18 = arith.addf %14, %17 : vector<1x3x16x16xf32>
    %c0_27 = arith.constant 0 : index
    %c0_28 = arith.constant 0 : index
    %c0_29 = arith.constant 0 : index
    %c4 = arith.constant 4 : index
    %19 = vector.load %arg3[%c0_27, %c0_28, %c0_29, %c4] : memref<1x3x28x28xf32, #tpu.memory_space<vmem>>, vector<1x3x16x16xf32>
    %cst_30 = arith.constant 0.00721509615 : f32
    %20 = vector.broadcast %cst_30 : f32 to vector<1x3x16x16xf32>
    %21 = arith.mulf %20, %19 : vector<1x3x16x16xf32>
    %22 = arith.addf %18, %21 : vector<1x3x16x16xf32>
    %c0_31 = arith.constant 0 : index
    %c0_32 = arith.constant 0 : index
    %c0_33 = arith.constant 0 : index
    %c5 = arith.constant 5 : index
    %23 = vector.load %arg3[%c0_31, %c0_32, %c0_33, %c5] : memref<1x3x28x28xf32, #tpu.memory_space<vmem>>, vector<1x3x16x16xf32>
    %cst_34 = arith.constant 0.00703883357 : f32
    %24 = vector.broadcast %cst_34 : f32 to vector<1x3x16x16xf32>
    %25 = arith.mulf %24, %23 : vector<1x3x16x16xf32>
    %26 = arith.addf %22, %25 : vector<1x3x16x16xf32>
    %c0_35 = arith.constant 0 : index
    %c0_36 = arith.constant 0 : index
    %c0_37 = arith.constant 0 : index
    %c6_38 = arith.constant 6 : index
    %27 = vector.load %arg3[%c0_35, %c0_36, %c0_37, %c6_38] : memref<1x3x28x28xf32, #tpu.memory_space<vmem>>, vector<1x3x16x16xf32>
    %cst_39 = arith.constant 0.00697700586 : f32
    %28 = vector.broadcast %cst_39 : f32 to vector<1x3x16x16xf32>
    %29 = arith.mulf %28, %27 : vector<1x3x16x16xf32>
    %30 = arith.addf %26, %29 : vector<1x3x16x16xf32>
    %c0_40 = arith.constant 0 : index
    %c0_41 = arith.constant 0 : index
    %c0_42 = arith.constant 0 : index
    %c7 = arith.constant 7 : index
    %31 = vector.load %arg3[%c0_40, %c0_41, %c0_42, %c7] : memref<1x3x28x28xf32, #tpu.memory_space<vmem>>, vector<1x3x16x16xf32>
    %cst_43 = arith.constant 0.00703883357 : f32
    %32 = vector.broadcast %cst_43 : f32 to vector<1x3x16x16xf32>
    %33 = arith.mulf %32, %31 : vector<1x3x16x16xf32>
    %34 = arith.addf %30, %33 : vector<1x3x16x16xf32>
    %c0_44 = arith.constant 0 : index
    %c0_45 = arith.constant 0 : index
    %c0_46 = arith.constant 0 : index
    %c8 = arith.constant 8 : index
    %35 = vector.load %arg3[%c0_44, %c0_45, %c0_46, %c8] : memref<1x3x28x28xf32, #tpu.memory_space<vmem>>, vector<1x3x16x16xf32>
    %cst_47 = arith.constant 0.00721509615 : f32
    %36 = vector.broadcast %cst_47 : f32 to vector<1x3x16x16xf32>
    %37 = arith.mulf %36, %35 : vector<1x3x16x16xf32>
    %38 = arith.addf %34, %37 : vector<1x3x16x16xf32>
    %c0_48 = arith.constant 0 : index
    %c0_49 = arith.constant 0 : index
    %c0_50 = arith.constant 0 : index
    %c9 = arith.constant 9 : index
    %39 = vector.load %arg3[%c0_48, %c0_49, %c0_50, %c9] : memref<1x3x28x28xf32, #tpu.memory_space<vmem>>, vector<1x3x16x16xf32>
    %cst_51 = arith.constant 0.00748170214 : f32
    %40 = vector.broadcast %cst_51 : f32 to vector<1x3x16x16xf32>
    %41 = arith.mulf %40, %39 : vector<1x3x16x16xf32>
    %42 = arith.addf %38, %41 : vector<1x3x16x16xf32>
    %c0_52 = arith.constant 0 : index
    %c0_53 = arith.constant 0 : index
    %c0_54 = arith.constant 0 : index
    %c10 = arith.constant 10 : index
    %43 = vector.load %arg3[%c0_52, %c0_53, %c0_54, %c10] : memref<1x3x28x28xf32, #tpu.memory_space<vmem>>, vector<1x3x16x16xf32>
    %cst_55 = arith.constant 0.00780775445 : f32
    %44 = vector.broadcast %cst_55 : f32 to vector<1x3x16x16xf32>
    %45 = arith.mulf %44, %43 : vector<1x3x16x16xf32>
    %46 = arith.addf %42, %45 : vector<1x3x16x16xf32>
    %c0_56 = arith.constant 0 : index
    %c0_57 = arith.constant 0 : index
    %c0_58 = arith.constant 0 : index
    %c11 = arith.constant 11 : index
    %47 = vector.load %arg3[%c0_56, %c0_57, %c0_58, %c11] : memref<1x3x28x28xf32, #tpu.memory_space<vmem>>, vector<1x3x16x16xf32>
    %cst_59 = arith.constant 0.00816312712 : f32
    %48 = vector.broadcast %cst_59 : f32 to vector<1x3x16x16xf32>
    %49 = arith.mulf %48, %47 : vector<1x3x16x16xf32>
    %50 = arith.addf %46, %49 : vector<1x3x16x16xf32>
    %c0_60 = arith.constant 0 : index
    %c0_61 = arith.constant 0 : index
    %c0_62 = arith.constant 0 : index
    %c12 = arith.constant 12 : index
    %51 = vector.load %arg3[%c0_60, %c0_61, %c0_62, %c12] : memref<1x3x28x28xf32, #tpu.memory_space<vmem>>, vector<1x3x16x16xf32>
    %cst_63 = arith.constant 0.00852281693 : f32
    %52 = vector.broadcast %cst_63 : f32 to vector<1x3x16x16xf32>
    %53 = arith.mulf %52, %51 : vector<1x3x16x16xf32>
    %54 = arith.addf %50, %53 : vector<1x3x16x16xf32>
    %c0_64 = arith.constant 0 : index
    %c0_65 = arith.constant 0 : index
    %c1_66 = arith.constant 1 : index
    %c0_67 = arith.constant 0 : index
    %55 = vector.load %arg3[%c0_64, %c0_65, %c1_66, %c0_67] : memref<1x3x28x28xf32, #tpu.memory_space<vmem>>, vector<1x3x16x16xf32>
    %cst_68 = arith.constant 0.00816312712 : f32
    %56 = vector.broadcast %cst_68 : f32 to vector<1x3x16x16xf32>
    %57 = arith.mulf %56, %55 : vector<1x3x16x16xf32>
    %58 = arith.addf %54, %57 : vector<1x3x16x16xf32>
    %c0_69 = arith.constant 0 : index
    %c0_70 = arith.constant 0 : index
    %c1_71 = arith.constant 1 : index
    %c1_72 = arith.constant 1 : index
    %59 = vector.load %arg3[%c0_69, %c0_70, %c1_71, %c1_72] : memref<1x3x28x28xf32, #tpu.memory_space<vmem>>, vector<1x3x16x16xf32>
    %cst_73 = arith.constant 7.719570e-03 : f32
    %60 = vector.broadcast %cst_73 : f32 to vector<1x3x16x16xf32>
    %61 = arith.mulf %60, %59 : vector<1x3x16x16xf32>
    %62 = arith.addf %58, %61 : vector<1x3x16x16xf32>
    %c0_74 = arith.constant 0 : index
    %c0_75 = arith.constant 0 : index
    %c1_76 = arith.constant 1 : index
    %c2_77 = arith.constant 2 : index
    %63 = vector.load %arg3[%c0_74, %c0_75, %c1_76, %c2_77] : memref<1x3x28x28xf32, #tpu.memory_space<vmem>>, vector<1x3x16x16xf32>
    %cst_78 = arith.constant 0.00727098761 : f32
    %64 = vector.broadcast %cst_78 : f32 to vector<1x3x16x16xf32>
    %65 = arith.mulf %64, %63 : vector<1x3x16x16xf32>
    %66 = arith.addf %62, %65 : vector<1x3x16x16xf32>
    %c0_79 = arith.constant 0 : index
    %c0_80 = arith.constant 0 : index
    %c1_81 = arith.constant 1 : index
    %c3_82 = arith.constant 3 : index
    %67 = vector.load %arg3[%c0_79, %c0_80, %c1_81, %c3_82] : memref<1x3x28x28xf32, #tpu.memory_space<vmem>>, vector<1x3x16x16xf32>
    %cst_83 = arith.constant 0.00684830965 : f32
    %68 = vector.broadcast %cst_83 : f32 to vector<1x3x16x16xf32>
    %69 = arith.mulf %68, %67 : vector<1x3x16x16xf32>
    %70 = arith.addf %66, %69 : vector<1x3x16x16xf32>
    %c0_84 = arith.constant 0 : index
    %c0_85 = arith.constant 0 : index
    %c1_86 = arith.constant 1 : index
    %c4_87 = arith.constant 4 : index
    %71 = vector.load %arg3[%c0_84, %c0_85, %c1_86, %c4_87] : memref<1x3x28x28xf32, #tpu.memory_space<vmem>>, vector<1x3x16x16xf32>
    %cst_88 = arith.constant 0.0064930846 : f32
    %72 = vector.broadcast %cst_88 : f32 to vector<1x3x16x16xf32>
    %73 = arith.mulf %72, %71 : vector<1x3x16x16xf32>
    %74 = arith.addf %70, %73 : vector<1x3x16x16xf32>
    %c0_89 = arith.constant 0 : index
    %c0_90 = arith.constant 0 : index
    %c1_91 = arith.constant 1 : index
    %c5_92 = arith.constant 5 : index
    %75 = vector.load %arg3[%c0_89, %c0_90, %c1_91, %c5_92] : memref<1x3x28x28xf32, #tpu.memory_space<vmem>>, vector<1x3x16x16xf32>
    %cst_93 = arith.constant 0.00625261199 : f32
    %76 = vector.broadcast %cst_93 : f32 to vector<1x3x16x16xf32>
    %77 = arith.mulf %76, %75 : vector<1x3x16x16xf32>
    %78 = arith.addf %74, %77 : vector<1x3x16x16xf32>
    %c0_94 = arith.constant 0 : index
    %c0_95 = arith.constant 0 : index
    %c1_96 = arith.constant 1 : index
    %c6_97 = arith.constant 6 : index
    %79 = vector.load %arg3[%c0_94, %c0_95, %c1_96, %c6_97] : memref<1x3x28x28xf32, #tpu.memory_space<vmem>>, vector<1x3x16x16xf32>
    %cst_98 = arith.constant 6.167070e-03 : f32
    %80 = vector.broadcast %cst_98 : f32 to vector<1x3x16x16xf32>
    %81 = arith.mulf %80, %79 : vector<1x3x16x16xf32>
    %82 = arith.addf %78, %81 : vector<1x3x16x16xf32>
    %c0_99 = arith.constant 0 : index
    %c0_100 = arith.constant 0 : index
    %c1_101 = arith.constant 1 : index
    %c7_102 = arith.constant 7 : index
    %83 = vector.load %arg3[%c0_99, %c0_100, %c1_101, %c7_102] : memref<1x3x28x28xf32, #tpu.memory_space<vmem>>, vector<1x3x16x16xf32>
    %cst_103 = arith.constant 0.00625261199 : f32
    %84 = vector.broadcast %cst_103 : f32 to vector<1x3x16x16xf32>
    %85 = arith.mulf %84, %83 : vector<1x3x16x16xf32>
    %86 = arith.addf %82, %85 : vector<1x3x16x16xf32>
    %c0_104 = arith.constant 0 : index
    %c0_105 = arith.constant 0 : index
    %c1_106 = arith.constant 1 : index
    %c8_107 = arith.constant 8 : index
    %87 = vector.load %arg3[%c0_104, %c0_105, %c1_106, %c8_107] : memref<1x3x28x28xf32, #tpu.memory_space<vmem>>, vector<1x3x16x16xf32>
    %cst_108 = arith.constant 0.0064930846 : f32
    %88 = vector.broadcast %cst_108 : f32 to vector<1x3x16x16xf32>
    %89 = arith.mulf %88, %87 : vector<1x3x16x16xf32>
    %90 = arith.addf %86, %89 : vector<1x3x16x16xf32>
    %c0_109 = arith.constant 0 : index
    %c0_110 = arith.constant 0 : index
    %c1_111 = arith.constant 1 : index
    %c9_112 = arith.constant 9 : index
    %91 = vector.load %arg3[%c0_109, %c0_110, %c1_111, %c9_112] : memref<1x3x28x28xf32, #tpu.memory_space<vmem>>, vector<1x3x16x16xf32>
    %cst_113 = arith.constant 0.00684830965 : f32
    %92 = vector.broadcast %cst_113 : f32 to vector<1x3x16x16xf32>
    %93 = arith.mulf %92, %91 : vector<1x3x16x16xf32>
    %94 = arith.addf %90, %93 : vector<1x3x16x16xf32>
    %c0_114 = arith.constant 0 : index
    %c0_115 = arith.constant 0 : index
    %c1_116 = arith.constant 1 : index
    %c10_117 = arith.constant 10 : index
    %95 = vector.load %arg3[%c0_114, %c0_115, %c1_116, %c10_117] : memref<1x3x28x28xf32, #tpu.memory_space<vmem>>, vector<1x3x16x16xf32>
    %cst_118 = arith.constant 0.00727098761 : f32
    %96 = vector.broadcast %cst_118 : f32 to vector<1x3x16x16xf32>
    %97 = arith.mulf %96, %95 : vector<1x3x16x16xf32>
    %98 = arith.addf %94, %97 : vector<1x3x16x16xf32>
    %c0_119 = arith.constant 0 : index
    %c0_120 = arith.constant 0 : index
    %c1_121 = arith.constant 1 : index
    %c11_122 = arith.constant 11 : index
    %99 = vector.load %arg3[%c0_119, %c0_120, %c1_121, %c11_122] : memref<1x3x28x28xf32, #tpu.memory_space<vmem>>, vector<1x3x16x16xf32>
    %cst_123 = arith.constant 7.719570e-03 : f32
    %100 = vector.broadcast %cst_123 : f32 to vector<1x3x16x16xf32>
    %101 = arith.mulf %100, %99 : vector<1x3x16x16xf32>
    %102 = arith.addf %98, %101 : vector<1x3x16x16xf32>
    %c0_124 = arith.constant 0 : index
    %c0_125 = arith.constant 0 : index
    %c1_126 = arith.constant 1 : index
    %c12_127 = arith.constant 12 : index
    %103 = vector.load %arg3[%c0_124, %c0_125, %c1_126, %c12_127] : memref<1x3x28x28xf32, #tpu.memory_space<vmem>>, vector<1x3x16x16xf32>
    %cst_128 = arith.constant 0.00816312712 : f32
    %104 = vector.broadcast %cst_128 : f32 to vector<1x3x16x16xf32>
    %105 = arith.mulf %104, %103 : vector<1x3x16x16xf32>
    %106 = arith.addf %102, %105 : vector<1x3x16x16xf32>
    %c0_129 = arith.constant 0 : index
    %c0_130 = arith.constant 0 : index
    %c2_131 = arith.constant 2 : index
    %c0_132 = arith.constant 0 : index
    %107 = vector.load %arg3[%c0_129, %c0_130, %c2_131, %c0_132] : memref<1x3x28x28xf32, #tpu.memory_space<vmem>>, vector<1x3x16x16xf32>
    %cst_133 = arith.constant 0.00780775445 : f32
    %108 = vector.broadcast %cst_133 : f32 to vector<1x3x16x16xf32>
    %109 = arith.mulf %108, %107 : vector<1x3x16x16xf32>
    %110 = arith.addf %106, %109 : vector<1x3x16x16xf32>
    %c0_134 = arith.constant 0 : index
    %c0_135 = arith.constant 0 : index
    %c2_136 = arith.constant 2 : index
    %c1_137 = arith.constant 1 : index
    %111 = vector.load %arg3[%c0_134, %c0_135, %c2_136, %c1_137] : memref<1x3x28x28xf32, #tpu.memory_space<vmem>>, vector<1x3x16x16xf32>
    %cst_138 = arith.constant 0.00727098761 : f32
    %112 = vector.broadcast %cst_138 : f32 to vector<1x3x16x16xf32>
    %113 = arith.mulf %112, %111 : vector<1x3x16x16xf32>
    %114 = arith.addf %110, %113 : vector<1x3x16x16xf32>
    %c0_139 = arith.constant 0 : index
    %c0_140 = arith.constant 0 : index
    %c2_141 = arith.constant 2 : index
    %c2_142 = arith.constant 2 : index
    %115 = vector.load %arg3[%c0_139, %c0_140, %c2_141, %c2_142] : memref<1x3x28x28xf32, #tpu.memory_space<vmem>>, vector<1x3x16x16xf32>
    %cst_143 = arith.constant 0.00671234401 : f32
    %116 = vector.broadcast %cst_143 : f32 to vector<1x3x16x16xf32>
    %117 = arith.mulf %116, %115 : vector<1x3x16x16xf32>
    %118 = arith.addf %114, %117 : vector<1x3x16x16xf32>
    %c0_144 = arith.constant 0 : index
    %c0_145 = arith.constant 0 : index
    %c2_146 = arith.constant 2 : index
    %c3_147 = arith.constant 3 : index
    %119 = vector.load %arg3[%c0_144, %c0_145, %c2_146, %c3_147] : memref<1x3x28x28xf32, #tpu.memory_space<vmem>>, vector<1x3x16x16xf32>
    %cst_148 = arith.constant 6.167070e-03 : f32
    %120 = vector.broadcast %cst_148 : f32 to vector<1x3x16x16xf32>
    %121 = arith.mulf %120, %119 : vector<1x3x16x16xf32>
    %122 = arith.addf %118, %121 : vector<1x3x16x16xf32>
    %c0_149 = arith.constant 0 : index
    %c0_150 = arith.constant 0 : index
    %c2_151 = arith.constant 2 : index
    %c4_152 = arith.constant 4 : index
    %123 = vector.load %arg3[%c0_149, %c0_150, %c2_151, %c4_152] : memref<1x3x28x28xf32, #tpu.memory_space<vmem>>, vector<1x3x16x16xf32>
    %cst_153 = arith.constant 0.00569026405 : f32
    %124 = vector.broadcast %cst_153 : f32 to vector<1x3x16x16xf32>
    %125 = arith.mulf %124, %123 : vector<1x3x16x16xf32>
    %126 = arith.addf %122, %125 : vector<1x3x16x16xf32>
    %c0_154 = arith.constant 0 : index
    %c0_155 = arith.constant 0 : index
    %c2_156 = arith.constant 2 : index
    %c5_157 = arith.constant 5 : index
    %127 = vector.load %arg3[%c0_154, %c0_155, %c2_156, %c5_157] : memref<1x3x28x28xf32, #tpu.memory_space<vmem>>, vector<1x3x16x16xf32>
    %cst_158 = arith.constant 0.00535517838 : f32
    %128 = vector.broadcast %cst_158 : f32 to vector<1x3x16x16xf32>
    %129 = arith.mulf %128, %127 : vector<1x3x16x16xf32>
    %130 = arith.addf %126, %129 : vector<1x3x16x16xf32>
    %c0_159 = arith.constant 0 : index
    %c0_160 = arith.constant 0 : index
    %c2_161 = arith.constant 2 : index
    %c6_162 = arith.constant 6 : index
    %131 = vector.load %arg3[%c0_159, %c0_160, %c2_161, %c6_162] : memref<1x3x28x28xf32, #tpu.memory_space<vmem>>, vector<1x3x16x16xf32>
    %cst_163 = arith.constant 0.00523311086 : f32
    %132 = vector.broadcast %cst_163 : f32 to vector<1x3x16x16xf32>
    %133 = arith.mulf %132, %131 : vector<1x3x16x16xf32>
    %134 = arith.addf %130, %133 : vector<1x3x16x16xf32>
    %c0_164 = arith.constant 0 : index
    %c0_165 = arith.constant 0 : index
    %c2_166 = arith.constant 2 : index
    %c7_167 = arith.constant 7 : index
    %135 = vector.load %arg3[%c0_164, %c0_165, %c2_166, %c7_167] : memref<1x3x28x28xf32, #tpu.memory_space<vmem>>, vector<1x3x16x16xf32>
    %cst_168 = arith.constant 0.00535517838 : f32
    %136 = vector.broadcast %cst_168 : f32 to vector<1x3x16x16xf32>
    %137 = arith.mulf %136, %135 : vector<1x3x16x16xf32>
    %138 = arith.addf %134, %137 : vector<1x3x16x16xf32>
    %c0_169 = arith.constant 0 : index
    %c0_170 = arith.constant 0 : index
    %c2_171 = arith.constant 2 : index
    %c8_172 = arith.constant 8 : index
    %139 = vector.load %arg3[%c0_169, %c0_170, %c2_171, %c8_172] : memref<1x3x28x28xf32, #tpu.memory_space<vmem>>, vector<1x3x16x16xf32>
    %cst_173 = arith.constant 0.00569026405 : f32
    %140 = vector.broadcast %cst_173 : f32 to vector<1x3x16x16xf32>
    %141 = arith.mulf %140, %139 : vector<1x3x16x16xf32>
    %142 = arith.addf %138, %141 : vector<1x3x16x16xf32>
    %c0_174 = arith.constant 0 : index
    %c0_175 = arith.constant 0 : index
    %c2_176 = arith.constant 2 : index
    %c9_177 = arith.constant 9 : index
    %143 = vector.load %arg3[%c0_174, %c0_175, %c2_176, %c9_177] : memref<1x3x28x28xf32, #tpu.memory_space<vmem>>, vector<1x3x16x16xf32>
    %cst_178 = arith.constant 6.167070e-03 : f32
    %144 = vector.broadcast %cst_178 : f32 to vector<1x3x16x16xf32>
    %145 = arith.mulf %144, %143 : vector<1x3x16x16xf32>
    %146 = arith.addf %142, %145 : vector<1x3x16x16xf32>
    %c0_179 = arith.constant 0 : index
    %c0_180 = arith.constant 0 : index
    %c2_181 = arith.constant 2 : index
    %c10_182 = arith.constant 10 : index
    %147 = vector.load %arg3[%c0_179, %c0_180, %c2_181, %c10_182] : memref<1x3x28x28xf32, #tpu.memory_space<vmem>>, vector<1x3x16x16xf32>
    %cst_183 = arith.constant 0.00671234401 : f32
    %148 = vector.broadcast %cst_183 : f32 to vector<1x3x16x16xf32>
    %149 = arith.mulf %148, %147 : vector<1x3x16x16xf32>
    %150 = arith.addf %146, %149 : vector<1x3x16x16xf32>
    %c0_184 = arith.constant 0 : index
    %c0_185 = arith.constant 0 : index
    %c2_186 = arith.constant 2 : index
    %c11_187 = arith.constant 11 : index
    %151 = vector.load %arg3[%c0_184, %c0_185, %c2_186, %c11_187] : memref<1x3x28x28xf32, #tpu.memory_space<vmem>>, vector<1x3x16x16xf32>
    %cst_188 = arith.constant 0.00727098761 : f32
    %152 = vector.broadcast %cst_188 : f32 to vector<1x3x16x16xf32>
    %153 = arith.mulf %152, %151 : vector<1x3x16x16xf32>
    %154 = arith.addf %150, %153 : vector<1x3x16x16xf32>
    %c0_189 = arith.constant 0 : index
    %c0_190 = arith.constant 0 : index
    %c2_191 = arith.constant 2 : index
    %c12_192 = arith.constant 12 : index
    %155 = vector.load %arg3[%c0_189, %c0_190, %c2_191, %c12_192] : memref<1x3x28x28xf32, #tpu.memory_space<vmem>>, vector<1x3x16x16xf32>
    %cst_193 = arith.constant 0.00780775445 : f32
    %156 = vector.broadcast %cst_193 : f32 to vector<1x3x16x16xf32>
    %157 = arith.mulf %156, %155 : vector<1x3x16x16xf32>
    %158 = arith.addf %154, %157 : vector<1x3x16x16xf32>
    %c0_194 = arith.constant 0 : index
    %c0_195 = arith.constant 0 : index
    %c3_196 = arith.constant 3 : index
    %c0_197 = arith.constant 0 : index
    %159 = vector.load %arg3[%c0_194, %c0_195, %c3_196, %c0_197] : memref<1x3x28x28xf32, #tpu.memory_space<vmem>>, vector<1x3x16x16xf32>
    %cst_198 = arith.constant 0.00748170214 : f32
    %160 = vector.broadcast %cst_198 : f32 to vector<1x3x16x16xf32>
    %161 = arith.mulf %160, %159 : vector<1x3x16x16xf32>
    %162 = arith.addf %158, %161 : vector<1x3x16x16xf32>
    %c0_199 = arith.constant 0 : index
    %c0_200 = arith.constant 0 : index
    %c3_201 = arith.constant 3 : index
    %c1_202 = arith.constant 1 : index
    %163 = vector.load %arg3[%c0_199, %c0_200, %c3_201, %c1_202] : memref<1x3x28x28xf32, #tpu.memory_space<vmem>>, vector<1x3x16x16xf32>
    %cst_203 = arith.constant 0.00684830965 : f32
    %164 = vector.broadcast %cst_203 : f32 to vector<1x3x16x16xf32>
    %165 = arith.mulf %164, %163 : vector<1x3x16x16xf32>
    %166 = arith.addf %162, %165 : vector<1x3x16x16xf32>
    %c0_204 = arith.constant 0 : index
    %c0_205 = arith.constant 0 : index
    %c3_206 = arith.constant 3 : index
    %c2_207 = arith.constant 2 : index
    %167 = vector.load %arg3[%c0_204, %c0_205, %c3_206, %c2_207] : memref<1x3x28x28xf32, #tpu.memory_space<vmem>>, vector<1x3x16x16xf32>
    %cst_208 = arith.constant 6.167070e-03 : f32
    %168 = vector.broadcast %cst_208 : f32 to vector<1x3x16x16xf32>
    %169 = arith.mulf %168, %167 : vector<1x3x16x16xf32>
    %170 = arith.addf %166, %169 : vector<1x3x16x16xf32>
    %c0_209 = arith.constant 0 : index
    %c0_210 = arith.constant 0 : index
    %c3_211 = arith.constant 3 : index
    %c3_212 = arith.constant 3 : index
    %171 = vector.load %arg3[%c0_209, %c0_210, %c3_211, %c3_212] : memref<1x3x28x28xf32, #tpu.memory_space<vmem>>, vector<1x3x16x16xf32>
    %cst_213 = arith.constant 0.00547175622 : f32
    %172 = vector.broadcast %cst_213 : f32 to vector<1x3x16x16xf32>
    %173 = arith.mulf %172, %171 : vector<1x3x16x16xf32>
    %174 = arith.addf %170, %173 : vector<1x3x16x16xf32>
    %c0_214 = arith.constant 0 : index
    %c0_215 = arith.constant 0 : index
    %c3_216 = arith.constant 3 : index
    %c4_217 = arith.constant 4 : index
    %175 = vector.load %arg3[%c0_214, %c0_215, %c3_216, %c4_217] : memref<1x3x28x28xf32, #tpu.memory_space<vmem>>, vector<1x3x16x16xf32>
    %cst_218 = arith.constant 0.00482798554 : f32
    %176 = vector.broadcast %cst_218 : f32 to vector<1x3x16x16xf32>
    %177 = arith.mulf %176, %175 : vector<1x3x16x16xf32>
    %178 = arith.addf %174, %177 : vector<1x3x16x16xf32>
    %c0_219 = arith.constant 0 : index
    %c0_220 = arith.constant 0 : index
    %c3_221 = arith.constant 3 : index
    %c5_222 = arith.constant 5 : index
    %179 = vector.load %arg3[%c0_219, %c0_220, %c3_221, %c5_222] : memref<1x3x28x28xf32, #tpu.memory_space<vmem>>, vector<1x3x16x16xf32>
    %cst_223 = arith.constant 0.00434648385 : f32
    %180 = vector.broadcast %cst_223 : f32 to vector<1x3x16x16xf32>
    %181 = arith.mulf %180, %179 : vector<1x3x16x16xf32>
    %182 = arith.addf %178, %181 : vector<1x3x16x16xf32>
    %c0_224 = arith.constant 0 : index
    %c0_225 = arith.constant 0 : index
    %c3_226 = arith.constant 3 : index
    %c6_227 = arith.constant 6 : index
    %183 = vector.load %arg3[%c0_224, %c0_225, %c3_226, %c6_227] : memref<1x3x28x28xf32, #tpu.memory_space<vmem>>, vector<1x3x16x16xf32>
    %cst_228 = arith.constant 0.00416305568 : f32
    %184 = vector.broadcast %cst_228 : f32 to vector<1x3x16x16xf32>
    %185 = arith.mulf %184, %183 : vector<1x3x16x16xf32>
    %186 = arith.addf %182, %185 : vector<1x3x16x16xf32>
    %c0_229 = arith.constant 0 : index
    %c0_230 = arith.constant 0 : index
    %c3_231 = arith.constant 3 : index
    %c7_232 = arith.constant 7 : index
    %187 = vector.load %arg3[%c0_229, %c0_230, %c3_231, %c7_232] : memref<1x3x28x28xf32, #tpu.memory_space<vmem>>, vector<1x3x16x16xf32>
    %cst_233 = arith.constant 0.00434648385 : f32
    %188 = vector.broadcast %cst_233 : f32 to vector<1x3x16x16xf32>
    %189 = arith.mulf %188, %187 : vector<1x3x16x16xf32>
    %190 = arith.addf %186, %189 : vector<1x3x16x16xf32>
    %c0_234 = arith.constant 0 : index
    %c0_235 = arith.constant 0 : index
    %c3_236 = arith.constant 3 : index
    %c8_237 = arith.constant 8 : index
    %191 = vector.load %arg3[%c0_234, %c0_235, %c3_236, %c8_237] : memref<1x3x28x28xf32, #tpu.memory_space<vmem>>, vector<1x3x16x16xf32>
    %cst_238 = arith.constant 0.00482798554 : f32
    %192 = vector.broadcast %cst_238 : f32 to vector<1x3x16x16xf32>
    %193 = arith.mulf %192, %191 : vector<1x3x16x16xf32>
    %194 = arith.addf %190, %193 : vector<1x3x16x16xf32>
    %c0_239 = arith.constant 0 : index
    %c0_240 = arith.constant 0 : index
    %c3_241 = arith.constant 3 : index
    %c9_242 = arith.constant 9 : index
    %195 = vector.load %arg3[%c0_239, %c0_240, %c3_241, %c9_242] : memref<1x3x28x28xf32, #tpu.memory_space<vmem>>, vector<1x3x16x16xf32>
    %cst_243 = arith.constant 0.00547175622 : f32
    %196 = vector.broadcast %cst_243 : f32 to vector<1x3x16x16xf32>
    %197 = arith.mulf %196, %195 : vector<1x3x16x16xf32>
    %198 = arith.addf %194, %197 : vector<1x3x16x16xf32>
    %c0_244 = arith.constant 0 : index
    %c0_245 = arith.constant 0 : index
    %c3_246 = arith.constant 3 : index
    %c10_247 = arith.constant 10 : index
    %199 = vector.load %arg3[%c0_244, %c0_245, %c3_246, %c10_247] : memref<1x3x28x28xf32, #tpu.memory_space<vmem>>, vector<1x3x16x16xf32>
    %cst_248 = arith.constant 6.167070e-03 : f32
    %200 = vector.broadcast %cst_248 : f32 to vector<1x3x16x16xf32>
    %201 = arith.mulf %200, %199 : vector<1x3x16x16xf32>
    %202 = arith.addf %198, %201 : vector<1x3x16x16xf32>
    %c0_249 = arith.constant 0 : index
    %c0_250 = arith.constant 0 : index
    %c3_251 = arith.constant 3 : index
    %c11_252 = arith.constant 11 : index
    %203 = vector.load %arg3[%c0_249, %c0_250, %c3_251, %c11_252] : memref<1x3x28x28xf32, #tpu.memory_space<vmem>>, vector<1x3x16x16xf32>
    %cst_253 = arith.constant 0.00684830965 : f32
    %204 = vector.broadcast %cst_253 : f32 to vector<1x3x16x16xf32>
    %205 = arith.mulf %204, %203 : vector<1x3x16x16xf32>
    %206 = arith.addf %202, %205 : vector<1x3x16x16xf32>
    %c0_254 = arith.constant 0 : index
    %c0_255 = arith.constant 0 : index
    %c3_256 = arith.constant 3 : index
    %c12_257 = arith.constant 12 : index
    %207 = vector.load %arg3[%c0_254, %c0_255, %c3_256, %c12_257] : memref<1x3x28x28xf32, #tpu.memory_space<vmem>>, vector<1x3x16x16xf32>
    %cst_258 = arith.constant 0.00748170214 : f32
    %208 = vector.broadcast %cst_258 : f32 to vector<1x3x16x16xf32>
    %209 = arith.mulf %208, %207 : vector<1x3x16x16xf32>
    %210 = arith.addf %206, %209 : vector<1x3x16x16xf32>
    %c0_259 = arith.constant 0 : index
    %c0_260 = arith.constant 0 : index
    %c4_261 = arith.constant 4 : index
    %c0_262 = arith.constant 0 : index
    %211 = vector.load %arg3[%c0_259, %c0_260, %c4_261, %c0_262] : memref<1x3x28x28xf32, #tpu.memory_space<vmem>>, vector<1x3x16x16xf32>
    %cst_263 = arith.constant 0.00721509615 : f32
    %212 = vector.broadcast %cst_263 : f32 to vector<1x3x16x16xf32>
    %213 = arith.mulf %212, %211 : vector<1x3x16x16xf32>
    %214 = arith.addf %210, %213 : vector<1x3x16x16xf32>
    %c0_264 = arith.constant 0 : index
    %c0_265 = arith.constant 0 : index
    %c4_266 = arith.constant 4 : index
    %c1_267 = arith.constant 1 : index
    %215 = vector.load %arg3[%c0_264, %c0_265, %c4_266, %c1_267] : memref<1x3x28x28xf32, #tpu.memory_space<vmem>>, vector<1x3x16x16xf32>
    %cst_268 = arith.constant 0.0064930846 : f32
    %216 = vector.broadcast %cst_268 : f32 to vector<1x3x16x16xf32>
    %217 = arith.mulf %216, %215 : vector<1x3x16x16xf32>
    %218 = arith.addf %214, %217 : vector<1x3x16x16xf32>
    %c0_269 = arith.constant 0 : index
    %c0_270 = arith.constant 0 : index
    %c4_271 = arith.constant 4 : index
    %c2_272 = arith.constant 2 : index
    %219 = vector.load %arg3[%c0_269, %c0_270, %c4_271, %c2_272] : memref<1x3x28x28xf32, #tpu.memory_space<vmem>>, vector<1x3x16x16xf32>
    %cst_273 = arith.constant 0.00569026405 : f32
    %220 = vector.broadcast %cst_273 : f32 to vector<1x3x16x16xf32>
    %221 = arith.mulf %220, %219 : vector<1x3x16x16xf32>
    %222 = arith.addf %218, %221 : vector<1x3x16x16xf32>
    %c0_274 = arith.constant 0 : index
    %c0_275 = arith.constant 0 : index
    %c4_276 = arith.constant 4 : index
    %c3_277 = arith.constant 3 : index
    %223 = vector.load %arg3[%c0_274, %c0_275, %c4_276, %c3_277] : memref<1x3x28x28xf32, #tpu.memory_space<vmem>>, vector<1x3x16x16xf32>
    %cst_278 = arith.constant 0.00482798554 : f32
    %224 = vector.broadcast %cst_278 : f32 to vector<1x3x16x16xf32>
    %225 = arith.mulf %224, %223 : vector<1x3x16x16xf32>
    %226 = arith.addf %222, %225 : vector<1x3x16x16xf32>
    %c0_279 = arith.constant 0 : index
    %c0_280 = arith.constant 0 : index
    %c4_281 = arith.constant 4 : index
    %c4_282 = arith.constant 4 : index
    %227 = vector.load %arg3[%c0_279, %c0_280, %c4_281, %c4_282] : memref<1x3x28x28xf32, #tpu.memory_space<vmem>>, vector<1x3x16x16xf32>
    %cst_283 = arith.constant 0.00396484975 : f32
    %228 = vector.broadcast %cst_283 : f32 to vector<1x3x16x16xf32>
    %229 = arith.mulf %228, %227 : vector<1x3x16x16xf32>
    %230 = arith.addf %226, %229 : vector<1x3x16x16xf32>
    %c0_284 = arith.constant 0 : index
    %c0_285 = arith.constant 0 : index
    %c4_286 = arith.constant 4 : index
    %c5_287 = arith.constant 5 : index
    %231 = vector.load %arg3[%c0_284, %c0_285, %c4_286, %c5_287] : memref<1x3x28x28xf32, #tpu.memory_space<vmem>>, vector<1x3x16x16xf32>
    %cst_288 = arith.constant 3.245830e-03 : f32
    %232 = vector.broadcast %cst_288 : f32 to vector<1x3x16x16xf32>
    %233 = arith.mulf %232, %231 : vector<1x3x16x16xf32>
    %234 = arith.addf %230, %233 : vector<1x3x16x16xf32>
    %c0_289 = arith.constant 0 : index
    %c0_290 = arith.constant 0 : index
    %c4_291 = arith.constant 4 : index
    %c6_292 = arith.constant 6 : index
    %235 = vector.load %arg3[%c0_289, %c0_290, %c4_291, %c6_292] : memref<1x3x28x28xf32, #tpu.memory_space<vmem>>, vector<1x3x16x16xf32>
    %cst_293 = arith.constant 0.00294382544 : f32
    %236 = vector.broadcast %cst_293 : f32 to vector<1x3x16x16xf32>
    %237 = arith.mulf %236, %235 : vector<1x3x16x16xf32>
    %238 = arith.addf %234, %237 : vector<1x3x16x16xf32>
    %c0_294 = arith.constant 0 : index
    %c0_295 = arith.constant 0 : index
    %c4_296 = arith.constant 4 : index
    %c7_297 = arith.constant 7 : index
    %239 = vector.load %arg3[%c0_294, %c0_295, %c4_296, %c7_297] : memref<1x3x28x28xf32, #tpu.memory_space<vmem>>, vector<1x3x16x16xf32>
    %cst_298 = arith.constant 3.245830e-03 : f32
    %240 = vector.broadcast %cst_298 : f32 to vector<1x3x16x16xf32>
    %241 = arith.mulf %240, %239 : vector<1x3x16x16xf32>
    %242 = arith.addf %238, %241 : vector<1x3x16x16xf32>
    %c0_299 = arith.constant 0 : index
    %c0_300 = arith.constant 0 : index
    %c4_301 = arith.constant 4 : index
    %c8_302 = arith.constant 8 : index
    %243 = vector.load %arg3[%c0_299, %c0_300, %c4_301, %c8_302] : memref<1x3x28x28xf32, #tpu.memory_space<vmem>>, vector<1x3x16x16xf32>
    %cst_303 = arith.constant 0.00396484975 : f32
    %244 = vector.broadcast %cst_303 : f32 to vector<1x3x16x16xf32>
    %245 = arith.mulf %244, %243 : vector<1x3x16x16xf32>
    %246 = arith.addf %242, %245 : vector<1x3x16x16xf32>
    %c0_304 = arith.constant 0 : index
    %c0_305 = arith.constant 0 : index
    %c4_306 = arith.constant 4 : index
    %c9_307 = arith.constant 9 : index
    %247 = vector.load %arg3[%c0_304, %c0_305, %c4_306, %c9_307] : memref<1x3x28x28xf32, #tpu.memory_space<vmem>>, vector<1x3x16x16xf32>
    %cst_308 = arith.constant 0.00482798554 : f32
    %248 = vector.broadcast %cst_308 : f32 to vector<1x3x16x16xf32>
    %249 = arith.mulf %248, %247 : vector<1x3x16x16xf32>
    %250 = arith.addf %246, %249 : vector<1x3x16x16xf32>
    %c0_309 = arith.constant 0 : index
    %c0_310 = arith.constant 0 : index
    %c4_311 = arith.constant 4 : index
    %c10_312 = arith.constant 10 : index
    %251 = vector.load %arg3[%c0_309, %c0_310, %c4_311, %c10_312] : memref<1x3x28x28xf32, #tpu.memory_space<vmem>>, vector<1x3x16x16xf32>
    %cst_313 = arith.constant 0.00569026405 : f32
    %252 = vector.broadcast %cst_313 : f32 to vector<1x3x16x16xf32>
    %253 = arith.mulf %252, %251 : vector<1x3x16x16xf32>
    %254 = arith.addf %250, %253 : vector<1x3x16x16xf32>
    %c0_314 = arith.constant 0 : index
    %c0_315 = arith.constant 0 : index
    %c4_316 = arith.constant 4 : index
    %c11_317 = arith.constant 11 : index
    %255 = vector.load %arg3[%c0_314, %c0_315, %c4_316, %c11_317] : memref<1x3x28x28xf32, #tpu.memory_space<vmem>>, vector<1x3x16x16xf32>
    %cst_318 = arith.constant 0.0064930846 : f32
    %256 = vector.broadcast %cst_318 : f32 to vector<1x3x16x16xf32>
    %257 = arith.mulf %256, %255 : vector<1x3x16x16xf32>
    %258 = arith.addf %254, %257 : vector<1x3x16x16xf32>
    %c0_319 = arith.constant 0 : index
    %c0_320 = arith.constant 0 : index
    %c4_321 = arith.constant 4 : index
    %c12_322 = arith.constant 12 : index
    %259 = vector.load %arg3[%c0_319, %c0_320, %c4_321, %c12_322] : memref<1x3x28x28xf32, #tpu.memory_space<vmem>>, vector<1x3x16x16xf32>
    %cst_323 = arith.constant 0.00721509615 : f32
    %260 = vector.broadcast %cst_323 : f32 to vector<1x3x16x16xf32>
    %261 = arith.mulf %260, %259 : vector<1x3x16x16xf32>
    %262 = arith.addf %258, %261 : vector<1x3x16x16xf32>
    %c0_324 = arith.constant 0 : index
    %c0_325 = arith.constant 0 : index
    %c5_326 = arith.constant 5 : index
    %c0_327 = arith.constant 0 : index
    %263 = vector.load %arg3[%c0_324, %c0_325, %c5_326, %c0_327] : memref<1x3x28x28xf32, #tpu.memory_space<vmem>>, vector<1x3x16x16xf32>
    %cst_328 = arith.constant 0.00703883357 : f32
    %264 = vector.broadcast %cst_328 : f32 to vector<1x3x16x16xf32>
    %265 = arith.mulf %264, %263 : vector<1x3x16x16xf32>
    %266 = arith.addf %262, %265 : vector<1x3x16x16xf32>
    %c0_329 = arith.constant 0 : index
    %c0_330 = arith.constant 0 : index
    %c5_331 = arith.constant 5 : index
    %c1_332 = arith.constant 1 : index
    %267 = vector.load %arg3[%c0_329, %c0_330, %c5_331, %c1_332] : memref<1x3x28x28xf32, #tpu.memory_space<vmem>>, vector<1x3x16x16xf32>
    %cst_333 = arith.constant 0.00625261199 : f32
    %268 = vector.broadcast %cst_333 : f32 to vector<1x3x16x16xf32>
    %269 = arith.mulf %268, %267 : vector<1x3x16x16xf32>
    %270 = arith.addf %266, %269 : vector<1x3x16x16xf32>
    %c0_334 = arith.constant 0 : index
    %c0_335 = arith.constant 0 : index
    %c5_336 = arith.constant 5 : index
    %c2_337 = arith.constant 2 : index
    %271 = vector.load %arg3[%c0_334, %c0_335, %c5_336, %c2_337] : memref<1x3x28x28xf32, #tpu.memory_space<vmem>>, vector<1x3x16x16xf32>
    %cst_338 = arith.constant 0.00535517838 : f32
    %272 = vector.broadcast %cst_338 : f32 to vector<1x3x16x16xf32>
    %273 = arith.mulf %272, %271 : vector<1x3x16x16xf32>
    %274 = arith.addf %270, %273 : vector<1x3x16x16xf32>
    %c0_339 = arith.constant 0 : index
    %c0_340 = arith.constant 0 : index
    %c5_341 = arith.constant 5 : index
    %c3_342 = arith.constant 3 : index
    %275 = vector.load %arg3[%c0_339, %c0_340, %c5_341, %c3_342] : memref<1x3x28x28xf32, #tpu.memory_space<vmem>>, vector<1x3x16x16xf32>
    %cst_343 = arith.constant 0.00434648385 : f32
    %276 = vector.broadcast %cst_343 : f32 to vector<1x3x16x16xf32>
    %277 = arith.mulf %276, %275 : vector<1x3x16x16xf32>
    %278 = arith.addf %274, %277 : vector<1x3x16x16xf32>
    %c0_344 = arith.constant 0 : index
    %c0_345 = arith.constant 0 : index
    %c5_346 = arith.constant 5 : index
    %c4_347 = arith.constant 4 : index
    %279 = vector.load %arg3[%c0_344, %c0_345, %c5_346, %c4_347] : memref<1x3x28x28xf32, #tpu.memory_space<vmem>>, vector<1x3x16x16xf32>
    %cst_348 = arith.constant 3.245830e-03 : f32
    %280 = vector.broadcast %cst_348 : f32 to vector<1x3x16x16xf32>
    %281 = arith.mulf %280, %279 : vector<1x3x16x16xf32>
    %282 = arith.addf %278, %281 : vector<1x3x16x16xf32>
    %c0_349 = arith.constant 0 : index
    %c0_350 = arith.constant 0 : index
    %c5_351 = arith.constant 5 : index
    %c5_352 = arith.constant 5 : index
    %283 = vector.load %arg3[%c0_349, %c0_350, %c5_351, %c5_352] : memref<1x3x28x28xf32, #tpu.memory_space<vmem>>, vector<1x3x16x16xf32>
    %cst_353 = arith.constant 0.00215470558 : f32
    %284 = vector.broadcast %cst_353 : f32 to vector<1x3x16x16xf32>
    %285 = arith.mulf %284, %283 : vector<1x3x16x16xf32>
    %286 = arith.addf %282, %285 : vector<1x3x16x16xf32>
    %c0_354 = arith.constant 0 : index
    %c0_355 = arith.constant 0 : index
    %c5_356 = arith.constant 5 : index
    %c6_357 = arith.constant 6 : index
    %287 = vector.load %arg3[%c0_354, %c0_355, %c5_356, %c6_357] : memref<1x3x28x28xf32, #tpu.memory_space<vmem>>, vector<1x3x16x16xf32>
    %cst_358 = arith.constant 0.00156125228 : f32
    %288 = vector.broadcast %cst_358 : f32 to vector<1x3x16x16xf32>
    %289 = arith.mulf %288, %287 : vector<1x3x16x16xf32>
    %290 = arith.addf %286, %289 : vector<1x3x16x16xf32>
    %c0_359 = arith.constant 0 : index
    %c0_360 = arith.constant 0 : index
    %c5_361 = arith.constant 5 : index
    %c7_362 = arith.constant 7 : index
    %291 = vector.load %arg3[%c0_359, %c0_360, %c5_361, %c7_362] : memref<1x3x28x28xf32, #tpu.memory_space<vmem>>, vector<1x3x16x16xf32>
    %cst_363 = arith.constant 0.00215470558 : f32
    %292 = vector.broadcast %cst_363 : f32 to vector<1x3x16x16xf32>
    %293 = arith.mulf %292, %291 : vector<1x3x16x16xf32>
    %294 = arith.addf %290, %293 : vector<1x3x16x16xf32>
    %c0_364 = arith.constant 0 : index
    %c0_365 = arith.constant 0 : index
    %c5_366 = arith.constant 5 : index
    %c8_367 = arith.constant 8 : index
    %295 = vector.load %arg3[%c0_364, %c0_365, %c5_366, %c8_367] : memref<1x3x28x28xf32, #tpu.memory_space<vmem>>, vector<1x3x16x16xf32>
    %cst_368 = arith.constant 3.245830e-03 : f32
    %296 = vector.broadcast %cst_368 : f32 to vector<1x3x16x16xf32>
    %297 = arith.mulf %296, %295 : vector<1x3x16x16xf32>
    %298 = arith.addf %294, %297 : vector<1x3x16x16xf32>
    %c0_369 = arith.constant 0 : index
    %c0_370 = arith.constant 0 : index
    %c5_371 = arith.constant 5 : index
    %c9_372 = arith.constant 9 : index
    %299 = vector.load %arg3[%c0_369, %c0_370, %c5_371, %c9_372] : memref<1x3x28x28xf32, #tpu.memory_space<vmem>>, vector<1x3x16x16xf32>
    %cst_373 = arith.constant 0.00434648385 : f32
    %300 = vector.broadcast %cst_373 : f32 to vector<1x3x16x16xf32>
    %301 = arith.mulf %300, %299 : vector<1x3x16x16xf32>
    %302 = arith.addf %298, %301 : vector<1x3x16x16xf32>
    %c0_374 = arith.constant 0 : index
    %c0_375 = arith.constant 0 : index
    %c5_376 = arith.constant 5 : index
    %c10_377 = arith.constant 10 : index
    %303 = vector.load %arg3[%c0_374, %c0_375, %c5_376, %c10_377] : memref<1x3x28x28xf32, #tpu.memory_space<vmem>>, vector<1x3x16x16xf32>
    %cst_378 = arith.constant 0.00535517838 : f32
    %304 = vector.broadcast %cst_378 : f32 to vector<1x3x16x16xf32>
    %305 = arith.mulf %304, %303 : vector<1x3x16x16xf32>
    %306 = arith.addf %302, %305 : vector<1x3x16x16xf32>
    %c0_379 = arith.constant 0 : index
    %c0_380 = arith.constant 0 : index
    %c5_381 = arith.constant 5 : index
    %c11_382 = arith.constant 11 : index
    %307 = vector.load %arg3[%c0_379, %c0_380, %c5_381, %c11_382] : memref<1x3x28x28xf32, #tpu.memory_space<vmem>>, vector<1x3x16x16xf32>
    %cst_383 = arith.constant 0.00625261199 : f32
    %308 = vector.broadcast %cst_383 : f32 to vector<1x3x16x16xf32>
    %309 = arith.mulf %308, %307 : vector<1x3x16x16xf32>
    %310 = arith.addf %306, %309 : vector<1x3x16x16xf32>
    %c0_384 = arith.constant 0 : index
    %c0_385 = arith.constant 0 : index
    %c5_386 = arith.constant 5 : index
    %c12_387 = arith.constant 12 : index
    %311 = vector.load %arg3[%c0_384, %c0_385, %c5_386, %c12_387] : memref<1x3x28x28xf32, #tpu.memory_space<vmem>>, vector<1x3x16x16xf32>
    %cst_388 = arith.constant 0.00703883357 : f32
    %312 = vector.broadcast %cst_388 : f32 to vector<1x3x16x16xf32>
    %313 = arith.mulf %312, %311 : vector<1x3x16x16xf32>
    %314 = arith.addf %310, %313 : vector<1x3x16x16xf32>
    %c0_389 = arith.constant 0 : index
    %c0_390 = arith.constant 0 : index
    %c6_391 = arith.constant 6 : index
    %c0_392 = arith.constant 0 : index
    %315 = vector.load %arg3[%c0_389, %c0_390, %c6_391, %c0_392] : memref<1x3x28x28xf32, #tpu.memory_space<vmem>>, vector<1x3x16x16xf32>
    %cst_393 = arith.constant 0.00697700586 : f32
    %316 = vector.broadcast %cst_393 : f32 to vector<1x3x16x16xf32>
    %317 = arith.mulf %316, %315 : vector<1x3x16x16xf32>
    %318 = arith.addf %314, %317 : vector<1x3x16x16xf32>
    %c0_394 = arith.constant 0 : index
    %c0_395 = arith.constant 0 : index
    %c6_396 = arith.constant 6 : index
    %c1_397 = arith.constant 1 : index
    %319 = vector.load %arg3[%c0_394, %c0_395, %c6_396, %c1_397] : memref<1x3x28x28xf32, #tpu.memory_space<vmem>>, vector<1x3x16x16xf32>
    %cst_398 = arith.constant 6.167070e-03 : f32
    %320 = vector.broadcast %cst_398 : f32 to vector<1x3x16x16xf32>
    %321 = arith.mulf %320, %319 : vector<1x3x16x16xf32>
    %322 = arith.addf %318, %321 : vector<1x3x16x16xf32>
    %c0_399 = arith.constant 0 : index
    %c0_400 = arith.constant 0 : index
    %c6_401 = arith.constant 6 : index
    %c2_402 = arith.constant 2 : index
    %323 = vector.load %arg3[%c0_399, %c0_400, %c6_401, %c2_402] : memref<1x3x28x28xf32, #tpu.memory_space<vmem>>, vector<1x3x16x16xf32>
    %cst_403 = arith.constant 0.00523311086 : f32
    %324 = vector.broadcast %cst_403 : f32 to vector<1x3x16x16xf32>
    %325 = arith.mulf %324, %323 : vector<1x3x16x16xf32>
    %326 = arith.addf %322, %325 : vector<1x3x16x16xf32>
    %c0_404 = arith.constant 0 : index
    %c0_405 = arith.constant 0 : index
    %c6_406 = arith.constant 6 : index
    %c3_407 = arith.constant 3 : index
    %327 = vector.load %arg3[%c0_404, %c0_405, %c6_406, %c3_407] : memref<1x3x28x28xf32, #tpu.memory_space<vmem>>, vector<1x3x16x16xf32>
    %cst_408 = arith.constant 0.00416305568 : f32
    %328 = vector.broadcast %cst_408 : f32 to vector<1x3x16x16xf32>
    %329 = arith.mulf %328, %327 : vector<1x3x16x16xf32>
    %330 = arith.addf %326, %329 : vector<1x3x16x16xf32>
    %c0_409 = arith.constant 0 : index
    %c0_410 = arith.constant 0 : index
    %c6_411 = arith.constant 6 : index
    %c4_412 = arith.constant 4 : index
    %331 = vector.load %arg3[%c0_409, %c0_410, %c6_411, %c4_412] : memref<1x3x28x28xf32, #tpu.memory_space<vmem>>, vector<1x3x16x16xf32>
    %cst_413 = arith.constant 0.00294382544 : f32
    %332 = vector.broadcast %cst_413 : f32 to vector<1x3x16x16xf32>
    %333 = arith.mulf %332, %331 : vector<1x3x16x16xf32>
    %334 = arith.addf %330, %333 : vector<1x3x16x16xf32>
    %c0_414 = arith.constant 0 : index
    %c0_415 = arith.constant 0 : index
    %c6_416 = arith.constant 6 : index
    %c5_417 = arith.constant 5 : index
    %335 = vector.load %arg3[%c0_414, %c0_415, %c6_416, %c5_417] : memref<1x3x28x28xf32, #tpu.memory_space<vmem>>, vector<1x3x16x16xf32>
    %cst_418 = arith.constant 0.00156125228 : f32
    %336 = vector.broadcast %cst_418 : f32 to vector<1x3x16x16xf32>
    %337 = arith.mulf %336, %335 : vector<1x3x16x16xf32>
    %338 = arith.addf %334, %337 : vector<1x3x16x16xf32>
    %c0_419 = arith.constant 0 : index
    %c0_420 = arith.constant 0 : index
    %c6_421 = arith.constant 6 : index
    %c7_422 = arith.constant 7 : index
    %339 = vector.load %arg3[%c0_419, %c0_420, %c6_421, %c7_422] : memref<1x3x28x28xf32, #tpu.memory_space<vmem>>, vector<1x3x16x16xf32>
    %cst_423 = arith.constant 0.00156125228 : f32
    %340 = vector.broadcast %cst_423 : f32 to vector<1x3x16x16xf32>
    %341 = arith.mulf %340, %339 : vector<1x3x16x16xf32>
    %342 = arith.addf %338, %341 : vector<1x3x16x16xf32>
    %c0_424 = arith.constant 0 : index
    %c0_425 = arith.constant 0 : index
    %c6_426 = arith.constant 6 : index
    %c8_427 = arith.constant 8 : index
    %343 = vector.load %arg3[%c0_424, %c0_425, %c6_426, %c8_427] : memref<1x3x28x28xf32, #tpu.memory_space<vmem>>, vector<1x3x16x16xf32>
    %cst_428 = arith.constant 0.00294382544 : f32
    %344 = vector.broadcast %cst_428 : f32 to vector<1x3x16x16xf32>
    %345 = arith.mulf %344, %343 : vector<1x3x16x16xf32>
    %346 = arith.addf %342, %345 : vector<1x3x16x16xf32>
    %c0_429 = arith.constant 0 : index
    %c0_430 = arith.constant 0 : index
    %c6_431 = arith.constant 6 : index
    %c9_432 = arith.constant 9 : index
    %347 = vector.load %arg3[%c0_429, %c0_430, %c6_431, %c9_432] : memref<1x3x28x28xf32, #tpu.memory_space<vmem>>, vector<1x3x16x16xf32>
    %cst_433 = arith.constant 0.00416305568 : f32
    %348 = vector.broadcast %cst_433 : f32 to vector<1x3x16x16xf32>
    %349 = arith.mulf %348, %347 : vector<1x3x16x16xf32>
    %350 = arith.addf %346, %349 : vector<1x3x16x16xf32>
    %c0_434 = arith.constant 0 : index
    %c0_435 = arith.constant 0 : index
    %c6_436 = arith.constant 6 : index
    %c10_437 = arith.constant 10 : index
    %351 = vector.load %arg3[%c0_434, %c0_435, %c6_436, %c10_437] : memref<1x3x28x28xf32, #tpu.memory_space<vmem>>, vector<1x3x16x16xf32>
    %cst_438 = arith.constant 0.00523311086 : f32
    %352 = vector.broadcast %cst_438 : f32 to vector<1x3x16x16xf32>
    %353 = arith.mulf %352, %351 : vector<1x3x16x16xf32>
    %354 = arith.addf %350, %353 : vector<1x3x16x16xf32>
    %c0_439 = arith.constant 0 : index
    %c0_440 = arith.constant 0 : index
    %c6_441 = arith.constant 6 : index
    %c11_442 = arith.constant 11 : index
    %355 = vector.load %arg3[%c0_439, %c0_440, %c6_441, %c11_442] : memref<1x3x28x28xf32, #tpu.memory_space<vmem>>, vector<1x3x16x16xf32>
    %cst_443 = arith.constant 6.167070e-03 : f32
    %356 = vector.broadcast %cst_443 : f32 to vector<1x3x16x16xf32>
    %357 = arith.mulf %356, %355 : vector<1x3x16x16xf32>
    %358 = arith.addf %354, %357 : vector<1x3x16x16xf32>
    %c0_444 = arith.constant 0 : index
    %c0_445 = arith.constant 0 : index
    %c6_446 = arith.constant 6 : index
    %c12_447 = arith.constant 12 : index
    %359 = vector.load %arg3[%c0_444, %c0_445, %c6_446, %c12_447] : memref<1x3x28x28xf32, #tpu.memory_space<vmem>>, vector<1x3x16x16xf32>
    %cst_448 = arith.constant 0.00697700586 : f32
    %360 = vector.broadcast %cst_448 : f32 to vector<1x3x16x16xf32>
    %361 = arith.mulf %360, %359 : vector<1x3x16x16xf32>
    %362 = arith.addf %358, %361 : vector<1x3x16x16xf32>
    %c0_449 = arith.constant 0 : index
    %c0_450 = arith.constant 0 : index
    %c7_451 = arith.constant 7 : index
    %c0_452 = arith.constant 0 : index
    %363 = vector.load %arg3[%c0_449, %c0_450, %c7_451, %c0_452] : memref<1x3x28x28xf32, #tpu.memory_space<vmem>>, vector<1x3x16x16xf32>
    %cst_453 = arith.constant 0.00703883357 : f32
    %364 = vector.broadcast %cst_453 : f32 to vector<1x3x16x16xf32>
    %365 = arith.mulf %364, %363 : vector<1x3x16x16xf32>
    %366 = arith.addf %362, %365 : vector<1x3x16x16xf32>
    %c0_454 = arith.constant 0 : index
    %c0_455 = arith.constant 0 : index
    %c7_456 = arith.constant 7 : index
    %c1_457 = arith.constant 1 : index
    %367 = vector.load %arg3[%c0_454, %c0_455, %c7_456, %c1_457] : memref<1x3x28x28xf32, #tpu.memory_space<vmem>>, vector<1x3x16x16xf32>
    %cst_458 = arith.constant 0.00625261199 : f32
    %368 = vector.broadcast %cst_458 : f32 to vector<1x3x16x16xf32>
    %369 = arith.mulf %368, %367 : vector<1x3x16x16xf32>
    %370 = arith.addf %366, %369 : vector<1x3x16x16xf32>
    %c0_459 = arith.constant 0 : index
    %c0_460 = arith.constant 0 : index
    %c7_461 = arith.constant 7 : index
    %c2_462 = arith.constant 2 : index
    %371 = vector.load %arg3[%c0_459, %c0_460, %c7_461, %c2_462] : memref<1x3x28x28xf32, #tpu.memory_space<vmem>>, vector<1x3x16x16xf32>
    %cst_463 = arith.constant 0.00535517838 : f32
    %372 = vector.broadcast %cst_463 : f32 to vector<1x3x16x16xf32>
    %373 = arith.mulf %372, %371 : vector<1x3x16x16xf32>
    %374 = arith.addf %370, %373 : vector<1x3x16x16xf32>
    %c0_464 = arith.constant 0 : index
    %c0_465 = arith.constant 0 : index
    %c7_466 = arith.constant 7 : index
    %c3_467 = arith.constant 3 : index
    %375 = vector.load %arg3[%c0_464, %c0_465, %c7_466, %c3_467] : memref<1x3x28x28xf32, #tpu.memory_space<vmem>>, vector<1x3x16x16xf32>
    %cst_468 = arith.constant 0.00434648385 : f32
    %376 = vector.broadcast %cst_468 : f32 to vector<1x3x16x16xf32>
    %377 = arith.mulf %376, %375 : vector<1x3x16x16xf32>
    %378 = arith.addf %374, %377 : vector<1x3x16x16xf32>
    %c0_469 = arith.constant 0 : index
    %c0_470 = arith.constant 0 : index
    %c7_471 = arith.constant 7 : index
    %c4_472 = arith.constant 4 : index
    %379 = vector.load %arg3[%c0_469, %c0_470, %c7_471, %c4_472] : memref<1x3x28x28xf32, #tpu.memory_space<vmem>>, vector<1x3x16x16xf32>
    %cst_473 = arith.constant 3.245830e-03 : f32
    %380 = vector.broadcast %cst_473 : f32 to vector<1x3x16x16xf32>
    %381 = arith.mulf %380, %379 : vector<1x3x16x16xf32>
    %382 = arith.addf %378, %381 : vector<1x3x16x16xf32>
    %c0_474 = arith.constant 0 : index
    %c0_475 = arith.constant 0 : index
    %c7_476 = arith.constant 7 : index
    %c5_477 = arith.constant 5 : index
    %383 = vector.load %arg3[%c0_474, %c0_475, %c7_476, %c5_477] : memref<1x3x28x28xf32, #tpu.memory_space<vmem>>, vector<1x3x16x16xf32>
    %cst_478 = arith.constant 0.00215470558 : f32
    %384 = vector.broadcast %cst_478 : f32 to vector<1x3x16x16xf32>
    %385 = arith.mulf %384, %383 : vector<1x3x16x16xf32>
    %386 = arith.addf %382, %385 : vector<1x3x16x16xf32>
    %c0_479 = arith.constant 0 : index
    %c0_480 = arith.constant 0 : index
    %c7_481 = arith.constant 7 : index
    %c6_482 = arith.constant 6 : index
    %387 = vector.load %arg3[%c0_479, %c0_480, %c7_481, %c6_482] : memref<1x3x28x28xf32, #tpu.memory_space<vmem>>, vector<1x3x16x16xf32>
    %cst_483 = arith.constant 0.00156125228 : f32
    %388 = vector.broadcast %cst_483 : f32 to vector<1x3x16x16xf32>
    %389 = arith.mulf %388, %387 : vector<1x3x16x16xf32>
    %390 = arith.addf %386, %389 : vector<1x3x16x16xf32>
    %c0_484 = arith.constant 0 : index
    %c0_485 = arith.constant 0 : index
    %c7_486 = arith.constant 7 : index
    %c7_487 = arith.constant 7 : index
    %391 = vector.load %arg3[%c0_484, %c0_485, %c7_486, %c7_487] : memref<1x3x28x28xf32, #tpu.memory_space<vmem>>, vector<1x3x16x16xf32>
    %cst_488 = arith.constant 0.00215470558 : f32
    %392 = vector.broadcast %cst_488 : f32 to vector<1x3x16x16xf32>
    %393 = arith.mulf %392, %391 : vector<1x3x16x16xf32>
    %394 = arith.addf %390, %393 : vector<1x3x16x16xf32>
    %c0_489 = arith.constant 0 : index
    %c0_490 = arith.constant 0 : index
    %c7_491 = arith.constant 7 : index
    %c8_492 = arith.constant 8 : index
    %395 = vector.load %arg3[%c0_489, %c0_490, %c7_491, %c8_492] : memref<1x3x28x28xf32, #tpu.memory_space<vmem>>, vector<1x3x16x16xf32>
    %cst_493 = arith.constant 3.245830e-03 : f32
    %396 = vector.broadcast %cst_493 : f32 to vector<1x3x16x16xf32>
    %397 = arith.mulf %396, %395 : vector<1x3x16x16xf32>
    %398 = arith.addf %394, %397 : vector<1x3x16x16xf32>
    %c0_494 = arith.constant 0 : index
    %c0_495 = arith.constant 0 : index
    %c7_496 = arith.constant 7 : index
    %c9_497 = arith.constant 9 : index
    %399 = vector.load %arg3[%c0_494, %c0_495, %c7_496, %c9_497] : memref<1x3x28x28xf32, #tpu.memory_space<vmem>>, vector<1x3x16x16xf32>
    %cst_498 = arith.constant 0.00434648385 : f32
    %400 = vector.broadcast %cst_498 : f32 to vector<1x3x16x16xf32>
    %401 = arith.mulf %400, %399 : vector<1x3x16x16xf32>
    %402 = arith.addf %398, %401 : vector<1x3x16x16xf32>
    %c0_499 = arith.constant 0 : index
    %c0_500 = arith.constant 0 : index
    %c7_501 = arith.constant 7 : index
    %c10_502 = arith.constant 10 : index
    %403 = vector.load %arg3[%c0_499, %c0_500, %c7_501, %c10_502] : memref<1x3x28x28xf32, #tpu.memory_space<vmem>>, vector<1x3x16x16xf32>
    %cst_503 = arith.constant 0.00535517838 : f32
    %404 = vector.broadcast %cst_503 : f32 to vector<1x3x16x16xf32>
    %405 = arith.mulf %404, %403 : vector<1x3x16x16xf32>
    %406 = arith.addf %402, %405 : vector<1x3x16x16xf32>
    %c0_504 = arith.constant 0 : index
    %c0_505 = arith.constant 0 : index
    %c7_506 = arith.constant 7 : index
    %c11_507 = arith.constant 11 : index
    %407 = vector.load %arg3[%c0_504, %c0_505, %c7_506, %c11_507] : memref<1x3x28x28xf32, #tpu.memory_space<vmem>>, vector<1x3x16x16xf32>
    %cst_508 = arith.constant 0.00625261199 : f32
    %408 = vector.broadcast %cst_508 : f32 to vector<1x3x16x16xf32>
    %409 = arith.mulf %408, %407 : vector<1x3x16x16xf32>
    %410 = arith.addf %406, %409 : vector<1x3x16x16xf32>
    %c0_509 = arith.constant 0 : index
    %c0_510 = arith.constant 0 : index
    %c7_511 = arith.constant 7 : index
    %c12_512 = arith.constant 12 : index
    %411 = vector.load %arg3[%c0_509, %c0_510, %c7_511, %c12_512] : memref<1x3x28x28xf32, #tpu.memory_space<vmem>>, vector<1x3x16x16xf32>
    %cst_513 = arith.constant 0.00703883357 : f32
    %412 = vector.broadcast %cst_513 : f32 to vector<1x3x16x16xf32>
    %413 = arith.mulf %412, %411 : vector<1x3x16x16xf32>
    %414 = arith.addf %410, %413 : vector<1x3x16x16xf32>
    %c0_514 = arith.constant 0 : index
    %c0_515 = arith.constant 0 : index
    %c8_516 = arith.constant 8 : index
    %c0_517 = arith.constant 0 : index
    %415 = vector.load %arg3[%c0_514, %c0_515, %c8_516, %c0_517] : memref<1x3x28x28xf32, #tpu.memory_space<vmem>>, vector<1x3x16x16xf32>
    %cst_518 = arith.constant 0.00721509615 : f32
    %416 = vector.broadcast %cst_518 : f32 to vector<1x3x16x16xf32>
    %417 = arith.mulf %416, %415 : vector<1x3x16x16xf32>
    %418 = arith.addf %414, %417 : vector<1x3x16x16xf32>
    %c0_519 = arith.constant 0 : index
    %c0_520 = arith.constant 0 : index
    %c8_521 = arith.constant 8 : index
    %c1_522 = arith.constant 1 : index
    %419 = vector.load %arg3[%c0_519, %c0_520, %c8_521, %c1_522] : memref<1x3x28x28xf32, #tpu.memory_space<vmem>>, vector<1x3x16x16xf32>
    %cst_523 = arith.constant 0.0064930846 : f32
    %420 = vector.broadcast %cst_523 : f32 to vector<1x3x16x16xf32>
    %421 = arith.mulf %420, %419 : vector<1x3x16x16xf32>
    %422 = arith.addf %418, %421 : vector<1x3x16x16xf32>
    %c0_524 = arith.constant 0 : index
    %c0_525 = arith.constant 0 : index
    %c8_526 = arith.constant 8 : index
    %c2_527 = arith.constant 2 : index
    %423 = vector.load %arg3[%c0_524, %c0_525, %c8_526, %c2_527] : memref<1x3x28x28xf32, #tpu.memory_space<vmem>>, vector<1x3x16x16xf32>
    %cst_528 = arith.constant 0.00569026405 : f32
    %424 = vector.broadcast %cst_528 : f32 to vector<1x3x16x16xf32>
    %425 = arith.mulf %424, %423 : vector<1x3x16x16xf32>
    %426 = arith.addf %422, %425 : vector<1x3x16x16xf32>
    %c0_529 = arith.constant 0 : index
    %c0_530 = arith.constant 0 : index
    %c8_531 = arith.constant 8 : index
    %c3_532 = arith.constant 3 : index
    %427 = vector.load %arg3[%c0_529, %c0_530, %c8_531, %c3_532] : memref<1x3x28x28xf32, #tpu.memory_space<vmem>>, vector<1x3x16x16xf32>
    %cst_533 = arith.constant 0.00482798554 : f32
    %428 = vector.broadcast %cst_533 : f32 to vector<1x3x16x16xf32>
    %429 = arith.mulf %428, %427 : vector<1x3x16x16xf32>
    %430 = arith.addf %426, %429 : vector<1x3x16x16xf32>
    %c0_534 = arith.constant 0 : index
    %c0_535 = arith.constant 0 : index
    %c8_536 = arith.constant 8 : index
    %c4_537 = arith.constant 4 : index
    %431 = vector.load %arg3[%c0_534, %c0_535, %c8_536, %c4_537] : memref<1x3x28x28xf32, #tpu.memory_space<vmem>>, vector<1x3x16x16xf32>
    %cst_538 = arith.constant 0.00396484975 : f32
    %432 = vector.broadcast %cst_538 : f32 to vector<1x3x16x16xf32>
    %433 = arith.mulf %432, %431 : vector<1x3x16x16xf32>
    %434 = arith.addf %430, %433 : vector<1x3x16x16xf32>
    %c0_539 = arith.constant 0 : index
    %c0_540 = arith.constant 0 : index
    %c8_541 = arith.constant 8 : index
    %c5_542 = arith.constant 5 : index
    %435 = vector.load %arg3[%c0_539, %c0_540, %c8_541, %c5_542] : memref<1x3x28x28xf32, #tpu.memory_space<vmem>>, vector<1x3x16x16xf32>
    %cst_543 = arith.constant 3.245830e-03 : f32
    %436 = vector.broadcast %cst_543 : f32 to vector<1x3x16x16xf32>
    %437 = arith.mulf %436, %435 : vector<1x3x16x16xf32>
    %438 = arith.addf %434, %437 : vector<1x3x16x16xf32>
    %c0_544 = arith.constant 0 : index
    %c0_545 = arith.constant 0 : index
    %c8_546 = arith.constant 8 : index
    %c6_547 = arith.constant 6 : index
    %439 = vector.load %arg3[%c0_544, %c0_545, %c8_546, %c6_547] : memref<1x3x28x28xf32, #tpu.memory_space<vmem>>, vector<1x3x16x16xf32>
    %cst_548 = arith.constant 0.00294382544 : f32
    %440 = vector.broadcast %cst_548 : f32 to vector<1x3x16x16xf32>
    %441 = arith.mulf %440, %439 : vector<1x3x16x16xf32>
    %442 = arith.addf %438, %441 : vector<1x3x16x16xf32>
    %c0_549 = arith.constant 0 : index
    %c0_550 = arith.constant 0 : index
    %c8_551 = arith.constant 8 : index
    %c7_552 = arith.constant 7 : index
    %443 = vector.load %arg3[%c0_549, %c0_550, %c8_551, %c7_552] : memref<1x3x28x28xf32, #tpu.memory_space<vmem>>, vector<1x3x16x16xf32>
    %cst_553 = arith.constant 3.245830e-03 : f32
    %444 = vector.broadcast %cst_553 : f32 to vector<1x3x16x16xf32>
    %445 = arith.mulf %444, %443 : vector<1x3x16x16xf32>
    %446 = arith.addf %442, %445 : vector<1x3x16x16xf32>
    %c0_554 = arith.constant 0 : index
    %c0_555 = arith.constant 0 : index
    %c8_556 = arith.constant 8 : index
    %c8_557 = arith.constant 8 : index
    %447 = vector.load %arg3[%c0_554, %c0_555, %c8_556, %c8_557] : memref<1x3x28x28xf32, #tpu.memory_space<vmem>>, vector<1x3x16x16xf32>
    %cst_558 = arith.constant 0.00396484975 : f32
    %448 = vector.broadcast %cst_558 : f32 to vector<1x3x16x16xf32>
    %449 = arith.mulf %448, %447 : vector<1x3x16x16xf32>
    %450 = arith.addf %446, %449 : vector<1x3x16x16xf32>
    %c0_559 = arith.constant 0 : index
    %c0_560 = arith.constant 0 : index
    %c8_561 = arith.constant 8 : index
    %c9_562 = arith.constant 9 : index
    %451 = vector.load %arg3[%c0_559, %c0_560, %c8_561, %c9_562] : memref<1x3x28x28xf32, #tpu.memory_space<vmem>>, vector<1x3x16x16xf32>
    %cst_563 = arith.constant 0.00482798554 : f32
    %452 = vector.broadcast %cst_563 : f32 to vector<1x3x16x16xf32>
    %453 = arith.mulf %452, %451 : vector<1x3x16x16xf32>
    %454 = arith.addf %450, %453 : vector<1x3x16x16xf32>
    %c0_564 = arith.constant 0 : index
    %c0_565 = arith.constant 0 : index
    %c8_566 = arith.constant 8 : index
    %c10_567 = arith.constant 10 : index
    %455 = vector.load %arg3[%c0_564, %c0_565, %c8_566, %c10_567] : memref<1x3x28x28xf32, #tpu.memory_space<vmem>>, vector<1x3x16x16xf32>
    %cst_568 = arith.constant 0.00569026405 : f32
    %456 = vector.broadcast %cst_568 : f32 to vector<1x3x16x16xf32>
    %457 = arith.mulf %456, %455 : vector<1x3x16x16xf32>
    %458 = arith.addf %454, %457 : vector<1x3x16x16xf32>
    %c0_569 = arith.constant 0 : index
    %c0_570 = arith.constant 0 : index
    %c8_571 = arith.constant 8 : index
    %c11_572 = arith.constant 11 : index
    %459 = vector.load %arg3[%c0_569, %c0_570, %c8_571, %c11_572] : memref<1x3x28x28xf32, #tpu.memory_space<vmem>>, vector<1x3x16x16xf32>
    %cst_573 = arith.constant 0.0064930846 : f32
    %460 = vector.broadcast %cst_573 : f32 to vector<1x3x16x16xf32>
    %461 = arith.mulf %460, %459 : vector<1x3x16x16xf32>
    %462 = arith.addf %458, %461 : vector<1x3x16x16xf32>
    %c0_574 = arith.constant 0 : index
    %c0_575 = arith.constant 0 : index
    %c8_576 = arith.constant 8 : index
    %c12_577 = arith.constant 12 : index
    %463 = vector.load %arg3[%c0_574, %c0_575, %c8_576, %c12_577] : memref<1x3x28x28xf32, #tpu.memory_space<vmem>>, vector<1x3x16x16xf32>
    %cst_578 = arith.constant 0.00721509615 : f32
    %464 = vector.broadcast %cst_578 : f32 to vector<1x3x16x16xf32>
    %465 = arith.mulf %464, %463 : vector<1x3x16x16xf32>
    %466 = arith.addf %462, %465 : vector<1x3x16x16xf32>
    %c0_579 = arith.constant 0 : index
    %c0_580 = arith.constant 0 : index
    %c9_581 = arith.constant 9 : index
    %c0_582 = arith.constant 0 : index
    %467 = vector.load %arg3[%c0_579, %c0_580, %c9_581, %c0_582] : memref<1x3x28x28xf32, #tpu.memory_space<vmem>>, vector<1x3x16x16xf32>
    %cst_583 = arith.constant 0.00748170214 : f32
    %468 = vector.broadcast %cst_583 : f32 to vector<1x3x16x16xf32>
    %469 = arith.mulf %468, %467 : vector<1x3x16x16xf32>
    %470 = arith.addf %466, %469 : vector<1x3x16x16xf32>
    %c0_584 = arith.constant 0 : index
    %c0_585 = arith.constant 0 : index
    %c9_586 = arith.constant 9 : index
    %c1_587 = arith.constant 1 : index
    %471 = vector.load %arg3[%c0_584, %c0_585, %c9_586, %c1_587] : memref<1x3x28x28xf32, #tpu.memory_space<vmem>>, vector<1x3x16x16xf32>
    %cst_588 = arith.constant 0.00684830965 : f32
    %472 = vector.broadcast %cst_588 : f32 to vector<1x3x16x16xf32>
    %473 = arith.mulf %472, %471 : vector<1x3x16x16xf32>
    %474 = arith.addf %470, %473 : vector<1x3x16x16xf32>
    %c0_589 = arith.constant 0 : index
    %c0_590 = arith.constant 0 : index
    %c9_591 = arith.constant 9 : index
    %c2_592 = arith.constant 2 : index
    %475 = vector.load %arg3[%c0_589, %c0_590, %c9_591, %c2_592] : memref<1x3x28x28xf32, #tpu.memory_space<vmem>>, vector<1x3x16x16xf32>
    %cst_593 = arith.constant 6.167070e-03 : f32
    %476 = vector.broadcast %cst_593 : f32 to vector<1x3x16x16xf32>
    %477 = arith.mulf %476, %475 : vector<1x3x16x16xf32>
    %478 = arith.addf %474, %477 : vector<1x3x16x16xf32>
    %c0_594 = arith.constant 0 : index
    %c0_595 = arith.constant 0 : index
    %c9_596 = arith.constant 9 : index
    %c3_597 = arith.constant 3 : index
    %479 = vector.load %arg3[%c0_594, %c0_595, %c9_596, %c3_597] : memref<1x3x28x28xf32, #tpu.memory_space<vmem>>, vector<1x3x16x16xf32>
    %cst_598 = arith.constant 0.00547175622 : f32
    %480 = vector.broadcast %cst_598 : f32 to vector<1x3x16x16xf32>
    %481 = arith.mulf %480, %479 : vector<1x3x16x16xf32>
    %482 = arith.addf %478, %481 : vector<1x3x16x16xf32>
    %c0_599 = arith.constant 0 : index
    %c0_600 = arith.constant 0 : index
    %c9_601 = arith.constant 9 : index
    %c4_602 = arith.constant 4 : index
    %483 = vector.load %arg3[%c0_599, %c0_600, %c9_601, %c4_602] : memref<1x3x28x28xf32, #tpu.memory_space<vmem>>, vector<1x3x16x16xf32>
    %cst_603 = arith.constant 0.00482798554 : f32
    %484 = vector.broadcast %cst_603 : f32 to vector<1x3x16x16xf32>
    %485 = arith.mulf %484, %483 : vector<1x3x16x16xf32>
    %486 = arith.addf %482, %485 : vector<1x3x16x16xf32>
    %c0_604 = arith.constant 0 : index
    %c0_605 = arith.constant 0 : index
    %c9_606 = arith.constant 9 : index
    %c5_607 = arith.constant 5 : index
    %487 = vector.load %arg3[%c0_604, %c0_605, %c9_606, %c5_607] : memref<1x3x28x28xf32, #tpu.memory_space<vmem>>, vector<1x3x16x16xf32>
    %cst_608 = arith.constant 0.00434648385 : f32
    %488 = vector.broadcast %cst_608 : f32 to vector<1x3x16x16xf32>
    %489 = arith.mulf %488, %487 : vector<1x3x16x16xf32>
    %490 = arith.addf %486, %489 : vector<1x3x16x16xf32>
    %c0_609 = arith.constant 0 : index
    %c0_610 = arith.constant 0 : index
    %c9_611 = arith.constant 9 : index
    %c6_612 = arith.constant 6 : index
    %491 = vector.load %arg3[%c0_609, %c0_610, %c9_611, %c6_612] : memref<1x3x28x28xf32, #tpu.memory_space<vmem>>, vector<1x3x16x16xf32>
    %cst_613 = arith.constant 0.00416305568 : f32
    %492 = vector.broadcast %cst_613 : f32 to vector<1x3x16x16xf32>
    %493 = arith.mulf %492, %491 : vector<1x3x16x16xf32>
    %494 = arith.addf %490, %493 : vector<1x3x16x16xf32>
    %c0_614 = arith.constant 0 : index
    %c0_615 = arith.constant 0 : index
    %c9_616 = arith.constant 9 : index
    %c7_617 = arith.constant 7 : index
    %495 = vector.load %arg3[%c0_614, %c0_615, %c9_616, %c7_617] : memref<1x3x28x28xf32, #tpu.memory_space<vmem>>, vector<1x3x16x16xf32>
    %cst_618 = arith.constant 0.00434648385 : f32
    %496 = vector.broadcast %cst_618 : f32 to vector<1x3x16x16xf32>
    %497 = arith.mulf %496, %495 : vector<1x3x16x16xf32>
    %498 = arith.addf %494, %497 : vector<1x3x16x16xf32>
    %c0_619 = arith.constant 0 : index
    %c0_620 = arith.constant 0 : index
    %c9_621 = arith.constant 9 : index
    %c8_622 = arith.constant 8 : index
    %499 = vector.load %arg3[%c0_619, %c0_620, %c9_621, %c8_622] : memref<1x3x28x28xf32, #tpu.memory_space<vmem>>, vector<1x3x16x16xf32>
    %cst_623 = arith.constant 0.00482798554 : f32
    %500 = vector.broadcast %cst_623 : f32 to vector<1x3x16x16xf32>
    %501 = arith.mulf %500, %499 : vector<1x3x16x16xf32>
    %502 = arith.addf %498, %501 : vector<1x3x16x16xf32>
    %c0_624 = arith.constant 0 : index
    %c0_625 = arith.constant 0 : index
    %c9_626 = arith.constant 9 : index
    %c9_627 = arith.constant 9 : index
    %503 = vector.load %arg3[%c0_624, %c0_625, %c9_626, %c9_627] : memref<1x3x28x28xf32, #tpu.memory_space<vmem>>, vector<1x3x16x16xf32>
    %cst_628 = arith.constant 0.00547175622 : f32
    %504 = vector.broadcast %cst_628 : f32 to vector<1x3x16x16xf32>
    %505 = arith.mulf %504, %503 : vector<1x3x16x16xf32>
    %506 = arith.addf %502, %505 : vector<1x3x16x16xf32>
    %c0_629 = arith.constant 0 : index
    %c0_630 = arith.constant 0 : index
    %c9_631 = arith.constant 9 : index
    %c10_632 = arith.constant 10 : index
    %507 = vector.load %arg3[%c0_629, %c0_630, %c9_631, %c10_632] : memref<1x3x28x28xf32, #tpu.memory_space<vmem>>, vector<1x3x16x16xf32>
    %cst_633 = arith.constant 6.167070e-03 : f32
    %508 = vector.broadcast %cst_633 : f32 to vector<1x3x16x16xf32>
    %509 = arith.mulf %508, %507 : vector<1x3x16x16xf32>
    %510 = arith.addf %506, %509 : vector<1x3x16x16xf32>
    %c0_634 = arith.constant 0 : index
    %c0_635 = arith.constant 0 : index
    %c9_636 = arith.constant 9 : index
    %c11_637 = arith.constant 11 : index
    %511 = vector.load %arg3[%c0_634, %c0_635, %c9_636, %c11_637] : memref<1x3x28x28xf32, #tpu.memory_space<vmem>>, vector<1x3x16x16xf32>
    %cst_638 = arith.constant 0.00684830965 : f32
    %512 = vector.broadcast %cst_638 : f32 to vector<1x3x16x16xf32>
    %513 = arith.mulf %512, %511 : vector<1x3x16x16xf32>
    %514 = arith.addf %510, %513 : vector<1x3x16x16xf32>
    %c0_639 = arith.constant 0 : index
    %c0_640 = arith.constant 0 : index
    %c9_641 = arith.constant 9 : index
    %c12_642 = arith.constant 12 : index
    %515 = vector.load %arg3[%c0_639, %c0_640, %c9_641, %c12_642] : memref<1x3x28x28xf32, #tpu.memory_space<vmem>>, vector<1x3x16x16xf32>
    %cst_643 = arith.constant 0.00748170214 : f32
    %516 = vector.broadcast %cst_643 : f32 to vector<1x3x16x16xf32>
    %517 = arith.mulf %516, %515 : vector<1x3x16x16xf32>
    %518 = arith.addf %514, %517 : vector<1x3x16x16xf32>
    %c0_644 = arith.constant 0 : index
    %c0_645 = arith.constant 0 : index
    %c10_646 = arith.constant 10 : index
    %c0_647 = arith.constant 0 : index
    %519 = vector.load %arg3[%c0_644, %c0_645, %c10_646, %c0_647] : memref<1x3x28x28xf32, #tpu.memory_space<vmem>>, vector<1x3x16x16xf32>
    %cst_648 = arith.constant 0.00780775445 : f32
    %520 = vector.broadcast %cst_648 : f32 to vector<1x3x16x16xf32>
    %521 = arith.mulf %520, %519 : vector<1x3x16x16xf32>
    %522 = arith.addf %518, %521 : vector<1x3x16x16xf32>
    %c0_649 = arith.constant 0 : index
    %c0_650 = arith.constant 0 : index
    %c10_651 = arith.constant 10 : index
    %c1_652 = arith.constant 1 : index
    %523 = vector.load %arg3[%c0_649, %c0_650, %c10_651, %c1_652] : memref<1x3x28x28xf32, #tpu.memory_space<vmem>>, vector<1x3x16x16xf32>
    %cst_653 = arith.constant 0.00727098761 : f32
    %524 = vector.broadcast %cst_653 : f32 to vector<1x3x16x16xf32>
    %525 = arith.mulf %524, %523 : vector<1x3x16x16xf32>
    %526 = arith.addf %522, %525 : vector<1x3x16x16xf32>
    %c0_654 = arith.constant 0 : index
    %c0_655 = arith.constant 0 : index
    %c10_656 = arith.constant 10 : index
    %c2_657 = arith.constant 2 : index
    %527 = vector.load %arg3[%c0_654, %c0_655, %c10_656, %c2_657] : memref<1x3x28x28xf32, #tpu.memory_space<vmem>>, vector<1x3x16x16xf32>
    %cst_658 = arith.constant 0.00671234401 : f32
    %528 = vector.broadcast %cst_658 : f32 to vector<1x3x16x16xf32>
    %529 = arith.mulf %528, %527 : vector<1x3x16x16xf32>
    %530 = arith.addf %526, %529 : vector<1x3x16x16xf32>
    %c0_659 = arith.constant 0 : index
    %c0_660 = arith.constant 0 : index
    %c10_661 = arith.constant 10 : index
    %c3_662 = arith.constant 3 : index
    %531 = vector.load %arg3[%c0_659, %c0_660, %c10_661, %c3_662] : memref<1x3x28x28xf32, #tpu.memory_space<vmem>>, vector<1x3x16x16xf32>
    %cst_663 = arith.constant 6.167070e-03 : f32
    %532 = vector.broadcast %cst_663 : f32 to vector<1x3x16x16xf32>
    %533 = arith.mulf %532, %531 : vector<1x3x16x16xf32>
    %534 = arith.addf %530, %533 : vector<1x3x16x16xf32>
    %c0_664 = arith.constant 0 : index
    %c0_665 = arith.constant 0 : index
    %c10_666 = arith.constant 10 : index
    %c4_667 = arith.constant 4 : index
    %535 = vector.load %arg3[%c0_664, %c0_665, %c10_666, %c4_667] : memref<1x3x28x28xf32, #tpu.memory_space<vmem>>, vector<1x3x16x16xf32>
    %cst_668 = arith.constant 0.00569026405 : f32
    %536 = vector.broadcast %cst_668 : f32 to vector<1x3x16x16xf32>
    %537 = arith.mulf %536, %535 : vector<1x3x16x16xf32>
    %538 = arith.addf %534, %537 : vector<1x3x16x16xf32>
    %c0_669 = arith.constant 0 : index
    %c0_670 = arith.constant 0 : index
    %c10_671 = arith.constant 10 : index
    %c5_672 = arith.constant 5 : index
    %539 = vector.load %arg3[%c0_669, %c0_670, %c10_671, %c5_672] : memref<1x3x28x28xf32, #tpu.memory_space<vmem>>, vector<1x3x16x16xf32>
    %cst_673 = arith.constant 0.00535517838 : f32
    %540 = vector.broadcast %cst_673 : f32 to vector<1x3x16x16xf32>
    %541 = arith.mulf %540, %539 : vector<1x3x16x16xf32>
    %542 = arith.addf %538, %541 : vector<1x3x16x16xf32>
    %c0_674 = arith.constant 0 : index
    %c0_675 = arith.constant 0 : index
    %c10_676 = arith.constant 10 : index
    %c6_677 = arith.constant 6 : index
    %543 = vector.load %arg3[%c0_674, %c0_675, %c10_676, %c6_677] : memref<1x3x28x28xf32, #tpu.memory_space<vmem>>, vector<1x3x16x16xf32>
    %cst_678 = arith.constant 0.00523311086 : f32
    %544 = vector.broadcast %cst_678 : f32 to vector<1x3x16x16xf32>
    %545 = arith.mulf %544, %543 : vector<1x3x16x16xf32>
    %546 = arith.addf %542, %545 : vector<1x3x16x16xf32>
    %c0_679 = arith.constant 0 : index
    %c0_680 = arith.constant 0 : index
    %c10_681 = arith.constant 10 : index
    %c7_682 = arith.constant 7 : index
    %547 = vector.load %arg3[%c0_679, %c0_680, %c10_681, %c7_682] : memref<1x3x28x28xf32, #tpu.memory_space<vmem>>, vector<1x3x16x16xf32>
    %cst_683 = arith.constant 0.00535517838 : f32
    %548 = vector.broadcast %cst_683 : f32 to vector<1x3x16x16xf32>
    %549 = arith.mulf %548, %547 : vector<1x3x16x16xf32>
    %550 = arith.addf %546, %549 : vector<1x3x16x16xf32>
    %c0_684 = arith.constant 0 : index
    %c0_685 = arith.constant 0 : index
    %c10_686 = arith.constant 10 : index
    %c8_687 = arith.constant 8 : index
    %551 = vector.load %arg3[%c0_684, %c0_685, %c10_686, %c8_687] : memref<1x3x28x28xf32, #tpu.memory_space<vmem>>, vector<1x3x16x16xf32>
    %cst_688 = arith.constant 0.00569026405 : f32
    %552 = vector.broadcast %cst_688 : f32 to vector<1x3x16x16xf32>
    %553 = arith.mulf %552, %551 : vector<1x3x16x16xf32>
    %554 = arith.addf %550, %553 : vector<1x3x16x16xf32>
    %c0_689 = arith.constant 0 : index
    %c0_690 = arith.constant 0 : index
    %c10_691 = arith.constant 10 : index
    %c9_692 = arith.constant 9 : index
    %555 = vector.load %arg3[%c0_689, %c0_690, %c10_691, %c9_692] : memref<1x3x28x28xf32, #tpu.memory_space<vmem>>, vector<1x3x16x16xf32>
    %cst_693 = arith.constant 6.167070e-03 : f32
    %556 = vector.broadcast %cst_693 : f32 to vector<1x3x16x16xf32>
    %557 = arith.mulf %556, %555 : vector<1x3x16x16xf32>
    %558 = arith.addf %554, %557 : vector<1x3x16x16xf32>
    %c0_694 = arith.constant 0 : index
    %c0_695 = arith.constant 0 : index
    %c10_696 = arith.constant 10 : index
    %c10_697 = arith.constant 10 : index
    %559 = vector.load %arg3[%c0_694, %c0_695, %c10_696, %c10_697] : memref<1x3x28x28xf32, #tpu.memory_space<vmem>>, vector<1x3x16x16xf32>
    %cst_698 = arith.constant 0.00671234401 : f32
    %560 = vector.broadcast %cst_698 : f32 to vector<1x3x16x16xf32>
    %561 = arith.mulf %560, %559 : vector<1x3x16x16xf32>
    %562 = arith.addf %558, %561 : vector<1x3x16x16xf32>
    %c0_699 = arith.constant 0 : index
    %c0_700 = arith.constant 0 : index
    %c10_701 = arith.constant 10 : index
    %c11_702 = arith.constant 11 : index
    %563 = vector.load %arg3[%c0_699, %c0_700, %c10_701, %c11_702] : memref<1x3x28x28xf32, #tpu.memory_space<vmem>>, vector<1x3x16x16xf32>
    %cst_703 = arith.constant 0.00727098761 : f32
    %564 = vector.broadcast %cst_703 : f32 to vector<1x3x16x16xf32>
    %565 = arith.mulf %564, %563 : vector<1x3x16x16xf32>
    %566 = arith.addf %562, %565 : vector<1x3x16x16xf32>
    %c0_704 = arith.constant 0 : index
    %c0_705 = arith.constant 0 : index
    %c10_706 = arith.constant 10 : index
    %c12_707 = arith.constant 12 : index
    %567 = vector.load %arg3[%c0_704, %c0_705, %c10_706, %c12_707] : memref<1x3x28x28xf32, #tpu.memory_space<vmem>>, vector<1x3x16x16xf32>
    %cst_708 = arith.constant 0.00780775445 : f32
    %568 = vector.broadcast %cst_708 : f32 to vector<1x3x16x16xf32>
    %569 = arith.mulf %568, %567 : vector<1x3x16x16xf32>
    %570 = arith.addf %566, %569 : vector<1x3x16x16xf32>
    %c0_709 = arith.constant 0 : index
    %c0_710 = arith.constant 0 : index
    %c11_711 = arith.constant 11 : index
    %c0_712 = arith.constant 0 : index
    %571 = vector.load %arg3[%c0_709, %c0_710, %c11_711, %c0_712] : memref<1x3x28x28xf32, #tpu.memory_space<vmem>>, vector<1x3x16x16xf32>
    %cst_713 = arith.constant 0.00816312712 : f32
    %572 = vector.broadcast %cst_713 : f32 to vector<1x3x16x16xf32>
    %573 = arith.mulf %572, %571 : vector<1x3x16x16xf32>
    %574 = arith.addf %570, %573 : vector<1x3x16x16xf32>
    %c0_714 = arith.constant 0 : index
    %c0_715 = arith.constant 0 : index
    %c11_716 = arith.constant 11 : index
    %c1_717 = arith.constant 1 : index
    %575 = vector.load %arg3[%c0_714, %c0_715, %c11_716, %c1_717] : memref<1x3x28x28xf32, #tpu.memory_space<vmem>>, vector<1x3x16x16xf32>
    %cst_718 = arith.constant 7.719570e-03 : f32
    %576 = vector.broadcast %cst_718 : f32 to vector<1x3x16x16xf32>
    %577 = arith.mulf %576, %575 : vector<1x3x16x16xf32>
    %578 = arith.addf %574, %577 : vector<1x3x16x16xf32>
    %c0_719 = arith.constant 0 : index
    %c0_720 = arith.constant 0 : index
    %c11_721 = arith.constant 11 : index
    %c2_722 = arith.constant 2 : index
    %579 = vector.load %arg3[%c0_719, %c0_720, %c11_721, %c2_722] : memref<1x3x28x28xf32, #tpu.memory_space<vmem>>, vector<1x3x16x16xf32>
    %cst_723 = arith.constant 0.00727098761 : f32
    %580 = vector.broadcast %cst_723 : f32 to vector<1x3x16x16xf32>
    %581 = arith.mulf %580, %579 : vector<1x3x16x16xf32>
    %582 = arith.addf %578, %581 : vector<1x3x16x16xf32>
    %c0_724 = arith.constant 0 : index
    %c0_725 = arith.constant 0 : index
    %c11_726 = arith.constant 11 : index
    %c3_727 = arith.constant 3 : index
    %583 = vector.load %arg3[%c0_724, %c0_725, %c11_726, %c3_727] : memref<1x3x28x28xf32, #tpu.memory_space<vmem>>, vector<1x3x16x16xf32>
    %cst_728 = arith.constant 0.00684830965 : f32
    %584 = vector.broadcast %cst_728 : f32 to vector<1x3x16x16xf32>
    %585 = arith.mulf %584, %583 : vector<1x3x16x16xf32>
    %586 = arith.addf %582, %585 : vector<1x3x16x16xf32>
    %c0_729 = arith.constant 0 : index
    %c0_730 = arith.constant 0 : index
    %c11_731 = arith.constant 11 : index
    %c4_732 = arith.constant 4 : index
    %587 = vector.load %arg3[%c0_729, %c0_730, %c11_731, %c4_732] : memref<1x3x28x28xf32, #tpu.memory_space<vmem>>, vector<1x3x16x16xf32>
    %cst_733 = arith.constant 0.0064930846 : f32
    %588 = vector.broadcast %cst_733 : f32 to vector<1x3x16x16xf32>
    %589 = arith.mulf %588, %587 : vector<1x3x16x16xf32>
    %590 = arith.addf %586, %589 : vector<1x3x16x16xf32>
    %c0_734 = arith.constant 0 : index
    %c0_735 = arith.constant 0 : index
    %c11_736 = arith.constant 11 : index
    %c5_737 = arith.constant 5 : index
    %591 = vector.load %arg3[%c0_734, %c0_735, %c11_736, %c5_737] : memref<1x3x28x28xf32, #tpu.memory_space<vmem>>, vector<1x3x16x16xf32>
    %cst_738 = arith.constant 0.00625261199 : f32
    %592 = vector.broadcast %cst_738 : f32 to vector<1x3x16x16xf32>
    %593 = arith.mulf %592, %591 : vector<1x3x16x16xf32>
    %594 = arith.addf %590, %593 : vector<1x3x16x16xf32>
    %c0_739 = arith.constant 0 : index
    %c0_740 = arith.constant 0 : index
    %c11_741 = arith.constant 11 : index
    %c6_742 = arith.constant 6 : index
    %595 = vector.load %arg3[%c0_739, %c0_740, %c11_741, %c6_742] : memref<1x3x28x28xf32, #tpu.memory_space<vmem>>, vector<1x3x16x16xf32>
    %cst_743 = arith.constant 6.167070e-03 : f32
    %596 = vector.broadcast %cst_743 : f32 to vector<1x3x16x16xf32>
    %597 = arith.mulf %596, %595 : vector<1x3x16x16xf32>
    %598 = arith.addf %594, %597 : vector<1x3x16x16xf32>
    %c0_744 = arith.constant 0 : index
    %c0_745 = arith.constant 0 : index
    %c11_746 = arith.constant 11 : index
    %c7_747 = arith.constant 7 : index
    %599 = vector.load %arg3[%c0_744, %c0_745, %c11_746, %c7_747] : memref<1x3x28x28xf32, #tpu.memory_space<vmem>>, vector<1x3x16x16xf32>
    %cst_748 = arith.constant 0.00625261199 : f32
    %600 = vector.broadcast %cst_748 : f32 to vector<1x3x16x16xf32>
    %601 = arith.mulf %600, %599 : vector<1x3x16x16xf32>
    %602 = arith.addf %598, %601 : vector<1x3x16x16xf32>
    %c0_749 = arith.constant 0 : index
    %c0_750 = arith.constant 0 : index
    %c11_751 = arith.constant 11 : index
    %c8_752 = arith.constant 8 : index
    %603 = vector.load %arg3[%c0_749, %c0_750, %c11_751, %c8_752] : memref<1x3x28x28xf32, #tpu.memory_space<vmem>>, vector<1x3x16x16xf32>
    %cst_753 = arith.constant 0.0064930846 : f32
    %604 = vector.broadcast %cst_753 : f32 to vector<1x3x16x16xf32>
    %605 = arith.mulf %604, %603 : vector<1x3x16x16xf32>
    %606 = arith.addf %602, %605 : vector<1x3x16x16xf32>
    %c0_754 = arith.constant 0 : index
    %c0_755 = arith.constant 0 : index
    %c11_756 = arith.constant 11 : index
    %c9_757 = arith.constant 9 : index
    %607 = vector.load %arg3[%c0_754, %c0_755, %c11_756, %c9_757] : memref<1x3x28x28xf32, #tpu.memory_space<vmem>>, vector<1x3x16x16xf32>
    %cst_758 = arith.constant 0.00684830965 : f32
    %608 = vector.broadcast %cst_758 : f32 to vector<1x3x16x16xf32>
    %609 = arith.mulf %608, %607 : vector<1x3x16x16xf32>
    %610 = arith.addf %606, %609 : vector<1x3x16x16xf32>
    %c0_759 = arith.constant 0 : index
    %c0_760 = arith.constant 0 : index
    %c11_761 = arith.constant 11 : index
    %c10_762 = arith.constant 10 : index
    %611 = vector.load %arg3[%c0_759, %c0_760, %c11_761, %c10_762] : memref<1x3x28x28xf32, #tpu.memory_space<vmem>>, vector<1x3x16x16xf32>
    %cst_763 = arith.constant 0.00727098761 : f32
    %612 = vector.broadcast %cst_763 : f32 to vector<1x3x16x16xf32>
    %613 = arith.mulf %612, %611 : vector<1x3x16x16xf32>
    %614 = arith.addf %610, %613 : vector<1x3x16x16xf32>
    %c0_764 = arith.constant 0 : index
    %c0_765 = arith.constant 0 : index
    %c11_766 = arith.constant 11 : index
    %c11_767 = arith.constant 11 : index
    %615 = vector.load %arg3[%c0_764, %c0_765, %c11_766, %c11_767] : memref<1x3x28x28xf32, #tpu.memory_space<vmem>>, vector<1x3x16x16xf32>
    %cst_768 = arith.constant 7.719570e-03 : f32
    %616 = vector.broadcast %cst_768 : f32 to vector<1x3x16x16xf32>
    %617 = arith.mulf %616, %615 : vector<1x3x16x16xf32>
    %618 = arith.addf %614, %617 : vector<1x3x16x16xf32>
    %c0_769 = arith.constant 0 : index
    %c0_770 = arith.constant 0 : index
    %c11_771 = arith.constant 11 : index
    %c12_772 = arith.constant 12 : index
    %619 = vector.load %arg3[%c0_769, %c0_770, %c11_771, %c12_772] : memref<1x3x28x28xf32, #tpu.memory_space<vmem>>, vector<1x3x16x16xf32>
    %cst_773 = arith.constant 0.00816312712 : f32
    %620 = vector.broadcast %cst_773 : f32 to vector<1x3x16x16xf32>
    %621 = arith.mulf %620, %619 : vector<1x3x16x16xf32>
    %622 = arith.addf %618, %621 : vector<1x3x16x16xf32>
    %c0_774 = arith.constant 0 : index
    %c0_775 = arith.constant 0 : index
    %c12_776 = arith.constant 12 : index
    %c0_777 = arith.constant 0 : index
    %623 = vector.load %arg3[%c0_774, %c0_775, %c12_776, %c0_777] : memref<1x3x28x28xf32, #tpu.memory_space<vmem>>, vector<1x3x16x16xf32>
    %cst_778 = arith.constant 0.00852281693 : f32
    %624 = vector.broadcast %cst_778 : f32 to vector<1x3x16x16xf32>
    %625 = arith.mulf %624, %623 : vector<1x3x16x16xf32>
    %626 = arith.addf %622, %625 : vector<1x3x16x16xf32>
    %c0_779 = arith.constant 0 : index
    %c0_780 = arith.constant 0 : index
    %c12_781 = arith.constant 12 : index
    %c1_782 = arith.constant 1 : index
    %627 = vector.load %arg3[%c0_779, %c0_780, %c12_781, %c1_782] : memref<1x3x28x28xf32, #tpu.memory_space<vmem>>, vector<1x3x16x16xf32>
    %cst_783 = arith.constant 0.00816312712 : f32
    %628 = vector.broadcast %cst_783 : f32 to vector<1x3x16x16xf32>
    %629 = arith.mulf %628, %627 : vector<1x3x16x16xf32>
    %630 = arith.addf %626, %629 : vector<1x3x16x16xf32>
    %c0_784 = arith.constant 0 : index
    %c0_785 = arith.constant 0 : index
    %c12_786 = arith.constant 12 : index
    %c2_787 = arith.constant 2 : index
    %631 = vector.load %arg3[%c0_784, %c0_785, %c12_786, %c2_787] : memref<1x3x28x28xf32, #tpu.memory_space<vmem>>, vector<1x3x16x16xf32>
    %cst_788 = arith.constant 0.00780775445 : f32
    %632 = vector.broadcast %cst_788 : f32 to vector<1x3x16x16xf32>
    %633 = arith.mulf %632, %631 : vector<1x3x16x16xf32>
    %634 = arith.addf %630, %633 : vector<1x3x16x16xf32>
    %c0_789 = arith.constant 0 : index
    %c0_790 = arith.constant 0 : index
    %c12_791 = arith.constant 12 : index
    %c3_792 = arith.constant 3 : index
    %635 = vector.load %arg3[%c0_789, %c0_790, %c12_791, %c3_792] : memref<1x3x28x28xf32, #tpu.memory_space<vmem>>, vector<1x3x16x16xf32>
    %cst_793 = arith.constant 0.00748170214 : f32
    %636 = vector.broadcast %cst_793 : f32 to vector<1x3x16x16xf32>
    %637 = arith.mulf %636, %635 : vector<1x3x16x16xf32>
    %638 = arith.addf %634, %637 : vector<1x3x16x16xf32>
    %c0_794 = arith.constant 0 : index
    %c0_795 = arith.constant 0 : index
    %c12_796 = arith.constant 12 : index
    %c4_797 = arith.constant 4 : index
    %639 = vector.load %arg3[%c0_794, %c0_795, %c12_796, %c4_797] : memref<1x3x28x28xf32, #tpu.memory_space<vmem>>, vector<1x3x16x16xf32>
    %cst_798 = arith.constant 0.00721509615 : f32
    %640 = vector.broadcast %cst_798 : f32 to vector<1x3x16x16xf32>
    %641 = arith.mulf %640, %639 : vector<1x3x16x16xf32>
    %642 = arith.addf %638, %641 : vector<1x3x16x16xf32>
    %c0_799 = arith.constant 0 : index
    %c0_800 = arith.constant 0 : index
    %c12_801 = arith.constant 12 : index
    %c5_802 = arith.constant 5 : index
    %643 = vector.load %arg3[%c0_799, %c0_800, %c12_801, %c5_802] : memref<1x3x28x28xf32, #tpu.memory_space<vmem>>, vector<1x3x16x16xf32>
    %cst_803 = arith.constant 0.00703883357 : f32
    %644 = vector.broadcast %cst_803 : f32 to vector<1x3x16x16xf32>
    %645 = arith.mulf %644, %643 : vector<1x3x16x16xf32>
    %646 = arith.addf %642, %645 : vector<1x3x16x16xf32>
    %c0_804 = arith.constant 0 : index
    %c0_805 = arith.constant 0 : index
    %c12_806 = arith.constant 12 : index
    %c6_807 = arith.constant 6 : index
    %647 = vector.load %arg3[%c0_804, %c0_805, %c12_806, %c6_807] : memref<1x3x28x28xf32, #tpu.memory_space<vmem>>, vector<1x3x16x16xf32>
    %cst_808 = arith.constant 0.00697700586 : f32
    %648 = vector.broadcast %cst_808 : f32 to vector<1x3x16x16xf32>
    %649 = arith.mulf %648, %647 : vector<1x3x16x16xf32>
    %650 = arith.addf %646, %649 : vector<1x3x16x16xf32>
    %c0_809 = arith.constant 0 : index
    %c0_810 = arith.constant 0 : index
    %c12_811 = arith.constant 12 : index
    %c7_812 = arith.constant 7 : index
    %651 = vector.load %arg3[%c0_809, %c0_810, %c12_811, %c7_812] : memref<1x3x28x28xf32, #tpu.memory_space<vmem>>, vector<1x3x16x16xf32>
    %cst_813 = arith.constant 0.00703883357 : f32
    %652 = vector.broadcast %cst_813 : f32 to vector<1x3x16x16xf32>
    %653 = arith.mulf %652, %651 : vector<1x3x16x16xf32>
    %654 = arith.addf %650, %653 : vector<1x3x16x16xf32>
    %c0_814 = arith.constant 0 : index
    %c0_815 = arith.constant 0 : index
    %c12_816 = arith.constant 12 : index
    %c8_817 = arith.constant 8 : index
    %655 = vector.load %arg3[%c0_814, %c0_815, %c12_816, %c8_817] : memref<1x3x28x28xf32, #tpu.memory_space<vmem>>, vector<1x3x16x16xf32>
    %cst_818 = arith.constant 0.00721509615 : f32
    %656 = vector.broadcast %cst_818 : f32 to vector<1x3x16x16xf32>
    %657 = arith.mulf %656, %655 : vector<1x3x16x16xf32>
    %658 = arith.addf %654, %657 : vector<1x3x16x16xf32>
    %c0_819 = arith.constant 0 : index
    %c0_820 = arith.constant 0 : index
    %c12_821 = arith.constant 12 : index
    %c9_822 = arith.constant 9 : index
    %659 = vector.load %arg3[%c0_819, %c0_820, %c12_821, %c9_822] : memref<1x3x28x28xf32, #tpu.memory_space<vmem>>, vector<1x3x16x16xf32>
    %cst_823 = arith.constant 0.00748170214 : f32
    %660 = vector.broadcast %cst_823 : f32 to vector<1x3x16x16xf32>
    %661 = arith.mulf %660, %659 : vector<1x3x16x16xf32>
    %662 = arith.addf %658, %661 : vector<1x3x16x16xf32>
    %c0_824 = arith.constant 0 : index
    %c0_825 = arith.constant 0 : index
    %c12_826 = arith.constant 12 : index
    %c10_827 = arith.constant 10 : index
    %663 = vector.load %arg3[%c0_824, %c0_825, %c12_826, %c10_827] : memref<1x3x28x28xf32, #tpu.memory_space<vmem>>, vector<1x3x16x16xf32>
    %cst_828 = arith.constant 0.00780775445 : f32
    %664 = vector.broadcast %cst_828 : f32 to vector<1x3x16x16xf32>
    %665 = arith.mulf %664, %663 : vector<1x3x16x16xf32>
    %666 = arith.addf %662, %665 : vector<1x3x16x16xf32>
    %c0_829 = arith.constant 0 : index
    %c0_830 = arith.constant 0 : index
    %c12_831 = arith.constant 12 : index
    %c11_832 = arith.constant 11 : index
    %667 = vector.load %arg3[%c0_829, %c0_830, %c12_831, %c11_832] : memref<1x3x28x28xf32, #tpu.memory_space<vmem>>, vector<1x3x16x16xf32>
    %cst_833 = arith.constant 0.00816312712 : f32
    %668 = vector.broadcast %cst_833 : f32 to vector<1x3x16x16xf32>
    %669 = arith.mulf %668, %667 : vector<1x3x16x16xf32>
    %670 = arith.addf %666, %669 : vector<1x3x16x16xf32>
    %c0_834 = arith.constant 0 : index
    %c0_835 = arith.constant 0 : index
    %c12_836 = arith.constant 12 : index
    %c12_837 = arith.constant 12 : index
    %671 = vector.load %arg3[%c0_834, %c0_835, %c12_836, %c12_837] : memref<1x3x28x28xf32, #tpu.memory_space<vmem>>, vector<1x3x16x16xf32>
    %cst_838 = arith.constant 0.00852281693 : f32
    %672 = vector.broadcast %cst_838 : f32 to vector<1x3x16x16xf32>
    %673 = arith.mulf %672, %671 : vector<1x3x16x16xf32>
    %674 = arith.addf %670, %673 : vector<1x3x16x16xf32>
    %c0_839 = arith.constant 0 : index
    %c0_840 = arith.constant 0 : index
    %c0_841 = arith.constant 0 : index
    %c0_842 = arith.constant 0 : index
    %675 = vector.load %arg2[%c0_839, %c0_840, %c0_841, %c0_842] : memref<1x3x16x16xf32, #tpu.memory_space<vmem>>, vector<1x3x16x16xf32>
    tpu.vector_store %arg2[%c0_839, %c0_840, %c0_841, %c0_842], %674 {strides = array<i32>} : memref<1x3x16x16xf32, #tpu.memory_space<vmem>>, vector<1x3x16x16xf32>,
    return
  }
  func.func @transform_0(%arg0: i32) -> (i32, i32, i32, i32) {
    %c0_i32 = arith.constant 0 : i32
    %c0_i32_0 = arith.constant 0 : i32
    %c0_i32_1 = arith.constant 0 : i32
    %c0_i32_2 = arith.constant 0 : i32
    return %arg0, %c0_i32, %c0_i32_0, %c0_i32_1 : i32, i32, i32, i32
  }
  func.func @transform_1(%arg0: i32) -> (i32, i32, i32, i32) {
    %c0_i32 = arith.constant 0 : i32
    %c0_i32_0 = arith.constant 0 : i32
    %c0_i32_1 = arith.constant 0 : i32
    %c0_i32_2 = arith.constant 0 : i32
    return %arg0, %c0_i32, %c0_i32_0, %c0_i32_1 : i32, i32, i32, i32
  }
}

</mosaic_0001>

<bundles_post_ra>
// kernel: tpu_custom_call.1
= control target key start
LH: loop header
LB: loop body
LE: loop exit
PB: predicated region body
PF: predicated region fallthrough
CT: control target
= control target key end

     0   :  { %6 = vsyncpa [#allocation4], 0  ;;  %s10356_s0 = inlined_call_operand.hbm [shape: f32[2,3,16,16], index: 0, kind: input, shape index: {}]   ;;  %s10357_s1 = inlined_call_operand.hbm [shape: f32[2,3,16,16], index: 1, kind: output, shape index: {}]  }
   0x1   :  { %8 = vsyncpa [#allocation4 + $0x1], 0 }
   0x2   :  { %9 = vsyncpa [#allocation5], 0 }
   0x3   :  { %11 = vsyncpa [#allocation5 + $0x1], 0  ;;  %s5245_s6 = smov 0   ;;  %s5247_s7 = smov 0  }
   0x4   :  { %s5249_s8 = smov 0   ;;  %s5251_s9 = smov 0  }
   0x5 LB: > { %s5266_s10 = sadd.s32 4294967295, %s5213_s9   ;;  %s5029_s11 = sadd.s32 4294967294, %s5213_s9   ;;  %s5213_s9 = sphi %s5251_s9, %s11568_s9   ;;  %s5209_s8 = sphi %s5249_s8, %s11567_s8   ;;  %s5205_s7 = sphi %s5247_s7, %s11566_s7   ;;  %s5201_s6 = sphi %s5245_s6, %s11565_s6  }
   0x6   : > { %s5270_s12 = sadd.s32 1, %s5213_s9   ;;  %s24_s13 = sadd.s32 1, %s5209_s8 }
   0x7   : > { %s21_s14 = ssub.s32 %s5213_s9, %s5270_s12  ;;  %p31_p0 = scmp.ne.s32.totalorder %s5209_s8, %s5205_s7 }
   0x8   : > { %p22_p1 = scmp.eq.s32.totalorder %s21_s14, 0  ;;  %p32_p2 = scmp.eq.s32.totalorder %s5213_s9, 0 }
   0x9   : > { %p37_p3 = scmp.ne.s32.totalorder %s5205_s7, %s5201_s6  ;;  %p38_p4 = scmp.eq.s32.totalorder %s5266_s10, 0 }
   0xa   : > { %s5282_s15 = scalar_select %p22_p1, %s5209_s8, %s24_s13  }
   0xb   : > { %p33_p5 = por %p32_p2, %p31_p0  ;;  %p5284_p6 = por %p38_p4, %p37_p3 }
   0xc   : > { %p61_p7 = scmp.eq.s32.totalorder %s5266_s10, 1  ;;  %p67_p8 = scmp.eq.s32.totalorder %s5029_s11, 1 }
   0xd   : > { %p5053_p10 = scmp.lt.s32.totalorder %s5213_s9, 2  ;;  %s87_s19 = sand.u32 1, %s5209_s8  }
   0xe   : > { %p5291_p11 = por %p61_p7, %p31_p0  ;;  %p5295_p12 = por %p67_p8, %p37_p3 }
   0xf   : > { %s5038_s20 = smul.u32 768, %s5213_s9  ;;  %p5306_p13 = pnand %p5053_p10, %p33_p5 }
  0x10   : > { %s10609_s17 = scalar_select %p5291_p11, 1, 0 }
  0x11   : > { %s10610_s18 = scalar_select %p5295_p12, 1, 0 }
  0x12   : > { %s5037_s21 = smul.u32 48, %s87_s19  ;;  %s5304_s24 = scalar_lea.hbm %s10356_s0, %s5038_s20 }
  0x13   : > { %s5312_s28 = scalar_lea.sflag [#allocation4], %s87_s19  ;;  %s5117_s29 = scalar_lea.hbm %s5304_s24, 768 }
  0x14   : > { %s91_s26 = scalar_lea.vmem [#allocation3], %s5037_s21  ;;  %p5118_p0 = scmp.ne.s32.totalorder %s5304_s24, %s5117_s29 }
  0x15   : > { %s98_s27 = sshll.u32 %s91_s26, 4  ;;  %p5119_p1 = pneg %p5306_p13  ;;  %s5310_s27 = int_to_ptr.vmem [resolvable:$true] %s98_s27 }
  0x16   : > { %s5122_s3 = scalar_lea.hbm %s10356_s0, 1536  ;;  %p5123_p4 = scmp.lt.u32.totalorder %s5304_s24, %s10356_s0 }
  0x17   : > { %p5120_p2 = pnand %p5119_p1, %p5118_p0  ;;  %p5124_p5 = scmp.lt.u32.totalorder %s5122_s3, %s5117_s29 }
  0x18   : > { %p5126_p8 = scmp.lt.u32.totalorder %s5117_s29, %s5304_s24 }
  0x19   : > { %p5121_p3 = pneg %p5120_p2  ;;  %p5125_p7 = por %p5124_p5, %p5123_p4 }
  0x1b   : > { %p5127_p10 = por %p5126_p8, %p5125_p7 }
  0x1d   : > { %p5128_p9 = pnand %p5127_p10, %p5121_p3 }
  0x1f   : > { %5131 = shalt.err (!%p5128_p9)
}
  0x20   : > { %s5132_s11 = scalar_lea.vmem %s5310_s27, 768  ;;  %s5215_s13 = smov [#allocation3]  }
  0x21   : > { %p5133_p0 = scmp.ne.s32.totalorder %s5310_s27, %s5132_s11  ;;  %s5137_s14 = sshll.u32 %s5215_s13, 4  ;;  %s5138_s14 = int_to_ptr.vmem [resolvable:$false] %s5137_s14 }
  0x22   : > { %s5139_s19 = scalar_lea.vmem %s5138_s14, 1536  ;;  %p5140_p11 = scmp.lt.s32.totalorder %s5310_s27, %s5138_s14 }
  0x23   : > { %p5135_p2 = pnand %p5133_p0, %p5119_p1  ;;  %p5141_p4 = scmp.lt.s32.totalorder %s5139_s19, %s5132_s11 }
  0x25   : > { %p5136_p12 = pneg %p5135_p2  ;;  %p5142_p5 = por %p5141_p4, %p5140_p11 }
  0x27   : > { %p5143_p7 = pnand %p5142_p5, %p5136_p12 }
  0x29   : > { %5146 = shalt.err (!%p5143_p7)
}
  0x2a   : > { %s5216_s20 = smov 128   ;;  %s5217_s21 = smov 8  }
  0x2b   : > { %5048 = dma.hbm_to_vmem [thread:$0]  (!%p5306_p13), %s5304_s24, 768, %s5310_s27, %s5312_s28, %s5216_s20, %s5216_s20, %s5217_s21  }
  0x2c   : > { %p5033_p9 = scmp.ge.s32.totalorder %s5213_s9, 1  ;;  %p106_p1 = scmp.lt.s32.totalorder %s5213_s9, 3 }
  0x2e   : > { %p107_p3 = pnand %p5033_p9, %p106_p1 }
  0x30   : > { %110 = sbr.rel (%p107_p3) target bundleno = 2106 (0x83a), region = 24 }
  0x37   : > { %s5343_s22 = sand.u32 1, %s5205_s7  }
  0x38   : > { %s5039_s23 = smul.u32 48, %s5343_s22  ;;  %s113_s26 = scalar_lea.sflag [#allocation4], %s5343_s22 }
  0x3a   : > { %s116_s29 = scalar_lea.vmem [#allocation3], %s5039_s23 }
  0x3b   : > { %5192 = dma.done.wait (%p5284_p6), %s113_s26, 768  }
  0x3c   : > { %5194 = vsyncadd (%p5284_p6), %s113_s26, 4294966528  ;;  %vm135_vm0 = vcmask 228352   ;;  %v5218_v0 = vmov 0.0   ;;  %v151_v1 = vld [vmem:[%s116_s29 + $0x10] sm:$0xff]  ;;  %v149_v2 = vld [vmem:[%s116_s29] sm:$0xff]  ;;  %s5219_s24 = smov 6  }
  0x3d   : > { %141 = vst.msk [vmem:[#allocation2 + $0x20] sm:$0xff] %vm135_vm0, %v5218_v0  ;;  %142 = vst.msk [vmem:[#allocation2 + $0x28] sm:$0xff] %vm135_vm0, %v5218_v0  ;;  %165 = vrot.lane.b32.xlu1 %v151_v1, %s5219_s24  ;;  %161 = vrot.lane.b32.xlu0 %v149_v2, %s5219_s24  ;;  %v152_v3 = vld [vmem:[%s116_s29 + $0x18] sm:$0xff]  ;;  %v150_v4 = vld [vmem:[%s116_s29 + $0x8] sm:$0xff]  ;;  %vm179_vm1 = vcmask 179248   ;;  %vm139_vm2 = vcmask 224256  }
  0x3e   : > { %136 = vst.msk [vmem:[#allocation2] sm:$0xff] %vm135_vm0, %v5218_v0  ;;  %137 = vst.msk [vmem:[#allocation2 + $0x8] sm:$0xff] %vm135_vm0, %v5218_v0  ;;  %v153_v5 = vld [vmem:[%s116_s29 + $0x20] sm:$0xff]  ;;  %v154_v6 = vld [vmem:[%s116_s29 + $0x28] sm:$0xff]  ;;  %s5220_s16 = smov 127   ;;  %s5221_s25 = smov 126  }
  0x3f   : > { %138 = vst.msk [vmem:[#allocation2 + $0x10] sm:$0xff] %vm135_vm0, %v5218_v0  ;;  %143 = vst.msk [vmem:[#allocation2 + $0x30] sm:$0xff] %vm135_vm0, %v5218_v0  ;;  %s5222_s27 = smov 125   ;;  %s5223_s28 = smov 124   ;;  %vm4935_vm3 = vcmask 130048  }
  0x40   : > { %145 = vst.msk [vmem:[#allocation2 + $0x40] sm:$0xff] %vm135_vm0, %v5218_v0  ;;  %146 = vst.msk [vmem:[#allocation2 + $0x48] sm:$0xff] %vm135_vm0, %v5218_v0  ;;  %s5224_s30 = smov 123   ;;  %s5225_s2 = smov 122  }
  0x41   : > { %147 = vst.msk [vmem:[#allocation2 + $0x50] sm:$0xff] %vm135_vm0, %v5218_v0  ;;  %167 = vrot.lane.b32.xlu1 %v152_v3, %s5219_s24  ;;  %163 = vrot.lane.b32.xlu0 %v150_v4, %s5219_s24  ;;  %s5226_s3 = smov 121   ;;  %s5227_s4 = smov 120  }
  0x42   : > { %140 = vst.msk [vmem:[#allocation2 + $0x18] sm:$0xf] %vm139_vm2, %v5218_v0  ;;  %144 = vst.msk [vmem:[#allocation2 + $0x38] sm:$0xf] %vm139_vm2, %v5218_v0  ;;  %s5228_s5 = smov 119   ;;  %s5229_s11 = smov 118  }
  0x43   : > { %148 = vst.msk [vmem:[#allocation2 + $0x58] sm:$0xf] %vm139_vm2, %v5218_v0  ;;  %s5230_s13 = smov 117   ;;  %s5231_s14 = smov 116  }
  0x44   : > { %s134_s19 = scalar_lea.vmem [#allocation6], %s5039_s23  ;;  %s5040_s21 = smul.u32 768, %s5266_s10 }
  0x45   : > { %169 = vrot.lane.b32.xlu0 %v153_v5, %s5219_s24  ;;  %171 = vrot.lane.b32.xlu1 %v154_v6, %s5219_s24  ;;  %s4956_s20 = sshll.u32 %s134_s19, 4  ;;  %s4943_s10 = scalar_lea.sflag [#allocation5], %s5343_s22  ;;  %s10304_s20 = int_to_ptr.vmem [resolvable:$true] %s4956_s20 }
  0x46   : > { %s10311_s29 = scalar_lea.hbm %s10357_s1, %s5040_s21  ;;  %s5147_s24 = scalar_lea.vmem %s10304_s20, 768 }
  0x47   : > { %p5148_p6 = scmp.ne.s32.totalorder %s10304_s20, %s5147_s24  ;;  %p11562_p11 = scmp.ne.s32.totalorder %s10609_s17, 0 }
  0x49   : > { %p5149_p12 = pnand %p5148_p6, %p11562_p11 }
  0x4b   : > { %p5150_p13 = pneg %p5149_p12 }
  0xaf   : > { %v166_v7 = vpop.permute.xlu1 %165  ;;  %v162_v8 = vpop.permute.xlu0 %161 }
  0xb0   : > { %182 = vst.msk [vmem:[#allocation2 + $0x26] sm:$0xff] %vm179_vm1, %v166_v7  ;;  %180 = vst.msk [vmem:[#allocation2 + $0x6] sm:$0xff] %vm179_vm1, %v162_v8 }
  0xb3   : > { %v168_v9 = vpop.permute.xlu1 %167  ;;  %v164_v10 = vpop.permute.xlu0 %163 }
  0xb4   : > { %183 = vst.msk [vmem:[#allocation2 + $0x2e] sm:$0xff] %vm179_vm1, %v168_v9  ;;  %181 = vst.msk [vmem:[#allocation2 + $0xe] sm:$0xff] %vm179_vm1, %v164_v10 }
  0xb7   : > { %v170_v11 = vpop.permute.xlu0 %169  ;;  %v5357_v12 = vld [vmem:[#allocation2] sm:$0xff]  ;;  %v172_v13 = vpop.permute.xlu1 %171 }
  0xb8   : > { %v5359_v14 = vld [vmem:[#allocation2 + $0x20] sm:$0xff]  ;;  %184 = vst.msk [vmem:[#allocation2 + $0x46] sm:$0xff] %vm179_vm1, %v170_v11  ;;  %v5363_v15 = vmul.f32 0.008163127, %v5357_v12  ;;  %185 = vst.msk [vmem:[#allocation2 + $0x4e] sm:$0xff] %vm179_vm1, %v172_v13 }
  0xb9   : > { %v5369_v16 = vmul.f32 0.008163127, %v5359_v14  ;;  %v5400_v25 = vmul.f32 0.0078077544, %v5357_v12  ;;  %v5410_v27 = vmul.f32 0.0078077544, %v5359_v14 }
  0xba   : > { %210 = vrot.lane.b32.xlu0 %v5363_v15, %s5220_s16  ;;  %v5430_v31 = vmul.f32 0.007481702, %v5357_v12  ;;  %v5440_v33 = vmul.f32 0.007481702, %v5359_v14  ;;  %v306_v37 = vmul.f32 0.007215096, %v5357_v12 }
  0xbb   : > { %v5371_v17 = vld [vmem:[#allocation2 + $0x8] sm:$0xff]  ;;  %v308_v39 = vmul.f32 0.007215096, %v5359_v14  ;;  %v342_v43 = vmul.f32 0.0070388336, %v5357_v12 }
  0xbc   : > { %v5374_v18 = vmul.f32 0.008163127, %v5371_v17  ;;  %v5376_v19 = vld [vmem:[#allocation2 + $0x28] sm:$0xff]  ;;  %v5407_v26 = vmul.f32 0.0078077544, %v5371_v17 }
  0xbd   : > { %v5387_v22 = vmul.f32 0.008163127, %v5376_v19  ;;  %v5417_v28 = vmul.f32 0.0078077544, %v5376_v19  ;;  %v5437_v32 = vmul.f32 0.007481702, %v5371_v17 }
  0xbe   : > { %214 = vrot.lane.b32.xlu0 %v5369_v16, %s5220_s16  ;;  %212 = vrot.lane.b32.xlu1 %v5374_v18, %s5220_s16  ;;  %v273_v34 = vmul.f32 0.007481702, %v5376_v19  ;;  %v5455_v38 = vmul.f32 0.007215096, %v5371_v17  ;;  %v5462_v40 = vmul.f32 0.007215096, %v5376_v19 }
  0xbf   : > { %v5382_v20 = vld [vmem:[#allocation2 + $0x48] sm:$0xff]  ;;  %v5384_v21 = vld [vmem:[#allocation2 + $0x40] sm:$0xff]  ;;  %v343_v44 = vmul.f32 0.0070388336, %v5371_v17  ;;  %v344_v45 = vmul.f32 0.0070388336, %v5359_v14 }
  0xc0   : > { %v5390_v23 = vmul.f32 0.008163127, %v5384_v21  ;;  %v5397_v24 = vmul.f32 0.008163127, %v5382_v20  ;;  %v5420_v29 = vmul.f32 0.0078077544, %v5384_v21 }
  0xc1   : > { %v5427_v30 = vmul.f32 0.0078077544, %v5382_v20  ;;  %v274_v35 = vmul.f32 0.007481702, %v5384_v21  ;;  %v275_v36 = vmul.f32 0.007481702, %v5382_v20 }
  0xc2   : > { %216 = vrot.lane.b32.xlu1 %v5387_v22, %s5220_s16  ;;  %218 = vrot.lane.b32.xlu0 %v5390_v23, %s5220_s16  ;;  %10612 = vst [vmem:[#allocation9_spill] sm:$0xff] %v5455_v38  ;;  %10613 = vst [vmem:[#allocation10_spill] sm:$0xff] %v5462_v40  ;;  %v310_v41 = vmul.f32 0.007215096, %v5384_v21  ;;  %v5469_v42 = vmul.f32 0.007215096, %v5382_v20 }
  0xc3   : > { %v345_v46 = vmul.f32 0.0070388336, %v5376_v19  ;;  %v346_v47 = vmul.f32 0.0070388336, %v5384_v21  ;;  %v347_v48 = vmul.f32 0.0070388336, %v5382_v20 }
  0xc4   : > { %10614 = vst [vmem:[#allocation11_spill] sm:$0xff] %v5469_v42  ;;  %v378_v49 = vmul.f32 0.006977006, %v5357_v12  ;;  %v379_v50 = vmul.f32 0.006977006, %v5371_v17  ;;  %v5592_v9 = vld [vmem:[#allocation2 + $0x1] sm:$0xff] }
  0xc5   : > { %v380_v51 = vmul.f32 0.006977006, %v5359_v14  ;;  %v381_v52 = vmul.f32 0.006977006, %v5376_v19  ;;  %v382_v53 = vmul.f32 0.006977006, %v5384_v21 }
  0xc6   : > { %220 = vrot.lane.b32.xlu1 %v5397_v24, %s5220_s16  ;;  %246 = vrot.lane.b32.xlu0 %v5400_v25, %s5221_s25  ;;  %v383_v54 = vmul.f32 0.006977006, %v5382_v20  ;;  %v5558_v62 = vmul.f32 0.008522817, %v5357_v12  ;;  %v5569_v1 = vmul.f32 0.008522817, %v5371_v17 }
  0xc7   : > { %v5572_v2 = vmul.f32 0.008522817, %v5359_v14  ;;  %v5583_v5 = vmul.f32 0.008522817, %v5376_v19  ;;  %v5586_v6 = vmul.f32 0.008522817, %v5384_v21 }
  0xc8   : > { %10615 = vst [vmem:[#allocation12_spill] sm:$0xff] %v5592_v9  ;;  %v5599_v10 = vmul.f32 0.008522817, %v5382_v20  ;;  %v5606_v13 = vmul.f32 0.00771957, %v5592_v9  ;;  %v5608_v14 = vld [vmem:[#allocation2 + $0x9] sm:$0xff] }
  0xc9   : > { %10617 = vst [vmem:[#allocation14_spill] sm:$0xff] %v5608_v14  ;;  %v5626_v20 = vld [vmem:[#allocation2 + $0x29] sm:$0xff]  ;;  %v5628_v21 = vld [vmem:[#allocation2 + $0x41] sm:$0xff] }
  0xca   : > { %248 = vrot.lane.b32.xlu1 %v5407_v26, %s5221_s25  ;;  %250 = vrot.lane.b32.xlu0 %v5410_v27, %s5221_s25  ;;  %10616 = vst [vmem:[#allocation13_spill] sm:$0xff] %v5606_v13  ;;  %10621 = vst [vmem:[#allocation18_spill] sm:$0xff] %v5626_v20 }
  0xcb   : > { %10622 = vst [vmem:[#allocation19_spill] sm:$0xff] %v5628_v21 }
  0xce   : > { %252 = vrot.lane.b32.xlu1 %v5417_v28, %s5221_s25  ;;  %254 = vrot.lane.b32.xlu0 %v5420_v29, %s5221_s25 }
  0xd2   : > { %256 = vrot.lane.b32.xlu1 %v5427_v30, %s5221_s25  ;;  %282 = vrot.lane.b32.xlu0 %v5430_v31, %s5222_s27 }
  0xd6   : > { %284 = vrot.lane.b32.xlu1 %v5437_v32, %s5222_s27  ;;  %286 = vrot.lane.b32.xlu0 %v5440_v33, %s5222_s27 }
  0xda   : > { %288 = vrot.lane.b32.xlu1 %v273_v34, %s5222_s27  ;;  %290 = vrot.lane.b32.xlu0 %v274_v35, %s5222_s27 }
  0xde   : > { %292 = vrot.lane.b32.xlu1 %v275_v36, %s5222_s27  ;;  %318 = vrot.lane.b32.xlu0 %v306_v37, %s5223_s28 }
  0xe2   : > { %320 = vrot.lane.b32.xlu1 %v5455_v38, %s5223_s28  ;;  %322 = vrot.lane.b32.xlu0 %v308_v39, %s5223_s28 }
  0xe6   : > { %324 = vrot.lane.b32.xlu1 %v5462_v40, %s5223_s28  ;;  %326 = vrot.lane.b32.xlu0 %v310_v41, %s5223_s28 }
  0xea   : > { %328 = vrot.lane.b32.xlu1 %v5469_v42, %s5223_s28  ;;  %354 = vrot.lane.b32.xlu0 %v342_v43, %s5224_s30 }
  0xee   : > { %356 = vrot.lane.b32.xlu1 %v343_v44, %s5224_s30  ;;  %358 = vrot.lane.b32.xlu0 %v344_v45, %s5224_s30 }
  0xf2   : > { %360 = vrot.lane.b32.xlu1 %v345_v46, %s5224_s30  ;;  %362 = vrot.lane.b32.xlu0 %v346_v47, %s5224_s30 }
  0xf6   : > { %364 = vrot.lane.b32.xlu1 %v347_v48, %s5224_s30  ;;  %390 = vrot.lane.b32.xlu0 %v378_v49, %s5225_s2 }
  0xfa   : > { %392 = vrot.lane.b32.xlu1 %v379_v50, %s5225_s2  ;;  %394 = vrot.lane.b32.xlu0 %v380_v51, %s5225_s2 }
  0xfe   : > { %396 = vrot.lane.b32.xlu1 %v381_v52, %s5225_s2  ;;  %398 = vrot.lane.b32.xlu0 %v382_v53, %s5225_s2  ;;  %v5725_v52 = vmul.f32 0.0068483097, %v5626_v20  ;;  %v5728_v53 = vmul.f32 0.0068483097, %v5628_v21 }
 0x100   : > { %10638 = vst [vmem:[#allocation35_spill] sm:$0xff] %v5725_v52  ;;  %10639 = vst [vmem:[#allocation36_spill] sm:$0xff] %v5728_v53 }
 0x102   : > { %400 = vrot.lane.b32.xlu1 %v383_v54, %s5225_s2  ;;  %414 = vrot.lane.b32.xlu0 %v342_v43, %s5226_s3 }
 0x106   : > { %416 = vrot.lane.b32.xlu1 %v343_v44, %s5226_s3  ;;  %418 = vrot.lane.b32.xlu0 %v344_v45, %s5226_s3  ;;  %v5700_v45 = vmul.f32 0.0068483097, %v5592_v9 }
 0x10a   : > { %420 = vrot.lane.b32.xlu1 %v345_v46, %s5226_s3  ;;  %422 = vrot.lane.b32.xlu0 %v346_v47, %s5226_s3 }
 0x10e   : > { %424 = vrot.lane.b32.xlu1 %v347_v48, %s5226_s3  ;;  %438 = vrot.lane.b32.xlu0 %v306_v37, %s5227_s4  ;;  %v5683_v37 = vmul.f32 0.0072709876, %v5626_v20  ;;  %v5711_v48 = vmul.f32 0.0068483097, %v5608_v14 }
 0x110   : > { %10631 = vst [vmem:[#allocation28_spill] sm:$0xff] %v5683_v37  ;;  %10635 = vst [vmem:[#allocation32_spill] sm:$0xff] %v5711_v48 }
 0x112   : > { %440 = vrot.lane.b32.xlu1 %v5455_v38, %s5227_s4  ;;  %442 = vrot.lane.b32.xlu0 %v308_v39, %s5227_s4  ;;  %v5686_v39 = vmul.f32 0.0072709876, %v5628_v21  ;;  %v5742_v38 = vmul.f32 0.0064930846, %v5592_v9 }
 0x114   : > { %10632 = vst [vmem:[#allocation29_spill] sm:$0xff] %v5686_v39 }
 0x116   : > { %444 = vrot.lane.b32.xlu1 %v5462_v40, %s5227_s4  ;;  %446 = vrot.lane.b32.xlu0 %v310_v41, %s5227_s4 }
 0x11a   : > { %448 = vrot.lane.b32.xlu1 %v5469_v42, %s5227_s4  ;;  %462 = vrot.lane.b32.xlu0 %v5430_v31, %s5228_s5 }
 0x11e   : > { %464 = vrot.lane.b32.xlu1 %v5437_v32, %s5228_s5  ;;  %466 = vrot.lane.b32.xlu0 %v5440_v33, %s5228_s5  ;;  %v5669_v33 = vmul.f32 0.0072709876, %v5608_v14 }
 0x120   : > { %10628 = vst [vmem:[#allocation25_spill] sm:$0xff] %v5669_v33 }
 0x122   : > { %468 = vrot.lane.b32.xlu1 %v273_v34, %s5228_s5  ;;  %470 = vrot.lane.b32.xlu0 %v274_v35, %s5228_s5 }
 0x126   : > { %472 = vrot.lane.b32.xlu1 %v275_v36, %s5228_s5  ;;  %486 = vrot.lane.b32.xlu0 %v5400_v25, %s5229_s11  ;;  %v5642_v25 = vmul.f32 0.00771957, %v5628_v21 }
 0x128   : > { %10624 = vst [vmem:[#allocation21_spill] sm:$0xff] %v5642_v25 }
 0x12a   : > { %488 = vrot.lane.b32.xlu1 %v5407_v26, %s5229_s11  ;;  %490 = vrot.lane.b32.xlu0 %v5410_v27, %s5229_s11  ;;  %v5644_v26 = vld [vmem:[#allocation2 + $0x49] sm:$0xff] }
 0x12b   : > { %10625 = vst [vmem:[#allocation22_spill] sm:$0xff] %v5644_v26  ;;  %v5697_v44 = vmul.f32 0.0072709876, %v5644_v26  ;;  %v5739_v40 = vmul.f32 0.0068483097, %v5644_v26 }
 0x12c   : > { %v5527_v55 = vpop.permute.xlu0 %210 }
 0x12d   : > { %10633 = vst [vmem:[#allocation30_spill] sm:$0xff] %v5697_v44  ;;  %10640 = vst [vmem:[#allocation37_spill] sm:$0xff] %v5739_v40 }
 0x12e   : > { %492 = vrot.lane.b32.xlu1 %v5417_v28, %s5229_s11  ;;  %494 = vrot.lane.b32.xlu0 %v5420_v29, %s5229_s11  ;;  %v5655_v29 = vmul.f32 0.00771957, %v5644_v26 }
 0x130   : > { %v5533_v56 = vpop.permute.xlu0 %214  ;;  %v5535_v57 = vpop.permute.xlu1 %212  ;;  %10626 = vst [vmem:[#allocation23_spill] sm:$0xff] %v5655_v29 }
 0x132   : > { %496 = vrot.lane.b32.xlu1 %v5427_v30, %s5229_s11  ;;  %510 = vrot.lane.b32.xlu0 %v5363_v15, %s5230_s13  ;;  %v5610_v15 = vld [vmem:[#allocation2 + $0x21] sm:$0xff]  ;;  %v5658_v30 = vmul.f32 0.0072709876, %v5592_v9 }
 0x133   : > { %10618 = vst [vmem:[#allocation15_spill] sm:$0xff] %v5610_v15  ;;  %v5624_v19 = vmul.f32 0.00771957, %v5610_v15  ;;  %v5672_v34 = vmul.f32 0.0072709876, %v5610_v15 }
 0x134   : > { %v5541_v58 = vpop.permute.xlu1 %216  ;;  %v5543_v59 = vpop.permute.xlu0 %218  ;;  %10627 = vst [vmem:[#allocation24_spill] sm:$0xff] %v5658_v30  ;;  %v5714_v49 = vmul.f32 0.0068483097, %v5610_v15 }
 0x135   : > { %10620 = vst [vmem:[#allocation17_spill] sm:$0xff] %v5624_v19  ;;  %10629 = vst [vmem:[#allocation26_spill] sm:$0xff] %v5672_v34 }
 0x136   : > { %512 = vrot.lane.b32.xlu1 %v5374_v18, %s5230_s13  ;;  %514 = vrot.lane.b32.xlu0 %v5369_v16, %s5230_s13  ;;  %v5621_v18 = vmul.f32 0.00771957, %v5608_v14  ;;  %10636 = vst [vmem:[#allocation33_spill] sm:$0xff] %v5714_v49 }
 0x138   : > { %v5549_v60 = vpop.permute.xlu1 %220  ;;  %v5551_v61 = vpop.permute.xlu0 %246  ;;  %10619 = vst [vmem:[#allocation16_spill] sm:$0xff] %v5621_v18 }
 0x13a   : > { %516 = vrot.lane.b32.xlu1 %v5387_v22, %s5230_s13  ;;  %518 = vrot.lane.b32.xlu0 %v5390_v23, %s5230_s13 }
 0x13c   : > { %v5560_v63 = vpop.permute.xlu1 %248  ;;  %v5562_v0 = vpop.permute.xlu0 %250 }
 0x13e   : > { %520 = vrot.lane.b32.xlu1 %v5397_v24, %s5230_s13  ;;  %540 = vrot.lane.b32.xlu0 %v5558_v62, %s5231_s14  ;;  %v5639_v24 = vmul.f32 0.00771957, %v5626_v20 }
 0x140   : > { %v5574_v3 = vpop.permute.xlu1 %252  ;;  %v5576_v4 = vpop.permute.xlu0 %254  ;;  %10623 = vst [vmem:[#allocation20_spill] sm:$0xff] %v5639_v24 }
 0x142   : > { %542 = vrot.lane.b32.xlu1 %v5569_v1, %s5231_s14  ;;  %544 = vrot.lane.b32.xlu0 %v5572_v2, %s5231_s14 }
 0x144   : > { %v5588_v7 = vpop.permute.xlu1 %256  ;;  %v5590_v8 = vpop.permute.xlu0 %282 }
 0x146   : > { %546 = vrot.lane.b32.xlu1 %v5583_v5, %s5231_s14  ;;  %548 = vrot.lane.b32.xlu0 %v5586_v6, %s5231_s14 }
 0x148   : > { %v5601_v11 = vpop.permute.xlu1 %284  ;;  %v5603_v12 = vpop.permute.xlu0 %286 }
 0x14a   : > { %550 = vrot.lane.b32.xlu1 %v5599_v10, %s5231_s14  ;;  %594 = vrot.lane.b32.xlu0 %v5606_v13, %s5220_s16 }
 0x14c   : > { %v5616_v16 = vpop.permute.xlu1 %288  ;;  %v5618_v17 = vpop.permute.xlu0 %290 }
 0x14e   : > { %596 = vrot.lane.b32.xlu1 %v5621_v18, %s5220_s16  ;;  %598 = vrot.lane.b32.xlu0 %v5624_v19, %s5220_s16  ;;  %v5756_v19 = vmul.f32 0.0064930846, %v5610_v15 }
 0x150   : > { %v5634_v22 = vpop.permute.xlu1 %292  ;;  %v5636_v23 = vpop.permute.xlu0 %318 }
 0x152   : > { %600 = vrot.lane.b32.xlu1 %v5639_v24, %s5220_s16  ;;  %602 = vrot.lane.b32.xlu0 %v5642_v25, %s5220_s16  ;;  %v5753_v24 = vmul.f32 0.0064930846, %v5608_v14 }
 0x154   : > { %v5650_v27 = vpop.permute.xlu1 %320  ;;  %v5652_v28 = vpop.permute.xlu0 %322 }
 0x156   : > { %604 = vrot.lane.b32.xlu1 %v5655_v29, %s5220_s16  ;;  %630 = vrot.lane.b32.xlu0 %v5658_v30, %s5221_s25  ;;  %v726_v30 = vmul.f32 0.006252612, %v5592_v9 }
 0x158   : > { %v5664_v31 = vpop.permute.xlu1 %324  ;;  %v5666_v32 = vpop.permute.xlu0 %326 }
 0x15a   : > { %632 = vrot.lane.b32.xlu1 %v5669_v33, %s5221_s25  ;;  %634 = vrot.lane.b32.xlu0 %v5672_v34, %s5221_s25  ;;  %v5781_v33 = vmul.f32 0.0064930846, %v5644_v26 }
 0x15c   : > { %v5678_v35 = vpop.permute.xlu1 %328  ;;  %v5680_v36 = vpop.permute.xlu0 %354 }
 0x15d   : > { %10630 = vst [vmem:[#allocation27_spill] sm:$0xff] %v5678_v35  ;;  %v762_v35 = vmul.f32 0.00616707, %v5592_v9 }
 0x15e   : > { %636 = vrot.lane.b32.xlu1 %v5683_v37, %s5221_s25  ;;  %638 = vrot.lane.b32.xlu0 %v5686_v39, %s5221_s25  ;;  %v5770_v39 = vmul.f32 0.0064930846, %v5628_v21 }
 0x160   : > { %v5692_v41 = vpop.permute.xlu1 %356  ;;  %v5694_v43 = vpop.permute.xlu0 %358 }
 0x162   : > { %640 = vrot.lane.b32.xlu1 %v5697_v44, %s5221_s25  ;;  %666 = vrot.lane.b32.xlu0 %v5700_v45, %s5222_s27  ;;  %v5767_v44 = vmul.f32 0.0064930846, %v5626_v20 }
 0x164   : > { %v5706_v46 = vpop.permute.xlu1 %360  ;;  %v5708_v47 = vpop.permute.xlu0 %362 }
 0x165   : > { %10634 = vst [vmem:[#allocation31_spill] sm:$0xff] %v5708_v47  ;;  %v764_v47 = vmul.f32 0.00616707, %v5610_v15 }
 0x166   : > { %668 = vrot.lane.b32.xlu1 %v5711_v48, %s5222_s27  ;;  %670 = vrot.lane.b32.xlu0 %v5714_v49, %s5222_s27 }
 0x168   : > { %v5720_v50 = vpop.permute.xlu1 %364  ;;  %v5722_v51 = vpop.permute.xlu0 %390 }
 0x169   : > { %10637 = vst [vmem:[#allocation34_spill] sm:$0xff] %v5720_v50  ;;  %v729_v50 = vmul.f32 0.006252612, %v5626_v20 }
 0x16a   : > { %672 = vrot.lane.b32.xlu1 %v5725_v52, %s5222_s27  ;;  %674 = vrot.lane.b32.xlu0 %v5728_v53, %s5222_s27  ;;  %v727_v52 = vmul.f32 0.006252612, %v5608_v14 }
 0x16c   : > { %v5734_v54 = vpop.permute.xlu1 %392  ;;  %v5736_v42 = vpop.permute.xlu0 %394 }
 0x16e   : > { %676 = vrot.lane.b32.xlu1 %v5739_v40, %s5222_s27  ;;  %702 = vrot.lane.b32.xlu0 %v5742_v38, %s5223_s28 }
 0x170   : > { %v5748_v29 = vpop.permute.xlu1 %396  ;;  %v5750_v25 = vpop.permute.xlu0 %398 }
 0x171   : > { %10641 = vst [vmem:[#allocation38_spill] sm:$0xff] %v5748_v29  ;;  %10642 = vst [vmem:[#allocation39_spill] sm:$0xff] %v5750_v25  ;;  %v730_v25 = vmul.f32 0.006252612, %v5628_v21  ;;  %v731_v29 = vmul.f32 0.006252612, %v5644_v26 }
 0x172   : > { %704 = vrot.lane.b32.xlu1 %v5753_v24, %s5223_s28  ;;  %706 = vrot.lane.b32.xlu0 %v5756_v19, %s5223_s28 }
 0x174   : > { %v5762_v18 = vpop.permute.xlu1 %400  ;;  %v5764_v13 = vpop.permute.xlu0 %414 }
 0x175   : > { %10643 = vst [vmem:[#allocation40_spill] sm:$0xff] %v5762_v18  ;;  %v728_v18 = vmul.f32 0.006252612, %v5610_v15 }
 0x176   : > { %708 = vrot.lane.b32.xlu1 %v5767_v44, %s5223_s28  ;;  %710 = vrot.lane.b32.xlu0 %v5770_v39, %s5223_s28 }
 0x178   : > { %v5776_v37 = vpop.permute.xlu1 %416  ;;  %v5778_v34 = vpop.permute.xlu0 %418 }
 0x179   : > { %10644 = vst [vmem:[#allocation41_spill] sm:$0xff] %v5776_v37  ;;  %10645 = vst [vmem:[#allocation42_spill] sm:$0xff] %v5778_v34  ;;  %v5816_v37 = vmul.f32 0.00616707, %v5608_v14 }
 0x17a   : > { %712 = vrot.lane.b32.xlu1 %v5781_v33, %s5223_s28  ;;  %738 = vrot.lane.b32.xlu0 %v726_v30, %s5224_s30 }
 0x17b   : > { %10651 = vst [vmem:[#allocation48_spill] sm:$0xff] %v5816_v37 }
 0x17c   : > { %v5787_v40 = vpop.permute.xlu1 %420  ;;  %v5789_v53 = vpop.permute.xlu0 %422 }
 0x17d   : > { %10646 = vst [vmem:[#allocation43_spill] sm:$0xff] %v5787_v40  ;;  %10647 = vst [vmem:[#allocation44_spill] sm:$0xff] %v5789_v53 }
 0x17e   : > { %740 = vrot.lane.b32.xlu1 %v727_v52, %s5224_s30  ;;  %742 = vrot.lane.b32.xlu0 %v728_v18, %s5224_s30 }
 0x180   : > { %v5795_v49 = vpop.permute.xlu1 %424  ;;  %v5797_v48 = vpop.permute.xlu0 %438 }
 0x181   : > { %10648 = vst [vmem:[#allocation45_spill] sm:$0xff] %v5795_v49 }
 0x182   : > { %744 = vrot.lane.b32.xlu1 %v729_v50, %s5224_s30  ;;  %746 = vrot.lane.b32.xlu0 %v730_v25, %s5224_s30 }
 0x184   : > { %v5803_v53 = vpop.permute.xlu1 %440  ;;  %v5805_v40 = vpop.permute.xlu0 %442 }
 0x185   : > { %10649 = vst [vmem:[#allocation46_spill] sm:$0xff] %v5805_v40 }
 0x186   : > { %748 = vrot.lane.b32.xlu1 %v731_v29, %s5224_s30  ;;  %774 = vrot.lane.b32.xlu0 %v762_v35, %s5225_s2  ;;  %v5827_v35 = vmul.f32 0.00616707, %v5626_v20 }
 0x188   : > { %v5811_v49 = vpop.permute.xlu1 %444  ;;  %v5813_v34 = vpop.permute.xlu0 %446  ;;  %10652 = vst [vmem:[#allocation49_spill] sm:$0xff] %v5827_v35 }
 0x189   : > { %10650 = vst [vmem:[#allocation47_spill] sm:$0xff] %v5811_v49  ;;  %v766_v49 = vmul.f32 0.00616707, %v5628_v21 }
 0x18a   : > { %776 = vrot.lane.b32.xlu1 %v5816_v37, %s5225_s2  ;;  %778 = vrot.lane.b32.xlu0 %v764_v47, %s5225_s2  ;;  %v5838_v47 = vmul.f32 0.00616707, %v5644_v26 }
 0x18c   : > { %v5822_v40 = vpop.permute.xlu1 %448  ;;  %v5824_v9 = vpop.permute.xlu0 %462  ;;  %10653 = vst [vmem:[#allocation50_spill] sm:$0xff] %v5838_v47 }
 0x18e   : > { %780 = vrot.lane.b32.xlu1 %v5827_v35, %s5225_s2  ;;  %782 = vrot.lane.b32.xlu0 %v766_v49, %s5225_s2 }
 0x190   : > { %v5833_v15 = vpop.permute.xlu1 %464  ;;  %v5835_v14 = vpop.permute.xlu0 %466 }
 0x192   : > { %784 = vrot.lane.b32.xlu1 %v5838_v47, %s5225_s2  ;;  %798 = vrot.lane.b32.xlu0 %v726_v30, %s5226_s3  ;;  %v228_v47 = vadd.f32 %v5527_v55, %v5558_v62 }
 0x194   : > { %v5843_v37 = vpop.permute.xlu1 %468  ;;  %v5845_v21 = vpop.permute.xlu0 %470  ;;  %v264_v20 = vadd.f32 %v5551_v61, %v228_v47  ;;  %v10659_v47 = vld [vmem:[#allocation39_spill] sm:$0xff] }
 0x196   : > { %800 = vrot.lane.b32.xlu1 %v727_v52, %s5226_s3  ;;  %802 = vrot.lane.b32.xlu0 %v728_v18, %s5226_s3  ;;  %v229_v18 = vadd.f32 %v5535_v57, %v5569_v1 }
 0x198   : > { %v5849_v49 = vpop.permute.xlu1 %472  ;;  %v487_v35 = vpop.permute.xlu0 %486  ;;  %v265_v52 = vadd.f32 %v5560_v63, %v229_v18 }
 0x19a   : > { %804 = vrot.lane.b32.xlu1 %v729_v50, %s5226_s3  ;;  %806 = vrot.lane.b32.xlu0 %v730_v25, %s5226_s3  ;;  %v230_v25 = vadd.f32 %v5533_v56, %v5572_v2  ;;  %v300_v50 = vadd.f32 %v5590_v8, %v264_v20  ;;  %v232_v56 = vadd.f32 %v5543_v59, %v5586_v6 }
 0x19b   : > { %v301_v57 = vadd.f32 %v5601_v11, %v265_v52  ;;  %v233_v59 = vadd.f32 %v5549_v60, %v5599_v10  ;;  %v10661_v52 = vld [vmem:[#allocation34_spill] sm:$0xff] }
 0x19c   : > { %v5855_v26 = vpop.permute.xlu1 %488  ;;  %v5857_v30 = vpop.permute.xlu0 %490  ;;  %v266_v61 = vadd.f32 %v5562_v0, %v230_v25  ;;  %v10660_v25 = vld [vmem:[#allocation46_spill] sm:$0xff] }
 0x19d   : > { %v337_v8 = vadd.f32 %v5650_v27, %v301_v57  ;;  %v10665_v57 = vld [vmem:[#allocation44_spill] sm:$0xff] }
 0x19e   : > { %808 = vrot.lane.b32.xlu1 %v731_v29, %s5226_s3  ;;  %822 = vrot.lane.b32.xlu0 %v5742_v38, %s5227_s4  ;;  %v336_v29 = vadd.f32 %v5636_v23, %v300_v50  ;;  %v231_v38 = vadd.f32 %v5541_v58, %v5583_v5  ;;  %v302_v63 = vadd.f32 %v5603_v12, %v266_v61 }
 0x19f   : > { %v268_v5 = vadd.f32 %v5576_v4, %v232_v56  ;;  %v373_v4 = vadd.f32 %v5692_v41, %v337_v8  ;;  %v269_v23 = vadd.f32 %v5588_v7, %v233_v59  ;;  %v10654_v7 = vld [vmem:[#allocation31_spill] sm:$0xff]  ;;  %v10656_v41 = vld [vmem:[#allocation42_spill] sm:$0xff]  ;;  %v10663_v56 = vld [vmem:[#allocation32_spill] sm:$0xff] }
 0x1a0   : > { %v5868_v55 = vpop.permute.xlu1 %492  ;;  %v5870_v62 = vpop.permute.xlu0 %494  ;;  %v372_v0 = vadd.f32 %v5680_v36, %v336_v29  ;;  %v267_v1 = vadd.f32 %v5574_v3, %v231_v38  ;;  %v10662_v29 = vld [vmem:[#allocation43_spill] sm:$0xff]  ;;  %v10668_v59 = vld [vmem:[#allocation12_spill] sm:$0xff] }
 0x1a1   : > { %v304_v3 = vadd.f32 %v5618_v17, %v268_v5  ;;  %v409_v27 = vadd.f32 %v5734_v54, %v373_v4  ;;  %v305_v36 = vadd.f32 %v5634_v22, %v269_v23  ;;  %v10666_v5 = vld [vmem:[#allocation40_spill] sm:$0xff] }
 0x1a2   : > { %824 = vrot.lane.b32.xlu1 %v5753_v24, %s5227_s4  ;;  %826 = vrot.lane.b32.xlu0 %v5756_v19, %s5227_s4  ;;  %v338_v19 = vadd.f32 %v5652_v28, %v302_v63  ;;  %v408_v20 = vadd.f32 %v5722_v51, %v372_v0  ;;  %v303_v6 = vadd.f32 %v5616_v16, %v267_v1  ;;  %v10658_v51 = vld [vmem:[#allocation38_spill] sm:$0xff] }
 0x1a3   : > { %v340_v24 = vadd.f32 %v5666_v32, %v304_v3 }
 0x1a4   : > { %v5887_v2 = vpop.permute.xlu1 %496  ;;  %v511_v58 = vpop.permute.xlu0 %510  ;;  %v374_v11 = vadd.f32 %v5694_v43, %v338_v19  ;;  %v432_v12 = vadd.f32 %v5764_v13, %v408_v20  ;;  %v339_v60 = vadd.f32 %v5664_v31, %v303_v6  ;;  %v10655_v31 = vld [vmem:[#allocation41_spill] sm:$0xff]  ;;  %v5937_v6 = vmul.f32 0.008163127, %v10668_v59 }
 0x1a5   : > { %v376_v13 = vadd.f32 %v10654_v7, %v340_v24  ;;  %v433_v32 = vadd.f32 %v10655_v31, %v409_v27  ;;  %v10671_v24 = vld [vmem:[#allocation36_spill] sm:$0xff]  ;;  %v10673_v7 = vld [vmem:[#allocation15_spill] sm:$0xff]  ;;  %v10691_v59 = vld [vmem:[#allocation17_spill] sm:$0xff] }
 0x1a6   : > { %828 = vrot.lane.b32.xlu1 %v5767_v44, %s5227_s4  ;;  %830 = vrot.lane.b32.xlu0 %v5770_v39, %s5227_s4  ;;  %v410_v28 = vadd.f32 %v5736_v42, %v374_v11  ;;  %v456_v17 = vadd.f32 %v5797_v48, %v432_v12  ;;  %v375_v39 = vadd.f32 %v5706_v46, %v339_v60  ;;  %v10657_v44 = vld [vmem:[#allocation27_spill] sm:$0xff] }
 0x1a7   : > { %v341_v48 = vadd.f32 %v10657_v44, %v305_v36  ;;  %v412_v18 = vadd.f32 %v10659_v47, %v376_v13 }
 0x1a8   : > { %v513_v10 = vpop.permute.xlu1 %512  ;;  %v515_v16 = vpop.permute.xlu0 %514  ;;  %v434_v43 = vadd.f32 %v10656_v41, %v410_v28  ;;  %v480_v42 = vadd.f32 %v5824_v9, %v456_v17  ;;  %v411_v22 = vadd.f32 %v10658_v51, %v375_v39  ;;  %v10664_v9 = vld [vmem:[#allocation33_spill] sm:$0xff]  ;;  %v10677_v51 = vld [vmem:[#allocation18_spill] sm:$0xff] }
 0x1a9   : > { %v377_v61 = vadd.f32 %v10661_v52, %v341_v48  ;;  %v436_v63 = vadd.f32 %v10665_v57, %v412_v18  ;;  %v10683_v57 = vld [vmem:[#allocation28_spill] sm:$0xff] }
 0x1aa   : > { %832 = vrot.lane.b32.xlu1 %v5781_v33, %s5227_s4  ;;  %846 = vrot.lane.b32.xlu0 %v5700_v45, %s5228_s5  ;;  %v457_v33 = vadd.f32 %v5803_v53, %v433_v32  ;;  %v458_v45 = vadd.f32 %v10660_v25, %v434_v43  ;;  %v504_v50 = vadd.f32 %v487_v35, %v480_v42  ;;  %v10667_v35 = vld [vmem:[#allocation47_spill] sm:$0xff] }
 0x1ab   : > { %v435_v38 = vadd.f32 %v10662_v29, %v411_v22  ;;  %v413_v8 = vadd.f32 %v10666_v5, %v377_v61  ;;  %v460_v4 = vadd.f32 %v5813_v34, %v436_v63  ;;  %v10684_v63 = vld [vmem:[#allocation29_spill] sm:$0xff]  ;;  %v10687_v5 = vld [vmem:[#allocation30_spill] sm:$0xff] }
 0x1ac   : > { %v517_v54 = vpop.permute.xlu1 %516  ;;  %v519_v46 = vpop.permute.xlu0 %518  ;;  %v481_v0 = vadd.f32 %v5833_v15, %v457_v33  ;;  %v482_v1 = vadd.f32 %v5835_v14, %v458_v45  ;;  %v528_v53 = vadd.f32 %v511_v58, %v504_v50  ;;  %v10669_v15 = vld [vmem:[#allocation45_spill] sm:$0xff]  ;;  %v10670_v58 = vld [vmem:[#allocation35_spill] sm:$0xff] }
 0x1ad   : > { %v459_v19 = vadd.f32 %v10667_v35, %v435_v38  ;;  %v437_v60 = vadd.f32 %v10669_v15, %v413_v8  ;;  %v484_v27 = vadd.f32 %v5845_v21, %v460_v4  ;;  %v10679_v45 = vld [vmem:[#allocation25_spill] sm:$0xff]  ;;  %v10682_v38 = vld [vmem:[#allocation22_spill] sm:$0xff] }
 0x1ae   : > { %848 = vrot.lane.b32.xlu1 %v10663_v56, %s5228_s5  ;;  %850 = vrot.lane.b32.xlu0 %v10664_v9, %s5228_s5  ;;  %v505_v11 = vadd.f32 %v5855_v26, %v481_v0  ;;  %v506_v12 = vadd.f32 %v5857_v30, %v482_v1  ;;  %v10672_v30 = vld [vmem:[#allocation14_spill] sm:$0xff]  ;;  %v10688_v8 = vld [vmem:[#allocation13_spill] sm:$0xff] }
 0x1af   : > { %v483_v14 = vadd.f32 %v5843_v37, %v459_v19  ;;  %v461_v26 = vadd.f32 %v5822_v40, %v437_v60  ;;  %v571_v36 = vmul.f32 0.008163127, %v10672_v30  ;;  %v572_v37 = vmul.f32 0.008163127, %v10673_v7  ;;  %v10696_v60 = vld [vmem:[#allocation23_spill] sm:$0xff] }
 0x1b0   : > { %v521_v20 = vpop.permute.xlu1 %520  ;;  %v541_v3 = vpop.permute.xlu0 %540  ;;  %v529_v28 = vadd.f32 %v513_v10, %v505_v11  ;;  %v530_v17 = vadd.f32 %v515_v16, %v506_v12  ;;  %v508_v32 = vadd.f32 %v5870_v62, %v484_v27  ;;  %v10674_v10 = vld [vmem:[#allocation37_spill] sm:$0xff]  ;;  %v10675_v16 = vld [vmem:[#allocation24_spill] sm:$0xff] }
 0x1b1   : > { %v558_v23 = vadd.f32 %v541_v3, %v528_v53  ;;  %v507_v31 = vadd.f32 %v5868_v55, %v483_v14  ;;  %v485_v21 = vadd.f32 %v5849_v49, %v461_v26  ;;  %v573_v55 = vmul.f32 0.008163127, %v10677_v51  ;;  %v10678_v49 = vld [vmem:[#allocation19_spill] sm:$0xff]  ;;  %v10693_v11 = vld [vmem:[#allocation20_spill] sm:$0xff]  ;;  %v10694_v12 = vld [vmem:[#allocation21_spill] sm:$0xff] }
 0x1b2   : > { %852 = vrot.lane.b32.xlu1 %v10670_v58, %s5228_s5  ;;  %854 = vrot.lane.b32.xlu0 %v10671_v24, %s5228_s5  ;;  %v532_v42 = vadd.f32 %v519_v46, %v508_v32  ;;  %v574_v33 = vmul.f32 0.008163127, %v10678_v49  ;;  %v6056_v32 = vld [vmem:[#allocation2 + $0x2a] sm:$0xff] }
 0x1b3   : > { %v5950_v34 = vadd.f32 %v5937_v6, %v558_v23  ;;  %v531_v40 = vadd.f32 %v517_v54, %v507_v31  ;;  %v509_v47 = vadd.f32 %v5887_v2, %v485_v21  ;;  %v10680_v54 = vld [vmem:[#allocation26_spill] sm:$0xff]  ;;  %v575_v2 = vmul.f32 0.008163127, %v10682_v38 }
 0x1b4   : > { %v543_v39 = vpop.permute.xlu1 %542  ;;  %v545_v13 = vpop.permute.xlu0 %544 }
 0x1b5   : > { %v559_v41 = vadd.f32 %v543_v39, %v529_v28  ;;  %v560_v43 = vadd.f32 %v545_v13, %v530_v17  ;;  %v533_v46 = vadd.f32 %v521_v20, %v509_v47  ;;  %v10690_v20 = vld [vmem:[#allocation16_spill] sm:$0xff]  ;;  %v6028_v17 = vld [vmem:[#allocation2 + $0x2] sm:$0xff] }
 0x1b6   : > { %856 = vrot.lane.b32.xlu1 %v10674_v10, %s5228_s5  ;;  %870 = vrot.lane.b32.xlu0 %v10675_v16, %s5229_s11  ;;  %v6037_v30 = vmul.f32 0.0072709876, %v6028_v17  ;;  %v6041_v39 = vld [vmem:[#allocation2 + $0x22] sm:$0xff]  ;;  %v6069_v16 = vmul.f32 0.0072709876, %v6056_v32 }
 0x1b7   : > { %v5962_v44 = vadd.f32 %v571_v36, %v559_v41  ;;  %v5964_v48 = vadd.f32 %v572_v37, %v560_v43  ;;  %v6054_v31 = vmul.f32 0.0072709876, %v6041_v39  ;;  %v6058_v41 = vld [vmem:[#allocation2 + $0x42] sm:$0xff]  ;;  %v6172_v56 = vmul.f32 0.005690264, %v6028_v17 }
 0x1b8   : > { %v547_v22 = vpop.permute.xlu1 %546  ;;  %v549_v62 = vpop.permute.xlu0 %548  ;;  %10700 = vst [vmem:[#allocation44_spill] sm:$0xff] %v6037_v30  ;;  %10706 = vst [vmem:[#allocation14_spill] sm:$0xff] %v6069_v16 }
 0x1b9   : > { %10676 = vst [vmem:[#allocation31_spill] sm:$0xff] %v5962_v44  ;;  %v561_v18 = vadd.f32 %v547_v22, %v531_v40  ;;  %v562_v25 = vadd.f32 %v549_v62, %v532_v42  ;;  %10704 = vst [vmem:[#allocation45_spill] sm:$0xff] %v6054_v31  ;;  %v6072_v40 = vmul.f32 0.0072709876, %v6058_v41  ;;  %v6074_v42 = vld [vmem:[#allocation2 + $0x4a] sm:$0xff] }
 0x1ba   : > { %872 = vrot.lane.b32.xlu1 %v10679_v45, %s5229_s11  ;;  %874 = vrot.lane.b32.xlu0 %v10680_v54, %s5229_s11  ;;  %v6085_v22 = vmul.f32 0.0072709876, %v6074_v42  ;;  %v6088_v62 = vmul.f32 0.006712344, %v6028_v17  ;;  %v6113_v54 = vmul.f32 0.006712344, %v6056_v32 }
 0x1bb   : > { %v5973_v50 = vadd.f32 %v573_v55, %v561_v18  ;;  %v5975_v52 = vadd.f32 %v574_v33, %v562_v25  ;;  %10707 = vst [vmem:[#allocation15_spill] sm:$0xff] %v6072_v40  ;;  %v6169_v58 = vmul.f32 0.00616707, %v6074_v42  ;;  %v1115_v44 = vmul.f32 0.0053551784, %v6074_v42 }
 0x1bc   : > { %v551_v61 = vpop.permute.xlu1 %550  ;;  %v5977_v29 = vpop.permute.xlu0 %594  ;;  %10709 = vst [vmem:[#allocation18_spill] sm:$0xff] %v6085_v22 }
 0x1bd   : > { %10681 = vst [vmem:[#allocation41_spill] sm:$0xff] %v5973_v50  ;;  %v563_v9 = vadd.f32 %v551_v61, %v533_v46  ;;  %v6116_v46 = vmul.f32 0.006712344, %v6058_v41  ;;  %v1113_v50 = vmul.f32 0.0053551784, %v6056_v32 }
 0x1be   : > { %876 = vrot.lane.b32.xlu1 %v10683_v57, %s5229_s11  ;;  %878 = vrot.lane.b32.xlu0 %v10684_v63, %s5229_s11 }
 0x1bf   : > { %v5984_v0 = vadd.f32 %v575_v2, %v563_v9  ;;  %v6130_v9 = vmul.f32 0.00616707, %v6028_v17 }
 0x1c0   : > { %v5986_v1 = vpop.permute.xlu1 %596  ;;  %v5988_v53 = vpop.permute.xlu0 %598 }
 0x1c1   : > { %10685 = vst [vmem:[#allocation42_spill] sm:$0xff] %v5984_v0  ;;  %10686 = vst [vmem:[#allocation27_spill] sm:$0xff] %v5986_v1 }
 0x1c2   : > { %880 = vrot.lane.b32.xlu1 %v10687_v5, %s5229_s11  ;;  %894 = vrot.lane.b32.xlu0 %v10688_v8, %s5230_s13  ;;  %v6144_v8 = vmul.f32 0.00616707, %v6041_v39 }
 0x1c4   : > { %v5994_v35 = vpop.permute.xlu1 %600  ;;  %v5996_v19 = vpop.permute.xlu0 %602 }
 0x1c5   : > { %10689 = vst [vmem:[#allocation38_spill] sm:$0xff] %v5994_v35 }
 0x1c6   : > { %896 = vrot.lane.b32.xlu1 %v10690_v20, %s5230_s13  ;;  %898 = vrot.lane.b32.xlu0 %v10691_v59, %s5230_s13 }
 0x1c8   : > { %v6002_v3 = vpop.permute.xlu1 %604  ;;  %v6004_v4 = vpop.permute.xlu0 %630 }
 0x1c9   : > { %10692 = vst [vmem:[#allocation39_spill] sm:$0xff] %v6002_v3  ;;  %v1110_v3 = vmul.f32 0.0053551784, %v6028_v17 }
 0x1ca   : > { %900 = vrot.lane.b32.xlu1 %v10693_v11, %s5230_s13  ;;  %902 = vrot.lane.b32.xlu0 %v10694_v12, %s5230_s13  ;;  %v6155_v11 = vmul.f32 0.00616707, %v6056_v32  ;;  %v6158_v12 = vmul.f32 0.00616707, %v6058_v41 }
 0x1cc   : > { %v6010_v23 = vpop.permute.xlu1 %632  ;;  %v6012_v15 = vpop.permute.xlu0 %634 }
 0x1cd   : > { %10695 = vst [vmem:[#allocation46_spill] sm:$0xff] %v6010_v23  ;;  %v1114_v23 = vmul.f32 0.0053551784, %v6058_v41 }
 0x1ce   : > { %904 = vrot.lane.b32.xlu1 %v10696_v60, %s5230_s13  ;;  %924 = vrot.lane.b32.xlu0 %v5937_v6, %s5231_s14 }
 0x1d0   : > { %v6018_v14 = vpop.permute.xlu1 %636  ;;  %v6020_v24 = vpop.permute.xlu0 %638 }
 0x1d1   : > { %10697 = vst [vmem:[#allocation34_spill] sm:$0xff] %v6018_v14 }
 0x1d2   : > { %926 = vrot.lane.b32.xlu1 %v571_v36, %s5231_s14  ;;  %928 = vrot.lane.b32.xlu0 %v572_v37, %s5231_s14  ;;  %v6039_v36 = vld [vmem:[#allocation2 + $0xa] sm:$0xff] }
 0x1d3   : > { %10701 = vst [vmem:[#allocation40_spill] sm:$0xff] %v6039_v36  ;;  %v6051_v13 = vmul.f32 0.0072709876, %v6039_v36  ;;  %v6099_v49 = vmul.f32 0.006712344, %v6039_v36 }
 0x1d4   : > { %v6024_v27 = vpop.permute.xlu1 %640  ;;  %v6026_v28 = vpop.permute.xlu0 %666  ;;  %v6141_v5 = vmul.f32 0.00616707, %v6039_v36  ;;  %v1111_v14 = vmul.f32 0.0053551784, %v6039_v36 }
 0x1d5   : > { %10698 = vst [vmem:[#allocation43_spill] sm:$0xff] %v6024_v27  ;;  %10703 = vst [vmem:[#allocation12_spill] sm:$0xff] %v6051_v13  ;;  %v6200_v27 = vmul.f32 0.005690264, %v6058_v41 }
 0x1d6   : > { %930 = vrot.lane.b32.xlu1 %v573_v55, %s5231_s14  ;;  %932 = vrot.lane.b32.xlu0 %v574_v33, %s5231_s14  ;;  %v6102_v33 = vmul.f32 0.006712344, %v6041_v39 }
 0x1d8   : > { %v6032_v26 = vpop.permute.xlu1 %668  ;;  %v6034_v6 = vpop.permute.xlu0 %670 }
 0x1d9   : > { %10699 = vst [vmem:[#allocation33_spill] sm:$0xff] %v6032_v26 }
 0x1da   : > { %934 = vrot.lane.b32.xlu1 %v575_v2, %s5231_s14  ;;  %978 = vrot.lane.b32.xlu0 %v6037_v30, %s5220_s16  ;;  %v6127_v2 = vmul.f32 0.006712344, %v6074_v42  ;;  %v1149_v30 = vmul.f32 0.005233111, %v6056_v32 }
 0x1dc   : > { %v6046_v7 = vpop.permute.xlu1 %672  ;;  %v6048_v37 = vpop.permute.xlu0 %674  ;;  %10713 = vst [vmem:[#allocation22_spill] sm:$0xff] %v6127_v2 }
 0x1dd   : > { %10702 = vst [vmem:[#allocation47_spill] sm:$0xff] %v6046_v7 }
 0x1de   : > { %980 = vrot.lane.b32.xlu1 %v6051_v13, %s5220_s16  ;;  %982 = vrot.lane.b32.xlu0 %v6054_v31, %s5220_s16  ;;  %v1148_v31 = vmul.f32 0.005233111, %v6041_v39 }
 0x1e0   : > { %v6064_v43 = vpop.permute.xlu1 %676  ;;  %v6066_v21 = vpop.permute.xlu0 %702 }
 0x1e1   : > { %10705 = vst [vmem:[#allocation36_spill] sm:$0xff] %v6064_v43  ;;  %v6186_v43 = vmul.f32 0.005690264, %v6041_v39 }
 0x1e2   : > { %984 = vrot.lane.b32.xlu1 %v6069_v16, %s5220_s16  ;;  %986 = vrot.lane.b32.xlu0 %v6072_v40, %s5220_s16  ;;  %v1147_v16 = vmul.f32 0.005233111, %v6039_v36 }
 0x1e4   : > { %v6080_v51 = vpop.permute.xlu1 %704  ;;  %v6082_v55 = vpop.permute.xlu0 %706 }
 0x1e5   : > { %10708 = vst [vmem:[#allocation24_spill] sm:$0xff] %v6080_v51 }
 0x1e6   : > { %988 = vrot.lane.b32.xlu1 %v6085_v22, %s5220_s16  ;;  %1014 = vrot.lane.b32.xlu0 %v6088_v62, %s5221_s25  ;;  %v1146_v22 = vmul.f32 0.005233111, %v6028_v17 }
 0x1e8   : > { %v6094_v47 = vpop.permute.xlu1 %708  ;;  %v6096_v18 = vpop.permute.xlu0 %710 }
 0x1e9   : > { %10710 = vst [vmem:[#allocation19_spill] sm:$0xff] %v6094_v47 }
 0x1ea   : > { %1016 = vrot.lane.b32.xlu1 %v6099_v49, %s5221_s25  ;;  %1018 = vrot.lane.b32.xlu0 %v6102_v33, %s5221_s25 }
 0x1ec   : > { %v6108_v25 = vpop.permute.xlu1 %712  ;;  %v6110_v45 = vpop.permute.xlu0 %738 }
 0x1ed   : > { %10711 = vst [vmem:[#allocation25_spill] sm:$0xff] %v6108_v25 }
 0x1ee   : > { %1020 = vrot.lane.b32.xlu1 %v6113_v54, %s5221_s25  ;;  %1022 = vrot.lane.b32.xlu0 %v6116_v46, %s5221_s25 }
 0x1f0   : > { %v6122_v61 = vpop.permute.xlu1 %740  ;;  %v6124_v38 = vpop.permute.xlu0 %742 }
 0x1f1   : > { %10712 = vst [vmem:[#allocation26_spill] sm:$0xff] %v6122_v61 }
 0x1f2   : > { %1024 = vrot.lane.b32.xlu1 %v6127_v2, %s5221_s25  ;;  %1050 = vrot.lane.b32.xlu0 %v6130_v9, %s5222_s27  ;;  %v1150_v2 = vmul.f32 0.005233111, %v6058_v41 }
 0x1f4   : > { %v6136_v57 = vpop.permute.xlu1 %744  ;;  %v6138_v63 = vpop.permute.xlu0 %746 }
 0x1f5   : > { %10714 = vst [vmem:[#allocation28_spill] sm:$0xff] %v6136_v57  ;;  %v6183_v57 = vmul.f32 0.005690264, %v6039_v36  ;;  %v1151_v36 = vmul.f32 0.005233111, %v6074_v42 }
 0x1f6   : > { %1052 = vrot.lane.b32.xlu1 %v6141_v5, %s5222_s27  ;;  %1054 = vrot.lane.b32.xlu0 %v6144_v8, %s5222_s27 }
 0x1f8   : > { %v6150_v20 = vpop.permute.xlu1 %748  ;;  %v6152_v59 = vpop.permute.xlu0 %774 }
 0x1f9   : > { %10715 = vst [vmem:[#allocation29_spill] sm:$0xff] %v6150_v20 }
 0x1fa   : > { %1056 = vrot.lane.b32.xlu1 %v6155_v11, %s5222_s27  ;;  %1058 = vrot.lane.b32.xlu0 %v6158_v12, %s5222_s27 }
 0x1fc   : > { %v6164_v60 = vpop.permute.xlu1 %776  ;;  %v6166_v10 = vpop.permute.xlu0 %778 }
 0x1fd   : > { %10716 = vst [vmem:[#allocation30_spill] sm:$0xff] %v6164_v60 }
 0x1fe   : > { %1060 = vrot.lane.b32.xlu1 %v6169_v58, %s5222_s27  ;;  %1086 = vrot.lane.b32.xlu0 %v6172_v56, %s5223_s28 }
 0x200   : > { %v6178_v20 = vpop.permute.xlu1 %780  ;;  %v6180_v25 = vpop.permute.xlu0 %782 }
 0x201   : > { %10717 = vst [vmem:[#allocation13_spill] sm:$0xff] %v6178_v20  ;;  %v6197_v20 = vmul.f32 0.005690264, %v6056_v32 }
 0x202   : > { %1088 = vrot.lane.b32.xlu1 %v6183_v57, %s5223_s28  ;;  %1090 = vrot.lane.b32.xlu0 %v6186_v43, %s5223_s28 }
 0x204   : > { %v6192_v60 = vpop.permute.xlu1 %784  ;;  %v6194_v47 = vpop.permute.xlu0 %798 }
 0x205   : > { %10718 = vst [vmem:[#allocation16_spill] sm:$0xff] %v6192_v60  ;;  %v6211_v60 = vmul.f32 0.005690264, %v6074_v42 }
 0x206   : > { %1092 = vrot.lane.b32.xlu1 %v6197_v20, %s5223_s28  ;;  %1094 = vrot.lane.b32.xlu0 %v6200_v27, %s5223_s28 }
 0x208   : > { %v6206_v61 = vpop.permute.xlu1 %800  ;;  %v6208_v7 = vpop.permute.xlu0 %802 }
 0x209   : > { %10719 = vst [vmem:[#allocation17_spill] sm:$0xff] %v6206_v61  ;;  %v1112_v61 = vmul.f32 0.0053551784, %v6041_v39 }
 0x20a   : > { %1096 = vrot.lane.b32.xlu1 %v6211_v60, %s5223_s28  ;;  %1122 = vrot.lane.b32.xlu0 %v1110_v3, %s5224_s30 }
 0x20c   : > { %v6217_v0 = vpop.permute.xlu1 %804  ;;  %v6219_v51 = vpop.permute.xlu0 %806 }
 0x20d   : > { %10720 = vst [vmem:[#allocation20_spill] sm:$0xff] %v6217_v0 }
 0x20e   : > { %1124 = vrot.lane.b32.xlu1 %v1111_v14, %s5224_s30  ;;  %1126 = vrot.lane.b32.xlu0 %v1112_v61, %s5224_s30 }
 0x210   : > { %v6225_v26 = vpop.permute.xlu1 %808  ;;  %v6227_v35 = vpop.permute.xlu0 %822 }
 0x211   : > { %10721 = vst [vmem:[#allocation21_spill] sm:$0xff] %v6225_v26 }
 0x212   : > { %1128 = vrot.lane.b32.xlu1 %v1113_v50, %s5224_s30  ;;  %1130 = vrot.lane.b32.xlu0 %v1114_v23, %s5224_s30 }
 0x214   : > { %v6233_v0 = vpop.permute.xlu1 %824  ;;  %v6235_v1 = vpop.permute.xlu0 %826 }
 0x215   : > { %10722 = vst [vmem:[#allocation23_spill] sm:$0xff] %v6233_v0 }
 0x216   : > { %1132 = vrot.lane.b32.xlu1 %v1115_v44, %s5224_s30  ;;  %1158 = vrot.lane.b32.xlu0 %v1146_v22, %s5225_s2 }
 0x218   : > { %v6241_v26 = vpop.permute.xlu1 %828  ;;  %v6243_v40 = vpop.permute.xlu0 %830 }
 0x219   : > { %10723 = vst [vmem:[#allocation51_spill] sm:$0xff] %v6241_v26 }
 0x21a   : > { %1160 = vrot.lane.b32.xlu1 %v1147_v16, %s5225_s2  ;;  %1162 = vrot.lane.b32.xlu0 %v1148_v31, %s5225_s2 }
 0x21c   : > { %v6249_v0 = vpop.permute.xlu1 %832  ;;  %v847_v13 = vpop.permute.xlu0 %846 }
 0x21d   : > { %10724 = vst [vmem:[#allocation52_spill] sm:$0xff] %v6249_v0 }
 0x21e   : > { %1164 = vrot.lane.b32.xlu1 %v1149_v30, %s5225_s2  ;;  %1166 = vrot.lane.b32.xlu0 %v1150_v2, %s5225_s2  ;;  %v612_v2 = vadd.f32 %v5977_v29, %v5950_v34 }
 0x220   : > { %v6255_v22 = vpop.permute.xlu1 %848  ;;  %v851_v26 = vpop.permute.xlu0 %850 }
 0x222   : > { %1168 = vrot.lane.b32.xlu1 %v1151_v36, %s5225_s2  ;;  %1182 = vrot.lane.b32.xlu0 %v1110_v3, %s5226_s3 }
 0x224   : > { %v6260_v31 = vpop.permute.xlu1 %852  ;;  %v855_v16 = vpop.permute.xlu0 %854 }
 0x225   : > { %10725 = vst [vmem:[#allocation53_spill] sm:$0xff] %v6260_v31  ;;  %v648_v31 = vadd.f32 %v6004_v4, %v612_v2 }
 0x226   : > { %1184 = vrot.lane.b32.xlu1 %v1111_v14, %s5226_s3  ;;  %1186 = vrot.lane.b32.xlu0 %v1112_v61, %s5226_s3  ;;  %v614_v14 = vadd.f32 %v5988_v53, %v5964_v48 }
 0x228   : > { %v6264_v0 = vpop.permute.xlu1 %856  ;;  %v871_v30 = vpop.permute.xlu0 %870  ;;  %v650_v34 = vadd.f32 %v6012_v15, %v614_v14  ;;  %v958_v14 = vmul.f32 0.0078077544, %v6058_v41 }
 0x22a   : > { %1188 = vrot.lane.b32.xlu1 %v1113_v50, %s5226_s3  ;;  %1190 = vrot.lane.b32.xlu0 %v1114_v23, %s5226_s3  ;;  %v684_v50 = vadd.f32 %v6026_v28, %v648_v31 }
 0x22c   : > { %v6270_v36 = vpop.permute.xlu1 %872  ;;  %v875_v3 = vpop.permute.xlu0 %874  ;;  %v720_v29 = vadd.f32 %v6066_v21, %v684_v50 }
 0x22e   : > { %1192 = vrot.lane.b32.xlu1 %v1115_v44, %s5226_s3  ;;  %1206 = vrot.lane.b32.xlu0 %v6172_v56, %s5227_s4  ;;  %v616_v56 = vadd.f32 %v5996_v19, %v5975_v52  ;;  %v686_v44 = vadd.f32 %v6034_v6, %v650_v34  ;;  %v756_v48 = vadd.f32 %v6110_v45, %v720_v29 }
 0x230   : > { %v6279_v61 = vpop.permute.xlu1 %876  ;;  %v879_v23 = vpop.permute.xlu0 %878  ;;  %v652_v15 = vadd.f32 %v6020_v24, %v616_v56  ;;  %v722_v28 = vadd.f32 %v6082_v55, %v686_v44  ;;  %v792_v21 = vadd.f32 %v6152_v59, %v756_v48  ;;  %v10730_v56 = vld [vmem:[#allocation12_spill] sm:$0xff]  ;;  %v10733_v48 = vld [vmem:[#allocation14_spill] sm:$0xff] }
 0x232   : > { %1208 = vrot.lane.b32.xlu1 %v6183_v57, %s5227_s4  ;;  %1210 = vrot.lane.b32.xlu0 %v6186_v43, %s5227_s4  ;;  %v688_v52 = vadd.f32 %v6048_v37, %v652_v15  ;;  %v758_v19 = vadd.f32 %v6124_v38, %v722_v28  ;;  %v816_v6 = vadd.f32 %v6194_v47, %v792_v21  ;;  %v10736_v21 = vld [vmem:[#allocation18_spill] sm:$0xff] }
 0x234   : > { %v6291_v53 = vpop.permute.xlu1 %880  ;;  %v895_v4 = vpop.permute.xlu0 %894  ;;  %v724_v24 = vadd.f32 %v6096_v18, %v688_v52  ;;  %v794_v55 = vadd.f32 %v6166_v10, %v758_v19  ;;  %v840_v57 = vadd.f32 %v6227_v35, %v816_v6  ;;  %v10737_v52 = vld [vmem:[#allocation40_spill] sm:$0xff] }
 0x235   : > { %v6391_v19 = vmul.f32 0.0078077544, %v10737_v52 }
 0x236   : > { %1212 = vrot.lane.b32.xlu1 %v6197_v20, %s5227_s4  ;;  %1214 = vrot.lane.b32.xlu0 %v6200_v27, %s5227_s4  ;;  %v760_v27 = vadd.f32 %v6138_v63, %v724_v24  ;;  %v818_v37 = vadd.f32 %v6208_v7, %v794_v55  ;;  %v864_v47 = vadd.f32 %v847_v13, %v840_v57  ;;  %v6401_v24 = vmul.f32 0.0078077544, %v6056_v32 }
 0x238   : > { %v6303_v43 = vpop.permute.xlu1 %896  ;;  %v899_v45 = vpop.permute.xlu0 %898  ;;  %v796_v18 = vadd.f32 %v6180_v25, %v760_v27  ;;  %v842_v10 = vadd.f32 %v6235_v1, %v818_v37  ;;  %v888_v59 = vadd.f32 %v871_v30, %v864_v47  ;;  %v954_v25 = vmul.f32 0.0078077544, %v6028_v17  ;;  %v6407_v27 = vld [vmem:[#allocation2 + $0x3] sm:$0xff] }
 0x239   : > { %10742 = vst [vmem:[#allocation40_spill] sm:$0xff] %v6407_v27  ;;  %v6413_v37 = vmul.f32 0.0078077544, %v6074_v42  ;;  %v6420_v32 = vmul.f32 0.0068483097, %v6407_v27 }
 0x23a   : > { %1216 = vrot.lane.b32.xlu1 %v6211_v60, %s5227_s4  ;;  %1230 = vrot.lane.b32.xlu0 %v6130_v9, %s5228_s5  ;;  %v820_v35 = vadd.f32 %v6219_v51, %v796_v18  ;;  %v866_v9 = vadd.f32 %v851_v26, %v842_v10  ;;  %v912_v63 = vadd.f32 %v895_v4, %v888_v59  ;;  %v10734_v4 = vld [vmem:[#allocation15_spill] sm:$0xff]  ;;  %v6424_v10 = vld [vmem:[#allocation2 + $0x23] sm:$0xff] }
 0x23b   : > { %10740 = vst [vmem:[#allocation15_spill] sm:$0xff] %v6401_v24  ;;  %10743 = vst [vmem:[#allocation55_spill] sm:$0xff] %v6413_v37  ;;  %v6422_v18 = vld [vmem:[#allocation2 + $0xb] sm:$0xff] }
 0x23c   : > { %v6314_v38 = vpop.permute.xlu1 %900  ;;  %v903_v20 = vpop.permute.xlu0 %902  ;;  %v844_v60 = vadd.f32 %v6243_v40, %v820_v35  ;;  %v890_v31 = vadd.f32 %v875_v3, %v866_v9  ;;  %v956_v40 = vmul.f32 0.0078077544, %v6041_v39  ;;  %10745 = vst [vmem:[#allocation57_spill] sm:$0xff] %v6420_v32  ;;  %10746 = vst [vmem:[#allocation58_spill] sm:$0xff] %v6422_v18  ;;  %v6435_v35 = vmul.f32 0.0068483097, %v6422_v18 }
 0x23d   : > { %10747 = vst [vmem:[#allocation59_spill] sm:$0xff] %v6424_v10  ;;  %v6438_v9 = vmul.f32 0.0068483097, %v6424_v10 }
 0x23e   : > { %1232 = vrot.lane.b32.xlu1 %v6141_v5, %s5228_s5  ;;  %1234 = vrot.lane.b32.xlu0 %v6144_v8, %s5228_s5  ;;  %v868_v5 = vadd.f32 %v855_v16, %v844_v60  ;;  %v914_v8 = vadd.f32 %v899_v45, %v890_v31  ;;  %10750 = vst [vmem:[#allocation62_spill] sm:$0xff] %v6435_v35 }
 0x23f   : > { %10751 = vst [vmem:[#allocation63_spill] sm:$0xff] %v6438_v9 }
 0x240   : > { %v6323_v7 = vpop.permute.xlu1 %904  ;;  %v925_v13 = vpop.permute.xlu0 %924  ;;  %v892_v2 = vadd.f32 %v879_v23, %v868_v5  ;;  %v6458_v5 = vld [vmem:[#allocation2 + $0x4b] sm:$0xff] }
 0x241   : > { %v942_v1 = vadd.f32 %v925_v13, %v912_v63  ;;  %v6440_v63 = vld [vmem:[#allocation2 + $0x2b] sm:$0xff]  ;;  %v6442_v13 = vld [vmem:[#allocation2 + $0x43] sm:$0xff] }
 0x242   : > { %1236 = vrot.lane.b32.xlu1 %v6155_v11, %s5228_s5  ;;  %1238 = vrot.lane.b32.xlu0 %v6158_v12, %s5228_s5  ;;  %v916_v17 = vadd.f32 %v903_v20, %v892_v2  ;;  %10752 = vst [vmem:[#allocation64_spill] sm:$0xff] %v6440_v63  ;;  %v6469_v2 = vmul.f32 0.0068483097, %v6458_v5 }
 0x243   : > { %v6331_v51 = vadd.f32 %v954_v25, %v942_v1  ;;  %v6456_v1 = vmul.f32 0.0068483097, %v6442_v13 }
 0x244   : > { %v6333_v26 = vpop.permute.xlu1 %926  ;;  %v929_v30 = vpop.permute.xlu0 %928  ;;  %10758 = vst [vmem:[#allocation70_spill] sm:$0xff] %v6469_v2 }
 0x245   : > { %v944_v3 = vadd.f32 %v929_v30, %v914_v8  ;;  %10755 = vst [vmem:[#allocation67_spill] sm:$0xff] %v6456_v1 }
 0x246   : > { %1240 = vrot.lane.b32.xlu1 %v6169_v58, %s5228_s5  ;;  %1254 = vrot.lane.b32.xlu0 %v6088_v62, %s5229_s11 }
 0x247   : > { %v6340_v11 = vadd.f32 %v956_v40, %v944_v3 }
 0x248   : > { %v6342_v12 = vpop.permute.xlu1 %930  ;;  %v933_v16 = vpop.permute.xlu0 %932 }
 0x249   : > { %v946_v50 = vadd.f32 %v933_v16, %v916_v17  ;;  %v6483_v16 = vmul.f32 0.00616707, %v6422_v18 }
 0x24a   : > { %1256 = vrot.lane.b32.xlu1 %v6099_v49, %s5229_s11  ;;  %1258 = vrot.lane.b32.xlu0 %v6102_v33, %s5229_s11  ;;  %v10727_v49 = vld [vmem:[#allocation22_spill] sm:$0xff]  ;;  %v10728_v33 = vld [vmem:[#allocation44_spill] sm:$0xff] }
 0x24b   : > { %v6349_v39 = vadd.f32 %v958_v14, %v946_v50  ;;  %10762 = vst [vmem:[#allocation74_spill] sm:$0xff] %v6483_v16 }
 0x24c   : > { %v6351_v58 = vpop.permute.xlu1 %934  ;;  %v6353_v62 = vpop.permute.xlu0 %978 }
 0x24e   : > { %1260 = vrot.lane.b32.xlu1 %v6113_v54, %s5229_s11  ;;  %1262 = vrot.lane.b32.xlu0 %v6116_v46, %s5229_s11  ;;  %v10731_v54 = vld [vmem:[#allocation45_spill] sm:$0xff] }
 0x24f   : > { %10738 = vst [vmem:[#allocation45_spill] sm:$0xff] %v6391_v19 }
 0x250   : > { %v6359_v41 = vpop.permute.xlu1 %980  ;;  %v6361_v23 = vpop.permute.xlu0 %982 }
 0x251   : > { %10726 = vst [vmem:[#allocation54_spill] sm:$0xff] %v6359_v41 }
 0x252   : > { %1264 = vrot.lane.b32.xlu1 %v10727_v49, %s5229_s11  ;;  %1278 = vrot.lane.b32.xlu0 %v10728_v33, %s5230_s13  ;;  %v6497_v33 = vmul.f32 0.00616707, %v6440_v63 }
 0x254   : > { %v6367_v34 = vpop.permute.xlu1 %984  ;;  %v6369_v29 = vpop.permute.xlu0 %986  ;;  %10765 = vst [vmem:[#allocation77_spill] sm:$0xff] %v6497_v33 }
 0x255   : > { %10729 = vst [vmem:[#allocation22_spill] sm:$0xff] %v6367_v34 }
 0x256   : > { %1280 = vrot.lane.b32.xlu1 %v10730_v56, %s5230_s13  ;;  %1282 = vrot.lane.b32.xlu0 %v10731_v54, %s5230_s13  ;;  %v6500_v56 = vmul.f32 0.00616707, %v6442_v13 }
 0x258   : > { %v6375_v46 = vpop.permute.xlu1 %988  ;;  %v6377_v44 = vpop.permute.xlu0 %1014  ;;  %10766 = vst [vmem:[#allocation78_spill] sm:$0xff] %v6500_v56 }
 0x259   : > { %10732 = vst [vmem:[#allocation44_spill] sm:$0xff] %v6375_v46 }
 0x25a   : > { %1284 = vrot.lane.b32.xlu1 %v10733_v48, %s5230_s13  ;;  %1286 = vrot.lane.b32.xlu0 %v10734_v4, %s5230_s13  ;;  %v6511_v4 = vmul.f32 0.00616707, %v6458_v5 }
 0x25c   : > { %v6383_v15 = vpop.permute.xlu1 %1016  ;;  %v6385_v28 = vpop.permute.xlu0 %1018  ;;  %10769 = vst [vmem:[#allocation81_spill] sm:$0xff] %v6511_v4 }
 0x25d   : > { %10735 = vst [vmem:[#allocation12_spill] sm:$0xff] %v6383_v15 }
 0x25e   : > { %1288 = vrot.lane.b32.xlu1 %v10736_v21, %s5230_s13  ;;  %1308 = vrot.lane.b32.xlu0 %v954_v25, %s5231_s14  ;;  %v6453_v25 = vmul.f32 0.0068483097, %v6440_v63  ;;  %v6514_v21 = vmul.f32 0.005471756, %v6407_v27 }
 0x260   : > { %v6393_v6 = vpop.permute.xlu1 %1020  ;;  %v6395_v45 = vpop.permute.xlu0 %1022  ;;  %10754 = vst [vmem:[#allocation66_spill] sm:$0xff] %v6453_v25  ;;  %10770 = vst [vmem:[#allocation82_spill] sm:$0xff] %v6514_v21 }
 0x261   : > { %10739 = vst [vmem:[#allocation14_spill] sm:$0xff] %v6393_v6 }
 0x262   : > { %1310 = vrot.lane.b32.xlu1 %v6391_v19, %s5231_s14  ;;  %1312 = vrot.lane.b32.xlu0 %v956_v40, %s5231_s14  ;;  %v6472_v40 = vmul.f32 0.00616707, %v6407_v27 }
 0x264   : > { %v6403_v55 = vpop.permute.xlu1 %1024  ;;  %v6405_v57 = vpop.permute.xlu0 %1050  ;;  %10759 = vst [vmem:[#allocation71_spill] sm:$0xff] %v6472_v40 }
 0x265   : > { %10741 = vst [vmem:[#allocation18_spill] sm:$0xff] %v6403_v55  ;;  %v1530_v55 = vmul.f32 0.0041630557, %v6407_v27 }
 0x266   : > { %1314 = vrot.lane.b32.xlu1 %v6401_v24, %s5231_s14  ;;  %1316 = vrot.lane.b32.xlu0 %v958_v14, %s5231_s14  ;;  %v6486_v14 = vmul.f32 0.00616707, %v6424_v10 }
 0x268   : > { %v6415_v47 = vpop.permute.xlu1 %1052  ;;  %v6417_v20 = vpop.permute.xlu0 %1054  ;;  %10763 = vst [vmem:[#allocation75_spill] sm:$0xff] %v6486_v14 }
 0x269   : > { %10744 = vst [vmem:[#allocation56_spill] sm:$0xff] %v6415_v47 }
 0x26a   : > { %1318 = vrot.lane.b32.xlu1 %v6413_v37, %s5231_s14  ;;  %1362 = vrot.lane.b32.xlu0 %v6420_v32, %s5220_s16  ;;  %v6539_v32 = vmul.f32 0.005471756, %v6440_v63 }
 0x26c   : > { %v6430_v59 = vpop.permute.xlu1 %1056  ;;  %v6432_v42 = vpop.permute.xlu0 %1058  ;;  %10777 = vst [vmem:[#allocation89_spill] sm:$0xff] %v6539_v32 }
 0x26d   : > { %10748 = vst [vmem:[#allocation60_spill] sm:$0xff] %v6430_v59  ;;  %10749 = vst [vmem:[#allocation61_spill] sm:$0xff] %v6432_v42  ;;  %v10801_v42 = vld [vmem:[#allocation38_spill] sm:$0xff] }
 0x26e   : > { %1364 = vrot.lane.b32.xlu1 %v6435_v35, %s5220_s16  ;;  %1366 = vrot.lane.b32.xlu0 %v6438_v9, %s5220_s16 }
 0x270   : > { %v6448_v60 = vpop.permute.xlu1 %1060  ;;  %v6450_v31 = vpop.permute.xlu0 %1086 }
 0x271   : > { %10753 = vst [vmem:[#allocation65_spill] sm:$0xff] %v6448_v60  ;;  %v1495_v60 = vmul.f32 0.004346484, %v6422_v18 }
 0x272   : > { %1368 = vrot.lane.b32.xlu1 %v6453_v25, %s5220_s16  ;;  %1370 = vrot.lane.b32.xlu0 %v6456_v1, %s5220_s16  ;;  %v6525_v1 = vmul.f32 0.005471756, %v6422_v18  ;;  %v6528_v25 = vmul.f32 0.005471756, %v6424_v10 }
 0x274   : > { %v6464_v8 = vpop.permute.xlu1 %1088  ;;  %v6466_v30 = vpop.permute.xlu0 %1090  ;;  %10773 = vst [vmem:[#allocation85_spill] sm:$0xff] %v6525_v1  ;;  %10774 = vst [vmem:[#allocation86_spill] sm:$0xff] %v6528_v25 }
 0x275   : > { %10756 = vst [vmem:[#allocation68_spill] sm:$0xff] %v6464_v8  ;;  %10757 = vst [vmem:[#allocation69_spill] sm:$0xff] %v6466_v30  ;;  %v10809_v30 = vld [vmem:[#allocation47_spill] sm:$0xff] }
 0x276   : > { %1372 = vrot.lane.b32.xlu1 %v6469_v2, %s5220_s16  ;;  %1398 = vrot.lane.b32.xlu0 %v6472_v40, %s5221_s25 }
 0x278   : > { %v6478_v3 = vpop.permute.xlu1 %1092  ;;  %v6480_v17 = vpop.permute.xlu0 %1094 }
 0x279   : > { %10760 = vst [vmem:[#allocation72_spill] sm:$0xff] %v6478_v3  ;;  %10761 = vst [vmem:[#allocation73_spill] sm:$0xff] %v6480_v17 }
 0x27a   : > { %1400 = vrot.lane.b32.xlu1 %v6483_v16, %s5221_s25  ;;  %1402 = vrot.lane.b32.xlu0 %v6486_v14, %s5221_s25  ;;  %v6553_v14 = vmul.f32 0.005471756, %v6458_v5  ;;  %v6556_v16 = vmul.f32 0.0048279855, %v6407_v27 }
 0x27c   : > { %v6492_v50 = vpop.permute.xlu1 %1096  ;;  %v6494_v49 = vpop.permute.xlu0 %1122  ;;  %10781 = vst [vmem:[#allocation93_spill] sm:$0xff] %v6553_v14 }
 0x27d   : > { %10764 = vst [vmem:[#allocation76_spill] sm:$0xff] %v6492_v50 }
 0x27e   : > { %1404 = vrot.lane.b32.xlu1 %v6497_v33, %s5221_s25  ;;  %1406 = vrot.lane.b32.xlu0 %v6500_v56, %s5221_s25 }
 0x280   : > { %v6506_v54 = vpop.permute.xlu1 %1124  ;;  %v6508_v48 = vpop.permute.xlu0 %1126 }
 0x281   : > { %10767 = vst [vmem:[#allocation79_spill] sm:$0xff] %v6506_v54  ;;  %10768 = vst [vmem:[#allocation80_spill] sm:$0xff] %v6508_v48  ;;  %v10800_v54 = vld [vmem:[#allocation41_spill] sm:$0xff] }
 0x282   : > { %1408 = vrot.lane.b32.xlu1 %v6511_v4, %s5221_s25  ;;  %1434 = vrot.lane.b32.xlu0 %v6514_v21, %s5222_s27  ;;  %v6542_v4 = vmul.f32 0.005471756, %v6442_v13 }
 0x284   : > { %v6520_v52 = vpop.permute.xlu1 %1128  ;;  %v6522_v2 = vpop.permute.xlu0 %1130  ;;  %10778 = vst [vmem:[#allocation90_spill] sm:$0xff] %v6542_v4 }
 0x285   : > { %10771 = vst [vmem:[#allocation83_spill] sm:$0xff] %v6520_v52  ;;  %10772 = vst [vmem:[#allocation84_spill] sm:$0xff] %v6522_v2  ;;  %v1494_v2 = vmul.f32 0.004346484, %v6407_v27  ;;  %v1531_v27 = vmul.f32 0.0041630557, %v6422_v18 }
 0x286   : > { %1436 = vrot.lane.b32.xlu1 %v6525_v1, %s5222_s27  ;;  %1438 = vrot.lane.b32.xlu0 %v6528_v25, %s5222_s27  ;;  %v6570_v25 = vmul.f32 0.0048279855, %v6424_v10 }
 0x288   : > { %v6534_v9 = vpop.permute.xlu1 %1132  ;;  %v6536_v35 = vpop.permute.xlu0 %1158 }
 0x289   : > { %10775 = vst [vmem:[#allocation87_spill] sm:$0xff] %v6534_v9  ;;  %10776 = vst [vmem:[#allocation88_spill] sm:$0xff] %v6536_v35  ;;  %v6581_v9 = vmul.f32 0.0048279855, %v6440_v63 }
 0x28a   : > { %1440 = vrot.lane.b32.xlu1 %v6539_v32, %s5222_s27  ;;  %1442 = vrot.lane.b32.xlu0 %v6542_v4, %s5222_s27  ;;  %v6567_v4 = vmul.f32 0.0048279855, %v6422_v18 }
 0x28b   : > { %10786 = vst [vmem:[#allocation98_spill] sm:$0xff] %v6581_v9 }
 0x28c   : > { %v6548_v56 = vpop.permute.xlu1 %1160  ;;  %v6550_v33 = vpop.permute.xlu0 %1162 }
 0x28d   : > { %10779 = vst [vmem:[#allocation91_spill] sm:$0xff] %v6548_v56  ;;  %10780 = vst [vmem:[#allocation92_spill] sm:$0xff] %v6550_v33  ;;  %v6617_v56 = vmul.f32 0.004346484, %v6442_v13 }
 0x28e   : > { %1444 = vrot.lane.b32.xlu1 %v6553_v14, %s5222_s27  ;;  %1470 = vrot.lane.b32.xlu0 %v6556_v16, %s5223_s28 }
 0x290   : > { %v6562_v40 = vpop.permute.xlu1 %1164  ;;  %v6564_v32 = vpop.permute.xlu0 %1166 }
 0x291   : > { %10782 = vst [vmem:[#allocation94_spill] sm:$0xff] %v6562_v40  ;;  %10783 = vst [vmem:[#allocation95_spill] sm:$0xff] %v6564_v32  ;;  %v6584_v32 = vmul.f32 0.0048279855, %v6442_v13 }
 0x292   : > { %1472 = vrot.lane.b32.xlu1 %v6567_v4, %s5223_s28  ;;  %1474 = vrot.lane.b32.xlu0 %v6570_v25, %s5223_s28 }
 0x293   : > { %10787 = vst [vmem:[#allocation99_spill] sm:$0xff] %v6584_v32 }
 0x294   : > { %v6576_v14 = vpop.permute.xlu1 %1168  ;;  %v6578_v1 = vpop.permute.xlu0 %1182 }
 0x295   : > { %10784 = vst [vmem:[#allocation96_spill] sm:$0xff] %v6576_v14  ;;  %10785 = vst [vmem:[#allocation97_spill] sm:$0xff] %v6578_v1  ;;  %v6595_v14 = vmul.f32 0.0048279855, %v6458_v5  ;;  %v10799_v1 = vld [vmem:[#allocation46_spill] sm:$0xff] }
 0x296   : > { %1476 = vrot.lane.b32.xlu1 %v6581_v9, %s5223_s28  ;;  %1478 = vrot.lane.b32.xlu0 %v6584_v32, %s5223_s28  ;;  %v615_v32 = vadd.f32 %v10801_v42, %v10800_v54  ;;  %v10807_v42 = vld [vmem:[#allocation42_spill] sm:$0xff]  ;;  %v10808_v54 = vld [vmem:[#allocation39_spill] sm:$0xff] }
 0x297   : > { %10790 = vst [vmem:[#allocation102_spill] sm:$0xff] %v6595_v14  ;;  %v617_v35 = vadd.f32 %v10808_v54, %v10807_v42  ;;  %v10814_v42 = vld [vmem:[#allocation30_spill] sm:$0xff]  ;;  %v10816_v54 = vld [vmem:[#allocation28_spill] sm:$0xff] }
 0x298   : > { %v6590_v40 = vpop.permute.xlu1 %1184  ;;  %v6592_v50 = vpop.permute.xlu0 %1186 }
 0x299   : > { %10788 = vst [vmem:[#allocation100_spill] sm:$0xff] %v6590_v40  ;;  %10789 = vst [vmem:[#allocation101_spill] sm:$0xff] %v6592_v50  ;;  %v1496_v40 = vmul.f32 0.004346484, %v6424_v10 }
 0x29a   : > { %1480 = vrot.lane.b32.xlu1 %v6595_v14, %s5223_s28  ;;  %1506 = vrot.lane.b32.xlu0 %v1494_v2, %s5224_s30  ;;  %v6614_v14 = vmul.f32 0.004346484, %v6440_v63 }
 0x29c   : > { %v6601_v21 = vpop.permute.xlu1 %1188  ;;  %v6603_v52 = vpop.permute.xlu0 %1190 }
 0x29d   : > { %10791 = vst [vmem:[#allocation103_spill] sm:$0xff] %v6601_v21  ;;  %10792 = vst [vmem:[#allocation104_spill] sm:$0xff] %v6603_v52  ;;  %v10795_v52 = vld [vmem:[#allocation31_spill] sm:$0xff] }
 0x29e   : > { %1508 = vrot.lane.b32.xlu1 %v1495_v60, %s5224_s30  ;;  %1510 = vrot.lane.b32.xlu0 %v1496_v40, %s5224_s30  ;;  %v10796_v21 = vld [vmem:[#allocation27_spill] sm:$0xff] }
 0x29f   : > { %v613_v17 = vadd.f32 %v10796_v21, %v10795_v52  ;;  %v10802_v21 = vld [vmem:[#allocation33_spill] sm:$0xff] }
 0x2a0   : > { %v6609_v50 = vpop.permute.xlu1 %1192  ;;  %v6611_v33 = vpop.permute.xlu0 %1206 }
 0x2a1   : > { %10793 = vst [vmem:[#allocation105_spill] sm:$0xff] %v6609_v50  ;;  %10794 = vst [vmem:[#allocation106_spill] sm:$0xff] %v6611_v33  ;;  %v6630_v33 = vmul.f32 0.004346484, %v6458_v5  ;;  %v649_v48 = vadd.f32 %v10799_v1, %v613_v17  ;;  %v1532_v1 = vmul.f32 0.0041630557, %v6424_v10 }
 0x2a2   : > { %1512 = vrot.lane.b32.xlu1 %v6614_v14, %s5224_s30  ;;  %1514 = vrot.lane.b32.xlu0 %v6617_v56, %s5224_s30  ;;  %v10806_v17 = vld [vmem:[#allocation24_spill] sm:$0xff] }
 0x2a3   : > { %v685_v52 = vadd.f32 %v10802_v21, %v649_v48  ;;  %v10812_v21 = vld [vmem:[#allocation19_spill] sm:$0xff] }
 0x2a4   : > { %v6625_v3 = vpop.permute.xlu1 %1208  ;;  %v6627_v50 = vpop.permute.xlu0 %1210 }
 0x2a5   : > { %10797 = vst [vmem:[#allocation31_spill] sm:$0xff] %v6625_v3  ;;  %10798 = vst [vmem:[#allocation27_spill] sm:$0xff] %v6627_v50  ;;  %v10803_v3 = vld [vmem:[#allocation34_spill] sm:$0xff]  ;;  %v721_v46 = vadd.f32 %v10806_v17, %v685_v52  ;;  %v1533_v52 = vmul.f32 0.0041630557, %v6440_v63 }
 0x2a6   : > { %1516 = vrot.lane.b32.xlu1 %v6630_v33, %s5224_s30  ;;  %1542 = vrot.lane.b32.xlu0 %v1530_v55, %s5225_s2  ;;  %v651_v9 = vadd.f32 %v10803_v3, %v615_v32  ;;  %v10810_v55 = vld [vmem:[#allocation26_spill] sm:$0xff]  ;;  %v10811_v3 = vld [vmem:[#allocation43_spill] sm:$0xff]  ;;  %v1534_v17 = vmul.f32 0.0041630557, %v6442_v13 }
 0x2a7   : > { %v757_v32 = vadd.f32 %v10810_v55, %v721_v46  ;;  %v653_v48 = vadd.f32 %v10811_v3, %v617_v35  ;;  %v10817_v46 = vld [vmem:[#allocation17_spill] sm:$0xff] }
 0x2a8   : > { %v6641_v50 = vpop.permute.xlu1 %1212  ;;  %v6643_v59 = vpop.permute.xlu0 %1214  ;;  %v687_v8 = vadd.f32 %v10809_v30, %v651_v9  ;;  %v10815_v30 = vld [vmem:[#allocation36_spill] sm:$0xff]  ;;  %v10819_v3 = vld [vmem:[#allocation13_spill] sm:$0xff] }
 0x2a9   : > { %10804 = vst [vmem:[#allocation46_spill] sm:$0xff] %v6641_v50  ;;  %10805 = vst [vmem:[#allocation41_spill] sm:$0xff] %v6643_v59  ;;  %v793_v9 = vadd.f32 %v10814_v42, %v757_v32  ;;  %v1535_v32 = vmul.f32 0.0041630557, %v6458_v5  ;;  %v10821_v42 = vld [vmem:[#allocation23_spill] sm:$0xff] }
 0x2aa   : > { %1544 = vrot.lane.b32.xlu1 %v1531_v27, %s5225_s2  ;;  %1546 = vrot.lane.b32.xlu0 %v1532_v1, %s5225_s2  ;;  %v723_v59 = vadd.f32 %v10812_v21, %v687_v8  ;;  %v689_v27 = vadd.f32 %v10815_v30, %v653_v48  ;;  %v10818_v8 = vld [vmem:[#allocation25_spill] sm:$0xff] }
 0x2ab   : > { %v817_v35 = vadd.f32 %v10817_v46, %v793_v9  ;;  %v10822_v30 = vld [vmem:[#allocation29_spill] sm:$0xff]  ;;  %v10824_v9 = vld [vmem:[#allocation16_spill] sm:$0xff] }
 0x2ac   : > { %v6656_v18 = vpop.permute.xlu1 %1216  ;;  %v6658_v10 = vpop.permute.xlu0 %1230  ;;  %v759_v1 = vadd.f32 %v10816_v54, %v723_v59  ;;  %v725_v55 = vadd.f32 %v10818_v8, %v689_v27  ;;  %v10823_v54 = vld [vmem:[#allocation20_spill] sm:$0xff] }
 0x2ad   : > { %10813 = vst [vmem:[#allocation38_spill] sm:$0xff] %v6656_v18  ;;  %v841_v48 = vadd.f32 %v10821_v42, %v817_v35  ;;  %v10827_v42 = vld [vmem:[#allocation21_spill] sm:$0xff] }
 0x2ae   : > { %1548 = vrot.lane.b32.xlu1 %v1533_v52, %s5225_s2  ;;  %1550 = vrot.lane.b32.xlu0 %v1534_v17, %s5225_s2  ;;  %v795_v21 = vadd.f32 %v10819_v3, %v759_v1  ;;  %v761_v59 = vadd.f32 %v10822_v30, %v725_v55  ;;  %v10825_v1 = vld [vmem:[#allocation51_spill] sm:$0xff]  ;;  %v10828_v30 = vld [vmem:[#allocation53_spill] sm:$0xff] }
 0x2af   : > { %v865_v17 = vadd.f32 %v6255_v22, %v841_v48 }
 0x2b0   : > { %v6670_v18 = vpop.permute.xlu1 %1232  ;;  %v6672_v63 = vpop.permute.xlu0 %1234  ;;  %v819_v52 = vadd.f32 %v10823_v54, %v795_v21  ;;  %v797_v27 = vadd.f32 %v10824_v9, %v761_v59 }
 0x2b1   : > { %10820 = vst [vmem:[#allocation33_spill] sm:$0xff] %v6670_v18  ;;  %v889_v35 = vadd.f32 %v6270_v36, %v865_v17 }
 0x2b2   : > { %1552 = vrot.lane.b32.xlu1 %v1535_v32, %s5225_s2  ;;  %1566 = vrot.lane.b32.xlu0 %v1494_v2, %s5226_s3  ;;  %v843_v46 = vadd.f32 %v10825_v1, %v819_v52  ;;  %v821_v55 = vadd.f32 %v10827_v42, %v797_v27  ;;  %v10829_v2 = vld [vmem:[#allocation52_spill] sm:$0xff]  ;;  %v10835_v42 = vld [vmem:[#allocation69_spill] sm:$0xff] }
 0x2b3   : > { %v913_v22 = vadd.f32 %v6303_v43, %v889_v35  ;;  %v996_v43 = vadd.f32 %v6353_v62, %v6331_v51  ;;  %v998_v51 = vadd.f32 %v6361_v23, %v6340_v11  ;;  %v1000_v11 = vadd.f32 %v6369_v29, %v6349_v39  ;;  %v10834_v35 = vld [vmem:[#allocation68_spill] sm:$0xff] }
 0x2b4   : > { %v6683_v8 = vpop.permute.xlu1 %1236  ;;  %v6685_v3 = vpop.permute.xlu0 %1238  ;;  %v867_v21 = vadd.f32 %v10828_v30, %v843_v46  ;;  %v845_v32 = vadd.f32 %v10829_v2, %v821_v55  ;;  %v10836_v39 = vld [vmem:[#allocation88_spill] sm:$0xff]  ;;  %v10840_v2 = vld [vmem:[#allocation99_spill] sm:$0xff] }
 0x2b5   : > { %10826 = vst [vmem:[#allocation34_spill] sm:$0xff] %v6683_v8  ;;  %v943_v36 = vadd.f32 %v6333_v26, %v913_v22  ;;  %v1034_v9 = vadd.f32 %v6385_v28, %v998_v51  ;;  %v10837_v30 = vld [vmem:[#allocation44_spill] sm:$0xff] }
 0x2b6   : > { %1568 = vrot.lane.b32.xlu1 %v1495_v60, %s5226_s3  ;;  %1570 = vrot.lane.b32.xlu0 %v1496_v40, %s5226_s3  ;;  %v891_v48 = vadd.f32 %v6279_v61, %v867_v21  ;;  %v869_v52 = vadd.f32 %v6264_v0, %v845_v32  ;;  %v10841_v32 = vld [vmem:[#allocation61_spill] sm:$0xff] }
 0x2b7   : > { %v961_v0 = vadd.f32 %v6391_v19, %v943_v36  ;;  %v1070_v23 = vadd.f32 %v6417_v20, %v1034_v9  ;;  %v10838_v20 = vld [vmem:[#allocation60_spill] sm:$0xff]  ;;  %v10842_v36 = vld [vmem:[#allocation79_spill] sm:$0xff] }
 0x2b8   : > { %v6695_v59 = vpop.permute.xlu1 %1240  ;;  %v6697_v54 = vpop.permute.xlu0 %1254  ;;  %v915_v17 = vadd.f32 %v6314_v38, %v891_v48  ;;  %v893_v61 = vadd.f32 %v6291_v53, %v869_v52  ;;  %v1032_v38 = vadd.f32 %v6377_v44, %v996_v43  ;;  %v10843_v52 = vld [vmem:[#allocation80_spill] sm:$0xff]  ;;  %v10844_v43 = vld [vmem:[#allocation97_spill] sm:$0xff] }
 0x2b9   : > { %10830 = vst [vmem:[#allocation24_spill] sm:$0xff] %v6695_v59  ;;  %v997_v53 = vadd.f32 %v6359_v41, %v961_v0  ;;  %v1106_v55 = vadd.f32 %v10835_v42, %v1070_v23  ;;  %v10850_v9 = vld [vmem:[#allocation92_spill] sm:$0xff] }
 0x2ba   : > { %1572 = vrot.lane.b32.xlu1 %v6614_v14, %s5226_s3  ;;  %1574 = vrot.lane.b32.xlu0 %v6617_v56, %s5226_s3  ;;  %v945_v60 = vadd.f32 %v6342_v12, %v915_v17  ;;  %v917_v14 = vadd.f32 %v6323_v7, %v893_v61  ;;  %v1068_v12 = vadd.f32 %v6405_v57, %v1032_v38  ;;  %v10846_v38 = vld [vmem:[#allocation72_spill] sm:$0xff] }
 0x2bb   : > { %v1142_v17 = vadd.f32 %v10843_v52, %v1106_v55  ;;  %v10857_v55 = vld [vmem:[#allocation100_spill] sm:$0xff] }
 0x2bc   : > { %v6710_v40 = vpop.permute.xlu1 %1256  ;;  %v6712_v26 = vpop.permute.xlu0 %1258  ;;  %v963_v62 = vadd.f32 %v6401_v24, %v945_v60  ;;  %v947_v56 = vadd.f32 %v6351_v58, %v917_v14  ;;  %v10845_v60 = vld [vmem:[#allocation18_spill] sm:$0xff] }
 0x2bd   : > { %10831 = vst [vmem:[#allocation42_spill] sm:$0xff] %v6710_v40 }
 0x2be   : > { %1576 = vrot.lane.b32.xlu1 %v6630_v33, %s5226_s3  ;;  %1590 = vrot.lane.b32.xlu0 %v6556_v16, %s5227_s4  ;;  %v1033_v33 = vadd.f32 %v6383_v15, %v997_v53  ;;  %v1104_v16 = vadd.f32 %v6450_v31, %v1068_v12  ;;  %v999_v27 = vadd.f32 %v6367_v34, %v963_v62  ;;  %v10848_v12 = vld [vmem:[#allocation73_spill] sm:$0xff] }
 0x2bf   : > { %v965_v28 = vadd.f32 %v6413_v37, %v947_v56  ;;  %v10849_v56 = vld [vmem:[#allocation91_spill] sm:$0xff] }
 0x2c0   : > { %v6727_v44 = vpop.permute.xlu1 %1260  ;;  %v6729_v7 = vpop.permute.xlu0 %1262  ;;  %v1069_v58 = vadd.f32 %v6415_v47, %v1033_v33  ;;  %v1140_v57 = vadd.f32 %v6494_v49, %v1104_v16  ;;  %v1035_v31 = vadd.f32 %v6393_v6, %v999_v27  ;;  %v10839_v49 = vld [vmem:[#allocation98_spill] sm:$0xff]  ;;  %v1178_v16 = vadd.f32 %v10850_v9, %v1142_v17  ;;  %v10862_v17 = vld [vmem:[#allocation95_spill] sm:$0xff] }
 0x2c1   : > { %10832 = vst [vmem:[#allocation39_spill] sm:$0xff] %v6727_v44  ;;  %v1001_v21 = vadd.f32 %v10837_v30, %v965_v28  ;;  %v10851_v27 = vld [vmem:[#allocation106_spill] sm:$0xff] }
 0x2c2   : > { %1592 = vrot.lane.b32.xlu1 %v6567_v4, %s5227_s4  ;;  %1594 = vrot.lane.b32.xlu0 %v6570_v25, %s5227_s4  ;;  %v1036_v4 = vadd.f32 %v6395_v45, %v1000_v11  ;;  %v1105_v25 = vadd.f32 %v10834_v35, %v1069_v58  ;;  %v1176_v29 = vadd.f32 %v10836_v39, %v1140_v57  ;;  %v10852_v58 = vld [vmem:[#allocation65_spill] sm:$0xff]  ;;  %v10853_v57 = vld [vmem:[#allocation83_spill] sm:$0xff] }
 0x2c3   : > { %v1071_v22 = vadd.f32 %v10838_v20, %v1035_v31  ;;  %v1037_v0 = vadd.f32 %v10845_v60, %v1001_v21  ;;  %v10854_v31 = vld [vmem:[#allocation102_spill] sm:$0xff] }
 0x2c4   : > { %v6746_v1 = vpop.permute.xlu1 %1264  ;;  %v1279_v46 = vpop.permute.xlu0 %1278  ;;  %v1072_v48 = vadd.f32 %v10841_v32, %v1036_v4  ;;  %v1141_v45 = vadd.f32 %v10842_v36, %v1105_v25  ;;  %v1200_v61 = vadd.f32 %v10844_v43, %v1176_v29  ;;  %v10855_v4 = vld [vmem:[#allocation82_spill] sm:$0xff]  ;;  %v10856_v25 = vld [vmem:[#allocation84_spill] sm:$0xff]  ;;  %v10858_v29 = vld [vmem:[#allocation101_spill] sm:$0xff] }
 0x2c5   : > { %10833 = vst [vmem:[#allocation47_spill] sm:$0xff] %v6746_v1  ;;  %v1107_v14 = vadd.f32 %v10846_v38, %v1071_v22  ;;  %v1073_v23 = vadd.f32 %v10852_v58, %v1037_v0  ;;  %v1202_v21 = vadd.f32 %v10858_v29, %v1178_v16  ;;  %v10860_v32 = vld [vmem:[#allocation94_spill] sm:$0xff]  ;;  %v10866_v16 = vld [vmem:[#allocation103_spill] sm:$0xff] }
 0x2c6   : > { %1596 = vrot.lane.b32.xlu1 %v10839_v49, %s5227_s4  ;;  %1598 = vrot.lane.b32.xlu0 %v10840_v2, %s5227_s4  ;;  %v1108_v62 = vadd.f32 %v10848_v12, %v1072_v48  ;;  %v1177_v33 = vadd.f32 %v10849_v56, %v1141_v45  ;;  %v1224_v11 = vadd.f32 %v10851_v27, %v1200_v61  ;;  %v10859_v49 = vld [vmem:[#allocation76_spill] sm:$0xff]  ;;  %v10863_v61 = vld [vmem:[#allocation31_spill] sm:$0xff] }
 0x2c7   : > { %v1143_v28 = vadd.f32 %v10853_v57, %v1107_v14  ;;  %v1109_v2 = vadd.f32 %v10859_v49, %v1073_v23  ;;  %v10864_v14 = vld [vmem:[#allocation27_spill] sm:$0xff]  ;;  %v10869_v23 = vld [vmem:[#allocation104_spill] sm:$0xff] }
 0x2c8   : > { %v6764_v53 = vpop.permute.xlu1 %1280  ;;  %v1283_v51 = vpop.permute.xlu0 %1282  ;;  %v1144_v42 = vadd.f32 %v10856_v25, %v1108_v62  ;;  %v1201_v39 = vadd.f32 %v10857_v55, %v1177_v33  ;;  %v1248_v22 = vadd.f32 %v6658_v10, %v1224_v11  ;;  %v1226_v12 = vadd.f32 %v10864_v14, %v1202_v21  ;;  %v10865_v33 = vld [vmem:[#allocation87_spill] sm:$0xff]  ;;  %v10867_v10 = vld [vmem:[#allocation85_spill] sm:$0xff]  ;;  %v10868_v11 = vld [vmem:[#allocation86_spill] sm:$0xff] }
 0x2c9   : > { %10847 = vst [vmem:[#allocation26_spill] sm:$0xff] %v6764_v53  ;;  %v1179_v48 = vadd.f32 %v10860_v32, %v1143_v28  ;;  %v1145_v9 = vadd.f32 %v10865_v33, %v1109_v2  ;;  %v10872_v21 = vld [vmem:[#allocation40_spill] sm:$0xff]  ;;  %v6951_v55 = vld [vmem:[#allocation2 + $0x4c] sm:$0xff] }
 0x2ca   : > { %1600 = vrot.lane.b32.xlu1 %v10854_v31, %s5227_s4  ;;  %1614 = vrot.lane.b32.xlu0 %v10855_v4, %s5228_s5  ;;  %v1180_v43 = vadd.f32 %v10862_v17, %v1144_v42  ;;  %v1225_v0 = vadd.f32 %v10863_v61, %v1201_v39  ;;  %v1272_v62 = vadd.f32 %v6697_v54, %v1248_v22  ;;  %v10870_v42 = vld [vmem:[#allocation96_spill] sm:$0xff]  ;;  %v6802_v22 = vmul.f32 0.007481702, %v10872_v21 }
 0x2cb   : > { %v1203_v27 = vadd.f32 %v10866_v16, %v1179_v48  ;;  %v1250_v4 = vadd.f32 %v6672_v63, %v1226_v12  ;;  %v1181_v39 = vadd.f32 %v10870_v42, %v1145_v9  ;;  %v10873_v48 = vld [vmem:[#allocation41_spill] sm:$0xff]  ;;  %v6962_v57 = vmul.f32 0.0064930846, %v6951_v55 }
 0x2cc   : > { %v6782_v45 = vpop.permute.xlu1 %1284  ;;  %v1287_v52 = vpop.permute.xlu0 %1286  ;;  %v1204_v28 = vadd.f32 %v10869_v23, %v1180_v43  ;;  %v1249_v31 = vadd.f32 %v6670_v18, %v1225_v0  ;;  %v1296_v25 = vadd.f32 %v1279_v46, %v1272_v62  ;;  %v10875_v12 = vld [vmem:[#allocation89_spill] sm:$0xff]  ;;  %v10876_v62 = vld [vmem:[#allocation90_spill] sm:$0xff]  ;;  %v7004_v34 = vmul.f32 0.005690264, %v6951_v55 }
 0x2cd   : > { %10861 = vst [vmem:[#allocation43_spill] sm:$0xff] %v6782_v45  ;;  %v1227_v54 = vadd.f32 %v6641_v50, %v1203_v27  ;;  %v1274_v43 = vadd.f32 %v6712_v26, %v1250_v4  ;;  %v10877_v26 = vld [vmem:[#allocation38_spill] sm:$0xff]  ;;  %10916 = vst [vmem:[#allocation92_spill] sm:$0xff] %v6962_v57 }
 0x2ce   : > { %1616 = vrot.lane.b32.xlu1 %v10867_v10, %s5228_s5  ;;  %1618 = vrot.lane.b32.xlu0 %v10868_v11, %s5228_s5  ;;  %v1228_v17 = vadd.f32 %v10873_v48, %v1204_v28  ;;  %v1273_v14 = vadd.f32 %v6710_v40, %v1249_v31  ;;  %v10874_v10 = vld [vmem:[#allocation105_spill] sm:$0xff]  ;;  %v10878_v31 = vld [vmem:[#allocation58_spill] sm:$0xff]  ;;  %10920 = vst [vmem:[#allocation84_spill] sm:$0xff] %v7004_v34 }
 0x2cf   : > { %v1205_v63 = vadd.f32 %v10874_v10, %v1181_v39  ;;  %v1251_v46 = vadd.f32 %v6683_v8, %v1227_v54  ;;  %v1298_v11 = vadd.f32 %v1283_v51, %v1274_v43  ;;  %v1339_v4 = vmul.f32 0.007481702, %v10878_v31  ;;  %v10880_v39 = vld [vmem:[#allocation59_spill] sm:$0xff] }
 0x2d0   : > { %v6799_v29 = vpop.permute.xlu1 %1288  ;;  %v1309_v2 = vpop.permute.xlu0 %1308  ;;  %v1252_v9 = vadd.f32 %v6685_v3, %v1228_v17  ;;  %v1297_v27 = vadd.f32 %v6764_v53, %v1273_v14  ;;  %v1340_v54 = vmul.f32 0.007481702, %v10880_v39  ;;  %v10881_v14 = vld [vmem:[#allocation93_spill] sm:$0xff]  ;;  %v10882_v43 = vld [vmem:[#allocation71_spill] sm:$0xff]  ;;  %v1342_v31 = vmul.f32 0.007481702, %v6442_v13 }
 0x2d1   : > { %10871 = vst [vmem:[#allocation19_spill] sm:$0xff] %v6799_v29  ;;  %v1326_v0 = vadd.f32 %v1309_v2, %v1296_v25  ;;  %v1229_v28 = vadd.f32 %v10877_v26, %v1205_v63  ;;  %v1275_v2 = vadd.f32 %v6727_v44, %v1251_v46  ;;  %v10884_v46 = vld [vmem:[#allocation64_spill] sm:$0xff]  ;;  %v6933_v18 = vld [vmem:[#allocation2 + $0x2c] sm:$0xff] }
 0x2d2   : > { %1620 = vrot.lane.b32.xlu1 %v10875_v12, %s5228_s5  ;;  %1622 = vrot.lane.b32.xlu0 %v10876_v62, %s5228_s5  ;;  %v1276_v48 = vadd.f32 %v6729_v7, %v1252_v9  ;;  %v1341_v7 = vmul.f32 0.007481702, %v10884_v46  ;;  %v6946_v61 = vmul.f32 0.0064930846, %v6933_v18  ;;  %v6990_v49 = vmul.f32 0.005690264, %v6933_v18 }
 0x2d3   : > { %v6816_v23 = vadd.f32 %v6802_v22, %v1326_v0  ;;  %v1253_v51 = vadd.f32 %v6695_v59, %v1229_v28  ;;  %v1299_v0 = vadd.f32 %v6782_v45, %v1275_v2  ;;  %v10901_v45 = vld [vmem:[#allocation67_spill] sm:$0xff]  ;;  %v6935_v59 = vld [vmem:[#allocation2 + $0x44] sm:$0xff] }
 0x2d4   : > { %v6820_v25 = vpop.permute.xlu1 %1310  ;;  %v1313_v21 = vpop.permute.xlu0 %1312  ;;  %v1300_v63 = vadd.f32 %v1287_v52, %v1276_v48  ;;  %v10887_v52 = vld [vmem:[#allocation75_spill] sm:$0xff]  ;;  %10913 = vst [vmem:[#allocation80_spill] sm:$0xff] %v6946_v61  ;;  %v6949_v26 = vmul.f32 0.0064930846, %v6935_v59  ;;  %v6993_v6 = vmul.f32 0.005690264, %v6935_v59 }
 0x2d5   : > { %10879 = vst [vmem:[#allocation30_spill] sm:$0xff] %v6820_v25  ;;  %v1327_v3 = vadd.f32 %v6820_v25, %v1297_v27  ;;  %v1328_v17 = vadd.f32 %v1313_v21, %v1298_v11  ;;  %v1277_v11 = vadd.f32 %v6746_v1, %v1253_v51  ;;  %v10886_v21 = vld [vmem:[#allocation74_spill] sm:$0xff] }
 0x2d6   : > { %1624 = vrot.lane.b32.xlu1 %v10881_v14, %s5228_s5  ;;  %1638 = vrot.lane.b32.xlu0 %v10882_v43, %s5229_s11  ;;  %v1343_v14 = vmul.f32 0.007481702, %v6458_v5  ;;  %v10890_v43 = vld [vmem:[#allocation77_spill] sm:$0xff]  ;;  %10914 = vst [vmem:[#allocation97_spill] sm:$0xff] %v6949_v26 }
 0x2d7   : > { %v6832_v12 = vadd.f32 %v1339_v4, %v1327_v3  ;;  %v6834_v62 = vadd.f32 %v1340_v54, %v1328_v17  ;;  %v1301_v2 = vadd.f32 %v6799_v29, %v1277_v11  ;;  %v10894_v11 = vld [vmem:[#allocation81_spill] sm:$0xff] }
 0x2d8   : > { %v6837_v9 = vpop.permute.xlu1 %1314  ;;  %v1317_v27 = vpop.permute.xlu0 %1316  ;;  %v6905_v29 = vld [vmem:[#allocation2 + $0x4] sm:$0xff] }
 0x2d9   : > { %10883 = vst [vmem:[#allocation36_spill] sm:$0xff] %v6832_v12  ;;  %10885 = vst [vmem:[#allocation28_spill] sm:$0xff] %v6837_v9  ;;  %v1329_v28 = vadd.f32 %v6837_v9, %v1299_v0  ;;  %v1330_v39 = vadd.f32 %v1317_v27, %v1300_v63  ;;  %v10891_v0 = vld [vmem:[#allocation78_spill] sm:$0xff]  ;;  %v6914_v40 = vmul.f32 0.0064930846, %v6905_v29 }
 0x2da   : > { %1640 = vrot.lane.b32.xlu1 %v10886_v21, %s5229_s11  ;;  %1642 = vrot.lane.b32.xlu0 %v10887_v52, %s5229_s11  ;;  %v10897_v52 = vld [vmem:[#allocation62_spill] sm:$0xff]  ;;  %v6965_v56 = vmul.f32 0.005690264, %v6905_v29  ;;  %v7007_v15 = vmul.f32 0.0048279855, %v6905_v29 }
 0x2db   : > { %v6847_v48 = vadd.f32 %v1341_v7, %v1329_v28  ;;  %v6849_v3 = vadd.f32 %v1342_v31, %v1330_v39  ;;  %v10895_v28 = vld [vmem:[#allocation57_spill] sm:$0xff]  ;;  %v10900_v9 = vld [vmem:[#allocation66_spill] sm:$0xff]  ;;  %10907 = vst [vmem:[#allocation52_spill] sm:$0xff] %v6914_v40  ;;  %v1883_v12 = vmul.f32 0.00324583, %v6951_v55 }
 0x2dc   : > { %v6851_v17 = vpop.permute.xlu1 %1318  ;;  %v6853_v51 = vpop.permute.xlu0 %1362 }
 0x2dd   : > { %10888 = vst [vmem:[#allocation17_spill] sm:$0xff] %v6847_v48  ;;  %10889 = vst [vmem:[#allocation25_spill] sm:$0xff] %v6851_v17  ;;  %v1331_v13 = vadd.f32 %v6851_v17, %v1301_v2  ;;  %v10898_v2 = vld [vmem:[#allocation63_spill] sm:$0xff]  ;;  %v10903_v17 = vld [vmem:[#allocation70_spill] sm:$0xff]  ;;  %v1881_v48 = vmul.f32 0.00324583, %v6933_v18 }
 0x2de   : > { %1644 = vrot.lane.b32.xlu1 %v10890_v43, %s5229_s11  ;;  %1646 = vrot.lane.b32.xlu0 %v10891_v0, %s5229_s11  ;;  %v7035_v43 = vmul.f32 0.0048279855, %v6935_v59 }
 0x2df   : > { %v6861_v63 = vadd.f32 %v1343_v14, %v1331_v13 }
 0x2e0   : > { %v6863_v46 = vpop.permute.xlu1 %1364  ;;  %v6865_v27 = vpop.permute.xlu0 %1366 }
 0x2e1   : > { %10892 = vst [vmem:[#allocation13_spill] sm:$0xff] %v6861_v63  ;;  %10893 = vst [vmem:[#allocation23_spill] sm:$0xff] %v6863_v46 }
 0x2e2   : > { %1648 = vrot.lane.b32.xlu1 %v10894_v11, %s5229_s11  ;;  %1662 = vrot.lane.b32.xlu0 %v10895_v28, %s5230_s13  ;;  %v7032_v11 = vmul.f32 0.0048279855, %v6933_v18 }
 0x2e4   : > { %v6871_v5 = vpop.permute.xlu1 %1368  ;;  %v6873_v39 = vpop.permute.xlu0 %1370 }
 0x2e5   : > { %10896 = vst [vmem:[#allocation29_spill] sm:$0xff] %v6871_v5 }
 0x2e6   : > { %1664 = vrot.lane.b32.xlu1 %v10897_v52, %s5230_s13  ;;  %1666 = vrot.lane.b32.xlu0 %v10898_v2, %s5230_s13  ;;  %v7049_v52 = vmul.f32 0.0039648497, %v6905_v29 }
 0x2e8   : > { %v6879_v13 = vpop.permute.xlu1 %1372  ;;  %v6881_v0 = vpop.permute.xlu0 %1398 }
 0x2e9   : > { %10899 = vst [vmem:[#allocation20_spill] sm:$0xff] %v6879_v13  ;;  %v1878_v13 = vmul.f32 0.00324583, %v6905_v29 }
 0x2ea   : > { %1668 = vrot.lane.b32.xlu1 %v10900_v9, %s5230_s13  ;;  %1670 = vrot.lane.b32.xlu0 %v10901_v45, %s5230_s13  ;;  %v7046_v9 = vmul.f32 0.0048279855, %v6951_v55 }
 0x2ec   : > { %v6887_v28 = vpop.permute.xlu1 %1400  ;;  %v6889_v25 = vpop.permute.xlu0 %1402 }
 0x2ed   : > { %10902 = vst [vmem:[#allocation16_spill] sm:$0xff] %v6887_v28  ;;  %v1882_v28 = vmul.f32 0.00324583, %v6935_v59 }
 0x2ee   : > { %1672 = vrot.lane.b32.xlu1 %v10903_v17, %s5230_s13  ;;  %1692 = vrot.lane.b32.xlu0 %v6802_v22, %s5231_s14 }
 0x2f0   : > { %v6895_v2 = vpop.permute.xlu1 %1404  ;;  %v6897_v44 = vpop.permute.xlu0 %1406 }
 0x2f1   : > { %10904 = vst [vmem:[#allocation51_spill] sm:$0xff] %v6895_v2 }
 0x2f2   : > { %1694 = vrot.lane.b32.xlu1 %v1339_v4, %s5231_s14  ;;  %1696 = vrot.lane.b32.xlu0 %v1340_v54, %s5231_s14  ;;  %v6916_v4 = vld [vmem:[#allocation2 + $0xc] sm:$0xff]  ;;  %v6918_v54 = vld [vmem:[#allocation2 + $0x24] sm:$0xff] }
 0x2f3   : > { %10908 = vst [vmem:[#allocation69_spill] sm:$0xff] %v6916_v4  ;;  %v6931_v50 = vmul.f32 0.0064930846, %v6918_v54  ;;  %v6976_v36 = vmul.f32 0.005690264, %v6916_v4 }
 0x2f4   : > { %v6901_v53 = vpop.permute.xlu1 %1408  ;;  %v6903_v45 = vpop.permute.xlu0 %1434  ;;  %v6979_v33 = vmul.f32 0.005690264, %v6918_v54  ;;  %v7018_v41 = vmul.f32 0.0048279855, %v6916_v4  ;;  %v7021_v30 = vmul.f32 0.0048279855, %v6918_v54 }
 0x2f5   : > { %10905 = vst [vmem:[#allocation21_spill] sm:$0xff] %v6901_v53  ;;  %10911 = vst [vmem:[#allocation99_spill] sm:$0xff] %v6931_v50  ;;  %v7077_v53 = vmul.f32 0.0039648497, %v6935_v59  ;;  %v1879_v2 = vmul.f32 0.00324583, %v6916_v4 }
 0x2f6   : > { %1698 = vrot.lane.b32.xlu1 %v1341_v7, %s5231_s14  ;;  %1700 = vrot.lane.b32.xlu0 %v1342_v31, %s5231_s14  ;;  %v6928_v31 = vmul.f32 0.0064930846, %v6916_v4 }
 0x2f8   : > { %v6909_v8 = vpop.permute.xlu1 %1436  ;;  %v6911_v22 = vpop.permute.xlu0 %1438  ;;  %10910 = vst [vmem:[#allocation98_spill] sm:$0xff] %v6928_v31 }
 0x2f9   : > { %10906 = vst [vmem:[#allocation53_spill] sm:$0xff] %v6909_v8 }
 0x2fa   : > { %1702 = vrot.lane.b32.xlu1 %v1343_v14, %s5231_s14  ;;  %1746 = vrot.lane.b32.xlu0 %v6914_v40, %s5220_s16  ;;  %v1917_v40 = vmul.f32 0.0029438254, %v6933_v18 }
 0x2fc   : > { %v6923_v1 = vpop.permute.xlu1 %1440  ;;  %v6925_v7 = vpop.permute.xlu0 %1442 }
 0x2fd   : > { %10909 = vst [vmem:[#allocation88_spill] sm:$0xff] %v6923_v1 }
 0x2fe   : > { %1748 = vrot.lane.b32.xlu1 %v6928_v31, %s5220_s16  ;;  %1750 = vrot.lane.b32.xlu0 %v6931_v50, %s5220_s16  ;;  %v1916_v50 = vmul.f32 0.0029438254, %v6918_v54 }
 0x300   : > { %v6941_v14 = vpop.permute.xlu1 %1444  ;;  %v6943_v16 = vpop.permute.xlu0 %1470 }
 0x301   : > { %10912 = vst [vmem:[#allocation61_spill] sm:$0xff] %v6941_v14  ;;  %v7063_v14 = vmul.f32 0.0039648497, %v6918_v54 }
 0x302   : > { %1752 = vrot.lane.b32.xlu1 %v6946_v61, %s5220_s16  ;;  %1754 = vrot.lane.b32.xlu0 %v6949_v26, %s5220_s16  ;;  %v1915_v61 = vmul.f32 0.0029438254, %v6916_v4 }
 0x304   : > { %v6957_v32 = vpop.permute.xlu1 %1472  ;;  %v6959_v10 = vpop.permute.xlu0 %1474 }
 0x305   : > { %10915 = vst [vmem:[#allocation73_spill] sm:$0xff] %v6957_v32 }
 0x306   : > { %1756 = vrot.lane.b32.xlu1 %v6962_v57, %s5220_s16  ;;  %1782 = vrot.lane.b32.xlu0 %v6965_v56, %s5221_s25  ;;  %v1914_v57 = vmul.f32 0.0029438254, %v6905_v29 }
 0x308   : > { %v6971_v42 = vpop.permute.xlu1 %1476  ;;  %v6973_v38 = vpop.permute.xlu0 %1478 }
 0x309   : > { %10917 = vst [vmem:[#allocation106_spill] sm:$0xff] %v6971_v42 }
 0x30a   : > { %1784 = vrot.lane.b32.xlu1 %v6976_v36, %s5221_s25  ;;  %1786 = vrot.lane.b32.xlu0 %v6979_v33, %s5221_s25 }
 0x30c   : > { %v6985_v20 = vpop.permute.xlu1 %1480  ;;  %v6987_v35 = vpop.permute.xlu0 %1506 }
 0x30d   : > { %10918 = vst [vmem:[#allocation102_spill] sm:$0xff] %v6985_v20 }
 0x30e   : > { %1788 = vrot.lane.b32.xlu1 %v6990_v49, %s5221_s25  ;;  %1790 = vrot.lane.b32.xlu0 %v6993_v6, %s5221_s25 }
 0x310   : > { %v6999_v47 = vpop.permute.xlu1 %1508  ;;  %v7001_v58 = vpop.permute.xlu0 %1510 }
 0x311   : > { %10919 = vst [vmem:[#allocation82_spill] sm:$0xff] %v6999_v47 }
 0x312   : > { %1792 = vrot.lane.b32.xlu1 %v7004_v34, %s5221_s25  ;;  %1818 = vrot.lane.b32.xlu0 %v7007_v15, %s5222_s27  ;;  %v1918_v34 = vmul.f32 0.0029438254, %v6935_v59 }
 0x314   : > { %v7013_v60 = vpop.permute.xlu1 %1512  ;;  %v7015_v24 = vpop.permute.xlu0 %1514 }
 0x315   : > { %10921 = vst [vmem:[#allocation101_spill] sm:$0xff] %v7013_v60  ;;  %v7060_v60 = vmul.f32 0.0039648497, %v6916_v4  ;;  %v1919_v4 = vmul.f32 0.0029438254, %v6951_v55 }
 0x316   : > { %1820 = vrot.lane.b32.xlu1 %v7018_v41, %s5222_s27  ;;  %1822 = vrot.lane.b32.xlu0 %v7021_v30, %s5222_s27 }
 0x318   : > { %v7027_v19 = vpop.permute.xlu1 %1516  ;;  %v7029_v37 = vpop.permute.xlu0 %1542 }
 0x319   : > { %10922 = vst [vmem:[#allocation95_spill] sm:$0xff] %v7027_v19 }
 0x31a   : > { %1824 = vrot.lane.b32.xlu1 %v7032_v11, %s5222_s27  ;;  %1826 = vrot.lane.b32.xlu0 %v7035_v43, %s5222_s27 }
 0x31c   : > { %v7041_v21 = vpop.permute.xlu1 %1544  ;;  %v7043_v17 = vpop.permute.xlu0 %1546 }
 0x31d   : > { %10923 = vst [vmem:[#allocation27_spill] sm:$0xff] %v7041_v21 }
 0x31e   : > { %1828 = vrot.lane.b32.xlu1 %v7046_v9, %s5222_s27  ;;  %1854 = vrot.lane.b32.xlu0 %v7049_v52, %s5223_s28 }
 0x320   : > { %v7055_v19 = vpop.permute.xlu1 %1548  ;;  %v7057_v20 = vpop.permute.xlu0 %1550 }
 0x321   : > { %10924 = vst [vmem:[#allocation85_spill] sm:$0xff] %v7055_v19  ;;  %v7074_v19 = vmul.f32 0.0039648497, %v6933_v18 }
 0x322   : > { %1856 = vrot.lane.b32.xlu1 %v7060_v60, %s5223_s28  ;;  %1858 = vrot.lane.b32.xlu0 %v7063_v14, %s5223_s28 }
 0x324   : > { %v7069_v21 = vpop.permute.xlu1 %1552  ;;  %v7071_v42 = vpop.permute.xlu0 %1566 }
 0x325   : > { %10925 = vst [vmem:[#allocation86_spill] sm:$0xff] %v7069_v21  ;;  %v7088_v21 = vmul.f32 0.0039648497, %v6951_v55 }
 0x326   : > { %1860 = vrot.lane.b32.xlu1 %v7074_v19, %s5223_s28  ;;  %1862 = vrot.lane.b32.xlu0 %v7077_v53, %s5223_s28 }
 0x328   : > { %v7083_v47 = vpop.permute.xlu1 %1568  ;;  %v7085_v1 = vpop.permute.xlu0 %1570 }
 0x329   : > { %10926 = vst [vmem:[#allocation104_spill] sm:$0xff] %v7083_v47  ;;  %v1880_v47 = vmul.f32 0.00324583, %v6918_v54 }
 0x32a   : > { %1864 = vrot.lane.b32.xlu1 %v7088_v21, %s5223_s28  ;;  %1890 = vrot.lane.b32.xlu0 %v1878_v13, %s5224_s30 }
 0x32c   : > { %v7094_v63 = vpop.permute.xlu1 %1572  ;;  %v7096_v32 = vpop.permute.xlu0 %1574 }
 0x32d   : > { %10927 = vst [vmem:[#allocation40_spill] sm:$0xff] %v7094_v63 }
 0x32e   : > { %1892 = vrot.lane.b32.xlu1 %v1879_v2, %s5224_s30  ;;  %1894 = vrot.lane.b32.xlu0 %v1880_v47, %s5224_s30 }
 0x330   : > { %v7102_v8 = vpop.permute.xlu1 %1576  ;;  %v7104_v5 = vpop.permute.xlu0 %1590 }
 0x331   : > { %10928 = vst [vmem:[#allocation41_spill] sm:$0xff] %v7102_v8 }
 0x332   : > { %1896 = vrot.lane.b32.xlu1 %v1881_v48, %s5224_s30  ;;  %1898 = vrot.lane.b32.xlu0 %v1882_v28, %s5224_s30 }
 0x334   : > { %v7110_v63 = vpop.permute.xlu1 %1592  ;;  %v7112_v46 = vpop.permute.xlu0 %1594 }
 0x335   : > { %10929 = vst [vmem:[#allocation89_spill] sm:$0xff] %v7110_v63 }
 0x336   : > { %1900 = vrot.lane.b32.xlu1 %v1883_v12, %s5224_s30  ;;  %1926 = vrot.lane.b32.xlu0 %v1914_v57, %s5225_s2 }
 0x338   : > { %v7118_v8 = vpop.permute.xlu1 %1596  ;;  %v7120_v26 = vpop.permute.xlu0 %1598 }
 0x339   : > { %10930 = vst [vmem:[#allocation90_spill] sm:$0xff] %v7118_v8 }
 0x33a   : > { %1928 = vrot.lane.b32.xlu1 %v1915_v61, %s5225_s2  ;;  %1930 = vrot.lane.b32.xlu0 %v1916_v50, %s5225_s2 }
 0x33c   : > { %v7126_v63 = vpop.permute.xlu1 %1600  ;;  %v1615_v31 = vpop.permute.xlu0 %1614 }
 0x33d   : > { %10931 = vst [vmem:[#allocation58_spill] sm:$0xff] %v7126_v63 }
 0x33e   : > { %1932 = vrot.lane.b32.xlu1 %v1917_v40, %s5225_s2  ;;  %1934 = vrot.lane.b32.xlu0 %v1918_v34, %s5225_s2  ;;  %v1380_v34 = vadd.f32 %v6853_v51, %v6816_v23 }
 0x340   : > { %v7132_v57 = vpop.permute.xlu1 %1616  ;;  %v1619_v8 = vpop.permute.xlu0 %1618 }
 0x342   : > { %1936 = vrot.lane.b32.xlu1 %v1919_v4, %s5225_s2  ;;  %1950 = vrot.lane.b32.xlu0 %v1878_v13, %s5226_s3 }
 0x344   : > { %v7137_v50 = vpop.permute.xlu1 %1620  ;;  %v1623_v61 = vpop.permute.xlu0 %1622 }
 0x345   : > { %10932 = vst [vmem:[#allocation59_spill] sm:$0xff] %v7137_v50  ;;  %v1416_v50 = vadd.f32 %v6881_v0, %v1380_v34 }
 0x346   : > { %1952 = vrot.lane.b32.xlu1 %v1879_v2, %s5226_s3  ;;  %1954 = vrot.lane.b32.xlu0 %v1880_v47, %s5226_s3  ;;  %v1382_v47 = vadd.f32 %v6865_v27, %v6834_v62 }
 0x348   : > { %v7141_v63 = vpop.permute.xlu1 %1624  ;;  %v1639_v40 = vpop.permute.xlu0 %1638  ;;  %v1418_v23 = vadd.f32 %v6889_v25, %v1382_v47  ;;  %v1726_v47 = vmul.f32 0.007215096, %v6935_v59 }
 0x34a   : > { %1956 = vrot.lane.b32.xlu1 %v1881_v48, %s5226_s3  ;;  %1958 = vrot.lane.b32.xlu0 %v1882_v28, %s5226_s3  ;;  %v1452_v48 = vadd.f32 %v6903_v45, %v1416_v50  ;;  %v1454_v62 = vadd.f32 %v6911_v22, %v1418_v23 }
 0x34c   : > { %v7147_v4 = vpop.permute.xlu1 %1640  ;;  %v1643_v13 = vpop.permute.xlu0 %1642  ;;  %v1488_v51 = vadd.f32 %v6943_v16, %v1452_v48  ;;  %v1490_v16 = vadd.f32 %v6959_v10, %v1454_v62 }
 0x34e   : > { %1960 = vrot.lane.b32.xlu1 %v1883_v12, %s5226_s3  ;;  %1974 = vrot.lane.b32.xlu0 %v7049_v52, %s5227_s4  ;;  %v1384_v12 = vadd.f32 %v6873_v39, %v6849_v3  ;;  %v1524_v27 = vadd.f32 %v6987_v35, %v1488_v51  ;;  %v1526_v3 = vadd.f32 %v7001_v58, %v1490_v16 }
 0x350   : > { %v7156_v2 = vpop.permute.xlu1 %1644  ;;  %v1647_v28 = vpop.permute.xlu0 %1646  ;;  %v1420_v25 = vadd.f32 %v6897_v44, %v1384_v12  ;;  %v1560_v45 = vadd.f32 %v7029_v37, %v1524_v27  ;;  %v1562_v10 = vadd.f32 %v7043_v17, %v1526_v3  ;;  %v10935_v12 = vld [vmem:[#allocation98_spill] sm:$0xff]  ;;  %v10938_v27 = vld [vmem:[#allocation80_spill] sm:$0xff] }
 0x352   : > { %1976 = vrot.lane.b32.xlu1 %v7060_v60, %s5227_s4  ;;  %1978 = vrot.lane.b32.xlu0 %v7063_v14, %s5227_s4  ;;  %v1456_v60 = vadd.f32 %v6925_v7, %v1420_v25  ;;  %v1584_v35 = vadd.f32 %v7071_v42, %v1560_v45  ;;  %v10940_v45 = vld [vmem:[#allocation92_spill] sm:$0xff] }
 0x354   : > { %v7168_v52 = vpop.permute.xlu1 %1648  ;;  %v1663_v0 = vpop.permute.xlu0 %1662  ;;  %v1492_v44 = vadd.f32 %v6973_v38, %v1456_v60  ;;  %v1608_v37 = vadd.f32 %v7104_v5, %v1584_v35  ;;  %v10941_v60 = vld [vmem:[#allocation69_spill] sm:$0xff] }
 0x355   : > { %v7268_v3 = vmul.f32 0.007215096, %v10941_v60 }
 0x356   : > { %1980 = vrot.lane.b32.xlu1 %v7074_v19, %s5227_s4  ;;  %1982 = vrot.lane.b32.xlu0 %v7077_v53, %s5227_s4  ;;  %v1528_v19 = vadd.f32 %v7015_v24, %v1492_v44  ;;  %v1586_v53 = vadd.f32 %v7085_v1, %v1562_v10  ;;  %v1632_v58 = vadd.f32 %v1615_v31, %v1608_v37  ;;  %v7278_v44 = vmul.f32 0.007215096, %v6933_v18 }
 0x357   : > { %10942 = vst [vmem:[#allocation71_spill] sm:$0xff] %v7268_v3 }
 0x358   : > { %v7180_v39 = vpop.permute.xlu1 %1664  ;;  %v1667_v22 = vpop.permute.xlu0 %1666  ;;  %v1564_v38 = vadd.f32 %v7057_v20, %v1528_v19  ;;  %v1610_v17 = vadd.f32 %v7112_v46, %v1586_v53  ;;  %v1656_v14 = vadd.f32 %v1639_v40, %v1632_v58  ;;  %v1722_v20 = vmul.f32 0.007215096, %v6905_v29  ;;  %10943 = vst [vmem:[#allocation64_spill] sm:$0xff] %v7278_v44  ;;  %v7284_v19 = vld [vmem:[#allocation2 + $0x5] sm:$0xff] }
 0x359   : > { %10945 = vst [vmem:[#allocation78_spill] sm:$0xff] %v7284_v19  ;;  %v7290_v53 = vmul.f32 0.007215096, %v6951_v55  ;;  %v7297_v18 = vmul.f32 0.006252612, %v7284_v19 }
 0x35a   : > { %1984 = vrot.lane.b32.xlu1 %v7088_v21, %s5227_s4  ;;  %1998 = vrot.lane.b32.xlu0 %v7007_v15, %s5228_s5  ;;  %v1588_v15 = vadd.f32 %v7096_v32, %v1564_v38  ;;  %v1634_v24 = vadd.f32 %v1619_v8, %v1610_v17  ;;  %v1680_v21 = vadd.f32 %v1663_v0, %v1656_v14  ;;  %v10939_v0 = vld [vmem:[#allocation97_spill] sm:$0xff]  ;;  %v7299_v38 = vld [vmem:[#allocation2 + $0xd] sm:$0xff] }
 0x35b   : > { %10946 = vst [vmem:[#allocation57_spill] sm:$0xff] %v7290_v53  ;;  %10947 = vst [vmem:[#allocation63_spill] sm:$0xff] %v7297_v18  ;;  %v7301_v17 = vld [vmem:[#allocation2 + $0x25] sm:$0xff] }
 0x35c   : > { %v7191_v42 = vpop.permute.xlu1 %1668  ;;  %v1671_v7 = vpop.permute.xlu0 %1670  ;;  %v1612_v31 = vadd.f32 %v7120_v26, %v1588_v15  ;;  %v1658_v50 = vadd.f32 %v1643_v13, %v1634_v24  ;;  %v1724_v26 = vmul.f32 0.007215096, %v6918_v54  ;;  %10948 = vst [vmem:[#allocation67_spill] sm:$0xff] %v7299_v38  ;;  %v7312_v15 = vmul.f32 0.006252612, %v7299_v38 }
 0x35d   : > { %v7315_v24 = vmul.f32 0.006252612, %v7301_v17 }
 0x35e   : > { %2000 = vrot.lane.b32.xlu1 %v7018_v41, %s5228_s5  ;;  %2002 = vrot.lane.b32.xlu0 %v7021_v30, %s5228_s5  ;;  %v1636_v41 = vadd.f32 %v1623_v61, %v1612_v31  ;;  %v1682_v30 = vadd.f32 %v1667_v22, %v1658_v50 }
 0x35f   : > { %10953 = vst [vmem:[#allocation80_spill] sm:$0xff] %v7315_v24 }
 0x360   : > { %v7200_v1 = vpop.permute.xlu1 %1672  ;;  %v1693_v5 = vpop.permute.xlu0 %1692  ;;  %v1660_v34 = vadd.f32 %v1647_v28, %v1636_v41  ;;  %v7335_v41 = vld [vmem:[#allocation2 + $0x4d] sm:$0xff] }
 0x361   : > { %v1710_v46 = vadd.f32 %v1693_v5, %v1680_v21  ;;  %v7317_v21 = vld [vmem:[#allocation2 + $0x2d] sm:$0xff]  ;;  %v7319_v5 = vld [vmem:[#allocation2 + $0x45] sm:$0xff] }
 0x362   : > { %2004 = vrot.lane.b32.xlu1 %v7032_v11, %s5228_s5  ;;  %2006 = vrot.lane.b32.xlu0 %v7035_v43, %s5228_s5  ;;  %v1684_v29 = vadd.f32 %v1671_v7, %v1660_v34  ;;  %10954 = vst [vmem:[#allocation97_spill] sm:$0xff] %v7317_v21  ;;  %v7346_v34 = vmul.f32 0.006252612, %v7335_v41 }
 0x363   : > { %v7208_v32 = vadd.f32 %v1722_v20, %v1710_v46  ;;  %v7333_v46 = vmul.f32 0.006252612, %v7319_v5 }
 0x364   : > { %v7210_v8 = vpop.permute.xlu1 %1694  ;;  %v1697_v40 = vpop.permute.xlu0 %1696  ;;  %10960 = vst [vmem:[#allocation110_spill] sm:$0xff] %v7346_v34 }
 0x365   : > { %v1712_v13 = vadd.f32 %v1697_v40, %v1682_v30  ;;  %10957 = vst [vmem:[#allocation107_spill] sm:$0xff] %v7333_v46 }
 0x366   : > { %2008 = vrot.lane.b32.xlu1 %v7046_v9, %s5228_s5  ;;  %2022 = vrot.lane.b32.xlu0 %v6965_v56, %s5229_s11 }
 0x367   : > { %v7217_v11 = vadd.f32 %v1724_v26, %v1712_v13 }
 0x368   : > { %v7219_v43 = vpop.permute.xlu1 %1698  ;;  %v1701_v61 = vpop.permute.xlu0 %1700 }
 0x369   : > { %v1714_v48 = vadd.f32 %v1701_v61, %v1684_v29  ;;  %v7360_v61 = vmul.f32 0.0053551784, %v7299_v38 }
 0x36a   : > { %2024 = vrot.lane.b32.xlu1 %v6976_v36, %s5229_s11  ;;  %2026 = vrot.lane.b32.xlu0 %v6979_v33, %s5229_s11  ;;  %v10933_v36 = vld [vmem:[#allocation84_spill] sm:$0xff] }
 0x36b   : > { %v7226_v54 = vadd.f32 %v1726_v47, %v1714_v48  ;;  %v10934_v33 = vld [vmem:[#allocation52_spill] sm:$0xff]  ;;  %10949 = vst [vmem:[#allocation84_spill] sm:$0xff] %v7301_v17  ;;  %10964 = vst [vmem:[#allocation114_spill] sm:$0xff] %v7360_v61 }
 0x36c   : > { %v7228_v9 = vpop.permute.xlu1 %1702  ;;  %v7230_v56 = vpop.permute.xlu0 %1746 }
 0x36e   : > { %2028 = vrot.lane.b32.xlu1 %v6990_v49, %s5229_s11  ;;  %2030 = vrot.lane.b32.xlu0 %v6993_v6, %s5229_s11  ;;  %v10936_v49 = vld [vmem:[#allocation99_spill] sm:$0xff] }
 0x36f   : > { %10952 = vst [vmem:[#allocation99_spill] sm:$0xff] %v7312_v15 }
 0x370   : > { %v7236_v59 = vpop.permute.xlu1 %1748  ;;  %v7238_v28 = vpop.permute.xlu0 %1750 }
 0x372   : > { %2032 = vrot.lane.b32.xlu1 %v10933_v36, %s5229_s11  ;;  %2046 = vrot.lane.b32.xlu0 %v10934_v33, %s5230_s13  ;;  %v7374_v33 = vmul.f32 0.0053551784, %v7317_v21 }
 0x374   : > { %v7244_v23 = vpop.permute.xlu1 %1752  ;;  %v7246_v51 = vpop.permute.xlu0 %1754  ;;  %10967 = vst [vmem:[#allocation117_spill] sm:$0xff] %v7374_v33 }
 0x376   : > { %2048 = vrot.lane.b32.xlu1 %v10935_v12, %s5230_s13  ;;  %2050 = vrot.lane.b32.xlu0 %v10936_v49, %s5230_s13  ;;  %v7377_v12 = vmul.f32 0.0053551784, %v7319_v5 }
 0x378   : > { %v7252_v6 = vpop.permute.xlu1 %1756  ;;  %v7254_v62 = vpop.permute.xlu0 %1782  ;;  %10968 = vst [vmem:[#allocation118_spill] sm:$0xff] %v7377_v12 }
 0x379   : > { %10937 = vst [vmem:[#allocation93_spill] sm:$0xff] %v7252_v6 }
 0x37a   : > { %2052 = vrot.lane.b32.xlu1 %v10938_v27, %s5230_s13  ;;  %2054 = vrot.lane.b32.xlu0 %v10939_v0, %s5230_s13  ;;  %v7388_v0 = vmul.f32 0.0053551784, %v7335_v41 }
 0x37c   : > { %v7260_v25 = vpop.permute.xlu1 %1784  ;;  %v7262_v16 = vpop.permute.xlu0 %1786  ;;  %10971 = vst [vmem:[#allocation121_spill] sm:$0xff] %v7388_v0 }
 0x37e   : > { %2056 = vrot.lane.b32.xlu1 %v10940_v45, %s5230_s13  ;;  %2076 = vrot.lane.b32.xlu0 %v1722_v20, %s5231_s14  ;;  %v7330_v20 = vmul.f32 0.006252612, %v7317_v21  ;;  %v7391_v45 = vmul.f32 0.004346484, %v7284_v19 }
 0x380   : > { %v7270_v35 = vpop.permute.xlu1 %1788  ;;  %v7272_v22 = vpop.permute.xlu0 %1790  ;;  %10956 = vst [vmem:[#allocation69_spill] sm:$0xff] %v7330_v20  ;;  %10972 = vst [vmem:[#allocation122_spill] sm:$0xff] %v7391_v45 }
 0x382   : > { %2078 = vrot.lane.b32.xlu1 %v7268_v3, %s5231_s14  ;;  %2080 = vrot.lane.b32.xlu0 %v1724_v26, %s5231_s14  ;;  %v7349_v26 = vmul.f32 0.0053551784, %v7284_v19 }
 0x384   : > { %v7280_v10 = vpop.permute.xlu1 %1792  ;;  %v7282_v37 = vpop.permute.xlu0 %1818  ;;  %10961 = vst [vmem:[#allocation111_spill] sm:$0xff] %v7349_v26 }
 0x385   : > { %10944 = vst [vmem:[#allocation75_spill] sm:$0xff] %v7280_v10  ;;  %v2298_v10 = vmul.f32 0.0015612523, %v7284_v19 }
 0x386   : > { %2082 = vrot.lane.b32.xlu1 %v7278_v44, %s5231_s14  ;;  %2084 = vrot.lane.b32.xlu0 %v1726_v47, %s5231_s14  ;;  %v7363_v47 = vmul.f32 0.0053551784, %v7301_v17 }
 0x388   : > { %v7292_v58 = vpop.permute.xlu1 %1820  ;;  %v7294_v7 = vpop.permute.xlu0 %1822  ;;  %10965 = vst [vmem:[#allocation115_spill] sm:$0xff] %v7363_v47 }
 0x38a   : > { %2086 = vrot.lane.b32.xlu1 %v7290_v53, %s5231_s14  ;;  %2130 = vrot.lane.b32.xlu0 %v7297_v18, %s5220_s16  ;;  %v7416_v18 = vmul.f32 0.004346484, %v7317_v21 }
 0x38c   : > { %v7307_v14 = vpop.permute.xlu1 %1824  ;;  %v7309_v55 = vpop.permute.xlu0 %1826  ;;  %10979 = vst [vmem:[#allocation129_spill] sm:$0xff] %v7416_v18 }
 0x38d   : > { %10950 = vst [vmem:[#allocation52_spill] sm:$0xff] %v7307_v14  ;;  %10951 = vst [vmem:[#allocation98_spill] sm:$0xff] %v7309_v55  ;;  %v11003_v55 = vld [vmem:[#allocation29_spill] sm:$0xff] }
 0x38e   : > { %2132 = vrot.lane.b32.xlu1 %v7312_v15, %s5220_s16  ;;  %2134 = vrot.lane.b32.xlu0 %v7315_v24, %s5220_s16 }
 0x390   : > { %v7325_v31 = vpop.permute.xlu1 %1828  ;;  %v7327_v50 = vpop.permute.xlu0 %1854 }
 0x391   : > { %10955 = vst [vmem:[#allocation92_spill] sm:$0xff] %v7325_v31  ;;  %v2263_v31 = vmul.f32 0.0021547056, %v7299_v38 }
 0x392   : > { %2136 = vrot.lane.b32.xlu1 %v7330_v20, %s5220_s16  ;;  %2138 = vrot.lane.b32.xlu0 %v7333_v46, %s5220_s16  ;;  %v7402_v46 = vmul.f32 0.004346484, %v7299_v38  ;;  %v7405_v20 = vmul.f32 0.004346484, %v7301_v17 }
 0x394   : > { %v7341_v30 = vpop.permute.xlu1 %1856  ;;  %v7343_v40 = vpop.permute.xlu0 %1858  ;;  %10975 = vst [vmem:[#allocation125_spill] sm:$0xff] %v7402_v46  ;;  %10976 = vst [vmem:[#allocation126_spill] sm:$0xff] %v7405_v20 }
 0x395   : > { %10958 = vst [vmem:[#allocation108_spill] sm:$0xff] %v7341_v30  ;;  %10959 = vst [vmem:[#allocation109_spill] sm:$0xff] %v7343_v40  ;;  %v11010_v40 = vld [vmem:[#allocation88_spill] sm:$0xff] }
 0x396   : > { %2140 = vrot.lane.b32.xlu1 %v7346_v34, %s5220_s16  ;;  %2166 = vrot.lane.b32.xlu0 %v7349_v26, %s5221_s25 }
 0x398   : > { %v7355_v13 = vpop.permute.xlu1 %1860  ;;  %v7357_v29 = vpop.permute.xlu0 %1862 }
 0x399   : > { %10962 = vst [vmem:[#allocation112_spill] sm:$0xff] %v7355_v13  ;;  %10963 = vst [vmem:[#allocation113_spill] sm:$0xff] %v7357_v29 }
 0x39a   : > { %2168 = vrot.lane.b32.xlu1 %v7360_v61, %s5221_s25  ;;  %2170 = vrot.lane.b32.xlu0 %v7363_v47, %s5221_s25  ;;  %v7430_v47 = vmul.f32 0.004346484, %v7335_v41  ;;  %v7433_v61 = vmul.f32 0.00324583, %v7284_v19 }
 0x39c   : > { %v7369_v48 = vpop.permute.xlu1 %1864  ;;  %v7371_v36 = vpop.permute.xlu0 %1890  ;;  %10983 = vst [vmem:[#allocation133_spill] sm:$0xff] %v7430_v47 }
 0x39d   : > { %10966 = vst [vmem:[#allocation116_spill] sm:$0xff] %v7369_v48 }
 0x39e   : > { %2172 = vrot.lane.b32.xlu1 %v7374_v33, %s5221_s25  ;;  %2174 = vrot.lane.b32.xlu0 %v7377_v12, %s5221_s25 }
 0x3a0   : > { %v7383_v49 = vpop.permute.xlu1 %1892  ;;  %v7385_v27 = vpop.permute.xlu0 %1894 }
 0x3a1   : > { %10969 = vst [vmem:[#allocation119_spill] sm:$0xff] %v7383_v49  ;;  %10970 = vst [vmem:[#allocation120_spill] sm:$0xff] %v7385_v27  ;;  %v11002_v49 = vld [vmem:[#allocation17_spill] sm:$0xff] }
 0x3a2   : > { %2176 = vrot.lane.b32.xlu1 %v7388_v0, %s5221_s25  ;;  %2202 = vrot.lane.b32.xlu0 %v7391_v45, %s5222_s27  ;;  %v7419_v0 = vmul.f32 0.004346484, %v7319_v5 }
 0x3a4   : > { %v7397_v60 = vpop.permute.xlu1 %1896  ;;  %v7399_v34 = vpop.permute.xlu0 %1898  ;;  %10980 = vst [vmem:[#allocation130_spill] sm:$0xff] %v7419_v0 }
 0x3a5   : > { %10973 = vst [vmem:[#allocation123_spill] sm:$0xff] %v7397_v60  ;;  %10974 = vst [vmem:[#allocation124_spill] sm:$0xff] %v7399_v34  ;;  %v2262_v34 = vmul.f32 0.0021547056, %v7284_v19  ;;  %v2299_v19 = vmul.f32 0.0015612523, %v7299_v38 }
 0x3a6   : > { %2204 = vrot.lane.b32.xlu1 %v7402_v46, %s5222_s27  ;;  %2206 = vrot.lane.b32.xlu0 %v7405_v20, %s5222_s27  ;;  %v7447_v20 = vmul.f32 0.00324583, %v7301_v17 }
 0x3a8   : > { %v7411_v24 = vpop.permute.xlu1 %1900  ;;  %v7413_v15 = vpop.permute.xlu0 %1926 }
 0x3a9   : > { %10977 = vst [vmem:[#allocation127_spill] sm:$0xff] %v7411_v24  ;;  %10978 = vst [vmem:[#allocation128_spill] sm:$0xff] %v7413_v15  ;;  %v7458_v24 = vmul.f32 0.00324583, %v7317_v21 }
 0x3aa   : > { %2208 = vrot.lane.b32.xlu1 %v7416_v18, %s5222_s27  ;;  %2210 = vrot.lane.b32.xlu0 %v7419_v0, %s5222_s27  ;;  %v7444_v0 = vmul.f32 0.00324583, %v7299_v38 }
 0x3ab   : > { %10988 = vst [vmem:[#allocation138_spill] sm:$0xff] %v7458_v24 }
 0x3ac   : > { %v7425_v12 = vpop.permute.xlu1 %1928  ;;  %v7427_v33 = vpop.permute.xlu0 %1930 }
 0x3ad   : > { %10981 = vst [vmem:[#allocation131_spill] sm:$0xff] %v7425_v12  ;;  %10982 = vst [vmem:[#allocation132_spill] sm:$0xff] %v7427_v33  ;;  %v7494_v12 = vmul.f32 0.0021547056, %v7319_v5 }
 0x3ae   : > { %2212 = vrot.lane.b32.xlu1 %v7430_v47, %s5222_s27  ;;  %2238 = vrot.lane.b32.xlu0 %v7433_v61, %s5223_s28 }
 0x3b0   : > { %v7439_v26 = vpop.permute.xlu1 %1932  ;;  %v7441_v18 = vpop.permute.xlu0 %1934 }
 0x3b1   : > { %10984 = vst [vmem:[#allocation134_spill] sm:$0xff] %v7439_v26  ;;  %10985 = vst [vmem:[#allocation135_spill] sm:$0xff] %v7441_v18  ;;  %v7461_v18 = vmul.f32 0.00324583, %v7319_v5 }
 0x3b2   : > { %2240 = vrot.lane.b32.xlu1 %v7444_v0, %s5223_s28  ;;  %2242 = vrot.lane.b32.xlu0 %v7447_v20, %s5223_s28 }
 0x3b3   : > { %10989 = vst [vmem:[#allocation139_spill] sm:$0xff] %v7461_v18 }
 0x3b4   : > { %v7453_v47 = vpop.permute.xlu1 %1936  ;;  %v7455_v46 = vpop.permute.xlu0 %1950 }
 0x3b5   : > { %10986 = vst [vmem:[#allocation136_spill] sm:$0xff] %v7453_v47  ;;  %10987 = vst [vmem:[#allocation137_spill] sm:$0xff] %v7455_v46  ;;  %v7472_v47 = vmul.f32 0.00324583, %v7335_v41  ;;  %v11001_v46 = vld [vmem:[#allocation16_spill] sm:$0xff] }
 0x3b6   : > { %2244 = vrot.lane.b32.xlu1 %v7458_v24, %s5223_s28  ;;  %2246 = vrot.lane.b32.xlu0 %v7461_v18, %s5223_s28  ;;  %v1383_v18 = vadd.f32 %v11003_v55, %v11002_v49  ;;  %v11008_v55 = vld [vmem:[#allocation13_spill] sm:$0xff]  ;;  %v11009_v49 = vld [vmem:[#allocation20_spill] sm:$0xff] }
 0x3b7   : > { %10992 = vst [vmem:[#allocation142_spill] sm:$0xff] %v7472_v47  ;;  %v1385_v15 = vadd.f32 %v11009_v49, %v11008_v55  ;;  %v11015_v55 = vld [vmem:[#allocation27_spill] sm:$0xff]  ;;  %v11017_v49 = vld [vmem:[#allocation101_spill] sm:$0xff] }
 0x3b8   : > { %v7467_v26 = vpop.permute.xlu1 %1952  ;;  %v7469_v48 = vpop.permute.xlu0 %1954 }
 0x3b9   : > { %10990 = vst [vmem:[#allocation140_spill] sm:$0xff] %v7467_v26  ;;  %10991 = vst [vmem:[#allocation141_spill] sm:$0xff] %v7469_v48  ;;  %v2264_v26 = vmul.f32 0.0021547056, %v7301_v17 }
 0x3ba   : > { %2248 = vrot.lane.b32.xlu1 %v7472_v47, %s5223_s28  ;;  %2274 = vrot.lane.b32.xlu0 %v2262_v34, %s5224_s30  ;;  %v7491_v47 = vmul.f32 0.0021547056, %v7317_v21 }
 0x3bc   : > { %v7478_v45 = vpop.permute.xlu1 %1956  ;;  %v7480_v60 = vpop.permute.xlu0 %1958 }
 0x3bd   : > { %10993 = vst [vmem:[#allocation143_spill] sm:$0xff] %v7478_v45  ;;  %10994 = vst [vmem:[#allocation144_spill] sm:$0xff] %v7480_v60  ;;  %v10997_v60 = vld [vmem:[#allocation36_spill] sm:$0xff]  ;;  %v10998_v45 = vld [vmem:[#allocation23_spill] sm:$0xff] }
 0x3be   : > { %2276 = vrot.lane.b32.xlu1 %v2263_v31, %s5224_s30  ;;  %2278 = vrot.lane.b32.xlu0 %v2264_v26, %s5224_s30  ;;  %v1381_v29 = vadd.f32 %v10998_v45, %v10997_v60  ;;  %v11004_v45 = vld [vmem:[#allocation53_spill] sm:$0xff] }
 0x3c0   : > { %v7486_v48 = vpop.permute.xlu1 %1960  ;;  %v7488_v33 = vpop.permute.xlu0 %1974  ;;  %v1417_v27 = vadd.f32 %v11001_v46, %v1381_v29  ;;  %v2300_v46 = vmul.f32 0.0015612523, %v7301_v17  ;;  %v11007_v29 = vld [vmem:[#allocation73_spill] sm:$0xff] }
 0x3c1   : > { %10995 = vst [vmem:[#allocation145_spill] sm:$0xff] %v7486_v48  ;;  %10996 = vst [vmem:[#allocation146_spill] sm:$0xff] %v7488_v33  ;;  %v7507_v33 = vmul.f32 0.0021547056, %v7335_v41 }
 0x3c2   : > { %2280 = vrot.lane.b32.xlu1 %v7491_v47, %s5224_s30  ;;  %2282 = vrot.lane.b32.xlu0 %v7494_v12, %s5224_s30  ;;  %v1453_v60 = vadd.f32 %v11004_v45, %v1417_v27  ;;  %v11013_v45 = vld [vmem:[#allocation106_spill] sm:$0xff] }
 0x3c4   : > { %v7502_v13 = vpop.permute.xlu1 %1976  ;;  %v7504_v48 = vpop.permute.xlu0 %1978  ;;  %v1489_v6 = vadd.f32 %v11007_v29, %v1453_v60  ;;  %v2301_v60 = vmul.f32 0.0015612523, %v7317_v21  ;;  %v2302_v29 = vmul.f32 0.0015612523, %v7319_v5 }
 0x3c5   : > { %10999 = vst [vmem:[#allocation36_spill] sm:$0xff] %v7502_v13  ;;  %11000 = vst [vmem:[#allocation23_spill] sm:$0xff] %v7504_v48  ;;  %v11005_v13 = vld [vmem:[#allocation51_spill] sm:$0xff] }
 0x3c6   : > { %2284 = vrot.lane.b32.xlu1 %v7507_v33, %s5224_s30  ;;  %2310 = vrot.lane.b32.xlu0 %v2298_v10, %s5225_s2  ;;  %v1419_v24 = vadd.f32 %v11005_v13, %v1383_v18  ;;  %v11011_v10 = vld [vmem:[#allocation82_spill] sm:$0xff]  ;;  %v11012_v13 = vld [vmem:[#allocation21_spill] sm:$0xff] }
 0x3c7   : > { %v1525_v18 = vadd.f32 %v11011_v10, %v1489_v6  ;;  %v1421_v27 = vadd.f32 %v11012_v13, %v1385_v15  ;;  %v11018_v6 = vld [vmem:[#allocation104_spill] sm:$0xff]  ;;  %v11020_v13 = vld [vmem:[#allocation85_spill] sm:$0xff] }
 0x3c8   : > { %v7518_v48 = vpop.permute.xlu1 %1980  ;;  %v7520_v14 = vpop.permute.xlu0 %1982  ;;  %v1455_v30 = vadd.f32 %v11010_v40, %v1419_v24  ;;  %v11016_v40 = vld [vmem:[#allocation61_spill] sm:$0xff] }
 0x3c9   : > { %11006 = vst [vmem:[#allocation16_spill] sm:$0xff] %v7520_v14  ;;  %v1561_v24 = vadd.f32 %v11015_v55, %v1525_v18  ;;  %v2303_v18 = vmul.f32 0.0015612523, %v7335_v41  ;;  %v11021_v55 = vld [vmem:[#allocation89_spill] sm:$0xff] }
 0x3ca   : > { %2312 = vrot.lane.b32.xlu1 %v2299_v19, %s5225_s2  ;;  %2314 = vrot.lane.b32.xlu0 %v2300_v46, %s5225_s2  ;;  %v1491_v14 = vadd.f32 %v11013_v45, %v1455_v30  ;;  %v1457_v19 = vadd.f32 %v11016_v40, %v1421_v27  ;;  %v11019_v30 = vld [vmem:[#allocation102_spill] sm:$0xff]  ;;  %v11022_v40 = vld [vmem:[#allocation95_spill] sm:$0xff] }
 0x3cb   : > { %v1585_v15 = vadd.f32 %v11018_v6, %v1561_v24  ;;  %v11024_v24 = vld [vmem:[#allocation86_spill] sm:$0xff] }
 0x3cc   : > { %v7533_v38 = vpop.permute.xlu1 %1984  ;;  %v7535_v17 = vpop.permute.xlu0 %1998  ;;  %v1527_v46 = vadd.f32 %v11017_v49, %v1491_v14  ;;  %v1493_v10 = vadd.f32 %v11019_v30, %v1457_v19  ;;  %v11023_v49 = vld [vmem:[#allocation40_spill] sm:$0xff] }
 0x3cd   : > { %11014 = vst [vmem:[#allocation17_spill] sm:$0xff] %v7533_v38  ;;  %v1609_v27 = vadd.f32 %v11021_v55, %v1585_v15  ;;  %v11026_v55 = vld [vmem:[#allocation41_spill] sm:$0xff] }
 0x3ce   : > { %2316 = vrot.lane.b32.xlu1 %v2301_v60, %s5225_s2  ;;  %2318 = vrot.lane.b32.xlu0 %v2302_v29, %s5225_s2  ;;  %v1563_v45 = vadd.f32 %v11020_v13, %v1527_v46  ;;  %v1529_v14 = vadd.f32 %v11022_v40, %v1493_v10  ;;  %v11025_v46 = vld [vmem:[#allocation90_spill] sm:$0xff]  ;;  %v11027_v40 = vld [vmem:[#allocation59_spill] sm:$0xff] }
 0x3cf   : > { %v1633_v29 = vadd.f32 %v7132_v57, %v1609_v27 }
 0x3d0   : > { %v7547_v38 = vpop.permute.xlu1 %2000  ;;  %v7549_v21 = vpop.permute.xlu0 %2002  ;;  %v1587_v60 = vadd.f32 %v11023_v49, %v1563_v45  ;;  %v1565_v19 = vadd.f32 %v11024_v24, %v1529_v14 }
 0x3d1   : > { %v1657_v15 = vadd.f32 %v7147_v4, %v1633_v29 }
 0x3d2   : > { %2320 = vrot.lane.b32.xlu1 %v2303_v18, %s5225_s2  ;;  %2334 = vrot.lane.b32.xlu0 %v2262_v34, %s5226_s3  ;;  %v1611_v6 = vadd.f32 %v11025_v46, %v1587_v60  ;;  %v1589_v10 = vadd.f32 %v11026_v55, %v1565_v19  ;;  %v11028_v34 = vld [vmem:[#allocation58_spill] sm:$0xff]  ;;  %v11029_v19 = vld [vmem:[#allocation108_spill] sm:$0xff]  ;;  %v11030_v46 = vld [vmem:[#allocation109_spill] sm:$0xff] }
 0x3d3   : > { %v1681_v57 = vadd.f32 %v7180_v39, %v1657_v15  ;;  %v1764_v39 = vadd.f32 %v7230_v56, %v7208_v32  ;;  %v1766_v32 = vadd.f32 %v7238_v28, %v7217_v11  ;;  %v1768_v11 = vadd.f32 %v7246_v51, %v7226_v54  ;;  %v11031_v54 = vld [vmem:[#allocation128_spill] sm:$0xff] }
 0x3d4   : > { %v7560_v30 = vpop.permute.xlu1 %2004  ;;  %v7562_v13 = vpop.permute.xlu0 %2006  ;;  %v1635_v45 = vadd.f32 %v11027_v40, %v1611_v6  ;;  %v1613_v18 = vadd.f32 %v11028_v34, %v1589_v10  ;;  %v11036_v10 = vld [vmem:[#allocation98_spill] sm:$0xff] }
 0x3d5   : > { %v1711_v4 = vadd.f32 %v7210_v8, %v1681_v57  ;;  %v1802_v24 = vadd.f32 %v7262_v16, %v1766_v32  ;;  %v11038_v57 = vld [vmem:[#allocation120_spill] sm:$0xff] }
 0x3d6   : > { %2336 = vrot.lane.b32.xlu1 %v2263_v31, %s5226_s3  ;;  %2338 = vrot.lane.b32.xlu0 %v2264_v26, %s5226_s3  ;;  %v1659_v27 = vadd.f32 %v7156_v2, %v1635_v45  ;;  %v1637_v60 = vadd.f32 %v7141_v63, %v1613_v18  ;;  %v11037_v45 = vld [vmem:[#allocation119_spill] sm:$0xff]  ;;  %v11039_v18 = vld [vmem:[#allocation137_spill] sm:$0xff]  ;;  %v11044_v32 = vld [vmem:[#allocation132_spill] sm:$0xff] }
 0x3d7   : > { %v1729_v63 = vadd.f32 %v7268_v3, %v1711_v4  ;;  %v1838_v28 = vadd.f32 %v7294_v7, %v1802_v24  ;;  %v11033_v7 = vld [vmem:[#allocation52_spill] sm:$0xff]  ;;  %v11040_v4 = vld [vmem:[#allocation75_spill] sm:$0xff] }
 0x3d8   : > { %v7572_v14 = vpop.permute.xlu1 %2008  ;;  %v7574_v49 = vpop.permute.xlu0 %2022  ;;  %v1683_v29 = vadd.f32 %v7191_v42, %v1659_v27  ;;  %v1661_v2 = vadd.f32 %v7168_v52, %v1637_v60  ;;  %v1800_v42 = vadd.f32 %v7254_v62, %v1764_v39 }
 0x3d9   : > { %v1765_v52 = vadd.f32 %v7236_v59, %v1729_v63  ;;  %v1874_v6 = vadd.f32 %v11030_v46, %v1838_v28  ;;  %v11042_v63 = vld [vmem:[#allocation113_spill] sm:$0xff]  ;;  %v11050_v28 = vld [vmem:[#allocation124_spill] sm:$0xff] }
 0x3da   : > { %2340 = vrot.lane.b32.xlu1 %v7491_v47, %s5226_s3  ;;  %2342 = vrot.lane.b32.xlu0 %v7494_v12, %s5226_s3  ;;  %v1713_v31 = vadd.f32 %v7219_v43, %v1683_v29  ;;  %v1685_v47 = vadd.f32 %v7200_v1, %v1661_v2  ;;  %v1836_v43 = vadd.f32 %v7282_v37, %v1800_v42  ;;  %v11041_v29 = vld [vmem:[#allocation112_spill] sm:$0xff] }
 0x3db   : > { %v1910_v34 = vadd.f32 %v11038_v57, %v1874_v6  ;;  %v11053_v46 = vld [vmem:[#allocation116_spill] sm:$0xff] }
 0x3dc   : > { %v7587_v26 = vpop.permute.xlu1 %2024  ;;  %v7589_v8 = vpop.permute.xlu0 %2026  ;;  %v1731_v56 = vadd.f32 %v7278_v44, %v1713_v31  ;;  %v1715_v12 = vadd.f32 %v7228_v9, %v1685_v47  ;;  %v11043_v47 = vld [vmem:[#allocation131_spill] sm:$0xff] }
 0x3de   : > { %2344 = vrot.lane.b32.xlu1 %v7507_v33, %s5226_s3  ;;  %2358 = vrot.lane.b32.xlu0 %v7433_v61, %s5227_s4  ;;  %v1801_v33 = vadd.f32 %v7260_v25, %v1765_v52  ;;  %v1872_v61 = vadd.f32 %v7327_v50, %v1836_v43  ;;  %v1767_v59 = vadd.f32 %v7244_v23, %v1731_v56  ;;  %v11045_v56 = vld [vmem:[#allocation146_spill] sm:$0xff] }
 0x3df   : > { %v1733_v16 = vadd.f32 %v7290_v53, %v1715_v12  ;;  %v1946_v43 = vadd.f32 %v11044_v32, %v1910_v34  ;;  %v11059_v34 = vld [vmem:[#allocation143_spill] sm:$0xff]  ;;  %v11064_v32 = vld [vmem:[#allocation78_spill] sm:$0xff] }
 0x3e0   : > { %v7604_v62 = vpop.permute.xlu1 %2028  ;;  %v7606_v1 = vpop.permute.xlu0 %2030  ;;  %v1837_v9 = vadd.f32 %v7292_v58, %v1801_v33  ;;  %v1908_v25 = vadd.f32 %v7371_v36, %v1872_v61  ;;  %v1803_v37 = vadd.f32 %v7270_v35, %v1767_v59  ;;  %v11032_v58 = vld [vmem:[#allocation93_spill] sm:$0xff]  ;;  %v11034_v36 = vld [vmem:[#allocation138_spill] sm:$0xff]  ;;  %v11035_v35 = vld [vmem:[#allocation139_spill] sm:$0xff] }
 0x3e1   : > { %v1769_v15 = vadd.f32 %v11032_v58, %v1733_v16  ;;  %v11046_v33 = vld [vmem:[#allocation92_spill] sm:$0xff]  ;;  %v11047_v61 = vld [vmem:[#allocation123_spill] sm:$0xff] }
 0x3e2   : > { %2360 = vrot.lane.b32.xlu1 %v7444_v0, %s5227_s4  ;;  %2362 = vrot.lane.b32.xlu0 %v7447_v20, %s5227_s4  ;;  %v1804_v0 = vadd.f32 %v7272_v22, %v1768_v11  ;;  %v1873_v20 = vadd.f32 %v11029_v19, %v1837_v9  ;;  %v1944_v51 = vadd.f32 %v11031_v54, %v1908_v25  ;;  %v11048_v11 = vld [vmem:[#allocation142_spill] sm:$0xff]  ;;  %v11051_v16 = vld [vmem:[#allocation140_spill] sm:$0xff] }
 0x3e3   : > { %v1839_v55 = vadd.f32 %v11033_v7, %v1803_v37  ;;  %v1805_v60 = vadd.f32 %v11040_v4, %v1769_v15  ;;  %v11049_v9 = vld [vmem:[#allocation122_spill] sm:$0xff]  ;;  %v11055_v7 = vld [vmem:[#allocation135_spill] sm:$0xff]  ;;  %v11062_v4 = vld [vmem:[#allocation144_spill] sm:$0xff] }
 0x3e4   : > { %v7623_v23 = vpop.permute.xlu1 %2032  ;;  %v2047_v50 = vpop.permute.xlu0 %2046  ;;  %v1840_v40 = vadd.f32 %v11036_v10, %v1804_v0  ;;  %v1909_v22 = vadd.f32 %v11037_v45, %v1873_v20  ;;  %v1968_v27 = vadd.f32 %v11039_v18, %v1944_v51  ;;  %v11052_v0 = vld [vmem:[#allocation141_spill] sm:$0xff]  ;;  %v11054_v54 = vld [vmem:[#allocation134_spill] sm:$0xff]  ;;  %v11057_v10 = vld [vmem:[#allocation23_spill] sm:$0xff] }
 0x3e5   : > { %v1875_v39 = vadd.f32 %v11041_v29, %v1839_v55  ;;  %v1841_v24 = vadd.f32 %v11046_v33, %v1805_v60  ;;  %v1970_v19 = vadd.f32 %v11052_v0, %v1946_v43  ;;  %v7673_v43 = vmul.f32 0.0070388336, %v11064_v32 }
 0x3e6   : > { %2364 = vrot.lane.b32.xlu1 %v11034_v36, %s5227_s4  ;;  %2366 = vrot.lane.b32.xlu0 %v11035_v35, %s5227_s4  ;;  %v1876_v42 = vadd.f32 %v11042_v63, %v1840_v40  ;;  %v1945_v52 = vadd.f32 %v11043_v47, %v1909_v22  ;;  %v1992_v12 = vadd.f32 %v11045_v56, %v1968_v27  ;;  %v11056_v36 = vld [vmem:[#allocation36_spill] sm:$0xff]  ;;  %v11058_v22 = vld [vmem:[#allocation127_spill] sm:$0xff]  ;;  %v11061_v27 = vld [vmem:[#allocation126_spill] sm:$0xff] }
 0x3e7   : > { %v1911_v59 = vadd.f32 %v11047_v61, %v1875_v39  ;;  %v1877_v6 = vadd.f32 %v11053_v46, %v1841_v24  ;;  %v1994_v40 = vadd.f32 %v11057_v10, %v1970_v19 }
 0x3e8   : > { %v2049_v2 = vpop.permute.xlu1 %2048  ;;  %v2051_v31 = vpop.permute.xlu0 %2050  ;;  %v1912_v25 = vadd.f32 %v11050_v28, %v1876_v42  ;;  %v1969_v37 = vadd.f32 %v11051_v16, %v1945_v52  ;;  %v2016_v20 = vadd.f32 %v7535_v17, %v1992_v12  ;;  %v11060_v17 = vld [vmem:[#allocation125_spill] sm:$0xff]  ;;  %v11063_v42 = vld [vmem:[#allocation136_spill] sm:$0xff] }
 0x3e9   : > { %v1947_v51 = vadd.f32 %v11054_v54, %v1911_v59  ;;  %v1913_v57 = vadd.f32 %v11058_v22, %v1877_v6  ;;  %v2018_v39 = vadd.f32 %v7549_v21, %v1994_v40  ;;  %v11065_v12 = vld [vmem:[#allocation16_spill] sm:$0xff]  ;;  %v11074_v40 = vld [vmem:[#allocation97_spill] sm:$0xff] }
 0x3ea   : > { %2368 = vrot.lane.b32.xlu1 %v11048_v11, %s5227_s4  ;;  %2382 = vrot.lane.b32.xlu0 %v11049_v9, %s5228_s5  ;;  %v1948_v55 = vadd.f32 %v11055_v7, %v1912_v25  ;;  %v1993_v35 = vadd.f32 %v11056_v36, %v1969_v37  ;;  %v2040_v45 = vadd.f32 %v7574_v49, %v2016_v20  ;;  %v11070_v37 = vld [vmem:[#allocation67_spill] sm:$0xff]  ;;  %v11071_v20 = vld [vmem:[#allocation84_spill] sm:$0xff] }
 0x3eb   : > { %v1971_v18 = vadd.f32 %v11059_v34, %v1947_v51  ;;  %v1949_v47 = vadd.f32 %v11063_v42, %v1913_v57  ;;  %v2042_v61 = vadd.f32 %v7589_v8, %v2018_v39  ;;  %v2107_v0 = vmul.f32 0.0070388336, %v11070_v37  ;;  %v11078_v39 = vld [vmem:[#allocation118_spill] sm:$0xff] }
 0x3ec   : > { %v2053_v58 = vpop.permute.xlu1 %2052  ;;  %v2055_v15 = vpop.permute.xlu0 %2054  ;;  %v1972_v60 = vadd.f32 %v11062_v4, %v1948_v55  ;;  %v2017_v29 = vadd.f32 %v7547_v38, %v1993_v35  ;;  %v2064_v63 = vadd.f32 %v2047_v50, %v2040_v45  ;;  %v11066_v38 = vld [vmem:[#allocation145_spill] sm:$0xff]  ;;  %v7775_v37 = vld [vmem:[#allocation2 + $0xe] sm:$0xff] }
 0x3ed   : > { %v1995_v49 = vadd.f32 %v7518_v48, %v1971_v18  ;;  %v1973_v11 = vadd.f32 %v11066_v38, %v1949_v47  ;;  %v11067_v50 = vld [vmem:[#allocation129_spill] sm:$0xff]  ;;  %v11068_v48 = vld [vmem:[#allocation130_spill] sm:$0xff]  ;;  %v2066_v25 = vadd.f32 %v2051_v31, %v2042_v61  ;;  %v11073_v31 = vld [vmem:[#allocation111_spill] sm:$0xff]  ;;  %11088 = vst [vmem:[#allocation51_spill] sm:$0xff] %v7775_v37 }
 0x3ee   : > { %2384 = vrot.lane.b32.xlu1 %v11060_v17, %s5228_s5  ;;  %2386 = vrot.lane.b32.xlu0 %v11061_v27, %s5228_s5  ;;  %v1996_v33 = vadd.f32 %v11065_v12, %v1972_v60  ;;  %v2041_v24 = vadd.f32 %v7587_v26, %v2017_v29  ;;  %v11069_v26 = vld [vmem:[#allocation17_spill] sm:$0xff]  ;;  %v11075_v18 = vld [vmem:[#allocation114_spill] sm:$0xff]  ;;  %v11082_v12 = vld [vmem:[#allocation80_spill] sm:$0xff] }
 0x3ef   : > { %v2019_v21 = vadd.f32 %v7560_v30, %v1995_v49  ;;  %v1997_v8 = vadd.f32 %v11069_v26, %v1973_v11  ;;  %v2108_v30 = vmul.f32 0.0070388336, %v11071_v20  ;;  %v11079_v49 = vld [vmem:[#allocation121_spill] sm:$0xff] }
 0x3f0   : > { %v2057_v52 = vpop.permute.xlu1 %2056  ;;  %v2077_v56 = vpop.permute.xlu0 %2076  ;;  %v2020_v9 = vadd.f32 %v7562_v13, %v1996_v33  ;;  %v2065_v28 = vadd.f32 %v2049_v2, %v2041_v24  ;;  %v11072_v2 = vld [vmem:[#allocation133_spill] sm:$0xff] }
 0x3f1   : > { %v2094_v59 = vadd.f32 %v2077_v56, %v2064_v63  ;;  %v2043_v6 = vadd.f32 %v7604_v62, %v2019_v21  ;;  %v2021_v13 = vadd.f32 %v7572_v14, %v1997_v8  ;;  %v2109_v62 = vmul.f32 0.0070388336, %v11074_v40  ;;  %v11081_v56 = vld [vmem:[#allocation99_spill] sm:$0xff]  ;;  %v11083_v61 = vld [vmem:[#allocation69_spill] sm:$0xff]  ;;  %v11085_v21 = vld [vmem:[#allocation110_spill] sm:$0xff] }
 0x3f2   : > { %2388 = vrot.lane.b32.xlu1 %v11067_v50, %s5228_s5  ;;  %2390 = vrot.lane.b32.xlu0 %v11068_v48, %s5228_s5  ;;  %v2044_v54 = vadd.f32 %v7606_v1, %v2020_v9  ;;  %v2110_v14 = vmul.f32 0.0070388336, %v7319_v5  ;;  %v11077_v5 = vld [vmem:[#allocation117_spill] sm:$0xff] }
 0x3f3   : > { %v7686_v16 = vadd.f32 %v7673_v43, %v2094_v59  ;;  %v2067_v55 = vadd.f32 %v2053_v58, %v2043_v6  ;;  %v2045_v22 = vadd.f32 %v7623_v23, %v2021_v13  ;;  %v11076_v58 = vld [vmem:[#allocation115_spill] sm:$0xff]  ;;  %v2111_v23 = vmul.f32 0.0070388336, %v7335_v41 }
 0x3f4   : > { %v2079_v19 = vpop.permute.xlu1 %2078  ;;  %v2081_v46 = vpop.permute.xlu0 %2080  ;;  %v2068_v36 = vadd.f32 %v2055_v15, %v2044_v54  ;;  %v11084_v59 = vld [vmem:[#allocation107_spill] sm:$0xff]  ;;  %v7794_v54 = vld [vmem:[#allocation2 + $0x46] sm:$0xff] }
 0x3f5   : > { %v2095_v51 = vadd.f32 %v2079_v19, %v2065_v28  ;;  %v2096_v7 = vadd.f32 %v2081_v46, %v2066_v25  ;;  %v2069_v15 = vadd.f32 %v2057_v52, %v2045_v22  ;;  %v11080_v52 = vld [vmem:[#allocation63_spill] sm:$0xff]  ;;  %v7764_v25 = vld [vmem:[#allocation2 + $0x6] sm:$0xff]  ;;  %11093 = vst [vmem:[#allocation82_spill] sm:$0xff] %v7794_v54  ;;  %v7835_v22 = vmul.f32 0.005233111, %v7775_v37 }
 0x3f6   : > { %2392 = vrot.lane.b32.xlu1 %v11072_v2, %s5228_s5  ;;  %2406 = vrot.lane.b32.xlu0 %v11073_v31, %s5229_s11  ;;  %11086 = vst [vmem:[#allocation29_spill] sm:$0xff] %v7764_v25  ;;  %v7773_v8 = vmul.f32 0.00616707, %v7764_v25  ;;  %v7792_v6 = vld [vmem:[#allocation2 + $0x2e] sm:$0xff]  ;;  %v7808_v2 = vmul.f32 0.00616707, %v7794_v54 }
 0x3f7   : > { %v7698_v35 = vadd.f32 %v2107_v0, %v2095_v51  ;;  %v7700_v10 = vadd.f32 %v2108_v30, %v2096_v7  ;;  %11092 = vst [vmem:[#allocation88_spill] sm:$0xff] %v7792_v6  ;;  %v7805_v13 = vmul.f32 0.00616707, %v7792_v6  ;;  %v7810_v31 = vld [vmem:[#allocation2 + $0x4e] sm:$0xff]  ;;  %11098 = vst [vmem:[#allocation101_spill] sm:$0xff] %v7835_v22 }
 0x3f8   : > { %v2083_v45 = vpop.permute.xlu1 %2082  ;;  %v2085_v1 = vpop.permute.xlu0 %2084  ;;  %11087 = vst [vmem:[#allocation53_spill] sm:$0xff] %v7773_v8  ;;  %11095 = vst [vmem:[#allocation106_spill] sm:$0xff] %v7808_v2  ;;  %v7821_v40 = vmul.f32 0.00616707, %v7810_v31  ;;  %v7905_v44 = vmul.f32 0.0041630557, %v7810_v31 }
 0x3f9   : > { %v2097_v57 = vadd.f32 %v2083_v45, %v2067_v55  ;;  %v2098_v34 = vadd.f32 %v2085_v1, %v2068_v36  ;;  %11094 = vst [vmem:[#allocation21_spill] sm:$0xff] %v7805_v13  ;;  %11096 = vst [vmem:[#allocation27_spill] sm:$0xff] %v7810_v31  ;;  %v2610_v3 = vmul.f32 0.0029438254, %v7764_v25 }
 0x3fa   : > { %2408 = vrot.lane.b32.xlu1 %v11075_v18, %s5229_s11  ;;  %2410 = vrot.lane.b32.xlu0 %v11076_v58, %s5229_s11  ;;  %11097 = vst [vmem:[#allocation61_spill] sm:$0xff] %v7821_v40  ;;  %v7849_v18 = vmul.f32 0.005233111, %v7792_v6  ;;  %v7852_v58 = vmul.f32 0.005233111, %v7794_v54 }
 0x3fb   : > { %v7709_v17 = vadd.f32 %v2109_v62, %v2097_v57  ;;  %v7711_v27 = vadd.f32 %v2110_v14, %v2098_v34 }
 0x3fc   : > { %v2087_v4 = vpop.permute.xlu1 %2086  ;;  %v7713_v60 = vpop.permute.xlu0 %2130  ;;  %11101 = vst [vmem:[#allocation85_spill] sm:$0xff] %v7849_v18  ;;  %11102 = vst [vmem:[#allocation89_spill] sm:$0xff] %v7852_v58 }
 0x3fd   : > { %v2099_v29 = vadd.f32 %v2087_v4, %v2069_v15 }
 0x3fe   : > { %2412 = vrot.lane.b32.xlu1 %v11077_v5, %s5229_s11  ;;  %2414 = vrot.lane.b32.xlu0 %v11078_v39, %s5229_s11 }
 0x3ff   : > { %v7720_v63 = vadd.f32 %v2111_v23, %v2099_v29  ;;  %v7866_v29 = vmul.f32 0.0041630557, %v7764_v25 }
 0x400   : > { %v7722_v42 = vpop.permute.xlu1 %2132  ;;  %v7724_v47 = vpop.permute.xlu0 %2134 }
 0x402   : > { %2416 = vrot.lane.b32.xlu1 %v11079_v49, %s5229_s11  ;;  %2430 = vrot.lane.b32.xlu0 %v11080_v52, %s5230_s13  ;;  %v7877_v49 = vmul.f32 0.0041630557, %v7775_v37 }
 0x404   : > { %v7730_v41 = vpop.permute.xlu1 %2136  ;;  %v7732_v32 = vpop.permute.xlu0 %2138 }
 0x406   : > { %2432 = vrot.lane.b32.xlu1 %v11081_v56, %s5230_s13  ;;  %2434 = vrot.lane.b32.xlu0 %v11082_v12, %s5230_s13 }
 0x408   : > { %v7738_v33 = vpop.permute.xlu1 %2140  ;;  %v7740_v24 = vpop.permute.xlu0 %2166 }
 0x40a   : > { %2436 = vrot.lane.b32.xlu1 %v11083_v61, %s5230_s13  ;;  %2438 = vrot.lane.b32.xlu0 %v11084_v59, %s5230_s13  ;;  %v7891_v61 = vmul.f32 0.0041630557, %v7792_v6  ;;  %v7894_v59 = vmul.f32 0.0041630557, %v7794_v54 }
 0x40c   : > { %v7746_v38 = vpop.permute.xlu1 %2168  ;;  %v7748_v11 = vpop.permute.xlu0 %2170 }
 0x40e   : > { %2440 = vrot.lane.b32.xlu1 %v11085_v21, %s5230_s13  ;;  %2460 = vrot.lane.b32.xlu0 %v7673_v43, %s5231_s14 }
 0x410   : > { %v7754_v50 = vpop.permute.xlu1 %2172  ;;  %v7756_v48 = vpop.permute.xlu0 %2174 }
 0x412   : > { %2462 = vrot.lane.b32.xlu1 %v2107_v0, %s5231_s14  ;;  %2464 = vrot.lane.b32.xlu0 %v2108_v30, %s5231_s14  ;;  %v7777_v0 = vld [vmem:[#allocation2 + $0x26] sm:$0xff]  ;;  %v7787_v30 = vmul.f32 0.00616707, %v7775_v37 }
 0x413   : > { %11089 = vst [vmem:[#allocation73_spill] sm:$0xff] %v7777_v0  ;;  %v7790_v46 = vmul.f32 0.00616707, %v7777_v0  ;;  %v7838_v57 = vmul.f32 0.005233111, %v7777_v0 }
 0x414   : > { %v7760_v9 = vpop.permute.xlu1 %2176  ;;  %v7762_v28 = vpop.permute.xlu0 %2202  ;;  %11090 = vst [vmem:[#allocation13_spill] sm:$0xff] %v7787_v30  ;;  %v7880_v52 = vmul.f32 0.0041630557, %v7777_v0 }
 0x415   : > { %11091 = vst [vmem:[#allocation20_spill] sm:$0xff] %v7790_v46  ;;  %11099 = vst [vmem:[#allocation104_spill] sm:$0xff] %v7838_v57 }
 0x416   : > { %2466 = vrot.lane.b32.xlu1 %v2109_v62, %s5231_s14  ;;  %2468 = vrot.lane.b32.xlu0 %v2110_v14, %s5231_s14  ;;  %v7824_v62 = vmul.f32 0.005233111, %v7764_v25 }
 0x418   : > { %v7768_v26 = vpop.permute.xlu1 %2204  ;;  %v7770_v43 = vpop.permute.xlu0 %2206 }
 0x41a   : > { %2470 = vrot.lane.b32.xlu1 %v2111_v23, %s5231_s14  ;;  %2514 = vrot.lane.b32.xlu0 %v7773_v8, %s5220_s16  ;;  %v7863_v23 = vmul.f32 0.005233111, %v7810_v31 }
 0x41c   : > { %v7782_v19 = vpop.permute.xlu1 %2208  ;;  %v7784_v20 = vpop.permute.xlu0 %2210  ;;  %11103 = vst [vmem:[#allocation95_spill] sm:$0xff] %v7863_v23 }
 0x41e   : > { %2516 = vrot.lane.b32.xlu1 %v7787_v30, %s5220_s16  ;;  %2518 = vrot.lane.b32.xlu0 %v7790_v46, %s5220_s16  ;;  %v2612_v46 = vmul.f32 0.0029438254, %v7777_v0 }
 0x420   : > { %v7800_v51 = vpop.permute.xlu1 %2212  ;;  %v7802_v7 = vpop.permute.xlu0 %2238 }
 0x422   : > { %2520 = vrot.lane.b32.xlu1 %v7805_v13, %s5220_s16  ;;  %2522 = vrot.lane.b32.xlu0 %v7808_v2, %s5220_s16  ;;  %v2611_v13 = vmul.f32 0.0029438254, %v7775_v37 }
 0x424   : > { %v7816_v55 = vpop.permute.xlu1 %2240  ;;  %v7818_v36 = vpop.permute.xlu0 %2242 }
 0x426   : > { %2524 = vrot.lane.b32.xlu1 %v7821_v40, %s5220_s16  ;;  %2550 = vrot.lane.b32.xlu0 %v7824_v62, %s5221_s25 }
 0x428   : > { %v7830_v45 = vpop.permute.xlu1 %2244  ;;  %v7832_v1 = vpop.permute.xlu0 %2246 }
 0x42a   : > { %2552 = vrot.lane.b32.xlu1 %v7835_v22, %s5221_s25  ;;  %2554 = vrot.lane.b32.xlu0 %v7838_v57, %s5221_s25  ;;  %v2615_v22 = vmul.f32 0.0029438254, %v7810_v31 }
 0x42c   : > { %v7844_v14 = vpop.permute.xlu1 %2248  ;;  %v7846_v34 = vpop.permute.xlu0 %2274 }
 0x42d   : > { %11100 = vst [vmem:[#allocation102_spill] sm:$0xff] %v7844_v14  ;;  %v2648_v14 = vmul.f32 0.0015612523, %v7777_v0  ;;  %v2651_v0 = vmul.f32 0.0015612523, %v7810_v31 }
 0x42e   : > { %2556 = vrot.lane.b32.xlu1 %v7849_v18, %s5221_s25  ;;  %2558 = vrot.lane.b32.xlu0 %v7852_v58, %s5221_s25  ;;  %v2614_v58 = vmul.f32 0.0029438254, %v7794_v54 }
 0x430   : > { %v7858_v15 = vpop.permute.xlu1 %2276  ;;  %v7860_v4 = vpop.permute.xlu0 %2278 }
 0x432   : > { %2560 = vrot.lane.b32.xlu1 %v7863_v23, %s5221_s25  ;;  %2586 = vrot.lane.b32.xlu0 %v7866_v29, %s5222_s27  ;;  %v2613_v23 = vmul.f32 0.0029438254, %v7792_v6 }
 0x434   : > { %v7872_v5 = vpop.permute.xlu1 %2280  ;;  %v7874_v39 = vpop.permute.xlu0 %2282 }
 0x435   : > { %11104 = vst [vmem:[#allocation40_spill] sm:$0xff] %v7874_v39  ;;  %v2650_v39 = vmul.f32 0.0015612523, %v7794_v54 }
 0x436   : > { %2588 = vrot.lane.b32.xlu1 %v7877_v49, %s5222_s27  ;;  %2590 = vrot.lane.b32.xlu0 %v7880_v52, %s5222_s27 }
 0x438   : > { %v7886_v56 = vpop.permute.xlu1 %2284  ;;  %v7888_v12 = vpop.permute.xlu0 %2310 }
 0x439   : > { %11105 = vst [vmem:[#allocation86_spill] sm:$0xff] %v7886_v56  ;;  %v2646_v56 = vmul.f32 0.0015612523, %v7764_v25  ;;  %v2649_v25 = vmul.f32 0.0015612523, %v7792_v6 }
 0x43a   : > { %2592 = vrot.lane.b32.xlu1 %v7891_v61, %s5222_s27  ;;  %2594 = vrot.lane.b32.xlu0 %v7894_v59, %s5222_s27 }
 0x43c   : > { %v7900_v21 = vpop.permute.xlu1 %2312  ;;  %v7902_v53 = vpop.permute.xlu0 %2314 }
 0x43e   : > { %2596 = vrot.lane.b32.xlu1 %v7905_v44, %s5222_s27  ;;  %2622 = vrot.lane.b32.xlu0 %v2610_v3, %s5223_s28 }
 0x440   : > { %v7911_v40 = vpop.permute.xlu1 %2316  ;;  %v7913_v2 = vpop.permute.xlu0 %2318 }
 0x441   : > { %11106 = vst [vmem:[#allocation90_spill] sm:$0xff] %v7911_v40  ;;  %11107 = vst [vmem:[#allocation41_spill] sm:$0xff] %v7913_v2  ;;  %v2647_v40 = vmul.f32 0.0015612523, %v7775_v37 }
 0x442   : > { %2624 = vrot.lane.b32.xlu1 %v2611_v13, %s5223_s28  ;;  %2626 = vrot.lane.b32.xlu0 %v2612_v46, %s5223_s28 }
 0x444   : > { %v7919_v30 = vpop.permute.xlu1 %2320  ;;  %v7921_v8 = vpop.permute.xlu0 %2334 }
 0x445   : > { %11108 = vst [vmem:[#allocation59_spill] sm:$0xff] %v7919_v30 }
 0x446   : > { %2628 = vrot.lane.b32.xlu1 %v2613_v23, %s5223_s28  ;;  %2630 = vrot.lane.b32.xlu0 %v2614_v58, %s5223_s28 }
 0x448   : > { %v7927_v18 = vpop.permute.xlu1 %2336  ;;  %v7929_v57 = vpop.permute.xlu0 %2338 }
 0x449   : > { %11109 = vst [vmem:[#allocation58_spill] sm:$0xff] %v7927_v18  ;;  %11110 = vst [vmem:[#allocation108_spill] sm:$0xff] %v7929_v57 }
 0x44a   : > { %2632 = vrot.lane.b32.xlu1 %v2615_v22, %s5223_s28  ;;  %2658 = vrot.lane.b32.xlu0 %v2646_v56, %s5224_s30 }
 0x44c   : > { %v7935_v30 = vpop.permute.xlu1 %2340  ;;  %v7937_v2 = vpop.permute.xlu0 %2342 }
 0x44d   : > { %11111 = vst [vmem:[#allocation109_spill] sm:$0xff] %v7935_v30  ;;  %11112 = vst [vmem:[#allocation128_spill] sm:$0xff] %v7937_v2 }
 0x44e   : > { %2660 = vrot.lane.b32.xlu1 %v2647_v40, %s5224_s30  ;;  %2662 = vrot.lane.b32.xlu0 %v2648_v14, %s5224_s30 }
 0x450   : > { %v7943_v57 = vpop.permute.xlu1 %2344  ;;  %v7945_v18 = vpop.permute.xlu0 %2358 }
 0x451   : > { %11113 = vst [vmem:[#allocation93_spill] sm:$0xff] %v7943_v57 }
 0x452   : > { %2664 = vrot.lane.b32.xlu1 %v2649_v25, %s5224_s30  ;;  %2666 = vrot.lane.b32.xlu0 %v2650_v39, %s5224_s30 }
 0x454   : > { %v7951_v2 = vpop.permute.xlu1 %2360  ;;  %v7953_v37 = vpop.permute.xlu0 %2362 }
 0x455   : > { %11114 = vst [vmem:[#allocation52_spill] sm:$0xff] %v7953_v37 }
 0x456   : > { %2668 = vrot.lane.b32.xlu1 %v2651_v0, %s5224_s30  ;;  %2682 = vrot.lane.b32.xlu0 %v2646_v56, %s5226_s3 }
 0x458   : > { %v7958_v57 = vpop.permute.xlu1 %2364  ;;  %v7960_v30 = vpop.permute.xlu0 %2366 }
 0x45a   : > { %2684 = vrot.lane.b32.xlu1 %v2647_v40, %s5226_s3  ;;  %2686 = vrot.lane.b32.xlu0 %v2648_v14, %s5226_s3 }
 0x45c   : > { %v7964_v54 = vpop.permute.xlu1 %2368  ;;  %v7966_v6 = vpop.permute.xlu0 %2382 }
 0x45d   : > { %11115 = vst [vmem:[#allocation138_spill] sm:$0xff] %v7964_v54 }
 0x45e   : > { %2688 = vrot.lane.b32.xlu1 %v2649_v25, %s5226_s3  ;;  %2690 = vrot.lane.b32.xlu0 %v2650_v39, %s5226_s3 }
 0x460   : > { %v7970_v31 = vpop.permute.xlu1 %2384  ;;  %v7972_v37 = vpop.permute.xlu0 %2386 }
 0x462   : > { %2692 = vrot.lane.b32.xlu1 %v2651_v0, %s5226_s3  ;;  %2706 = vrot.lane.b32.xlu0 %v2610_v3, %s5227_s4  ;;  %v2148_v0 = vadd.f32 %v7713_v60, %v7686_v16 }
 0x464   : > { %v7976_v56 = vpop.permute.xlu1 %2388  ;;  %v7978_v40 = vpop.permute.xlu0 %2390  ;;  %v2184_v54 = vadd.f32 %v7740_v24, %v2148_v0  ;;  %v11121_v0 = vld [vmem:[#allocation41_spill] sm:$0xff] }
 0x466   : > { %2708 = vrot.lane.b32.xlu1 %v2611_v13, %s5227_s4  ;;  %2710 = vrot.lane.b32.xlu0 %v2612_v46, %s5227_s4  ;;  %v2149_v46 = vadd.f32 %v7722_v42, %v7698_v35  ;;  %v2150_v13 = vadd.f32 %v7724_v47, %v7700_v10  ;;  %v2152_v35 = vadd.f32 %v7732_v32, %v7711_v27 }
 0x467   : > { %v2153_v27 = vadd.f32 %v7738_v33, %v7720_v63 }
 0x468   : > { %v7982_v14 = vpop.permute.xlu1 %2392  ;;  %v2407_v25 = vpop.permute.xlu0 %2406  ;;  %v2186_v24 = vadd.f32 %v7748_v11, %v2150_v13  ;;  %v11122_v13 = vld [vmem:[#allocation52_spill] sm:$0xff] }
 0x46a   : > { %2712 = vrot.lane.b32.xlu1 %v2613_v23, %s5227_s4  ;;  %2714 = vrot.lane.b32.xlu0 %v2614_v58, %s5227_s4  ;;  %v2220_v58 = vadd.f32 %v7762_v28, %v2184_v54  ;;  %v2185_v23 = vadd.f32 %v7746_v38, %v2149_v46  ;;  %v2222_v42 = vadd.f32 %v7770_v43, %v2186_v24 }
 0x46c   : > { %v7988_v39 = vpop.permute.xlu1 %2408  ;;  %v7990_v3 = vpop.permute.xlu0 %2410  ;;  %v2221_v10 = vadd.f32 %v7768_v26, %v2185_v23  ;;  %v2258_v54 = vadd.f32 %v7818_v36, %v2222_v42  ;;  %v11123_v23 = vld [vmem:[#allocation86_spill] sm:$0xff] }
 0x46e   : > { %2716 = vrot.lane.b32.xlu1 %v2615_v22, %s5227_s4  ;;  %2730 = vrot.lane.b32.xlu0 %v7866_v29, %s5228_s5  ;;  %v2256_v22 = vadd.f32 %v7802_v7, %v2220_v58  ;;  %v2151_v29 = vadd.f32 %v7730_v41, %v7709_v17  ;;  %v2188_v41 = vadd.f32 %v7756_v48, %v2152_v35  ;;  %v11125_v35 = vld [vmem:[#allocation101_spill] sm:$0xff] }
 0x46f   : > { %v2257_v28 = vadd.f32 %v7816_v55, %v2221_v10  ;;  %v2294_v26 = vadd.f32 %v7860_v4, %v2258_v54  ;;  %v2189_v55 = vadd.f32 %v7760_v9, %v2153_v27  ;;  %v11116_v9 = vld [vmem:[#allocation40_spill] sm:$0xff] }
 0x470   : > { %v8001_v16 = vpop.permute.xlu1 %2412  ;;  %v8003_v60 = vpop.permute.xlu0 %2414  ;;  %v2292_v47 = vadd.f32 %v7846_v34, %v2256_v22  ;;  %v2187_v38 = vadd.f32 %v7754_v50, %v2151_v29  ;;  %v2224_v50 = vadd.f32 %v7784_v20, %v2188_v41  ;;  %v11124_v22 = vld [vmem:[#allocation109_spill] sm:$0xff]  ;;  %v11127_v10 = vld [vmem:[#allocation128_spill] sm:$0xff]  ;;  %v11128_v41 = vld [vmem:[#allocation59_spill] sm:$0xff] }
 0x471   : > { %v2293_v48 = vadd.f32 %v7858_v15, %v2257_v28  ;;  %v2225_v15 = vadd.f32 %v7800_v51, %v2189_v55  ;;  %v11130_v55 = vld [vmem:[#allocation93_spill] sm:$0xff] }
 0x472   : > { %2732 = vrot.lane.b32.xlu1 %v7877_v49, %s5228_s5  ;;  %2734 = vrot.lane.b32.xlu0 %v7880_v52, %s5228_s5  ;;  %v2328_v7 = vadd.f32 %v7888_v12, %v2292_v47  ;;  %v2223_v32 = vadd.f32 %v7782_v19, %v2187_v38  ;;  %v2260_v36 = vadd.f32 %v7832_v1, %v2224_v50  ;;  %v11118_v52 = vld [vmem:[#allocation108_spill] sm:$0xff] }
 0x473   : > { %v2329_v34 = vadd.f32 %v7900_v21, %v2293_v48  ;;  %v2330_v49 = vadd.f32 %v7902_v53, %v2294_v26 }
 0x474   : > { %v8020_v11 = vpop.permute.xlu1 %2416  ;;  %v2431_v17 = vpop.permute.xlu0 %2430  ;;  %v2352_v43 = vadd.f32 %v7921_v8, %v2328_v7  ;;  %v2259_v63 = vadd.f32 %v7830_v45, %v2223_v32  ;;  %v2296_v8 = vadd.f32 %v11116_v9, %v2260_v36  ;;  %v11117_v45 = vld [vmem:[#allocation58_spill] sm:$0xff]  ;;  %v11129_v7 = vld [vmem:[#allocation29_spill] sm:$0xff] }
 0x475   : > { %v2353_v1 = vadd.f32 %v11117_v45, %v2329_v34  ;;  %v2354_v12 = vadd.f32 %v11118_v52, %v2330_v49  ;;  %v2490_v27 = vmul.f32 0.006977006, %v11129_v7  ;;  %v8133_v7 = vld [vmem:[#allocation2 + $0x7] sm:$0xff] }
 0x476   : > { %2736 = vrot.lane.b32.xlu1 %v7891_v61, %s5228_s5  ;;  %2738 = vrot.lane.b32.xlu0 %v7894_v59, %s5228_s5  ;;  %v2376_v20 = vadd.f32 %v7945_v18, %v2352_v43  ;;  %v2295_v4 = vadd.f32 %v7872_v5, %v2259_v63  ;;  %v11119_v61 = vld [vmem:[#allocation102_spill] sm:$0xff]  ;;  %v2332_v46 = vadd.f32 %v11121_v0, %v2296_v8 }
 0x477   : > { %v2261_v18 = vadd.f32 %v11119_v61, %v2225_v15  ;;  %v11120_v59 = vld [vmem:[#allocation90_spill] sm:$0xff]  ;;  %11146 = vst [vmem:[#allocation139_spill] sm:$0xff] %v8133_v7 }
 0x478   : > { %v2433_v33 = vpop.permute.xlu1 %2432  ;;  %v2435_v19 = vpop.permute.xlu0 %2434  ;;  %v2400_v53 = vadd.f32 %v7966_v6, %v2376_v20  ;;  %v2331_v51 = vadd.f32 %v11120_v59, %v2295_v4  ;;  %v11126_v6 = vld [vmem:[#allocation104_spill] sm:$0xff]  ;;  %v2356_v42 = vadd.f32 %v11127_v10, %v2332_v46  ;;  %v11135_v4 = vld [vmem:[#allocation73_spill] sm:$0xff]  ;;  %v11144_v10 = vld [vmem:[#allocation106_spill] sm:$0xff] }
 0x479   : > { %v2297_v24 = vadd.f32 %v11123_v23, %v2261_v18  ;;  %v2492_v9 = vmul.f32 0.006977006, %v11135_v4  ;;  %v11138_v59 = vld [vmem:[#allocation88_spill] sm:$0xff]  ;;  %v8193_v4 = vmul.f32 0.0053551784, %v8133_v7 }
 0x47a   : > { %2740 = vrot.lane.b32.xlu1 %v7905_v44, %s5228_s5  ;;  %2754 = vrot.lane.b32.xlu0 %v7824_v62, %s5229_s11  ;;  %v2377_v44 = vadd.f32 %v7951_v2, %v2353_v1  ;;  %v2378_v62 = vadd.f32 %v11122_v13, %v2354_v12  ;;  %v2424_v58 = vadd.f32 %v2407_v25, %v2400_v53 }
 0x47b   : > { %v2355_v29 = vadd.f32 %v11124_v22, %v2331_v51  ;;  %v2333_v28 = vadd.f32 %v11128_v41, %v2297_v24  ;;  %v2380_v50 = vadd.f32 %v7960_v30, %v2356_v42  ;;  %11158 = vst [vmem:[#allocation123_spill] sm:$0xff] %v8193_v4 }
 0x47c   : > { %v2437_v21 = vpop.permute.xlu1 %2436  ;;  %v2439_v5 = vpop.permute.xlu0 %2438  ;;  %v2401_v47 = vadd.f32 %v7970_v31, %v2377_v44  ;;  %v2402_v38 = vadd.f32 %v7972_v37, %v2378_v62  ;;  %v2448_v2 = vadd.f32 %v2431_v17, %v2424_v58  ;;  %v11131_v17 = vld [vmem:[#allocation85_spill] sm:$0xff] }
 0x47d   : > { %v2379_v25 = vadd.f32 %v7958_v57, %v2355_v29  ;;  %v2357_v31 = vadd.f32 %v11130_v55, %v2333_v28  ;;  %v11132_v57 = vld [vmem:[#allocation89_spill] sm:$0xff]  ;;  %v2404_v63 = vadd.f32 %v7978_v40, %v2380_v50  ;;  %v11142_v29 = vld [vmem:[#allocation27_spill] sm:$0xff]  ;;  %v8142_v50 = vmul.f32 0.006252612, %v8133_v7 }
 0x47e   : > { %2756 = vrot.lane.b32.xlu1 %v11125_v35, %s5229_s11  ;;  %2758 = vrot.lane.b32.xlu0 %v11126_v6, %s5229_s11  ;;  %v2425_v48 = vadd.f32 %v7988_v39, %v2401_v47  ;;  %v2426_v26 = vadd.f32 %v7990_v3, %v2402_v38  ;;  %v11133_v39 = vld [vmem:[#allocation138_spill] sm:$0xff]  ;;  %v11134_v3 = vld [vmem:[#allocation51_spill] sm:$0xff]  ;;  %v11140_v62 = vld [vmem:[#allocation13_spill] sm:$0xff] }
 0x47f   : > { %v2403_v37 = vadd.f32 %v7976_v56, %v2379_v25  ;;  %v2381_v49 = vadd.f32 %v11133_v39, %v2357_v31  ;;  %v2491_v20 = vmul.f32 0.006977006, %v11134_v3  ;;  %v2428_v45 = vadd.f32 %v8003_v60, %v2404_v63  ;;  %v11143_v6 = vld [vmem:[#allocation21_spill] sm:$0xff]  ;;  %11147 = vst [vmem:[#allocation98_spill] sm:$0xff] %v8142_v50 }
 0x480   : > { %v2441_v54 = vpop.permute.xlu1 %2440  ;;  %v2461_v32 = vpop.permute.xlu0 %2460  ;;  %v2449_v36 = vadd.f32 %v2433_v33, %v2425_v48  ;;  %v2450_v34 = vadd.f32 %v2435_v19, %v2426_v26  ;;  %v11136_v33 = vld [vmem:[#allocation95_spill] sm:$0xff]  ;;  %v11137_v19 = vld [vmem:[#allocation53_spill] sm:$0xff] }
 0x481   : > { %v2478_v43 = vadd.f32 %v2461_v32, %v2448_v2  ;;  %v2427_v8 = vadd.f32 %v8001_v16, %v2403_v37  ;;  %v2405_v40 = vadd.f32 %v7982_v14, %v2381_v49  ;;  %v2452_v53 = vadd.f32 %v2439_v5, %v2428_v45  ;;  %v11139_v14 = vld [vmem:[#allocation82_spill] sm:$0xff]  ;;  %v11145_v2 = vld [vmem:[#allocation61_spill] sm:$0xff] }
 0x482   : > { %2760 = vrot.lane.b32.xlu1 %v11131_v17, %s5229_s11  ;;  %2762 = vrot.lane.b32.xlu0 %v11132_v57, %s5229_s11  ;;  %v2493_v16 = vmul.f32 0.006977006, %v11138_v59  ;;  %v2494_v44 = vmul.f32 0.006977006, %v11139_v14  ;;  %v8144_v48 = vld [vmem:[#allocation2 + $0xf] sm:$0xff]  ;;  %v8146_v26 = vld [vmem:[#allocation2 + $0x27] sm:$0xff] }
 0x483   : > { %v8080_v30 = vadd.f32 %v2490_v27, %v2478_v43  ;;  %v2451_v12 = vadd.f32 %v2437_v21, %v2427_v8  ;;  %v2429_v0 = vadd.f32 %v8020_v11, %v2405_v40  ;;  %v11141_v21 = vld [vmem:[#allocation20_spill] sm:$0xff]  ;;  %v2495_v11 = vmul.f32 0.006977006, %v11142_v29  ;;  %11148 = vst [vmem:[#allocation119_spill] sm:$0xff] %v8144_v48  ;;  %11149 = vst [vmem:[#allocation120_spill] sm:$0xff] %v8146_v26  ;;  %v8161_v17 = vld [vmem:[#allocation2 + $0x2f] sm:$0xff] }
 0x484   : > { %v2463_v15 = vpop.permute.xlu1 %2462  ;;  %v2465_v56 = vpop.permute.xlu0 %2464  ;;  %v8156_v31 = vmul.f32 0.006252612, %v8144_v48  ;;  %v8159_v37 = vmul.f32 0.006252612, %v8146_v26  ;;  %11152 = vst [vmem:[#allocation112_spill] sm:$0xff] %v8161_v17  ;;  %v8163_v57 = vld [vmem:[#allocation2 + $0x47] sm:$0xff] }
 0x485   : > { %v2479_v1 = vadd.f32 %v2463_v15, %v2449_v36  ;;  %v2480_v52 = vadd.f32 %v2465_v56, %v2450_v34  ;;  %v2453_v5 = vadd.f32 %v2441_v54, %v2429_v0  ;;  %11153 = vst [vmem:[#allocation113_spill] sm:$0xff] %v8163_v57  ;;  %v8174_v34 = vmul.f32 0.006252612, %v8161_v17  ;;  %v8179_v49 = vld [vmem:[#allocation2 + $0x4f] sm:$0xff] }
 0x486   : > { %2764 = vrot.lane.b32.xlu1 %v11136_v33, %s5229_s11  ;;  %2778 = vrot.lane.b32.xlu0 %v11137_v19, %s5230_s13  ;;  %11150 = vst [vmem:[#allocation137_spill] sm:$0xff] %v8156_v31  ;;  %11151 = vst [vmem:[#allocation75_spill] sm:$0xff] %v8159_v37  ;;  %v8177_v39 = vmul.f32 0.006252612, %v8163_v57  ;;  %v8190_v15 = vmul.f32 0.006252612, %v8179_v49 }
 0x487   : > { %v8092_v61 = vadd.f32 %v2491_v20, %v2479_v1  ;;  %v8094_v18 = vadd.f32 %v2492_v9, %v2480_v52  ;;  %11154 = vst [vmem:[#allocation131_spill] sm:$0xff] %v8174_v34  ;;  %11156 = vst [vmem:[#allocation146_spill] sm:$0xff] %v8179_v49  ;;  %v8204_v8 = vmul.f32 0.0053551784, %v8144_v48  ;;  %v8207_v45 = vmul.f32 0.0053551784, %v8146_v26 }
 0x488   : > { %v2467_v51 = vpop.permute.xlu1 %2466  ;;  %v2469_v60 = vpop.permute.xlu0 %2468  ;;  %11155 = vst [vmem:[#allocation132_spill] sm:$0xff] %v8177_v39  ;;  %11157 = vst [vmem:[#allocation92_spill] sm:$0xff] %v8190_v15  ;;  %v8218_v40 = vmul.f32 0.0053551784, %v8161_v17  ;;  %v8221_v33 = vmul.f32 0.0053551784, %v8163_v57 }
 0x489   : > { %v2481_v46 = vadd.f32 %v2467_v51, %v2451_v12  ;;  %v2482_v13 = vadd.f32 %v2469_v60, %v2452_v53  ;;  %11159 = vst [vmem:[#allocation142_spill] sm:$0xff] %v8204_v8  ;;  %11160 = vst [vmem:[#allocation122_spill] sm:$0xff] %v8207_v45  ;;  %v8232_v53 = vmul.f32 0.0053551784, %v8179_v49  ;;  %v8235_v59 = vmul.f32 0.004346484, %v8133_v7 }
 0x48a   : > { %2780 = vrot.lane.b32.xlu1 %v11140_v62, %s5230_s13  ;;  %2782 = vrot.lane.b32.xlu0 %v11141_v21, %s5230_s13  ;;  %11161 = vst [vmem:[#allocation124_spill] sm:$0xff] %v8218_v40  ;;  %11162 = vst [vmem:[#allocation140_spill] sm:$0xff] %v8221_v33  ;;  %v8246_v60 = vmul.f32 0.004346484, %v8144_v48  ;;  %v8249_v0 = vmul.f32 0.004346484, %v8146_v26 }
 0x48b   : > { %v8103_v58 = vadd.f32 %v2493_v16, %v2481_v46  ;;  %v8105_v23 = vadd.f32 %v2494_v44, %v2482_v13  ;;  %11163 = vst [vmem:[#allocation141_spill] sm:$0xff] %v8232_v53  ;;  %v8263_v13 = vmul.f32 0.004346484, %v8163_v57 }
 0x48c   : > { %v2471_v24 = vpop.permute.xlu1 %2470  ;;  %v8107_v22 = vpop.permute.xlu0 %2514  ;;  %11164 = vst [vmem:[#allocation116_spill] sm:$0xff] %v8246_v60  ;;  %11165 = vst [vmem:[#allocation134_spill] sm:$0xff] %v8249_v0 }
 0x48d   : > { %v2483_v35 = vadd.f32 %v2471_v24, %v2453_v5  ;;  %11168 = vst [vmem:[#allocation23_spill] sm:$0xff] %v8263_v13  ;;  %v8274_v5 = vmul.f32 0.004346484, %v8179_v49  ;;  %v8277_v24 = vmul.f32 0.00324583, %v8133_v7 }
 0x48e   : > { %2784 = vrot.lane.b32.xlu1 %v11143_v6, %s5230_s13  ;;  %2786 = vrot.lane.b32.xlu0 %v11144_v10, %s5230_s13  ;;  %v8291_v6 = vmul.f32 0.00324583, %v8146_v26 }
 0x48f   : > { %v8114_v42 = vadd.f32 %v2495_v11, %v2483_v35  ;;  %11169 = vst [vmem:[#allocation127_spill] sm:$0xff] %v8274_v5  ;;  %v8288_v35 = vmul.f32 0.00324583, %v8144_v48 }
 0x490   : > { %v8116_v47 = vpop.permute.xlu1 %2516  ;;  %v8118_v38 = vpop.permute.xlu0 %2518 }
 0x492   : > { %2788 = vrot.lane.b32.xlu1 %v11145_v2, %s5230_s13  ;;  %2808 = vrot.lane.b32.xlu0 %v2490_v27, %s5231_s14 }
 0x494   : > { %v8123_v41 = vpop.permute.xlu1 %2520  ;;  %v8125_v28 = vpop.permute.xlu0 %2522 }
 0x496   : > { %2810 = vrot.lane.b32.xlu1 %v2491_v20, %s5231_s14  ;;  %2812 = vrot.lane.b32.xlu0 %v2492_v9, %s5231_s14 }
 0x498   : > { %v8129_v25 = vpop.permute.xlu1 %2524  ;;  %v8131_v54 = vpop.permute.xlu0 %2550 }
 0x49a   : > { %2814 = vrot.lane.b32.xlu1 %v2493_v16, %s5231_s14  ;;  %2816 = vrot.lane.b32.xlu0 %v2494_v44, %s5231_s14  ;;  %v8260_v44 = vmul.f32 0.004346484, %v8161_v17 }
 0x49c   : > { %v8137_v32 = vpop.permute.xlu1 %2552  ;;  %v8139_v27 = vpop.permute.xlu0 %2554  ;;  %11167 = vst [vmem:[#allocation36_spill] sm:$0xff] %v8260_v44 }
 0x49e   : > { %2818 = vrot.lane.b32.xlu1 %v2495_v11, %s5231_s14  ;;  %2862 = vrot.lane.b32.xlu0 %v8142_v50, %s5220_s16  ;;  %v2994_v50 = vmul.f32 0.0021547056, %v8133_v7 }
 0x4a0   : > { %v8151_v43 = vpop.permute.xlu1 %2556  ;;  %v8153_v55 = vpop.permute.xlu0 %2558 }
 0x4a2   : > { %2864 = vrot.lane.b32.xlu1 %v8156_v31, %s5220_s16  ;;  %2866 = vrot.lane.b32.xlu0 %v8159_v37, %s5220_s16  ;;  %v8316_v31 = vmul.f32 0.00324583, %v8179_v49 }
 0x4a4   : > { %v8169_v63 = vpop.permute.xlu1 %2560  ;;  %v8171_v36 = vpop.permute.xlu0 %2586 }
 0x4a6   : > { %2868 = vrot.lane.b32.xlu1 %v8174_v34, %s5220_s16  ;;  %2870 = vrot.lane.b32.xlu0 %v8177_v39, %s5220_s16  ;;  %v8305_v39 = vmul.f32 0.00324583, %v8163_v57 }
 0x4a8   : > { %v8185_v3 = vpop.permute.xlu1 %2588  ;;  %v8187_v20 = vpop.permute.xlu0 %2590 }
 0x4aa   : > { %2872 = vrot.lane.b32.xlu1 %v8190_v15, %s5220_s16  ;;  %2898 = vrot.lane.b32.xlu0 %v8193_v4, %s5221_s25  ;;  %v8302_v15 = vmul.f32 0.00324583, %v8161_v17 }
 0x4ac   : > { %v8199_v9 = vpop.permute.xlu1 %2592  ;;  %v8201_v56 = vpop.permute.xlu0 %2594 }
 0x4ae   : > { %2900 = vrot.lane.b32.xlu1 %v8204_v8, %s5221_s25  ;;  %2902 = vrot.lane.b32.xlu0 %v8207_v45, %s5221_s25  ;;  %v2996_v45 = vmul.f32 0.0021547056, %v8146_v26 }
 0x4b0   : > { %v8213_v1 = vpop.permute.xlu1 %2596  ;;  %v8215_v52 = vpop.permute.xlu0 %2622 }
 0x4b2   : > { %2904 = vrot.lane.b32.xlu1 %v8218_v40, %s5221_s25  ;;  %2906 = vrot.lane.b32.xlu0 %v8221_v33, %s5221_s25  ;;  %v2995_v40 = vmul.f32 0.0021547056, %v8144_v48 }
 0x4b4   : > { %v8227_v19 = vpop.permute.xlu1 %2624  ;;  %v8229_v12 = vpop.permute.xlu0 %2626 }
 0x4b6   : > { %2908 = vrot.lane.b32.xlu1 %v8232_v53, %s5221_s25  ;;  %2934 = vrot.lane.b32.xlu0 %v8235_v59, %s5222_s27 }
 0x4b8   : > { %v8241_v16 = vpop.permute.xlu1 %2628  ;;  %v8243_v51 = vpop.permute.xlu0 %2630 }
 0x4ba   : > { %2936 = vrot.lane.b32.xlu1 %v8246_v60, %s5222_s27  ;;  %2938 = vrot.lane.b32.xlu0 %v8249_v0, %s5222_s27  ;;  %v3030_v0 = vmul.f32 0.0015612523, %v8133_v7  ;;  %v3033_v7 = vmul.f32 0.0015612523, %v8161_v17 }
 0x4bc   : > { %v8255_v46 = vpop.permute.xlu1 %2632  ;;  %v8257_v14 = vpop.permute.xlu0 %2658 }
 0x4bd   : > { %11166 = vst [vmem:[#allocation135_spill] sm:$0xff] %v8255_v46  ;;  %v3032_v46 = vmul.f32 0.0015612523, %v8146_v26 }
 0x4be   : > { %2940 = vrot.lane.b32.xlu1 %v8260_v44, %s5222_s27  ;;  %2942 = vrot.lane.b32.xlu0 %v8263_v13, %s5222_s27  ;;  %v2998_v13 = vmul.f32 0.0021547056, %v8163_v57 }
 0x4c0   : > { %v8269_v62 = vpop.permute.xlu1 %2660  ;;  %v8271_v21 = vpop.permute.xlu0 %2662 }
 0x4c2   : > { %2944 = vrot.lane.b32.xlu1 %v8274_v5, %s5222_s27  ;;  %2970 = vrot.lane.b32.xlu0 %v8277_v24, %s5223_s28  ;;  %v2997_v5 = vmul.f32 0.0021547056, %v8161_v17 }
 0x4c4   : > { %v8283_v29 = vpop.permute.xlu1 %2664  ;;  %v8285_v11 = vpop.permute.xlu0 %2666 }
 0x4c6   : > { %2972 = vrot.lane.b32.xlu1 %v8288_v35, %s5223_s28  ;;  %2974 = vrot.lane.b32.xlu0 %v8291_v6, %s5223_s28 }
 0x4c8   : > { %v8297_v10 = vpop.permute.xlu1 %2668  ;;  %v8299_v2 = vpop.permute.xlu0 %2682 }
 0x4c9   : > { %11170 = vst [vmem:[#allocation143_spill] sm:$0xff] %v8297_v10 }
 0x4ca   : > { %2976 = vrot.lane.b32.xlu1 %v8302_v15, %s5223_s28  ;;  %2978 = vrot.lane.b32.xlu0 %v8305_v39, %s5223_s28 }
 0x4cc   : > { %v8311_v34 = vpop.permute.xlu1 %2684  ;;  %v8313_v37 = vpop.permute.xlu0 %2686 }
 0x4ce   : > { %2980 = vrot.lane.b32.xlu1 %v8316_v31, %s5223_s28  ;;  %3006 = vrot.lane.b32.xlu0 %v2994_v50, %s5224_s30 }
 0x4d0   : > { %v8322_v53 = vpop.permute.xlu1 %2688  ;;  %v8324_v33 = vpop.permute.xlu0 %2690 }
 0x4d1   : > { %11171 = vst [vmem:[#allocation125_spill] sm:$0xff] %v8322_v53  ;;  %11172 = vst [vmem:[#allocation126_spill] sm:$0xff] %v8324_v33  ;;  %v2999_v33 = vmul.f32 0.0021547056, %v8179_v49  ;;  %v3031_v53 = vmul.f32 0.0015612523, %v8144_v48 }
 0x4d2   : > { %3008 = vrot.lane.b32.xlu1 %v2995_v40, %s5224_s30  ;;  %3010 = vrot.lane.b32.xlu0 %v2996_v45, %s5224_s30 }
 0x4d4   : > { %v8330_v8 = vpop.permute.xlu1 %2692  ;;  %v8332_v4 = vpop.permute.xlu0 %2706 }
 0x4d5   : > { %11173 = vst [vmem:[#allocation144_spill] sm:$0xff] %v8330_v8 }
 0x4d6   : > { %3012 = vrot.lane.b32.xlu1 %v2997_v5, %s5224_s30  ;;  %3014 = vrot.lane.b32.xlu0 %v2998_v13, %s5224_s30 }
 0x4d8   : > { %v8338_v44 = vpop.permute.xlu1 %2708  ;;  %v8340_v10 = vpop.permute.xlu0 %2710 }
 0x4d9   : > { %11174 = vst [vmem:[#allocation136_spill] sm:$0xff] %v8338_v44  ;;  %11175 = vst [vmem:[#allocation78_spill] sm:$0xff] %v8340_v10 }
 0x4da   : > { %3016 = vrot.lane.b32.xlu1 %v2999_v33, %s5224_s30  ;;  %3042 = vrot.lane.b32.xlu0 %v3030_v0, %s5225_s2  ;;  %v3034_v0 = vmul.f32 0.0015612523, %v8163_v57 }
 0x4dc   : > { %v8346_v8 = vpop.permute.xlu1 %2712  ;;  %v8348_v60 = vpop.permute.xlu0 %2714 }
 0x4dd   : > { %11176 = vst [vmem:[#allocation16_spill] sm:$0xff] %v8348_v60 }
 0x4de   : > { %3044 = vrot.lane.b32.xlu1 %v3031_v53, %s5225_s2  ;;  %3046 = vrot.lane.b32.xlu0 %v3032_v46, %s5225_s2  ;;  %v3035_v53 = vmul.f32 0.0015612523, %v8179_v49 }
 0x4e0   : > { %v8354_v10 = vpop.permute.xlu1 %2716  ;;  %v8356_v44 = vpop.permute.xlu0 %2730 }
 0x4e2   : > { %3048 = vrot.lane.b32.xlu1 %v3033_v7, %s5225_s2  ;;  %3050 = vrot.lane.b32.xlu0 %v3034_v0, %s5225_s2 }
 0x4e4   : > { %v8362_v60 = vpop.permute.xlu1 %2732  ;;  %v8364_v48 = vpop.permute.xlu0 %2734 }
 0x4e6   : > { %3052 = vrot.lane.b32.xlu1 %v3035_v53, %s5225_s2  ;;  %3066 = vrot.lane.b32.xlu0 %v2994_v50, %s5226_s3  ;;  %v2532_v50 = vadd.f32 %v8107_v22, %v8080_v30 }
 0x4e8   : > { %v8369_v46 = vpop.permute.xlu1 %2736  ;;  %v8371_v26 = vpop.permute.xlu0 %2738 }
 0x4ea   : > { %3068 = vrot.lane.b32.xlu1 %v2995_v40, %s5226_s3  ;;  %3070 = vrot.lane.b32.xlu0 %v2996_v45, %s5226_s3  ;;  %v2568_v45 = vadd.f32 %v8131_v54, %v2532_v50 }
 0x4ec   : > { %v8375_v7 = vpop.permute.xlu1 %2740  ;;  %v2755_v0 = vpop.permute.xlu0 %2754  ;;  %v2604_v17 = vadd.f32 %v8171_v36, %v2568_v45 }
 0x4ee   : > { %3072 = vrot.lane.b32.xlu1 %v2997_v5, %s5226_s3  ;;  %3074 = vrot.lane.b32.xlu0 %v2998_v13, %s5226_s3  ;;  %v2533_v13 = vadd.f32 %v8116_v47, %v8092_v61  ;;  %v2534_v5 = vadd.f32 %v8118_v38, %v8094_v18  ;;  %v2640_v54 = vadd.f32 %v8215_v52, %v2604_v17 }
 0x4ef   : > { %v2535_v61 = vadd.f32 %v8123_v41, %v8103_v58  ;;  %v2536_v38 = vadd.f32 %v8125_v28, %v8105_v23 }
 0x4f0   : > { %v8379_v49 = vpop.permute.xlu1 %2756  ;;  %v8381_v53 = vpop.permute.xlu0 %2758  ;;  %v2569_v30 = vadd.f32 %v8137_v32, %v2533_v13  ;;  %v2570_v22 = vadd.f32 %v8139_v27, %v2534_v5  ;;  %v2537_v27 = vadd.f32 %v8129_v25, %v8114_v42  ;;  %v11184_v13 = vld [vmem:[#allocation143_spill] sm:$0xff] }
 0x4f1   : > { %v2571_v32 = vadd.f32 %v8151_v43, %v2535_v61  ;;  %v2572_v58 = vadd.f32 %v8153_v55, %v2536_v38  ;;  %v11186_v38 = vld [vmem:[#allocation16_spill] sm:$0xff] }
 0x4f2   : > { %3076 = vrot.lane.b32.xlu1 %v2999_v33, %s5226_s3  ;;  %3090 = vrot.lane.b32.xlu0 %v8277_v24, %s5227_s4  ;;  %v2605_v36 = vadd.f32 %v8185_v3, %v2569_v30  ;;  %v2606_v33 = vadd.f32 %v8187_v20, %v2570_v22  ;;  %v2676_v24 = vadd.f32 %v8257_v14, %v2640_v54  ;;  %v11185_v22 = vld [vmem:[#allocation139_spill] sm:$0xff] }
 0x4f3   : > { %v2607_v17 = vadd.f32 %v8199_v9, %v2571_v32  ;;  %v2608_v20 = vadd.f32 %v8201_v56, %v2572_v58  ;;  %v2573_v52 = vadd.f32 %v8169_v63, %v2537_v27  ;;  %v8457_v54 = vmul.f32 0.0070388336, %v11185_v22  ;;  %v11210_v22 = vld [vmem:[#allocation75_spill] sm:$0xff] }
 0x4f4   : > { %v8389_v40 = vpop.permute.xlu1 %2760  ;;  %v8391_v57 = vpop.permute.xlu0 %2762  ;;  %v2641_v41 = vadd.f32 %v8227_v19, %v2605_v36  ;;  %v2642_v23 = vadd.f32 %v8229_v12, %v2606_v33  ;;  %v2700_v28 = vadd.f32 %v8299_v2, %v2676_v24 }
 0x4f5   : > { %v2643_v19 = vadd.f32 %v8241_v16, %v2607_v17  ;;  %v2644_v42 = vadd.f32 %v8243_v51, %v2608_v20  ;;  %v11179_v51 = vld [vmem:[#allocation135_spill] sm:$0xff] }
 0x4f6   : > { %3092 = vrot.lane.b32.xlu1 %v8288_v35, %s5227_s4  ;;  %3094 = vrot.lane.b32.xlu0 %v8291_v6, %s5227_s4  ;;  %v2724_v55 = vadd.f32 %v8332_v4, %v2700_v28  ;;  %v2609_v4 = vadd.f32 %v8213_v1, %v2573_v52  ;;  %v11182_v1 = vld [vmem:[#allocation134_spill] sm:$0xff] }
 0x4f7   : > { %v2679_v63 = vadd.f32 %v8283_v29, %v2643_v19  ;;  %v2680_v14 = vadd.f32 %v8285_v11, %v2644_v42 }
 0x4f8   : > { %v8407_v47 = vpop.permute.xlu1 %2764  ;;  %v2779_v18 = vpop.permute.xlu0 %2778  ;;  %v2748_v56 = vadd.f32 %v8356_v44, %v2724_v55  ;;  %v2645_v6 = vadd.f32 %v11179_v51, %v2609_v4  ;;  %v11183_v44 = vld [vmem:[#allocation126_spill] sm:$0xff]  ;;  %v11196_v4 = vld [vmem:[#allocation112_spill] sm:$0xff] }
 0x4f9   : > { %v2704_v29 = vadd.f32 %v11183_v44, %v2680_v14  ;;  %v11204_v44 = vld [vmem:[#allocation140_spill] sm:$0xff] }
 0x4fa   : > { %3096 = vrot.lane.b32.xlu1 %v8302_v15, %s5227_s4  ;;  %3098 = vrot.lane.b32.xlu0 %v8305_v39, %s5227_s4  ;;  %v2677_v15 = vadd.f32 %v8269_v62, %v2641_v41  ;;  %v2678_v39 = vadd.f32 %v8271_v21, %v2642_v23  ;;  %v11178_v21 = vld [vmem:[#allocation78_spill] sm:$0xff]  ;;  %v2772_v35 = vadd.f32 %v2755_v0, %v2748_v56 }
 0x4fb   : > { %v2681_v5 = vadd.f32 %v11184_v13, %v2645_v6  ;;  %v2728_v36 = vadd.f32 %v11186_v38, %v2704_v29  ;;  %v11207_v13 = vld [vmem:[#allocation98_spill] sm:$0xff] }
 0x4fc   : > { %v2781_v43 = vpop.permute.xlu1 %2780  ;;  %v2783_v3 = vpop.permute.xlu0 %2782  ;;  %v2701_v25 = vadd.f32 %v8311_v34, %v2677_v15  ;;  %v2702_v9 = vadd.f32 %v8313_v37, %v2678_v39  ;;  %v11180_v34 = vld [vmem:[#allocation125_spill] sm:$0xff]  ;;  %v11181_v37 = vld [vmem:[#allocation116_spill] sm:$0xff]  ;;  %v2796_v45 = vadd.f32 %v2779_v18, %v2772_v35 }
 0x4fd   : > { %v2703_v2 = vadd.f32 %v11180_v34, %v2679_v63  ;;  %v11188_v18 = vld [vmem:[#allocation36_spill] sm:$0xff]  ;;  %v2752_v41 = vadd.f32 %v8371_v26, %v2728_v36  ;;  %v11212_v36 = vld [vmem:[#allocation131_spill] sm:$0xff] }
 0x4fe   : > { %3100 = vrot.lane.b32.xlu1 %v8316_v31, %s5227_s4  ;;  %3114 = vrot.lane.b32.xlu0 %v8235_v59, %s5228_s5  ;;  %v11177_v31 = vld [vmem:[#allocation136_spill] sm:$0xff]  ;;  %v2726_v59 = vadd.f32 %v11178_v21, %v2702_v9 }
 0x4ff   : > { %v2725_v62 = vadd.f32 %v11177_v31, %v2701_v25  ;;  %v2727_v0 = vadd.f32 %v8346_v8, %v2703_v2  ;;  %v11189_v8 = vld [vmem:[#allocation23_spill] sm:$0xff]  ;;  %v11192_v15 = vld [vmem:[#allocation120_spill] sm:$0xff]  ;;  %v2776_v52 = vadd.f32 %v8391_v57, %v2752_v41  ;;  %v11202_v2 = vld [vmem:[#allocation146_spill] sm:$0xff] }
 0x500   : > { %v2785_v12 = vpop.permute.xlu1 %2784  ;;  %v2787_v16 = vpop.permute.xlu0 %2786  ;;  %v2750_v11 = vadd.f32 %v8364_v48, %v2726_v59  ;;  %v11198_v59 = vld [vmem:[#allocation142_spill] sm:$0xff] }
 0x501   : > { %v2749_v50 = vadd.f32 %v8362_v60, %v2725_v62  ;;  %v11187_v60 = vld [vmem:[#allocation144_spill] sm:$0xff]  ;;  %v2751_v48 = vadd.f32 %v8369_v46, %v2727_v0  ;;  %v2840_v46 = vmul.f32 0.0070388336, %v11192_v15  ;;  %v2800_v25 = vadd.f32 %v2787_v16, %v2776_v52  ;;  %v8571_v15 = vld [vmem:[#allocation2 + $0x28] sm:$0xff] }
 0x502   : > { %3116 = vrot.lane.b32.xlu1 %v11181_v37, %s5228_s5  ;;  %3118 = vrot.lane.b32.xlu0 %v11182_v1, %s5228_s5  ;;  %v2774_v24 = vadd.f32 %v8381_v53, %v2750_v11  ;;  %v2705_v58 = vadd.f32 %v11187_v60, %v2681_v5  ;;  %v11191_v53 = vld [vmem:[#allocation119_spill] sm:$0xff]  ;;  %v11203_v1 = vld [vmem:[#allocation124_spill] sm:$0xff] }
 0x503   : > { %v2773_v33 = vadd.f32 %v8379_v49, %v2749_v50  ;;  %v2839_v17 = vmul.f32 0.0070388336, %v11191_v53  ;;  %v2775_v55 = vadd.f32 %v8389_v40, %v2751_v48  ;;  %v2841_v40 = vmul.f32 0.0070388336, %v11196_v4  ;;  %v11215_v60 = vld [vmem:[#allocation92_spill] sm:$0xff] }
 0x504   : > { %v2789_v30 = vpop.permute.xlu1 %2788  ;;  %v2809_v61 = vpop.permute.xlu0 %2808  ;;  %v2798_v28 = vadd.f32 %v2783_v3, %v2774_v24  ;;  %v2729_v49 = vadd.f32 %v8354_v10, %v2705_v58  ;;  %v11194_v3 = vld [vmem:[#allocation123_spill] sm:$0xff] }
 0x505   : > { %v2826_v32 = vadd.f32 %v2809_v61, %v2796_v45  ;;  %v2797_v23 = vadd.f32 %v2781_v43, %v2773_v33  ;;  %v11193_v43 = vld [vmem:[#allocation127_spill] sm:$0xff]  ;;  %v2799_v10 = vadd.f32 %v2785_v12, %v2775_v55  ;;  %v11199_v12 = vld [vmem:[#allocation122_spill] sm:$0xff]  ;;  %v11206_v45 = vld [vmem:[#allocation141_spill] sm:$0xff] }
 0x506   : > { %3120 = vrot.lane.b32.xlu1 %v11188_v18, %s5228_s5  ;;  %3122 = vrot.lane.b32.xlu0 %v11189_v8, %s5228_s5  ;;  %v2753_v26 = vadd.f32 %v8375_v7, %v2729_v49  ;;  %v11197_v7 = vld [vmem:[#allocation113_spill] sm:$0xff]  ;;  %v11213_v33 = vld [vmem:[#allocation132_spill] sm:$0xff]  ;;  %v8559_v49 = vld [vmem:[#allocation2 + $0x10] sm:$0xff] }
 0x507   : > { %v8470_v27 = vadd.f32 %v8457_v54, %v2826_v32  ;;  %v2842_v62 = vmul.f32 0.0070388336, %v11197_v7 }
 0x508   : > { %v2811_v20 = vpop.permute.xlu1 %2810  ;;  %v2813_v39 = vpop.permute.xlu0 %2812  ;;  %v2777_v14 = vadd.f32 %v8407_v47, %v2753_v26  ;;  %v2843_v47 = vmul.f32 0.0070388336, %v11202_v2 }
 0x509   : > { %11190 = vst [vmem:[#allocation145_spill] sm:$0xff] %v8470_v27  ;;  %v2827_v19 = vadd.f32 %v2811_v20, %v2797_v23  ;;  %v2828_v42 = vadd.f32 %v2813_v39, %v2798_v28  ;;  %v8569_v20 = vmul.f32 0.0064930846, %v8559_v49  ;;  %v8576_v39 = vld [vmem:[#allocation2 + $0x30] sm:$0xff] }
 0x50a   : > { %3124 = vrot.lane.b32.xlu1 %v11193_v43, %s5228_s5  ;;  %3138 = vrot.lane.b32.xlu0 %v11194_v3, %s5229_s11  ;;  %v2801_v16 = vadd.f32 %v2789_v30, %v2777_v14  ;;  %v11209_v30 = vld [vmem:[#allocation137_spill] sm:$0xff]  ;;  %v8594_v43 = vld [vmem:[#allocation2 + $0x50] sm:$0xff]  ;;  %v8622_v14 = vmul.f32 0.005690264, %v8571_v15 }
 0x50b   : > { %v8482_v9 = vadd.f32 %v2839_v17, %v2827_v19  ;;  %v8484_v56 = vadd.f32 %v2840_v46, %v2828_v42  ;;  %11220 = vst [vmem:[#allocation118_spill] sm:$0xff] %v8569_v20  ;;  %v8587_v19 = vmul.f32 0.0064930846, %v8576_v39  ;;  %v8589_v42 = vld [vmem:[#allocation2 + $0x48] sm:$0xff] }
 0x50c   : > { %v2815_v63 = vpop.permute.xlu1 %2814  ;;  %v2817_v57 = vpop.permute.xlu0 %2816  ;;  %v8592_v26 = vmul.f32 0.0064930846, %v8589_v42 }
 0x50d   : > { %11195 = vst [vmem:[#allocation129_spill] sm:$0xff] %v8484_v56  ;;  %v2829_v31 = vadd.f32 %v2815_v63, %v2799_v10  ;;  %v2830_v21 = vadd.f32 %v2817_v57, %v2800_v25  ;;  %11223 = vst [vmem:[#allocation99_spill] sm:$0xff] %v8587_v19  ;;  %v8605_v25 = vmul.f32 0.0064930846, %v8594_v43  ;;  %v8619_v57 = vmul.f32 0.005690264, %v8559_v49 }
 0x50e   : > { %3140 = vrot.lane.b32.xlu1 %v11198_v59, %s5229_s11  ;;  %3142 = vrot.lane.b32.xlu0 %v11199_v12, %s5229_s11  ;;  %11224 = vst [vmem:[#allocation80_spill] sm:$0xff] %v8592_v26  ;;  %v3376_v56 = vmul.f32 0.00324583, %v8589_v42 }
 0x50f   : > { %v8493_v35 = vadd.f32 %v2841_v40, %v2829_v31  ;;  %v8495_v51 = vadd.f32 %v2842_v62, %v2830_v21  ;;  %11226 = vst [vmem:[#allocation107_spill] sm:$0xff] %v8605_v25  ;;  %v8636_v21 = vmul.f32 0.005690264, %v8589_v42 }
 0x510   : > { %v2819_v6 = vpop.permute.xlu1 %2818  ;;  %v8497_v34 = vpop.permute.xlu0 %2862 }
 0x511   : > { %11200 = vst [vmem:[#allocation130_spill] sm:$0xff] %v8495_v51  ;;  %11201 = vst [vmem:[#allocation17_spill] sm:$0xff] %v8497_v34  ;;  %v2831_v37 = vadd.f32 %v2819_v6, %v2801_v16  ;;  %v8647_v16 = vmul.f32 0.005690264, %v8594_v43  ;;  %v3377_v34 = vmul.f32 0.00324583, %v8594_v43 }
 0x512   : > { %3144 = vrot.lane.b32.xlu1 %v11203_v1, %s5229_s11  ;;  %3146 = vrot.lane.b32.xlu0 %v11204_v44, %s5229_s11  ;;  %v8664_v1 = vmul.f32 0.0048279855, %v8571_v15 }
 0x513   : > { %v8504_v29 = vadd.f32 %v2843_v47, %v2831_v37  ;;  %v8661_v37 = vmul.f32 0.0048279855, %v8559_v49 }
 0x514   : > { %v8506_v50 = vpop.permute.xlu1 %2864  ;;  %v8508_v11 = vpop.permute.xlu0 %2866 }
 0x515   : > { %11205 = vst [vmem:[#allocation67_spill] sm:$0xff] %v8508_v11  ;;  %v3375_v11 = vmul.f32 0.00324583, %v8576_v39 }
 0x516   : > { %3148 = vrot.lane.b32.xlu1 %v11206_v45, %s5229_s11  ;;  %3162 = vrot.lane.b32.xlu0 %v11207_v13, %s5230_s13  ;;  %v8675_v13 = vmul.f32 0.0048279855, %v8576_v39 }
 0x518   : > { %v8514_v5 = vpop.permute.xlu1 %2868  ;;  %v8516_v0 = vpop.permute.xlu0 %2870 }
 0x519   : > { %11208 = vst [vmem:[#allocation84_spill] sm:$0xff] %v8516_v0 }
 0x51a   : > { %3164 = vrot.lane.b32.xlu1 %v11209_v30, %s5230_s13  ;;  %3166 = vrot.lane.b32.xlu0 %v11210_v22, %s5230_s13  ;;  %v8678_v30 = vmul.f32 0.0048279855, %v8589_v42 }
 0x51c   : > { %v8522_v61 = vpop.permute.xlu1 %2872  ;;  %v8524_v38 = vpop.permute.xlu0 %2898 }
 0x51d   : > { %11211 = vst [vmem:[#allocation133_spill] sm:$0xff] %v8524_v38 }
 0x51e   : > { %3168 = vrot.lane.b32.xlu1 %v11212_v36, %s5230_s13  ;;  %3170 = vrot.lane.b32.xlu0 %v11213_v33, %s5230_s13  ;;  %v8689_v33 = vmul.f32 0.0048279855, %v8594_v43 }
 0x520   : > { %v8530_v24 = vpop.permute.xlu1 %2900  ;;  %v8532_v32 = vpop.permute.xlu0 %2902 }
 0x521   : > { %11214 = vst [vmem:[#allocation111_spill] sm:$0xff] %v8532_v32  ;;  %v3374_v32 = vmul.f32 0.00324583, %v8571_v15 }
 0x522   : > { %3172 = vrot.lane.b32.xlu1 %v11215_v60, %s5230_s13  ;;  %3192 = vrot.lane.b32.xlu0 %v8457_v54, %s5231_s14  ;;  %v8554_v54 = vld [vmem:[#allocation2 + $0x8] sm:$0xff] }
 0x523   : > { %v8557_v28 = vmul.f32 0.0064930846, %v8554_v54  ;;  %v8608_v4 = vmul.f32 0.005690264, %v8554_v54  ;;  %v8650_v6 = vmul.f32 0.0048279855, %v8554_v54 }
 0x524   : > { %v8538_v58 = vpop.permute.xlu1 %2904  ;;  %v8540_v48 = vpop.permute.xlu0 %2906  ;;  %v8692_v60 = vmul.f32 0.0039648497, %v8554_v54  ;;  %v3408_v27 = vmul.f32 0.0029438254, %v8554_v54 }
 0x525   : > { %11216 = vst [vmem:[#allocation97_spill] sm:$0xff] %v8540_v48 }
 0x526   : > { %3194 = vrot.lane.b32.xlu1 %v2839_v17, %s5231_s14  ;;  %3196 = vrot.lane.b32.xlu0 %v2840_v46, %s5231_s14  ;;  %v8574_v46 = vmul.f32 0.0064930846, %v8571_v15 }
 0x528   : > { %v8544_v18 = vpop.permute.xlu1 %2908  ;;  %v8546_v8 = vpop.permute.xlu0 %2934  ;;  %11221 = vst [vmem:[#allocation121_spill] sm:$0xff] %v8574_v46 }
 0x529   : > { %11217 = vst [vmem:[#allocation114_spill] sm:$0xff] %v8546_v8 }
 0x52a   : > { %3198 = vrot.lane.b32.xlu1 %v2841_v40, %s5231_s14  ;;  %3200 = vrot.lane.b32.xlu0 %v2842_v62, %s5231_s14  ;;  %v8633_v62 = vmul.f32 0.005690264, %v8576_v39 }
 0x52c   : > { %v8550_v41 = vpop.permute.xlu1 %2936  ;;  %v8552_v23 = vpop.permute.xlu0 %2938 }
 0x52d   : > { %11218 = vst [vmem:[#allocation115_spill] sm:$0xff] %v8552_v23  ;;  %v8731_v23 = vmul.f32 0.0039648497, %v8594_v43 }
 0x52e   : > { %3202 = vrot.lane.b32.xlu1 %v2843_v47, %s5231_s14  ;;  %3240 = vrot.lane.b32.xlu0 %v8557_v28, %s5220_s16 }
 0x530   : > { %v8564_v53 = vpop.permute.xlu1 %2940  ;;  %v8566_v17 = vpop.permute.xlu0 %2942 }
 0x531   : > { %11219 = vst [vmem:[#allocation117_spill] sm:$0xff] %v8566_v17 }
 0x532   : > { %3242 = vrot.lane.b32.xlu1 %v8569_v20, %s5220_s16  ;;  %3244 = vrot.lane.b32.xlu0 %v8574_v46, %s5220_s16 }
 0x534   : > { %v8582_v55 = vpop.permute.xlu1 %2944  ;;  %v8584_v52 = vpop.permute.xlu0 %2970 }
 0x535   : > { %11222 = vst [vmem:[#allocation63_spill] sm:$0xff] %v8584_v52  ;;  %v3373_v52 = vmul.f32 0.00324583, %v8559_v49 }
 0x536   : > { %3246 = vrot.lane.b32.xlu1 %v8587_v19, %s5220_s16  ;;  %3248 = vrot.lane.b32.xlu0 %v8592_v26, %s5220_s16  ;;  %v3409_v26 = vmul.f32 0.0029438254, %v8559_v49  ;;  %v3410_v19 = vmul.f32 0.0029438254, %v8571_v15 }
 0x538   : > { %v8600_v3 = vpop.permute.xlu1 %2972  ;;  %v8602_v10 = vpop.permute.xlu0 %2974 }
 0x539   : > { %11225 = vst [vmem:[#allocation69_spill] sm:$0xff] %v8602_v10  ;;  %v8717_v10 = vmul.f32 0.0039648497, %v8576_v39 }
 0x53a   : > { %3250 = vrot.lane.b32.xlu1 %v8605_v25, %s5220_s16  ;;  %3276 = vrot.lane.b32.xlu0 %v8608_v4, %s5221_s25 }
 0x53c   : > { %v8614_v40 = vpop.permute.xlu1 %2976  ;;  %v8616_v63 = vpop.permute.xlu0 %2978 }
 0x53d   : > { %11227 = vst [vmem:[#allocation110_spill] sm:$0xff] %v8616_v63 }
 0x53e   : > { %3278 = vrot.lane.b32.xlu1 %v8619_v57, %s5221_s25  ;;  %3280 = vrot.lane.b32.xlu0 %v8622_v14, %s5221_s25 }
 0x540   : > { %v8628_v31 = vpop.permute.xlu1 %2980  ;;  %v8630_v7 = vpop.permute.xlu0 %3006 }
 0x541   : > { %11228 = vst [vmem:[#allocation40_spill] sm:$0xff] %v8630_v7 }
 0x542   : > { %3282 = vrot.lane.b32.xlu1 %v8633_v62, %s5221_s25  ;;  %3284 = vrot.lane.b32.xlu0 %v8636_v21, %s5221_s25 }
 0x544   : > { %v8642_v59 = vpop.permute.xlu1 %3008  ;;  %v8644_v12 = vpop.permute.xlu0 %3010 }
 0x545   : > { %11229 = vst [vmem:[#allocation58_spill] sm:$0xff] %v8644_v12  ;;  %v8703_v12 = vmul.f32 0.0039648497, %v8559_v49 }
 0x546   : > { %3286 = vrot.lane.b32.xlu1 %v8647_v16, %s5221_s25  ;;  %3312 = vrot.lane.b32.xlu0 %v8650_v6, %s5222_s27 }
 0x548   : > { %v8656_v2 = vpop.permute.xlu1 %3012  ;;  %v8658_v47 = vpop.permute.xlu0 %3014 }
 0x549   : > { %11230 = vst [vmem:[#allocation108_spill] sm:$0xff] %v8658_v47 }
 0x54a   : > { %3314 = vrot.lane.b32.xlu1 %v8661_v37, %s5222_s27  ;;  %3316 = vrot.lane.b32.xlu0 %v8664_v1, %s5222_s27 }
 0x54c   : > { %v8670_v44 = vpop.permute.xlu1 %3016  ;;  %v8672_v45 = vpop.permute.xlu0 %3042 }
 0x54d   : > { %11231 = vst [vmem:[#allocation102_spill] sm:$0xff] %v8672_v45 }
 0x54e   : > { %3318 = vrot.lane.b32.xlu1 %v8675_v13, %s5222_s27  ;;  %3320 = vrot.lane.b32.xlu0 %v8678_v30, %s5222_s27 }
 0x550   : > { %v8684_v22 = vpop.permute.xlu1 %3044  ;;  %v8686_v36 = vpop.permute.xlu0 %3046 }
 0x551   : > { %11232 = vst [vmem:[#allocation90_spill] sm:$0xff] %v8686_v36  ;;  %v8706_v36 = vmul.f32 0.0039648497, %v8571_v15  ;;  %v3413_v15 = vmul.f32 0.0029438254, %v8594_v43 }
 0x552   : > { %3322 = vrot.lane.b32.xlu1 %v8689_v33, %s5222_s27  ;;  %3348 = vrot.lane.b32.xlu0 %v8692_v60, %s5223_s28 }
 0x554   : > { %v8698_v47 = vpop.permute.xlu1 %3048  ;;  %v8700_v63 = vpop.permute.xlu0 %3050 }
 0x555   : > { %11233 = vst [vmem:[#allocation41_spill] sm:$0xff] %v8700_v63  ;;  %v8720_v63 = vmul.f32 0.0039648497, %v8589_v42 }
 0x556   : > { %3350 = vrot.lane.b32.xlu1 %v8703_v12, %s5223_s28  ;;  %3352 = vrot.lane.b32.xlu0 %v8706_v36, %s5223_s28 }
 0x558   : > { %v8712_v17 = vpop.permute.xlu1 %3052  ;;  %v8714_v45 = vpop.permute.xlu0 %3066 }
 0x559   : > { %11234 = vst [vmem:[#allocation52_spill] sm:$0xff] %v8714_v45  ;;  %v3372_v45 = vmul.f32 0.00324583, %v8554_v54  ;;  %v3411_v54 = vmul.f32 0.0029438254, %v8576_v39 }
 0x55a   : > { %3354 = vrot.lane.b32.xlu1 %v8717_v10, %s5223_s28  ;;  %3356 = vrot.lane.b32.xlu0 %v8720_v63, %s5223_s28 }
 0x55c   : > { %v8726_v48 = vpop.permute.xlu1 %3068  ;;  %v8728_v7 = vpop.permute.xlu0 %3070 }
 0x55d   : > { %11235 = vst [vmem:[#allocation86_spill] sm:$0xff] %v8728_v7 }
 0x55e   : > { %3358 = vrot.lane.b32.xlu1 %v8731_v23, %s5223_s28  ;;  %3384 = vrot.lane.b32.xlu0 %v3372_v45, %s5224_s30 }
 0x560   : > { %v8737_v0 = vpop.permute.xlu1 %3072  ;;  %v8739_v51 = vpop.permute.xlu0 %3074 }
 0x561   : > { %11236 = vst [vmem:[#allocation109_spill] sm:$0xff] %v8739_v51 }
 0x562   : > { %3386 = vrot.lane.b32.xlu1 %v3373_v52, %s5224_s30  ;;  %3388 = vrot.lane.b32.xlu0 %v3374_v32, %s5224_s30 }
 0x564   : > { %v8745_v7 = vpop.permute.xlu1 %3076  ;;  %v8747_v8 = vpop.permute.xlu0 %3090 }
 0x565   : > { %11237 = vst [vmem:[#allocation101_spill] sm:$0xff] %v8747_v8 }
 0x566   : > { %3390 = vrot.lane.b32.xlu1 %v3375_v11, %s5224_s30  ;;  %3392 = vrot.lane.b32.xlu0 %v3376_v56, %s5224_s30 }
 0x568   : > { %v8753_v51 = vpop.permute.xlu1 %3092  ;;  %v8755_v38 = vpop.permute.xlu0 %3094 }
 0x569   : > { %11238 = vst [vmem:[#allocation104_spill] sm:$0xff] %v8755_v38 }
 0x56a   : > { %3394 = vrot.lane.b32.xlu1 %v3377_v34, %s5224_s30  ;;  %3420 = vrot.lane.b32.xlu0 %v3408_v27, %s5225_s2  ;;  %v3412_v27 = vmul.f32 0.0029438254, %v8589_v42 }
 0x56c   : > { %v8761_v8 = vpop.permute.xlu1 %3096  ;;  %v8763_v25 = vpop.permute.xlu0 %3098 }
 0x56d   : > { %11239 = vst [vmem:[#allocation128_spill] sm:$0xff] %v8763_v25 }
 0x56e   : > { %3422 = vrot.lane.b32.xlu1 %v3409_v26, %s5225_s2  ;;  %3424 = vrot.lane.b32.xlu0 %v3410_v19, %s5225_s2 }
 0x570   : > { %v8769_v38 = vpop.permute.xlu1 %3100  ;;  %v8771_v46 = vpop.permute.xlu0 %3114 }
 0x572   : > { %3426 = vrot.lane.b32.xlu1 %v3411_v54, %s5225_s2  ;;  %3428 = vrot.lane.b32.xlu0 %v3412_v27, %s5225_s2 }
 0x574   : > { %v3117_v25 = vpop.permute.xlu1 %3116  ;;  %v8777_v20 = vpop.permute.xlu0 %3118 }
 0x575   : > { %11240 = vst [vmem:[#allocation59_spill] sm:$0xff] %v8777_v20 }
 0x576   : > { %3430 = vrot.lane.b32.xlu1 %v3413_v15, %s5225_s2  ;;  %3444 = vrot.lane.b32.xlu0 %v3372_v45, %s5226_s3 }
 0x578   : > { %v3121_v19 = vpop.permute.xlu1 %3120  ;;  %v8782_v26 = vpop.permute.xlu0 %3122 }
 0x57a   : > { %3446 = vrot.lane.b32.xlu1 %v3373_v52, %s5226_s3  ;;  %3448 = vrot.lane.b32.xlu0 %v3374_v32, %s5226_s3  ;;  %v2881_v52 = vadd.f32 %v8506_v50, %v8482_v9 }
 0x57c   : > { %v8786_v42 = vpop.permute.xlu1 %3124  ;;  %v8788_v54 = vpop.permute.xlu0 %3138  ;;  %v2917_v15 = vadd.f32 %v8530_v24, %v2881_v52  ;;  %v2885_v24 = vadd.f32 %v8522_v61, %v8504_v29 }
 0x57e   : > { %3450 = vrot.lane.b32.xlu1 %v3375_v11, %s5226_s3  ;;  %3452 = vrot.lane.b32.xlu0 %v3376_v56, %s5226_s3  ;;  %v2883_v56 = vadd.f32 %v8514_v5, %v8493_v35 }
 0x580   : > { %v3141_v27 = vpop.permute.xlu1 %3140  ;;  %v8792_v20 = vpop.permute.xlu0 %3142  ;;  %v2919_v9 = vadd.f32 %v8538_v58, %v2883_v56  ;;  %v2921_v58 = vadd.f32 %v8544_v18, %v2885_v24  ;;  %v3221_v56 = vmul.f32 0.007215096, %v8594_v43  ;;  %v11245_v24 = vld [vmem:[#allocation99_spill] sm:$0xff] }
 0x582   : > { %3454 = vrot.lane.b32.xlu1 %v3377_v34, %s5226_s3  ;;  %3468 = vrot.lane.b32.xlu0 %v8692_v60, %s5227_s4  ;;  %v2953_v34 = vadd.f32 %v8550_v41, %v2917_v15  ;;  %v2955_v35 = vadd.f32 %v8564_v53, %v2919_v9  ;;  %v2957_v29 = vadd.f32 %v8582_v55, %v2921_v58 }
 0x584   : > { %v3145_v32 = vpop.permute.xlu1 %3144  ;;  %v8799_v45 = vpop.permute.xlu0 %3146  ;;  %v2989_v50 = vadd.f32 %v8600_v3, %v2953_v34  ;;  %v2991_v3 = vadd.f32 %v8614_v40, %v2955_v35  ;;  %v2993_v18 = vadd.f32 %v8628_v31, %v2957_v29 }
 0x586   : > { %3470 = vrot.lane.b32.xlu1 %v8703_v12, %s5227_s4  ;;  %3472 = vrot.lane.b32.xlu0 %v8706_v36, %s5227_s4  ;;  %v3025_v5 = vadd.f32 %v8642_v59, %v2989_v50  ;;  %v3027_v61 = vadd.f32 %v8656_v2, %v2991_v3 }
 0x588   : > { %v3149_v11 = vpop.permute.xlu1 %3148  ;;  %v8809_v60 = vpop.permute.xlu0 %3162  ;;  %v3061_v36 = vadd.f32 %v8684_v22, %v3025_v5  ;;  %v3063_v40 = vadd.f32 %v8698_v47, %v3027_v61  ;;  %v11247_v5 = vld [vmem:[#allocation107_spill] sm:$0xff] }
 0x58a   : > { %3474 = vrot.lane.b32.xlu1 %v8717_v10, %s5227_s4  ;;  %3476 = vrot.lane.b32.xlu0 %v8720_v63, %s5227_s4  ;;  %v3085_v53 = vadd.f32 %v8726_v48, %v3061_v36  ;;  %v3087_v55 = vadd.f32 %v8737_v0, %v3063_v40  ;;  %v11249_v36 = vld [vmem:[#allocation10_spill] sm:$0xff]  ;;  %v8932_v40 = vld [vmem:[#allocation2 + $0x11] sm:$0xff] }
 0x58b   : > { %11252 = vst [vmem:[#allocation89_spill] sm:$0xff] %v8932_v40 }
 0x58c   : > { %v3165_v41 = vpop.permute.xlu1 %3164  ;;  %v8821_v12 = vpop.permute.xlu0 %3166  ;;  %v3109_v59 = vadd.f32 %v8753_v51, %v3085_v53  ;;  %v3111_v47 = vadd.f32 %v8761_v8, %v3087_v55  ;;  %v11251_v53 = vld [vmem:[#allocation11_spill] sm:$0xff] }
 0x58e   : > { %3478 = vrot.lane.b32.xlu1 %v8731_v23, %s5227_s4  ;;  %3492 = vrot.lane.b32.xlu0 %v8650_v6, %s5228_s5  ;;  %v3029_v23 = vadd.f32 %v8670_v44, %v2993_v18  ;;  %v3133_v48 = vadd.f32 %v3117_v25, %v3109_v59  ;;  %v11253_v59 = vld [vmem:[#allocation32_spill] sm:$0xff] }
 0x590   : > { %v3169_v10 = vpop.permute.xlu1 %3168  ;;  %v8833_v63 = vpop.permute.xlu0 %3170  ;;  %v3065_v31 = vadd.f32 %v8712_v17, %v3029_v23  ;;  %v3157_v22 = vadd.f32 %v3141_v27, %v3133_v48  ;;  %v3219_v17 = vmul.f32 0.007215096, %v8559_v49  ;;  %v8942_v48 = vmul.f32 0.0068483097, %v8932_v40 }
 0x592   : > { %3494 = vrot.lane.b32.xlu1 %v8661_v37, %s5228_s5  ;;  %3496 = vrot.lane.b32.xlu0 %v8664_v1, %s5228_s5  ;;  %v3089_v51 = vadd.f32 %v8745_v7, %v3065_v31  ;;  %v3135_v37 = vadd.f32 %v3121_v19, %v3111_v47  ;;  %v3181_v1 = vadd.f32 %v3165_v41, %v3157_v22  ;;  %v11248_v41 = vld [vmem:[#allocation9_spill] sm:$0xff]  ;;  %v11258_v31 = vld [vmem:[#allocation35_spill] sm:$0xff] }
 0x593   : > { %11256 = vst [vmem:[#allocation73_spill] sm:$0xff] %v8942_v48 }
 0x594   : > { %v3173_v6 = vpop.permute.xlu1 %3172  ;;  %v8844_v2 = vpop.permute.xlu0 %3192  ;;  %v3113_v44 = vadd.f32 %v8769_v38, %v3089_v51  ;;  %v3159_v52 = vadd.f32 %v3145_v32, %v3135_v37  ;;  %v3220_v38 = vmul.f32 0.007215096, %v8576_v39  ;;  %v8957_v37 = vld [vmem:[#allocation2 + $0x51] sm:$0xff] }
 0x596   : > { %3498 = vrot.lane.b32.xlu1 %v8675_v13, %s5228_s5  ;;  %3500 = vrot.lane.b32.xlu0 %v8678_v30, %s5228_s5  ;;  %v3137_v13 = vadd.f32 %v8786_v42, %v3113_v44  ;;  %v3183_v7 = vadd.f32 %v3169_v10, %v3159_v52  ;;  %v8968_v52 = vmul.f32 0.0068483097, %v8957_v37 }
 0x598   : > { %v3195_v0 = vpop.permute.xlu1 %3194  ;;  %v8853_v25 = vpop.permute.xlu0 %3196  ;;  %v3161_v15 = vadd.f32 %v3149_v11, %v3137_v13  ;;  %11264 = vst [vmem:[#allocation20_spill] sm:$0xff] %v8968_v52 }
 0x599   : > { %v3211_v8 = vadd.f32 %v3195_v0, %v3181_v1  ;;  %v11261_v1 = vld [vmem:[#allocation37_spill] sm:$0xff] }
 0x59a   : > { %3502 = vrot.lane.b32.xlu1 %v8689_v33, %s5228_s5  ;;  %3516 = vrot.lane.b32.xlu0 %v8608_v4, %s5229_s11  ;;  %v3185_v49 = vadd.f32 %v3173_v6, %v3161_v15  ;;  %v8944_v6 = vld [vmem:[#allocation2 + $0x31] sm:$0xff] }
 0x59b   : > { %v8862_v30 = vadd.f32 %v3219_v17, %v3211_v8  ;;  %11257 = vst [vmem:[#allocation95_spill] sm:$0xff] %v8944_v6  ;;  %v8955_v51 = vmul.f32 0.0068483097, %v8944_v6 }
 0x59c   : > { %v3199_v19 = vpop.permute.xlu1 %3198  ;;  %v8864_v27 = vpop.permute.xlu0 %3200 }
 0x59d   : > { %v3213_v32 = vadd.f32 %v3199_v19, %v3183_v7  ;;  %11260 = vst [vmem:[#allocation88_spill] sm:$0xff] %v8955_v51  ;;  %v8979_v7 = vmul.f32 0.00616707, %v8932_v40  ;;  %v11269_v19 = vld [vmem:[#allocation49_spill] sm:$0xff] }
 0x59e   : > { %3518 = vrot.lane.b32.xlu1 %v8619_v57, %s5229_s11  ;;  %3520 = vrot.lane.b32.xlu0 %v8622_v14, %s5229_s11 }
 0x59f   : > { %v8871_v4 = vadd.f32 %v3220_v38, %v3213_v32  ;;  %11268 = vst [vmem:[#allocation106_spill] sm:$0xff] %v8979_v7  ;;  %v8990_v32 = vmul.f32 0.00616707, %v8944_v6 }
 0x5a0   : > { %v3203_v33 = vpop.permute.xlu1 %3202  ;;  %v8873_v42 = vpop.permute.xlu0 %3240 }
 0x5a1   : > { %v3215_v34 = vadd.f32 %v3203_v33, %v3185_v49  ;;  %11271 = vst [vmem:[#allocation136_spill] sm:$0xff] %v8990_v32  ;;  %v11272_v49 = vld [vmem:[#allocation50_spill] sm:$0xff] }
 0x5a2   : > { %3522 = vrot.lane.b32.xlu1 %v8633_v62, %s5229_s11  ;;  %3524 = vrot.lane.b32.xlu0 %v8636_v21, %s5229_s11  ;;  %v11242_v62 = vld [vmem:[#allocation118_spill] sm:$0xff]  ;;  %v11243_v21 = vld [vmem:[#allocation121_spill] sm:$0xff] }
 0x5a3   : > { %v8880_v39 = vadd.f32 %v3221_v56, %v3215_v34  ;;  %v9001_v34 = vmul.f32 0.00616707, %v8957_v37 }
 0x5a4   : > { %v8882_v57 = vpop.permute.xlu1 %3242  ;;  %v8884_v14 = vpop.permute.xlu0 %3244 }
 0x5a5   : > { %11241 = vst [vmem:[#allocation29_spill] sm:$0xff] %v8880_v39  ;;  %11275 = vst [vmem:[#allocation125_spill] sm:$0xff] %v9001_v34 }
 0x5a6   : > { %3526 = vrot.lane.b32.xlu1 %v8647_v16, %s5229_s11  ;;  %3540 = vrot.lane.b32.xlu0 %v8557_v28, %s5230_s13  ;;  %v11246_v16 = vld [vmem:[#allocation80_spill] sm:$0xff] }
 0x5a8   : > { %v8890_v43 = vpop.permute.xlu1 %3246  ;;  %v8892_v11 = vpop.permute.xlu0 %3248 }
 0x5aa   : > { %3542 = vrot.lane.b32.xlu1 %v11242_v62, %s5230_s13  ;;  %3544 = vrot.lane.b32.xlu0 %v11243_v21, %s5230_s13  ;;  %v9003_v62 = vld [vmem:[#allocation2 + $0x9] sm:$0xff] }
 0x5ab   : > { %11276 = vst [vmem:[#allocation116_spill] sm:$0xff] %v9003_v62  ;;  %v9006_v21 = vmul.f32 0.005471756, %v9003_v62 }
 0x5ac   : > { %v8898_v9 = vpop.permute.xlu1 %3250  ;;  %v8900_v50 = vpop.permute.xlu0 %3276 }
 0x5ad   : > { %11244 = vst [vmem:[#allocation93_spill] sm:$0xff] %v8898_v9  ;;  %11277 = vst [vmem:[#allocation134_spill] sm:$0xff] %v9006_v21 }
 0x5ae   : > { %3546 = vrot.lane.b32.xlu1 %v11245_v24, %s5230_s13  ;;  %3548 = vrot.lane.b32.xlu0 %v11246_v16, %s5230_s13 }
 0x5b0   : > { %v8906_v28 = vpop.permute.xlu1 %3278  ;;  %v8908_v35 = vpop.permute.xlu0 %3280 }
 0x5b2   : > { %3550 = vrot.lane.b32.xlu1 %v11247_v5, %s5230_s13  ;;  %3567 = vrot.lane.b32.xlu0 %v11248_v41, %s5231_s14  ;;  %v9017_v5 = vmul.f32 0.005471756, %v8932_v40 }
 0x5b4   : > { %v8914_v58 = vpop.permute.xlu1 %3282  ;;  %v8916_v3 = vpop.permute.xlu0 %3284  ;;  %11280 = vst [vmem:[#allocation139_spill] sm:$0xff] %v9017_v5 }
 0x5b6   : > { %3569 = vrot.lane.b32.xlu1 %v3219_v17, %s5231_s14  ;;  %3571 = vrot.lane.b32.xlu0 %v11249_v36, %s5231_s14  ;;  %v11265_v17 = vld [vmem:[#allocation48_spill] sm:$0xff] }
 0x5b8   : > { %v8921_v29 = vpop.permute.xlu1 %3286  ;;  %v8923_v61 = vpop.permute.xlu0 %3312 }
 0x5b9   : > { %11250 = vst [vmem:[#allocation85_spill] sm:$0xff] %v8921_v29 }
 0x5ba   : > { %3573 = vrot.lane.b32.xlu1 %v3220_v38, %s5231_s14  ;;  %3575 = vrot.lane.b32.xlu0 %v11251_v53, %s5231_s14 }
 0x5bc   : > { %v8928_v10 = vpop.permute.xlu1 %3314  ;;  %v8930_v18 = vpop.permute.xlu0 %3316 }
 0x5be   : > { %3577 = vrot.lane.b32.xlu1 %v3221_v56, %s5231_s14  ;;  %3612 = vrot.lane.b32.xlu0 %v11253_v59, %s5220_s16  ;;  %v9035_v59 = vld [vmem:[#allocation2 + $0x49] sm:$0xff] }
 0x5c0   : > { %v8937_v23 = vpop.permute.xlu1 %3318  ;;  %v8939_v55 = vpop.permute.xlu0 %3320 }
 0x5c1   : > { %11254 = vst [vmem:[#allocation138_spill] sm:$0xff] %v8937_v23  ;;  %11255 = vst [vmem:[#allocation51_spill] sm:$0xff] %v8939_v55  ;;  %v9136_v55 = vmul.f32 0.004346484, %v8957_v37 }
 0x5c2   : > { %3614 = vrot.lane.b32.xlu1 %v8942_v48, %s5220_s16  ;;  %3616 = vrot.lane.b32.xlu0 %v11258_v31, %s5220_s16  ;;  %v9033_v48 = vmul.f32 0.005471756, %v8944_v6 }
 0x5c4   : > { %v8950_v47 = vpop.permute.xlu1 %3322  ;;  %v8952_v22 = vpop.permute.xlu0 %3348  ;;  %11284 = vst [vmem:[#allocation23_spill] sm:$0xff] %v9033_v48 }
 0x5c5   : > { %11259 = vst [vmem:[#allocation53_spill] sm:$0xff] %v8950_v47  ;;  %v9102_v47 = vmul.f32 0.004346484, %v8932_v40 }
 0x5c6   : > { %3618 = vrot.lane.b32.xlu1 %v8955_v51, %s5220_s16  ;;  %3620 = vrot.lane.b32.xlu0 %v11261_v1, %s5220_s16 }
 0x5c8   : > { %v8963_v0 = vpop.permute.xlu1 %3350  ;;  %v8965_v44 = vpop.permute.xlu0 %3352 }
 0x5c9   : > { %11262 = vst [vmem:[#allocation82_spill] sm:$0xff] %v8963_v0  ;;  %11263 = vst [vmem:[#allocation13_spill] sm:$0xff] %v8965_v44 }
 0x5ca   : > { %3622 = vrot.lane.b32.xlu1 %v8968_v52, %s5220_s16  ;;  %3642 = vrot.lane.b32.xlu0 %v11265_v17, %s5221_s25  ;;  %v9019_v52 = vld [vmem:[#allocation2 + $0x29] sm:$0xff] }
 0x5cb   : > { %v9022_v1 = vmul.f32 0.005471756, %v9019_v52 }
 0x5cc   : > { %v8974_v8 = vpop.permute.xlu1 %3354  ;;  %v8976_v13 = vpop.permute.xlu0 %3356 }
 0x5cd   : > { %11266 = vst [vmem:[#allocation27_spill] sm:$0xff] %v8974_v8  ;;  %11267 = vst [vmem:[#allocation21_spill] sm:$0xff] %v8976_v13  ;;  %v9121_v13 = vmul.f32 0.004346484, %v9035_v59  ;;  %v11304_v8 = vld [vmem:[#allocation133_spill] sm:$0xff] }
 0x5ce   : > { %3644 = vrot.lane.b32.xlu1 %v8979_v7, %s5221_s25  ;;  %3646 = vrot.lane.b32.xlu0 %v11269_v19, %s5221_s25  ;;  %11281 = vst [vmem:[#allocation16_spill] sm:$0xff] %v9022_v1  ;;  %v9049_v19 = vmul.f32 0.005471756, %v8957_v37  ;;  %v9052_v7 = vmul.f32 0.0048279855, %v9003_v62 }
 0x5d0   : > { %v8985_v15 = vpop.permute.xlu1 %3358  ;;  %v8987_v38 = vpop.permute.xlu0 %3384  ;;  %11288 = vst [vmem:[#allocation123_spill] sm:$0xff] %v9049_v19 }
 0x5d1   : > { %11270 = vst [vmem:[#allocation61_spill] sm:$0xff] %v8985_v15 }
 0x5d2   : > { %3648 = vrot.lane.b32.xlu1 %v8990_v32, %s5221_s25  ;;  %3650 = vrot.lane.b32.xlu0 %v11272_v49, %s5221_s25 }
 0x5d4   : > { %v8996_v33 = vpop.permute.xlu1 %3386  ;;  %v8998_v56 = vpop.permute.xlu0 %3388 }
 0x5d5   : > { %11273 = vst [vmem:[#allocation78_spill] sm:$0xff] %v8996_v33  ;;  %11274 = vst [vmem:[#allocation135_spill] sm:$0xff] %v8998_v56 }
 0x5d6   : > { %3652 = vrot.lane.b32.xlu1 %v9001_v34, %s5221_s25  ;;  %3678 = vrot.lane.b32.xlu0 %v9006_v21, %s5222_s27  ;;  %v9038_v34 = vmul.f32 0.005471756, %v9035_v59 }
 0x5d8   : > { %v9012_v24 = vpop.permute.xlu1 %3390  ;;  %v9014_v16 = vpop.permute.xlu0 %3392  ;;  %11285 = vst [vmem:[#allocation119_spill] sm:$0xff] %v9038_v34 }
 0x5d9   : > { %11278 = vst [vmem:[#allocation126_spill] sm:$0xff] %v9012_v24  ;;  %11279 = vst [vmem:[#allocation143_spill] sm:$0xff] %v9014_v16  ;;  %v3738_v16 = vmul.f32 0.004346484, %v9003_v62 }
 0x5da   : > { %3680 = vrot.lane.b32.xlu1 %v9017_v5, %s5222_s27  ;;  %3682 = vrot.lane.b32.xlu0 %v9022_v1, %s5222_s27  ;;  %v9066_v1 = vmul.f32 0.0048279855, %v9019_v52 }
 0x5dc   : > { %v9028_v51 = vpop.permute.xlu1 %3394  ;;  %v9030_v31 = vpop.permute.xlu0 %3420 }
 0x5dd   : > { %11282 = vst [vmem:[#allocation144_spill] sm:$0xff] %v9028_v51  ;;  %11283 = vst [vmem:[#allocation36_spill] sm:$0xff] %v9030_v31  ;;  %v9077_v51 = vmul.f32 0.0048279855, %v8944_v6 }
 0x5de   : > { %3684 = vrot.lane.b32.xlu1 %v9033_v48, %s5222_s27  ;;  %3686 = vrot.lane.b32.xlu0 %v9038_v34, %s5222_s27  ;;  %v9063_v34 = vmul.f32 0.0048279855, %v8932_v40 }
 0x5df   : > { %11293 = vst [vmem:[#allocation146_spill] sm:$0xff] %v9077_v51 }
 0x5e0   : > { %v9044_v49 = vpop.permute.xlu1 %3422  ;;  %v9046_v32 = vpop.permute.xlu0 %3424 }
 0x5e1   : > { %11286 = vst [vmem:[#allocation120_spill] sm:$0xff] %v9044_v49  ;;  %11287 = vst [vmem:[#allocation127_spill] sm:$0xff] %v9046_v32 }
 0x5e2   : > { %3688 = vrot.lane.b32.xlu1 %v9049_v19, %s5222_s27  ;;  %3714 = vrot.lane.b32.xlu0 %v9052_v7, %s5223_s28 }
 0x5e4   : > { %v9058_v17 = vpop.permute.xlu1 %3426  ;;  %v9060_v48 = vpop.permute.xlu0 %3428 }
 0x5e5   : > { %11289 = vst [vmem:[#allocation112_spill] sm:$0xff] %v9058_v17  ;;  %11290 = vst [vmem:[#allocation113_spill] sm:$0xff] %v9060_v48  ;;  %v9080_v48 = vmul.f32 0.0048279855, %v9035_v59 }
 0x5e6   : > { %3716 = vrot.lane.b32.xlu1 %v9063_v34, %s5223_s28  ;;  %3718 = vrot.lane.b32.xlu0 %v9066_v1, %s5223_s28 }
 0x5e7   : > { %11294 = vst [vmem:[#allocation124_spill] sm:$0xff] %v9080_v48 }
 0x5e8   : > { %v9072_v19 = vpop.permute.xlu1 %3430  ;;  %v9074_v5 = vpop.permute.xlu0 %3444 }
 0x5e9   : > { %11291 = vst [vmem:[#allocation142_spill] sm:$0xff] %v9072_v19  ;;  %11292 = vst [vmem:[#allocation122_spill] sm:$0xff] %v9074_v5  ;;  %v9091_v19 = vmul.f32 0.0048279855, %v8957_v37  ;;  %v11305_v5 = vld [vmem:[#allocation129_spill] sm:$0xff] }
 0x5ea   : > { %3720 = vrot.lane.b32.xlu1 %v9077_v51, %s5223_s28  ;;  %3722 = vrot.lane.b32.xlu0 %v9080_v48, %s5223_s28  ;;  %v11311_v51 = vld [vmem:[#allocation63_spill] sm:$0xff] }
 0x5eb   : > { %11297 = vst [vmem:[#allocation98_spill] sm:$0xff] %v9091_v19 }
 0x5ec   : > { %v9086_v17 = vpop.permute.xlu1 %3446  ;;  %v9088_v15 = vpop.permute.xlu0 %3448 }
 0x5ed   : > { %11295 = vst [vmem:[#allocation140_spill] sm:$0xff] %v9086_v17  ;;  %11296 = vst [vmem:[#allocation141_spill] sm:$0xff] %v9088_v15  ;;  %v9105_v17 = vmul.f32 0.004346484, %v9019_v52  ;;  %v11300_v15 = vld [vmem:[#allocation145_spill] sm:$0xff] }
 0x5ee   : > { %3724 = vrot.lane.b32.xlu1 %v9091_v19, %s5223_s28  ;;  %3750 = vrot.lane.b32.xlu0 %v3738_v16, %s5224_s30  ;;  %v11301_v19 = vld [vmem:[#allocation17_spill] sm:$0xff] }
 0x5ef   : > { %v2880_v32 = vadd.f32 %v11301_v19, %v11300_v15  ;;  %v11306_v19 = vld [vmem:[#allocation67_spill] sm:$0xff] }
 0x5f0   : > { %v9097_v21 = vpop.permute.xlu1 %3450  ;;  %v9099_v24 = vpop.permute.xlu0 %3452  ;;  %v2882_v15 = vadd.f32 %v11306_v19, %v11305_v5  ;;  %v11312_v5 = vld [vmem:[#allocation130_spill] sm:$0xff]  ;;  %v11314_v19 = vld [vmem:[#allocation115_spill] sm:$0xff] }
 0x5f1   : > { %11298 = vst [vmem:[#allocation137_spill] sm:$0xff] %v9097_v21  ;;  %11299 = vst [vmem:[#allocation75_spill] sm:$0xff] %v9099_v24  ;;  %v9118_v24 = vmul.f32 0.004346484, %v8944_v6  ;;  %v2916_v29 = vadd.f32 %v11304_v8, %v2880_v32  ;;  %v3774_v8 = vmul.f32 0.0041630557, %v9003_v62 }
 0x5f2   : > { %3752 = vrot.lane.b32.xlu1 %v9102_v47, %s5224_s30  ;;  %3754 = vrot.lane.b32.xlu0 %v9105_v17, %s5224_s30  ;;  %v11310_v32 = vld [vmem:[#allocation111_spill] sm:$0xff]  ;;  %v11318_v62 = vld [vmem:[#allocation69_spill] sm:$0xff] }
 0x5f3   : > { %v2918_v48 = vadd.f32 %v11310_v32, %v2882_v15  ;;  %v3775_v15 = vmul.f32 0.0041630557, %v8932_v40 }
 0x5f4   : > { %v9113_v49 = vpop.permute.xlu1 %3454  ;;  %v9115_v21 = vpop.permute.xlu0 %3468 }
 0x5f5   : > { %11302 = vst [vmem:[#allocation131_spill] sm:$0xff] %v9113_v49  ;;  %11303 = vst [vmem:[#allocation132_spill] sm:$0xff] %v9115_v21  ;;  %v11307_v49 = vld [vmem:[#allocation114_spill] sm:$0xff] }
 0x5f6   : > { %3756 = vrot.lane.b32.xlu1 %v9118_v24, %s5224_s30  ;;  %3758 = vrot.lane.b32.xlu0 %v9121_v13, %s5224_s30  ;;  %v2952_v56 = vadd.f32 %v11307_v49, %v2916_v29  ;;  %v11313_v29 = vld [vmem:[#allocation84_spill] sm:$0xff] }
 0x5f7   : > { %v2884_v49 = vadd.f32 %v11313_v29, %v11312_v5  ;;  %v11322_v29 = vld [vmem:[#allocation52_spill] sm:$0xff] }
 0x5f8   : > { %v9131_v21 = vpop.permute.xlu1 %3470  ;;  %v9133_v33 = vpop.permute.xlu0 %3472  ;;  %v2988_v23 = vadd.f32 %v11311_v51, %v2952_v56  ;;  %v3776_v51 = vmul.f32 0.0041630557, %v9019_v52  ;;  %v11317_v56 = vld [vmem:[#allocation97_spill] sm:$0xff] }
 0x5f9   : > { %11308 = vst [vmem:[#allocation92_spill] sm:$0xff] %v9131_v21  ;;  %11309 = vst [vmem:[#allocation118_spill] sm:$0xff] %v9133_v33  ;;  %v2954_v21 = vadd.f32 %v11314_v19, %v2918_v48  ;;  %v11315_v33 = vld [vmem:[#allocation40_spill] sm:$0xff]  ;;  %v2920_v32 = vadd.f32 %v11317_v56, %v2884_v49  ;;  %v11320_v48 = vld [vmem:[#allocation117_spill] sm:$0xff]  ;;  %v3777_v49 = vmul.f32 0.0041630557, %v8944_v6 }
 0x5fa   : > { %3760 = vrot.lane.b32.xlu1 %v9136_v55, %s5224_s30  ;;  %3786 = vrot.lane.b32.xlu0 %v3774_v8, %s5225_s2  ;;  %v3024_v9 = vadd.f32 %v11315_v33, %v2988_v23  ;;  %v11319_v8 = vld [vmem:[#allocation102_spill] sm:$0xff] }
 0x5fb   : > { %v2990_v44 = vadd.f32 %v11318_v62, %v2954_v21  ;;  %v2956_v23 = vadd.f32 %v11320_v48, %v2920_v32  ;;  %v11321_v33 = vld [vmem:[#allocation58_spill] sm:$0xff]  ;;  %v3778_v62 = vmul.f32 0.0041630557, %v9035_v59 }
 0x5fc   : > { %v9148_v39 = vpop.permute.xlu1 %3474  ;;  %v9150_v31 = vpop.permute.xlu0 %3476  ;;  %v3060_v0 = vadd.f32 %v11319_v8, %v3024_v9  ;;  %v11323_v21 = vld [vmem:[#allocation110_spill] sm:$0xff]  ;;  %v11325_v8 = vld [vmem:[#allocation101_spill] sm:$0xff] }
 0x5fd   : > { %11316 = vst [vmem:[#allocation121_spill] sm:$0xff] %v9150_v31  ;;  %v3026_v5 = vadd.f32 %v11321_v33, %v2990_v44  ;;  %v2992_v9 = vadd.f32 %v11323_v21, %v2956_v23  ;;  %v11324_v56 = vld [vmem:[#allocation90_spill] sm:$0xff]  ;;  %v11326_v44 = vld [vmem:[#allocation108_spill] sm:$0xff]  ;;  %v3779_v23 = vmul.f32 0.0041630557, %v8957_v37  ;;  %v11328_v21 = vld [vmem:[#allocation41_spill] sm:$0xff] }
 0x5fe   : > { %3788 = vrot.lane.b32.xlu1 %v3775_v15, %s5225_s2  ;;  %3790 = vrot.lane.b32.xlu0 %v3776_v51, %s5225_s2  ;;  %v3084_v19 = vadd.f32 %v11322_v29, %v3060_v0  ;;  %v11327_v32 = vld [vmem:[#allocation86_spill] sm:$0xff] }
 0x5ff   : > { %v3062_v15 = vadd.f32 %v11324_v56, %v3026_v5  ;;  %v3028_v0 = vadd.f32 %v11326_v44, %v2992_v9  ;;  %v11329_v56 = vld [vmem:[#allocation104_spill] sm:$0xff] }
 0x600   : > { %v9162_v31 = vpop.permute.xlu1 %3478  ;;  %v9164_v40 = vpop.permute.xlu0 %3492  ;;  %v3108_v51 = vadd.f32 %v11325_v8, %v3084_v19 }
 0x601   : > { %v3086_v48 = vadd.f32 %v11327_v32, %v3062_v15  ;;  %v3064_v5 = vadd.f32 %v11328_v21, %v3028_v0  ;;  %v11331_v15 = vld [vmem:[#allocation59_spill] sm:$0xff]  ;;  %v11332_v32 = vld [vmem:[#allocation128_spill] sm:$0xff] }
 0x602   : > { %3792 = vrot.lane.b32.xlu1 %v3777_v49, %s5225_s2  ;;  %3794 = vrot.lane.b32.xlu0 %v3778_v62, %s5225_s2  ;;  %v3132_v33 = vadd.f32 %v8771_v46, %v3108_v51  ;;  %v11330_v62 = vld [vmem:[#allocation109_spill] sm:$0xff] }
 0x603   : > { %v3110_v19 = vadd.f32 %v11329_v56, %v3086_v48  ;;  %v3088_v9 = vadd.f32 %v11330_v62, %v3064_v5  ;;  %v11338_v62 = vld [vmem:[#allocation138_spill] sm:$0xff] }
 0x604   : > { %v9176_v29 = vpop.permute.xlu1 %3494  ;;  %v9178_v6 = vpop.permute.xlu0 %3496  ;;  %v3156_v49 = vadd.f32 %v8788_v54, %v3132_v33 }
 0x605   : > { %v3134_v46 = vadd.f32 %v11331_v15, %v3110_v19  ;;  %v3112_v0 = vadd.f32 %v11332_v32, %v3088_v9  ;;  %v11341_v9 = vld [vmem:[#allocation51_spill] sm:$0xff] }
 0x606   : > { %3796 = vrot.lane.b32.xlu1 %v3779_v23, %s5225_s2  ;;  %3810 = vrot.lane.b32.xlu0 %v3738_v16, %s5226_s3  ;;  %v3180_v8 = vadd.f32 %v8809_v60, %v3156_v49  ;;  %v11337_v49 = vld [vmem:[#allocation93_spill] sm:$0xff] }
 0x607   : > { %v3158_v48 = vadd.f32 %v8792_v20, %v3134_v46  ;;  %v3136_v16 = vadd.f32 %v8782_v26, %v3112_v0  ;;  %v11344_v0 = vld [vmem:[#allocation122_spill] sm:$0xff] }
 0x608   : > { %v9189_v51 = vpop.permute.xlu1 %3498  ;;  %v9191_v44 = vpop.permute.xlu0 %3500  ;;  %v3210_v54 = vadd.f32 %v8844_v2, %v3180_v8  ;;  %v11343_v8 = vld [vmem:[#allocation135_spill] sm:$0xff] }
 0x609   : > { %v3182_v60 = vadd.f32 %v8821_v12, %v3158_v48  ;;  %v3160_v21 = vadd.f32 %v8799_v45, %v3136_v16 }
 0x60a   : > { %3812 = vrot.lane.b32.xlu1 %v9102_v47, %s5226_s3  ;;  %3814 = vrot.lane.b32.xlu0 %v9105_v17, %s5226_s3  ;;  %v3222_v20 = vadd.f32 %v3210_v54, %v11248_v41  ;;  %v11345_v54 = vld [vmem:[#allocation85_spill] sm:$0xff] }
 0x60b   : > { %v3212_v2 = vadd.f32 %v8853_v25, %v3182_v60  ;;  %v3184_v26 = vadd.f32 %v8833_v63, %v3160_v21  ;;  %v3259_v63 = vadd.f32 %v8882_v57, %v8862_v30  ;;  %v11346_v60 = vld [vmem:[#allocation27_spill] sm:$0xff] }
 0x60c   : > { %v9202_v33 = vpop.permute.xlu1 %3502  ;;  %v9204_v23 = vpop.permute.xlu0 %3516  ;;  %v3258_v12 = vadd.f32 %v8873_v42, %v3222_v20 }
 0x60d   : > { %v3224_v45 = vadd.f32 %v3212_v2, %v11249_v36  ;;  %v3214_v41 = vadd.f32 %v8864_v27, %v3184_v26  ;;  %v11347_v26 = vld [vmem:[#allocation21_spill] sm:$0xff] }
 0x60e   : > { %3816 = vrot.lane.b32.xlu1 %v9118_v24, %s5226_s3  ;;  %3818 = vrot.lane.b32.xlu0 %v9121_v13, %s5226_s3  ;;  %v3294_v25 = vadd.f32 %v8900_v50, %v3258_v12  ;;  %v3295_v50 = vadd.f32 %v8906_v28, %v3259_v63 }
 0x60f   : > { %v3260_v42 = vadd.f32 %v8884_v14, %v3224_v45  ;;  %v3226_v27 = vadd.f32 %v3214_v41, %v11251_v53  ;;  %v11348_v45 = vld [vmem:[#allocation120_spill] sm:$0xff] }
 0x610   : > { %v9215_v47 = vpop.permute.xlu1 %3518  ;;  %v9217_v17 = vpop.permute.xlu0 %3520  ;;  %v3330_v13 = vadd.f32 %v8923_v61, %v3294_v25  ;;  %v3331_v57 = vadd.f32 %v8928_v10, %v3295_v50  ;;  %v11349_v25 = vld [vmem:[#allocation127_spill] sm:$0xff] }
 0x611   : > { %v3262_v30 = vadd.f32 %v8892_v11, %v3226_v27  ;;  %v11336_v11 = vld [vmem:[#allocation29_spill] sm:$0xff] }
 0x612   : > { %3820 = vrot.lane.b32.xlu1 %v9136_v55, %s5226_s3  ;;  %3834 = vrot.lane.b32.xlu0 %v9052_v7, %s5227_s4  ;;  %v3296_v55 = vadd.f32 %v8908_v35, %v3260_v42  ;;  %v3366_v5 = vadd.f32 %v8952_v22, %v3330_v13  ;;  %v3261_v7 = vadd.f32 %v8890_v43, %v8871_v4  ;;  %v11333_v43 = vld [vmem:[#allocation82_spill] sm:$0xff]  ;;  %v11350_v42 = vld [vmem:[#allocation132_spill] sm:$0xff]  ;;  %v11351_v27 = vld [vmem:[#allocation53_spill] sm:$0xff] }
 0x613   : > { %v3298_v4 = vadd.f32 %v8916_v3, %v3262_v30  ;;  %v3367_v22 = vadd.f32 %v11333_v43, %v3331_v57  ;;  %v3263_v10 = vadd.f32 %v11337_v49, %v11336_v11  ;;  %v11342_v3 = vld [vmem:[#allocation78_spill] sm:$0xff]  ;;  %v11355_v57 = vld [vmem:[#allocation143_spill] sm:$0xff] }
 0x614   : > { %v9230_v24 = vpop.permute.xlu1 %3522  ;;  %v9232_v36 = vpop.permute.xlu0 %3524  ;;  %v3332_v14 = vadd.f32 %v8930_v18, %v3296_v55  ;;  %v3402_v28 = vadd.f32 %v8987_v38, %v3366_v5  ;;  %v3297_v35 = vadd.f32 %v8914_v58, %v3261_v7  ;;  %v11339_v38 = vld [vmem:[#allocation146_spill] sm:$0xff]  ;;  %v11340_v58 = vld [vmem:[#allocation124_spill] sm:$0xff] }
 0x615   : > { %v3334_v15 = vadd.f32 %v11341_v9, %v3298_v4  ;;  %v3403_v46 = vadd.f32 %v11342_v3, %v3367_v22  ;;  %v3299_v16 = vadd.f32 %v11345_v54, %v3263_v10  ;;  %v11352_v55 = vld [vmem:[#allocation126_spill] sm:$0xff]  ;;  %v11357_v4 = vld [vmem:[#allocation141_spill] sm:$0xff]  ;;  %v11363_v3 = vld [vmem:[#allocation144_spill] sm:$0xff] }
 0x616   : > { %3836 = vrot.lane.b32.xlu1 %v9063_v34, %s5227_s4  ;;  %3838 = vrot.lane.b32.xlu0 %v9066_v1, %s5227_s4  ;;  %v11334_v34 = vld [vmem:[#allocation13_spill] sm:$0xff]  ;;  %v11335_v1 = vld [vmem:[#allocation36_spill] sm:$0xff]  ;;  %v3333_v18 = vadd.f32 %v11338_v62, %v3297_v35  ;;  %v11353_v7 = vld [vmem:[#allocation98_spill] sm:$0xff] }
 0x617   : > { %v3368_v56 = vadd.f32 %v11334_v34, %v3332_v14  ;;  %v3438_v19 = vadd.f32 %v11335_v1, %v3402_v28  ;;  %v3370_v12 = vadd.f32 %v11347_v26, %v3334_v15  ;;  %v3439_v41 = vadd.f32 %v11348_v45, %v3403_v46  ;;  %v11354_v30 = vld [vmem:[#allocation134_spill] sm:$0xff]  ;;  %v11356_v28 = vld [vmem:[#allocation140_spill] sm:$0xff]  ;;  %v11358_v34 = vld [vmem:[#allocation61_spill] sm:$0xff] }
 0x618   : > { %v9249_v61 = vpop.permute.xlu1 %3526  ;;  %v3541_v53 = vpop.permute.xlu0 %3540  ;;  %v3369_v21 = vadd.f32 %v11346_v60, %v3333_v18  ;;  %v3335_v50 = vadd.f32 %v11351_v27, %v3299_v16  ;;  %v11359_v1 = vld [vmem:[#allocation112_spill] sm:$0xff]  ;;  %v11360_v10 = vld [vmem:[#allocation113_spill] sm:$0xff]  ;;  %v11368_v26 = vld [vmem:[#allocation142_spill] sm:$0xff] }
 0x619   : > { %v3404_v32 = vadd.f32 %v11343_v8, %v3368_v56  ;;  %v3462_v48 = vadd.f32 %v11344_v0, %v3438_v19  ;;  %v3406_v14 = vadd.f32 %v11355_v57, %v3370_v12  ;;  %v3463_v35 = vadd.f32 %v11356_v28, %v3439_v41  ;;  %v11361_v18 = vld [vmem:[#allocation92_spill] sm:$0xff]  ;;  %v11364_v8 = vld [vmem:[#allocation137_spill] sm:$0xff] }
 0x61a   : > { %3840 = vrot.lane.b32.xlu1 %v11339_v38, %s5227_s4  ;;  %3842 = vrot.lane.b32.xlu0 %v11340_v58, %s5227_s4  ;;  %v3405_v5 = vadd.f32 %v11352_v55, %v3369_v21  ;;  %v3371_v56 = vadd.f32 %v11358_v34, %v3335_v50  ;;  %v11362_v58 = vld [vmem:[#allocation118_spill] sm:$0xff]  ;;  %v11366_v0 = vld [vmem:[#allocation16_spill] sm:$0xff] }
 0x61b   : > { %v3440_v63 = vadd.f32 %v11349_v25, %v3404_v32  ;;  %v3486_v13 = vadd.f32 %v11350_v42, %v3462_v48  ;;  %v3442_v62 = vadd.f32 %v11360_v10, %v3406_v14  ;;  %v3487_v38 = vadd.f32 %v11361_v18, %v3463_v35  ;;  %v11367_v48 = vld [vmem:[#allocation75_spill] sm:$0xff]  ;;  %v11369_v41 = vld [vmem:[#allocation116_spill] sm:$0xff]  ;;  %v11370_v42 = vld [vmem:[#allocation121_spill] sm:$0xff] }
 0x61c   : > { %v3543_v20 = vpop.permute.xlu1 %3542  ;;  %v3545_v2 = vpop.permute.xlu0 %3544  ;;  %v3441_v19 = vadd.f32 %v11359_v1, %v3405_v5  ;;  %v3407_v46 = vadd.f32 %v11363_v3, %v3371_v56  ;;  %v9300_v25 = vmul.f32 0.007481702, %v11369_v41  ;;  %v11377_v10 = vld [vmem:[#allocation95_spill] sm:$0xff]  ;;  %v11386_v41 = vld [vmem:[#allocation88_spill] sm:$0xff] }
 0x61d   : > { %v3464_v43 = vadd.f32 %v11357_v4, %v3440_v63  ;;  %v3510_v22 = vadd.f32 %v9164_v40, %v3486_v13  ;;  %v11365_v40 = vld [vmem:[#allocation139_spill] sm:$0xff]  ;;  %v3466_v54 = vadd.f32 %v11367_v48, %v3442_v62  ;;  %v3511_v16 = vadd.f32 %v9176_v29, %v3487_v38 }
 0x61e   : > { %3844 = vrot.lane.b32.xlu1 %v11353_v7, %s5227_s4  ;;  %3858 = vrot.lane.b32.xlu0 %v11354_v30, %s5228_s5  ;;  %v3465_v32 = vadd.f32 %v11364_v8, %v3441_v19  ;;  %v3443_v12 = vadd.f32 %v11368_v26, %v3407_v46  ;;  %v11371_v29 = vld [vmem:[#allocation131_spill] sm:$0xff]  ;;  %v11384_v26 = vld [vmem:[#allocation73_spill] sm:$0xff] }
 0x61f   : > { %v3488_v9 = vadd.f32 %v11362_v58, %v3464_v43  ;;  %v3534_v15 = vadd.f32 %v9204_v23, %v3510_v22  ;;  %v3490_v13 = vadd.f32 %v11370_v42, %v3466_v54  ;;  %v3535_v27 = vadd.f32 %v9215_v47, %v3511_v16  ;;  %v11382_v16 = vld [vmem:[#allocation125_spill] sm:$0xff] }
 0x620   : > { %v3547_v11 = vpop.permute.xlu1 %3546  ;;  %v3549_v49 = vpop.permute.xlu0 %3548  ;;  %v3489_v23 = vadd.f32 %v9148_v39, %v3465_v32  ;;  %v3467_v5 = vadd.f32 %v11371_v29, %v3443_v12  ;;  %v11373_v39 = vld [vmem:[#allocation119_spill] sm:$0xff] }
 0x621   : > { %v3512_v60 = vadd.f32 %v9178_v6, %v3488_v9  ;;  %v3558_v21 = vadd.f32 %v3541_v53, %v3534_v15  ;;  %v11372_v53 = vld [vmem:[#allocation23_spill] sm:$0xff]  ;;  %v3514_v7 = vadd.f32 %v9191_v44, %v3490_v13  ;;  %v3559_v30 = vadd.f32 %v3543_v20, %v3535_v27  ;;  %v11378_v9 = vld [vmem:[#allocation106_spill] sm:$0xff]  ;;  %v11389_v27 = vld [vmem:[#allocation20_spill] sm:$0xff] }
 0x622   : > { %3860 = vrot.lane.b32.xlu1 %v11365_v40, %s5228_s5  ;;  %3862 = vrot.lane.b32.xlu0 %v11366_v0, %s5228_s5  ;;  %v3513_v6 = vadd.f32 %v9189_v51, %v3489_v23  ;;  %v3491_v47 = vadd.f32 %v9162_v31, %v3467_v5  ;;  %v3596_v51 = vmul.f32 0.007481702, %v9019_v52  ;;  %v11375_v20 = vld [vmem:[#allocation123_spill] sm:$0xff]  ;;  %v11381_v40 = vld [vmem:[#allocation50_spill] sm:$0xff] }
 0x623   : > { %v3536_v50 = vadd.f32 %v9217_v17, %v3512_v60  ;;  %v11374_v17 = vld [vmem:[#allocation89_spill] sm:$0xff]  ;;  %v3538_v22 = vadd.f32 %v9232_v36, %v3514_v7  ;;  %v11383_v60 = vld [vmem:[#allocation32_spill] sm:$0xff]  ;;  %v11385_v12 = vld [vmem:[#allocation35_spill] sm:$0xff] }
 0x624   : > { %v3551_v45 = vpop.permute.xlu1 %3550  ;;  %v3568_v63 = vpop.permute.xlu0 %3567  ;;  %v3595_v28 = vmul.f32 0.007481702, %v11374_v17  ;;  %v3537_v43 = vadd.f32 %v9230_v24, %v3513_v6  ;;  %v3515_v44 = vadd.f32 %v9202_v33, %v3491_v47  ;;  %v3597_v24 = vmul.f32 0.007481702, %v11377_v10  ;;  %v9391_v6 = vld [vmem:[#allocation2 + $0x12] sm:$0xff] }
 0x625   : > { %v3585_v55 = vadd.f32 %v3568_v63, %v3558_v21  ;;  %v3560_v57 = vadd.f32 %v3545_v2, %v3536_v50  ;;  %v11376_v2 = vld [vmem:[#allocation48_spill] sm:$0xff]  ;;  %v3562_v1 = vadd.f32 %v3549_v49, %v3538_v22  ;;  %v3598_v33 = vmul.f32 0.007481702, %v9035_v59  ;;  %v11387_v63 = vld [vmem:[#allocation37_spill] sm:$0xff] }
 0x626   : > { %3864 = vrot.lane.b32.xlu1 %v11372_v53, %s5228_s5  ;;  %3866 = vrot.lane.b32.xlu0 %v11373_v39, %s5228_s5  ;;  %v3561_v31 = vadd.f32 %v3547_v11, %v3537_v43  ;;  %v3539_v18 = vadd.f32 %v9249_v61, %v3515_v44  ;;  %v11379_v11 = vld [vmem:[#allocation49_spill] sm:$0xff]  ;;  %v3599_v61 = vmul.f32 0.007481702, %v8957_v37  ;;  %v11380_v59 = vld [vmem:[#allocation136_spill] sm:$0xff]  ;;  %v9400_v39 = vmul.f32 0.0072709876, %v9391_v6 }
 0x627   : > { %v9313_v14 = vadd.f32 %v9300_v25, %v3585_v55  ;;  %v9402_v7 = vld [vmem:[#allocation2 + $0x32] sm:$0xff]  ;;  %v4014_v44 = vmul.f32 0.00616707, %v9391_v6 }
 0x628   : > { %v3570_v35 = vpop.permute.xlu1 %3569  ;;  %v3572_v4 = vpop.permute.xlu0 %3571  ;;  %v3563_v49 = vadd.f32 %v3551_v45, %v3539_v18  ;;  %v9414_v17 = vmul.f32 0.0072709876, %v9402_v7  ;;  %v3994_v43 = vmul.f32 0.006712344, %v9402_v7 }
 0x629   : > { %v3586_v34 = vadd.f32 %v3570_v35, %v3559_v30  ;;  %v3587_v56 = vadd.f32 %v3572_v4, %v3560_v57  ;;  %v9404_v30 = vld [vmem:[#allocation2 + $0x52] sm:$0xff]  ;;  %v3993_v4 = vmul.f32 0.006712344, %v9391_v6 }
 0x62a   : > { %3868 = vrot.lane.b32.xlu1 %v11375_v20, %s5228_s5  ;;  %3882 = vrot.lane.b32.xlu0 %v11376_v2, %s5229_s11 }
 0x62b   : > { %v9325_v19 = vadd.f32 %v3595_v28, %v3586_v34  ;;  %v9327_v52 = vadd.f32 %v3596_v51, %v3587_v56  ;;  %v3995_v56 = vmul.f32 0.006712344, %v9404_v30 }
 0x62c   : > { %v3574_v62 = vpop.permute.xlu1 %3573  ;;  %v3576_v36 = vpop.permute.xlu0 %3575 }
 0x62d   : > { %v3588_v38 = vadd.f32 %v3574_v62, %v3561_v31  ;;  %v3589_v58 = vadd.f32 %v3576_v36, %v3562_v1  ;;  %v4015_v31 = vmul.f32 0.00616707, %v9402_v7  ;;  %v4016_v1 = vmul.f32 0.00616707, %v9404_v30 }
 0x62e   : > { %3884 = vrot.lane.b32.xlu1 %v11378_v9, %s5229_s11  ;;  %3886 = vrot.lane.b32.xlu0 %v11379_v11, %s5229_s11  ;;  %v4035_v62 = vmul.f32 0.005690264, %v9391_v6  ;;  %v4036_v36 = vmul.f32 0.005690264, %v9402_v7 }
 0x62f   : > { %v9336_v15 = vadd.f32 %v3597_v24, %v3588_v38  ;;  %v9338_v3 = vadd.f32 %v3598_v33, %v3589_v58  ;;  %v4056_v58 = vmul.f32 0.0053551784, %v9391_v6 }
 0x630   : > { %v3578_v46 = vpop.permute.xlu1 %3577  ;;  %v9340_v8 = vpop.permute.xlu0 %3612 }
 0x631   : > { %v3590_v32 = vadd.f32 %v3578_v46, %v3563_v49  ;;  %v4057_v49 = vmul.f32 0.0053551784, %v9402_v7  ;;  %v4058_v46 = vmul.f32 0.0053551784, %v9404_v30 }
 0x632   : > { %3888 = vrot.lane.b32.xlu1 %v11380_v59, %s5229_s11  ;;  %3890 = vrot.lane.b32.xlu0 %v11381_v40, %s5229_s11  ;;  %v4077_v59 = vmul.f32 0.005233111, %v9391_v6  ;;  %v4078_v40 = vmul.f32 0.005233111, %v9402_v7 }
 0x633   : > { %v9347_v0 = vadd.f32 %v3599_v61, %v3590_v32 }
 0x634   : > { %v9349_v48 = vpop.permute.xlu1 %3614  ;;  %v9351_v54 = vpop.permute.xlu0 %3616 }
 0x636   : > { %3892 = vrot.lane.b32.xlu1 %v11382_v16, %s5229_s11  ;;  %3906 = vrot.lane.b32.xlu0 %v11383_v60, %s5230_s13 }
 0x638   : > { %v9357_v37 = vpop.permute.xlu1 %3618  ;;  %v9359_v21 = vpop.permute.xlu0 %3620 }
 0x63a   : > { %3908 = vrot.lane.b32.xlu1 %v11384_v26, %s5230_s13  ;;  %3910 = vrot.lane.b32.xlu0 %v11385_v12, %s5230_s13  ;;  %v4079_v26 = vmul.f32 0.005233111, %v9404_v30 }
 0x63c   : > { %v9365_v23 = vpop.permute.xlu1 %3622  ;;  %v9367_v45 = vpop.permute.xlu0 %3642 }
 0x63e   : > { %3912 = vrot.lane.b32.xlu1 %v11386_v41, %s5230_s13  ;;  %3914 = vrot.lane.b32.xlu0 %v11387_v63, %s5230_s13 }
 0x640   : > { %v9373_v42 = vpop.permute.xlu1 %3644  ;;  %v9375_v13 = vpop.permute.xlu0 %3646 }
 0x641   : > { %11388 = vst [vmem:[#allocation99_spill] sm:$0xff] %v9375_v13 }
 0x642   : > { %3916 = vrot.lane.b32.xlu1 %v11389_v27, %s5230_s13  ;;  %3936 = vrot.lane.b32.xlu0 %v9300_v25, %s5231_s14 }
 0x644   : > { %v9381_v50 = vpop.permute.xlu1 %3648  ;;  %v9383_v55 = vpop.permute.xlu0 %3650 }
 0x646   : > { %3938 = vrot.lane.b32.xlu1 %v3595_v28, %s5231_s14  ;;  %3940 = vrot.lane.b32.xlu0 %v3596_v51, %s5231_s14  ;;  %v9417_v28 = vmul.f32 0.0072709876, %v9404_v30 }
 0x648   : > { %v9387_v29 = vpop.permute.xlu1 %3652  ;;  %v9389_v5 = vpop.permute.xlu0 %3678 }
 0x649   : > { %11390 = vst [vmem:[#allocation80_spill] sm:$0xff] %v9389_v5 }
 0x64a   : > { %3942 = vrot.lane.b32.xlu1 %v3597_v24, %s5231_s14  ;;  %3944 = vrot.lane.b32.xlu0 %v3598_v33, %s5231_s14  ;;  %v4037_v33 = vmul.f32 0.005690264, %v9404_v30 }
 0x64c   : > { %v9395_v53 = vpop.permute.xlu1 %3680  ;;  %v9397_v25 = vpop.permute.xlu0 %3682 }
 0x64d   : > { %11391 = vst [vmem:[#allocation107_spill] sm:$0xff] %v9397_v25 }
 0x64e   : > { %3946 = vrot.lane.b32.xlu1 %v3599_v61, %s5231_s14  ;;  %3978 = vrot.lane.b32.xlu0 %v9400_v39, %s5220_s16 }
 0x650   : > { %v9409_v57 = vpop.permute.xlu1 %3684  ;;  %v9411_v47 = vpop.permute.xlu0 %3686 }
 0x652   : > { %3980 = vrot.lane.b32.xlu1 %v9414_v17, %s5220_s16  ;;  %3982 = vrot.lane.b32.xlu0 %v9417_v28, %s5220_s16 }
 0x654   : > { %v9423_v35 = vpop.permute.xlu1 %3688  ;;  %v9425_v51 = vpop.permute.xlu0 %3714 }
 0x655   : > { %11392 = vst [vmem:[#allocation9_spill] sm:$0xff] %v9425_v51 }
 0x656   : > { %3999 = vrot.lane.b32.xlu1 %v3993_v4, %s5221_s25  ;;  %4001 = vrot.lane.b32.xlu0 %v3994_v43, %s5221_s25 }
 0x658   : > { %v9431_v22 = vpop.permute.xlu1 %3716  ;;  %v9433_v34 = vpop.permute.xlu0 %3718 }
 0x659   : > { %11393 = vst [vmem:[#allocation10_spill] sm:$0xff] %v9433_v34 }
 0x65a   : > { %4003 = vrot.lane.b32.xlu1 %v3995_v56, %s5221_s25  ;;  %4020 = vrot.lane.b32.xlu0 %v4014_v44, %s5222_s27 }
 0x65c   : > { %v9439_v20 = vpop.permute.xlu1 %3720  ;;  %v9441_v2 = vpop.permute.xlu0 %3722 }
 0x65d   : > { %11394 = vst [vmem:[#allocation11_spill] sm:$0xff] %v9441_v2 }
 0x65e   : > { %4022 = vrot.lane.b32.xlu1 %v4015_v31, %s5222_s27  ;;  %4024 = vrot.lane.b32.xlu0 %v4016_v1, %s5222_s27 }
 0x660   : > { %v9447_v10 = vpop.permute.xlu1 %3724  ;;  %v9449_v24 = vpop.permute.xlu0 %3750 }
 0x661   : > { %11395 = vst [vmem:[#allocation145_spill] sm:$0xff] %v9449_v24 }
 0x662   : > { %4041 = vrot.lane.b32.xlu1 %v4035_v62, %s5223_s28  ;;  %4043 = vrot.lane.b32.xlu0 %v4036_v36, %s5223_s28 }
 0x664   : > { %v9455_v18 = vpop.permute.xlu1 %3752  ;;  %v9457_v38 = vpop.permute.xlu0 %3754 }
 0x665   : > { %11396 = vst [vmem:[#allocation17_spill] sm:$0xff] %v9457_v38 }
 0x666   : > { %4045 = vrot.lane.b32.xlu1 %v4037_v33, %s5223_s28  ;;  %4062 = vrot.lane.b32.xlu0 %v4056_v58, %s5224_s30 }
 0x668   : > { %v9463_v9 = vpop.permute.xlu1 %3756  ;;  %v9465_v11 = vpop.permute.xlu0 %3758 }
 0x669   : > { %11397 = vst [vmem:[#allocation133_spill] sm:$0xff] %v9465_v11 }
 0x66a   : > { %4064 = vrot.lane.b32.xlu1 %v4057_v49, %s5224_s30  ;;  %4066 = vrot.lane.b32.xlu0 %v4058_v46, %s5224_s30 }
 0x66c   : > { %v9471_v61 = vpop.permute.xlu1 %3760  ;;  %v9473_v32 = vpop.permute.xlu0 %3786 }
 0x66d   : > { %11398 = vst [vmem:[#allocation129_spill] sm:$0xff] %v9473_v32 }
 0x66e   : > { %4083 = vrot.lane.b32.xlu1 %v4077_v59, %s5225_s2  ;;  %4085 = vrot.lane.b32.xlu0 %v4078_v40, %s5225_s2 }
 0x670   : > { %v9479_v16 = vpop.permute.xlu1 %3788  ;;  %v9481_v60 = vpop.permute.xlu0 %3790 }
 0x671   : > { %11399 = vst [vmem:[#allocation67_spill] sm:$0xff] %v9481_v60 }
 0x672   : > { %4087 = vrot.lane.b32.xlu1 %v4079_v26, %s5225_s2  ;;  %4098 = vrot.lane.b32.xlu0 %v4056_v58, %s5226_s3  ;;  %v9552_v26 = vld [vmem:[#allocation2 + $0xb] sm:$0xff] }
 0x673   : > { %11409 = vst [vmem:[#allocation102_spill] sm:$0xff] %v9552_v26 }
 0x674   : > { %v9486_v12 = vpop.permute.xlu1 %3792  ;;  %v9488_v41 = vpop.permute.xlu0 %3794 }
 0x675   : > { %11400 = vst [vmem:[#allocation114_spill] sm:$0xff] %v9488_v41 }
 0x676   : > { %4100 = vrot.lane.b32.xlu1 %v4057_v49, %s5226_s3  ;;  %4102 = vrot.lane.b32.xlu0 %v4058_v46, %s5226_s3 }
 0x678   : > { %v9492_v63 = vpop.permute.xlu1 %3796  ;;  %v9494_v27 = vpop.permute.xlu0 %3810 }
 0x679   : > { %11401 = vst [vmem:[#allocation111_spill] sm:$0xff] %v9494_v27  ;;  %v9588_v27 = vld [vmem:[#allocation2 + $0x4b] sm:$0xff] }
 0x67a   : > { %4113 = vrot.lane.b32.xlu1 %v4035_v62, %s5227_s4  ;;  %4115 = vrot.lane.b32.xlu0 %v4036_v36, %s5227_s4  ;;  %11417 = vst [vmem:[#allocation86_spill] sm:$0xff] %v9588_v27  ;;  %v9591_v38 = vmul.f32 0.00771957, %v9588_v27  ;;  %v9635_v11 = vmul.f32 0.0072709876, %v9588_v27 }
 0x67c   : > { %v9498_v59 = vpop.permute.xlu1 %3812  ;;  %v9500_v40 = vpop.permute.xlu0 %3814  ;;  %11418 = vst [vmem:[#allocation41_spill] sm:$0xff] %v9591_v38 }
 0x67d   : > { %11402 = vst [vmem:[#allocation63_spill] sm:$0xff] %v9500_v40 }
 0x67e   : > { %4117 = vrot.lane.b32.xlu1 %v4037_v33, %s5227_s4  ;;  %4128 = vrot.lane.b32.xlu0 %v4014_v44, %s5228_s5 }
 0x680   : > { %v9504_v58 = vpop.permute.xlu1 %3816  ;;  %v9506_v49 = vpop.permute.xlu0 %3818 }
 0x681   : > { %11403 = vst [vmem:[#allocation130_spill] sm:$0xff] %v9506_v49  ;;  %v9593_v49 = vld [vmem:[#allocation2 + $0x53] sm:$0xff] }
 0x682   : > { %4130 = vrot.lane.b32.xlu1 %v4015_v31, %s5228_s5  ;;  %4132 = vrot.lane.b32.xlu0 %v4016_v1, %s5228_s5  ;;  %v9536_v1 = vmul.f32 0.0078077544, %v9391_v6  ;;  %v9555_v6 = vmul.f32 0.00771957, %v9552_v26 }
 0x684   : > { %v9510_v46 = vpop.permute.xlu1 %3820  ;;  %v9512_v62 = vpop.permute.xlu0 %3834  ;;  %11410 = vst [vmem:[#allocation117_spill] sm:$0xff] %v9555_v6 }
 0x685   : > { %11404 = vst [vmem:[#allocation84_spill] sm:$0xff] %v9512_v62  ;;  %v9575_v62 = vld [vmem:[#allocation2 + $0x33] sm:$0xff] }
 0x686   : > { %4143 = vrot.lane.b32.xlu1 %v3993_v4, %s5229_s11  ;;  %4145 = vrot.lane.b32.xlu0 %v3994_v43, %s5229_s11  ;;  %v9632_v25 = vmul.f32 0.0072709876, %v9575_v62 }
 0x688   : > { %v9516_v36 = vpop.permute.xlu1 %3836  ;;  %v9518_v33 = vpop.permute.xlu0 %3838 }
 0x689   : > { %11405 = vst [vmem:[#allocation115_spill] sm:$0xff] %v9518_v33 }
 0x68a   : > { %4147 = vrot.lane.b32.xlu1 %v3995_v56, %s5229_s11  ;;  %4158 = vrot.lane.b32.xlu0 %v9400_v39, %s5230_s13  ;;  %v9539_v56 = vmul.f32 0.0078077544, %v9402_v7  ;;  %v9557_v7 = vld [vmem:[#allocation2 + $0x13] sm:$0xff] }
 0x68c   : > { %v9523_v44 = vpop.permute.xlu1 %3840  ;;  %v9525_v31 = vpop.permute.xlu0 %3842 }
 0x68d   : > { %11406 = vst [vmem:[#allocation40_spill] sm:$0xff] %v9525_v31 }
 0x68e   : > { %4160 = vrot.lane.b32.xlu1 %v9414_v17, %s5230_s13  ;;  %4162 = vrot.lane.b32.xlu0 %v9417_v28, %s5230_s13  ;;  %v9550_v28 = vmul.f32 0.0078077544, %v9404_v30  ;;  %v9568_v30 = vmul.f32 0.00771957, %v9557_v7 }
 0x690   : > { %v9531_v4 = vpop.permute.xlu1 %3844  ;;  %v9533_v43 = vpop.permute.xlu0 %3858  ;;  %11412 = vst [vmem:[#allocation52_spill] sm:$0xff] %v9568_v30 }
 0x691   : > { %11407 = vst [vmem:[#allocation97_spill] sm:$0xff] %v9533_v43 }
 0x692   : > { %4176 = vrot.lane.b32.xlu1 %v9536_v1, %s5231_s14  ;;  %4178 = vrot.lane.b32.xlu0 %v9539_v56, %s5231_s14 }
 0x694   : > { %v9545_v39 = vpop.permute.xlu1 %3860  ;;  %v9547_v17 = vpop.permute.xlu0 %3862 }
 0x695   : > { %11408 = vst [vmem:[#allocation69_spill] sm:$0xff] %v9547_v17  ;;  %v9570_v17 = vld [vmem:[#allocation2 + $0x2b] sm:$0xff] }
 0x696   : > { %4180 = vrot.lane.b32.xlu1 %v9550_v28, %s5231_s14  ;;  %4218 = vrot.lane.b32.xlu0 %v9555_v6, %s5220_s16  ;;  %11413 = vst [vmem:[#allocation110_spill] sm:$0xff] %v9570_v17  ;;  %v9573_v40 = vmul.f32 0.00771957, %v9570_v17  ;;  %v9619_v41 = vmul.f32 0.0072709876, %v9570_v17 }
 0x698   : > { %v9563_v33 = vpop.permute.xlu1 %3864  ;;  %v9565_v43 = vpop.permute.xlu0 %3866  ;;  %11414 = vst [vmem:[#allocation90_spill] sm:$0xff] %v9573_v40 }
 0x699   : > { %11411 = vst [vmem:[#allocation58_spill] sm:$0xff] %v9565_v43  ;;  %v9586_v43 = vmul.f32 0.00771957, %v9575_v62 }
 0x69a   : > { %4220 = vrot.lane.b32.xlu1 %v9568_v30, %s5220_s16  ;;  %4222 = vrot.lane.b32.xlu0 %v9573_v40, %s5220_s16  ;;  %v9605_v40 = vmul.f32 0.0072709876, %v9552_v26 }
 0x69b   : > { %11416 = vst [vmem:[#allocation108_spill] sm:$0xff] %v9586_v43 }
 0x69c   : > { %v9581_v60 = vpop.permute.xlu1 %3868  ;;  %v9583_v31 = vpop.permute.xlu0 %3882 }
 0x69d   : > { %11415 = vst [vmem:[#allocation101_spill] sm:$0xff] %v9583_v31  ;;  %v9602_v31 = vmul.f32 0.00771957, %v9593_v49 }
 0x69e   : > { %4224 = vrot.lane.b32.xlu1 %v9586_v43, %s5220_s16  ;;  %4226 = vrot.lane.b32.xlu0 %v9591_v38, %s5220_s16  ;;  %v3631_v43 = vadd.f32 %v9349_v48, %v9325_v19  ;;  %v3633_v19 = vadd.f32 %v9357_v37, %v9336_v15  ;;  %v3635_v15 = vadd.f32 %v9365_v23, %v9347_v0  ;;  %v11425_v0 = vld [vmem:[#allocation62_spill] sm:$0xff] }
 0x69f   : > { %11420 = vst [vmem:[#allocation109_spill] sm:$0xff] %v9602_v31 }
 0x6a0   : > { %v3885_v32 = vpop.permute.xlu1 %3884  ;;  %v9599_v34 = vpop.permute.xlu0 %3886  ;;  %v3661_v24 = vadd.f32 %v9373_v42, %v3631_v43  ;;  %v3663_v42 = vadd.f32 %v9381_v50, %v3633_v19  ;;  %v9650_v50 = vmul.f32 0.0072709876, %v9593_v49 }
 0x6a1   : > { %11419 = vst [vmem:[#allocation104_spill] sm:$0xff] %v9599_v34  ;;  %v9616_v34 = vmul.f32 0.0072709876, %v9557_v7 }
 0x6a2   : > { %4228 = vrot.lane.b32.xlu1 %v9602_v31, %s5220_s16  ;;  %4254 = vrot.lane.b32.xlu0 %v9605_v40, %s5221_s25  ;;  %v3697_v48 = vadd.f32 %v9395_v53, %v3661_v24  ;;  %v3699_v37 = vadd.f32 %v9409_v57, %v3663_v42  ;;  %11424 = vst [vmem:[#allocation13_spill] sm:$0xff] %v9650_v50 }
 0x6a4   : > { %v3889_v30 = vpop.permute.xlu1 %3888  ;;  %v9613_v38 = vpop.permute.xlu0 %3890  ;;  %v3733_v43 = vadd.f32 %v9431_v22, %v3697_v48  ;;  %v3665_v22 = vadd.f32 %v9387_v29, %v3635_v15  ;;  %v3735_v19 = vadd.f32 %v9439_v20, %v3699_v37  ;;  %v9665_v29 = vmul.f32 0.0068483097, %v9557_v7 }
 0x6a5   : > { %11421 = vst [vmem:[#allocation59_spill] sm:$0xff] %v9613_v38 }
 0x6a6   : > { %4256 = vrot.lane.b32.xlu1 %v9616_v34, %s5221_s25  ;;  %4258 = vrot.lane.b32.xlu0 %v9619_v41, %s5221_s25  ;;  %v3769_v53 = vadd.f32 %v9455_v18, %v3733_v43  ;;  %v3701_v23 = vadd.f32 %v9423_v35, %v3665_v22  ;;  %v3771_v57 = vadd.f32 %v9463_v9, %v3735_v19  ;;  %v11427_v35 = vld [vmem:[#allocation66_spill] sm:$0xff] }
 0x6a8   : > { %v3893_v31 = vpop.permute.xlu1 %3892  ;;  %v9629_v38 = vpop.permute.xlu0 %3906  ;;  %v3805_v48 = vadd.f32 %v9479_v16, %v3769_v53  ;;  %v3737_v20 = vadd.f32 %v9447_v10, %v3701_v23  ;;  %v3807_v16 = vadd.f32 %v9486_v12, %v3771_v57  ;;  %v9680_v10 = vmul.f32 0.0068483097, %v9575_v62 }
 0x6a9   : > { %11422 = vst [vmem:[#allocation128_spill] sm:$0xff] %v9629_v38 }
 0x6aa   : > { %4260 = vrot.lane.b32.xlu1 %v9632_v25, %s5221_s25  ;;  %4262 = vrot.lane.b32.xlu0 %v9635_v11, %s5221_s25  ;;  %v3829_v18 = vadd.f32 %v9498_v59, %v3805_v48  ;;  %v3773_v9 = vadd.f32 %v9471_v61, %v3737_v20  ;;  %v3831_v59 = vadd.f32 %v9504_v58, %v3807_v16  ;;  %v11429_v61 = vld [vmem:[#allocation70_spill] sm:$0xff] }
 0x6ac   : > { %v3909_v24 = vpop.permute.xlu1 %3908  ;;  %v9647_v38 = vpop.permute.xlu0 %3910  ;;  %v3853_v15 = vadd.f32 %v9516_v36, %v3829_v18  ;;  %v3809_v12 = vadd.f32 %v9492_v63, %v3773_v9  ;;  %v3855_v36 = vadd.f32 %v9523_v44, %v3831_v59  ;;  %v9693_v18 = vmul.f32 0.0068483097, %v9593_v49 }
 0x6ad   : > { %11423 = vst [vmem:[#allocation82_spill] sm:$0xff] %v9647_v38  ;;  %v9696_v63 = vmul.f32 0.0064930846, %v9552_v26  ;;  %v9710_v9 = vmul.f32 0.0064930846, %v9557_v7  ;;  %v11433_v38 = vld [vmem:[#allocation77_spill] sm:$0xff] }
 0x6ae   : > { %4264 = vrot.lane.b32.xlu1 %v9650_v50, %s5221_s25  ;;  %4284 = vrot.lane.b32.xlu0 %v11425_v0, %s5222_s27  ;;  %v3877_v37 = vadd.f32 %v9545_v39, %v3853_v15  ;;  %v3833_v58 = vadd.f32 %v9510_v46, %v3809_v12  ;;  %v3879_v39 = vadd.f32 %v9563_v33, %v3855_v36  ;;  %v9723_v12 = vmul.f32 0.0064930846, %v9575_v62 }
 0x6af   : > { %v9726_v36 = vmul.f32 0.0064930846, %v9588_v27 }
 0x6b0   : > { %v3913_v42 = vpop.permute.xlu1 %3912  ;;  %v9662_v43 = vpop.permute.xlu0 %3914  ;;  %v3901_v19 = vadd.f32 %v3885_v32, %v3877_v37  ;;  %v3857_v32 = vadd.f32 %v9531_v4, %v3833_v58  ;;  %v3903_v44 = vadd.f32 %v3889_v30, %v3879_v39  ;;  %v9713_v4 = vmul.f32 0.0064930846, %v9570_v17 }
 0x6b1   : > { %11426 = vst [vmem:[#allocation36_spill] sm:$0xff] %v9662_v43  ;;  %v9736_v58 = vmul.f32 0.0064930846, %v9593_v49  ;;  %v4344_v39 = vmul.f32 0.006252612, %v9552_v26 }
 0x6b2   : > { %4286 = vrot.lane.b32.xlu1 %v9665_v29, %s5222_s27  ;;  %4288 = vrot.lane.b32.xlu0 %v11427_v35, %s5222_s27  ;;  %v3925_v48 = vadd.f32 %v3909_v24, %v3901_v19  ;;  %v3881_v46 = vadd.f32 %v9581_v60, %v3857_v32  ;;  %v3927_v33 = vadd.f32 %v3913_v42, %v3903_v44  ;;  %v4345_v32 = vmul.f32 0.006252612, %v9557_v7 }
 0x6b3   : > { %v4346_v44 = vmul.f32 0.006252612, %v9570_v17  ;;  %v11434_v17 = vld [vmem:[#allocation81_spill] sm:$0xff]  ;;  %v4382_v26 = vmul.f32 0.00616707, %v9593_v49 }
 0x6b4   : > { %v3917_v53 = vpop.permute.xlu1 %3916  ;;  %v9677_v22 = vpop.permute.xlu0 %3936  ;;  %v3905_v30 = vadd.f32 %v3893_v31, %v3881_v46  ;;  %v4347_v46 = vmul.f32 0.006252612, %v9575_v62 }
 0x6b5   : > { %11428 = vst [vmem:[#allocation29_spill] sm:$0xff] %v9677_v22 }
 0x6b6   : > { %4290 = vrot.lane.b32.xlu1 %v9680_v10, %s5222_s27  ;;  %4292 = vrot.lane.b32.xlu0 %v11429_v61, %s5222_s27  ;;  %v3929_v60 = vadd.f32 %v3917_v53, %v3905_v30 }
 0x6b8   : > { %v3939_v23 = vpop.permute.xlu1 %3938  ;;  %v9690_v57 = vpop.permute.xlu0 %3940 }
 0x6b9   : > { %11430 = vst [vmem:[#allocation93_spill] sm:$0xff] %v9690_v57  ;;  %v3955_v20 = vadd.f32 %v3939_v23, %v3925_v48  ;;  %v4380_v57 = vmul.f32 0.00616707, %v9557_v7 }
 0x6ba   : > { %4294 = vrot.lane.b32.xlu1 %v9693_v18, %s5222_s27  ;;  %4320 = vrot.lane.b32.xlu0 %v9696_v63, %s5223_s28 }
 0x6bb   : > { %v9705_v24 = vadd.f32 %v9536_v1, %v3955_v20 }
 0x6bc   : > { %v3943_v16 = vpop.permute.xlu1 %3942  ;;  %v9707_v15 = vpop.permute.xlu0 %3944 }
 0x6bd   : > { %11431 = vst [vmem:[#allocation138_spill] sm:$0xff] %v9707_v15  ;;  %v3957_v59 = vadd.f32 %v3943_v16, %v3927_v33  ;;  %v4348_v33 = vmul.f32 0.006252612, %v9588_v27  ;;  %v4381_v15 = vmul.f32 0.00616707, %v9575_v62 }
 0x6be   : > { %4322 = vrot.lane.b32.xlu1 %v9710_v9, %s5223_s28  ;;  %4324 = vrot.lane.b32.xlu0 %v9713_v4, %s5223_s28 }
 0x6bf   : > { %v9720_v1 = vadd.f32 %v9539_v56, %v3957_v59  ;;  %v4349_v59 = vmul.f32 0.006252612, %v9593_v49 }
 0x6c0   : > { %v3947_v42 = vpop.permute.xlu1 %3946  ;;  %v3979_v37 = vpop.permute.xlu0 %3978 }
 0x6c1   : > { %v3959_v31 = vadd.f32 %v3947_v42, %v3929_v60  ;;  %v11432_v60 = vld [vmem:[#allocation74_spill] sm:$0xff] }
 0x6c2   : > { %4326 = vrot.lane.b32.xlu1 %v9723_v12, %s5223_s28  ;;  %4328 = vrot.lane.b32.xlu0 %v9726_v36, %s5223_s28 }
 0x6c3   : > { %v9733_v53 = vadd.f32 %v9550_v28, %v3959_v31 }
 0x6c4   : > { %v3981_v56 = vpop.permute.xlu1 %3980  ;;  %v3983_v19 = vpop.permute.xlu0 %3982 }
 0x6c6   : > { %4330 = vrot.lane.b32.xlu1 %v9736_v58, %s5223_s28  ;;  %4356 = vrot.lane.b32.xlu0 %v4344_v39, %s5224_s30 }
 0x6c8   : > { %v4000_v48 = vpop.permute.xlu1 %3999  ;;  %v4002_v23 = vpop.permute.xlu0 %4001 }
 0x6ca   : > { %4358 = vrot.lane.b32.xlu1 %v4345_v32, %s5224_s30  ;;  %4360 = vrot.lane.b32.xlu0 %v4346_v44, %s5224_s30 }
 0x6cc   : > { %v4004_v28 = vpop.permute.xlu1 %4003  ;;  %v4021_v20 = vpop.permute.xlu0 %4020 }
 0x6ce   : > { %4362 = vrot.lane.b32.xlu1 %v4347_v46, %s5224_s30  ;;  %4364 = vrot.lane.b32.xlu0 %v4348_v33, %s5224_s30 }
 0x6d0   : > { %v4023_v16 = vpop.permute.xlu1 %4022  ;;  %v4025_v30 = vpop.permute.xlu0 %4024 }
 0x6d2   : > { %4366 = vrot.lane.b32.xlu1 %v4349_v59, %s5224_s30  ;;  %4386 = vrot.lane.b32.xlu0 %v11432_v60, %s5225_s2 }
 0x6d4   : > { %v4042_v42 = vpop.permute.xlu1 %4041  ;;  %v4044_v31 = vpop.permute.xlu0 %4043 }
 0x6d6   : > { %4388 = vrot.lane.b32.xlu1 %v4380_v57, %s5225_s2  ;;  %4390 = vrot.lane.b32.xlu0 %v11433_v38, %s5225_s2 }
 0x6d8   : > { %v4046_v27 = vpop.permute.xlu1 %4045  ;;  %v4063_v22 = vpop.permute.xlu0 %4062 }
 0x6da   : > { %4392 = vrot.lane.b32.xlu1 %v4381_v15, %s5225_s2  ;;  %4394 = vrot.lane.b32.xlu0 %v11434_v17, %s5225_s2 }
 0x6dc   : > { %v4065_v43 = vpop.permute.xlu1 %4064  ;;  %v4067_v60 = vpop.permute.xlu0 %4066 }
 0x6de   : > { %4396 = vrot.lane.b32.xlu1 %v4382_v26, %s5225_s2  ;;  %4410 = vrot.lane.b32.xlu0 %v4344_v39, %s5226_s3 }
 0x6e0   : > { %v4084_v57 = vpop.permute.xlu1 %4083  ;;  %v4086_v51 = vpop.permute.xlu0 %4085 }
 0x6e2   : > { %4412 = vrot.lane.b32.xlu1 %v4345_v32, %s5226_s3  ;;  %4414 = vrot.lane.b32.xlu0 %v4346_v44, %s5226_s3  ;;  %v3988_v32 = vadd.f32 %v3979_v37, %v9705_v24  ;;  %v3990_v44 = vadd.f32 %v3981_v56, %v9720_v1 }
 0x6e4   : > { %v4088_v38 = vpop.permute.xlu1 %4087  ;;  %v4099_v13 = vpop.permute.xlu0 %4098  ;;  %v4009_v6 = vadd.f32 %v4000_v48, %v3988_v32  ;;  %v4011_v50 = vadd.f32 %v4002_v23, %v3990_v44 }
 0x6e6   : > { %4416 = vrot.lane.b32.xlu1 %v4347_v46, %s5226_s3  ;;  %4418 = vrot.lane.b32.xlu0 %v4348_v33, %s5226_s3 }
 0x6e8   : > { %v4101_v17 = vpop.permute.xlu1 %4100  ;;  %v4103_v15 = vpop.permute.xlu0 %4102 }
 0x6ea   : > { %4420 = vrot.lane.b32.xlu1 %v4349_v59, %s5226_s3  ;;  %4434 = vrot.lane.b32.xlu0 %v9696_v63, %s5227_s4  ;;  %v3992_v63 = vadd.f32 %v3983_v19, %v9733_v53  ;;  %v4032_v59 = vadd.f32 %v4023_v16, %v4011_v50 }
 0x6ec   : > { %v4114_v26 = vpop.permute.xlu1 %4113  ;;  %v4116_v39 = vpop.permute.xlu0 %4115  ;;  %v4013_v5 = vadd.f32 %v4004_v28, %v3992_v63  ;;  %v4053_v37 = vadd.f32 %v4044_v31, %v4032_v59  ;;  %v11440_v59 = vld [vmem:[#allocation9_spill] sm:$0xff] }
 0x6ee   : > { %4436 = vrot.lane.b32.xlu1 %v9710_v9, %s5227_s4  ;;  %4438 = vrot.lane.b32.xlu0 %v9713_v4, %s5227_s4  ;;  %v4030_v9 = vadd.f32 %v4021_v20, %v4009_v6  ;;  %v4034_v1 = vadd.f32 %v4025_v30, %v4013_v5  ;;  %v4074_v56 = vadd.f32 %v4065_v43, %v4053_v37 }
 0x6f0   : > { %v4118_v46 = vpop.permute.xlu1 %4117  ;;  %v4129_v33 = vpop.permute.xlu0 %4128  ;;  %v4051_v24 = vadd.f32 %v4042_v42, %v4030_v9  ;;  %v4055_v23 = vadd.f32 %v4046_v27, %v4034_v1  ;;  %v4095_v6 = vadd.f32 %v4086_v51, %v4074_v56  ;;  %v11443_v56 = vld [vmem:[#allocation145_spill] sm:$0xff] }
 0x6f2   : > { %4440 = vrot.lane.b32.xlu1 %v9723_v12, %s5227_s4  ;;  %4442 = vrot.lane.b32.xlu0 %v9726_v36, %s5227_s4  ;;  %v4072_v12 = vadd.f32 %v4063_v22, %v4051_v24  ;;  %v4076_v50 = vadd.f32 %v4067_v60, %v4055_v23  ;;  %v11441_v24 = vld [vmem:[#allocation133_spill] sm:$0xff] }
 0x6f4   : > { %v4131_v2 = vpop.permute.xlu1 %4130  ;;  %v4133_v4 = vpop.permute.xlu0 %4132  ;;  %v4093_v53 = vadd.f32 %v4084_v57, %v4072_v12 }
 0x6f6   : > { %4444 = vrot.lane.b32.xlu1 %v9736_v58, %s5227_s4  ;;  %4458 = vrot.lane.b32.xlu0 %v11425_v0, %s5228_s5  ;;  %v4108_v19 = vadd.f32 %v4099_v13, %v4093_v53  ;;  %v4110_v58 = vadd.f32 %v4101_v17, %v4095_v6  ;;  %v4097_v0 = vadd.f32 %v4088_v38, %v4076_v50  ;;  %v11445_v53 = vld [vmem:[#allocation52_spill] sm:$0xff]  ;;  %v11446_v6 = vld [vmem:[#allocation90_spill] sm:$0xff] }
 0x6f7   : > { %v11447_v50 = vld [vmem:[#allocation10_spill] sm:$0xff] }
 0x6f8   : > { %v4144_v48 = vpop.permute.xlu1 %4143  ;;  %v4146_v36 = vpop.permute.xlu0 %4145  ;;  %v4123_v5 = vadd.f32 %v4114_v26, %v4108_v19  ;;  %v4125_v22 = vadd.f32 %v4116_v39, %v4110_v58  ;;  %v4112_v51 = vadd.f32 %v4103_v15, %v4097_v0  ;;  %v9803_v15 = vmul.f32 0.008163127, %v9575_v62  ;;  %v11448_v58 = vld [vmem:[#allocation129_spill] sm:$0xff] }
 0x6f9   : > { %v3630_v62 = vadd.f32 %v9340_v8, %v9313_v14 }
 0x6fa   : > { %4460 = vrot.lane.b32.xlu1 %v9665_v29, %s5228_s5  ;;  %4462 = vrot.lane.b32.xlu0 %v11427_v35, %s5228_s5  ;;  %v4138_v27 = vadd.f32 %v4129_v33, %v4123_v5  ;;  %v4140_v43 = vadd.f32 %v4131_v2, %v4125_v22  ;;  %v4127_v35 = vadd.f32 %v4118_v46, %v4112_v51  ;;  %v11450_v51 = vld [vmem:[#allocation17_spill] sm:$0xff] }
 0x6fc   : > { %v4148_v28 = vpop.permute.xlu1 %4147  ;;  %v4159_v20 = vpop.permute.xlu0 %4158  ;;  %v4153_v30 = vadd.f32 %v4144_v48, %v4138_v27  ;;  %v4155_v13 = vadd.f32 %v4146_v36, %v4140_v43  ;;  %v4142_v42 = vadd.f32 %v4133_v4, %v4127_v35  ;;  %v11444_v36 = vld [vmem:[#allocation114_spill] sm:$0xff]  ;;  %v11451_v43 = vld [vmem:[#allocation111_spill] sm:$0xff] }
 0x6fe   : > { %4464 = vrot.lane.b32.xlu1 %v9680_v10, %s5228_s5  ;;  %4466 = vrot.lane.b32.xlu0 %v11429_v61, %s5228_s5  ;;  %v4168_v31 = vadd.f32 %v4159_v20, %v4153_v30  ;;  %v9800_v61 = vmul.f32 0.008163127, %v9557_v7  ;;  %v4157_v2 = vadd.f32 %v4148_v28, %v4142_v42  ;;  %v11449_v20 = vld [vmem:[#allocation130_spill] sm:$0xff]  ;;  %v11453_v30 = vld [vmem:[#allocation108_spill] sm:$0xff]  ;;  %v11455_v42 = vld [vmem:[#allocation67_spill] sm:$0xff] }
 0x700   : > { %v4161_v29 = vpop.permute.xlu1 %4160  ;;  %v4163_v16 = vpop.permute.xlu0 %4162 }
 0x701   : > { %v4170_v10 = vadd.f32 %v4161_v29, %v4155_v13  ;;  %v11454_v13 = vld [vmem:[#allocation41_spill] sm:$0xff] }
 0x702   : > { %4468 = vrot.lane.b32.xlu1 %v9693_v18, %s5228_s5  ;;  %4482 = vrot.lane.b32.xlu0 %v9605_v40, %s5229_s11  ;;  %v3634_v40 = vadd.f32 %v9359_v21, %v9338_v3  ;;  %v4172_v18 = vadd.f32 %v4163_v16, %v4157_v2  ;;  %v3660_v3 = vadd.f32 %v9367_v45, %v3630_v62  ;;  %v11438_v45 = vld [vmem:[#allocation117_spill] sm:$0xff]  ;;  %v11452_v16 = vld [vmem:[#allocation40_spill] sm:$0xff] }
 0x704   : > { %v4177_v60 = vpop.permute.xlu1 %4176  ;;  %v4179_v57 = vpop.permute.xlu0 %4178 }
 0x705   : > { %v4186_v38 = vadd.f32 %v4177_v60, %v4168_v31  ;;  %v4188_v17 = vadd.f32 %v4179_v57, %v4170_v10  ;;  %v11456_v10 = vld [vmem:[#allocation84_spill] sm:$0xff]  ;;  %v11457_v57 = vld [vmem:[#allocation58_spill] sm:$0xff] }
 0x706   : > { %4484 = vrot.lane.b32.xlu1 %v9616_v34, %s5229_s11  ;;  %4486 = vrot.lane.b32.xlu0 %v9619_v41, %s5229_s11  ;;  %v3664_v34 = vadd.f32 %v9383_v55, %v3634_v40  ;;  %v9823_v41 = vmul.f32 0.008163127, %v9593_v49  ;;  %v3632_v55 = vadd.f32 %v9351_v54, %v9327_v52  ;;  %v11435_v49 = vld [vmem:[#allocation80_spill] sm:$0xff]  ;;  %v11442_v52 = vld [vmem:[#allocation107_spill] sm:$0xff] }
 0x707   : > { %v9812_v26 = vadd.f32 %v9800_v61, %v4186_v38  ;;  %v9815_v7 = vadd.f32 %v9803_v15, %v4188_v17  ;;  %v3696_v33 = vadd.f32 %v11435_v49, %v3660_v3  ;;  %v11458_v38 = vld [vmem:[#allocation102_spill] sm:$0xff]  ;;  %v11461_v3 = vld [vmem:[#allocation59_spill] sm:$0xff] }
 0x708   : > { %v4181_v39 = vpop.permute.xlu1 %4180  ;;  %v9817_v32 = vpop.permute.xlu0 %4218  ;;  %v3700_v21 = vadd.f32 %v9411_v47, %v3664_v34  ;;  %v11439_v47 = vld [vmem:[#allocation99_spill] sm:$0xff]  ;;  %v9878_v17 = vmul.f32 0.008163127, %v11458_v38  ;;  %v11460_v34 = vld [vmem:[#allocation97_spill] sm:$0xff] }
 0x709   : > { %v4190_v44 = vadd.f32 %v4181_v39, %v4172_v18  ;;  %v3662_v9 = vadd.f32 %v11439_v47, %v3632_v55  ;;  %v3732_v4 = vadd.f32 %v11440_v59, %v3696_v33  ;;  %v11459_v39 = vld [vmem:[#allocation63_spill] sm:$0xff]  ;;  %v11462_v55 = vld [vmem:[#allocation109_spill] sm:$0xff]  ;;  %v11466_v47 = vld [vmem:[#allocation110_spill] sm:$0xff] }
 0x70a   : > { %4488 = vrot.lane.b32.xlu1 %v9632_v25, %s5229_s11  ;;  %4490 = vrot.lane.b32.xlu0 %v9635_v11, %s5229_s11  ;;  %v11436_v25 = vld [vmem:[#allocation11_spill] sm:$0xff]  ;;  %v11437_v11 = vld [vmem:[#allocation13_spill] sm:$0xff] }
 0x70b   : > { %v9832_v46 = vadd.f32 %v9823_v41, %v4190_v44  ;;  %v3736_v63 = vadd.f32 %v11436_v25, %v3700_v21  ;;  %v3698_v54 = vadd.f32 %v11442_v52, %v3662_v9  ;;  %v3768_v48 = vadd.f32 %v11443_v56, %v3732_v4  ;;  %v11463_v49 = vld [vmem:[#allocation115_spill] sm:$0xff]  ;;  %v11464_v25 = vld [vmem:[#allocation101_spill] sm:$0xff]  ;;  %v11468_v52 = vld [vmem:[#allocation128_spill] sm:$0xff] }
 0x70c   : > { %v9834_v14 = vpop.permute.xlu1 %4220  ;;  %v9836_v8 = vpop.permute.xlu0 %4222  ;;  %v9895_v9 = vmul.f32 0.008163127, %v11466_v47  ;;  %v11469_v56 = vld [vmem:[#allocation138_spill] sm:$0xff] }
 0x70d   : > { %v3772_v37 = vadd.f32 %v11441_v24, %v3736_v63  ;;  %v3734_v19 = vadd.f32 %v11447_v50, %v3698_v54  ;;  %v3804_v28 = vadd.f32 %v11448_v58, %v3768_v48  ;;  %v11467_v24 = vld [vmem:[#allocation69_spill] sm:$0xff]  ;;  %v11472_v50 = vld [vmem:[#allocation86_spill] sm:$0xff] }
 0x70e   : > { %4492 = vrot.lane.b32.xlu1 %v11437_v11, %s5229_s11  ;;  %4506 = vrot.lane.b32.xlu0 %v11438_v45, %s5230_s13  ;;  %v11465_v11 = vld [vmem:[#allocation36_spill] sm:$0xff] }
 0x70f   : > { %v3808_v23 = vadd.f32 %v11444_v36, %v3772_v37  ;;  %v3770_v27 = vadd.f32 %v11450_v51, %v3734_v19  ;;  %v3828_v29 = vadd.f32 %v11451_v43, %v3804_v28  ;;  %v11470_v36 = vld [vmem:[#allocation104_spill] sm:$0xff]  ;;  %v9911_v19 = vmul.f32 0.008163127, %v11472_v50  ;;  %v11474_v51 = vld [vmem:[#allocation55_spill] sm:$0xff] }
 0x710   : > { %v9849_v1 = vpop.permute.xlu1 %4224  ;;  %v9851_v12 = vpop.permute.xlu0 %4226 }
 0x711   : > { %v3832_v0 = vadd.f32 %v11449_v20, %v3808_v23  ;;  %v3806_v31 = vadd.f32 %v11455_v42, %v3770_v27  ;;  %v3852_v60 = vadd.f32 %v11456_v10, %v3828_v29  ;;  %v11473_v20 = vld [vmem:[#allocation82_spill] sm:$0xff]  ;;  %v11476_v29 = vld [vmem:[#allocation93_spill] sm:$0xff] }
 0x712   : > { %4508 = vrot.lane.b32.xlu1 %v11445_v53, %s5230_s13  ;;  %4510 = vrot.lane.b32.xlu0 %v11446_v6, %s5230_s13  ;;  %v11471_v53 = vld [vmem:[#allocation29_spill] sm:$0xff] }
 0x713   : > { %v3856_v35 = vadd.f32 %v11452_v16, %v3832_v0  ;;  %v3830_v62 = vadd.f32 %v11459_v39, %v3806_v31  ;;  %v3876_v44 = vadd.f32 %v11460_v34, %v3852_v60  ;;  %v11478_v31 = vld [vmem:[#allocation44_spill] sm:$0xff] }
 0x714   : > { %v9863_v5 = vpop.permute.xlu1 %4228  ;;  %v9865_v22 = vpop.permute.xlu0 %4254  ;;  %v9935_v60 = vld [vmem:[#allocation2 + $0x14] sm:$0xff] }
 0x715   : > { %v3880_v2 = vadd.f32 %v11457_v57, %v3856_v35  ;;  %v3854_v33 = vadd.f32 %v11463_v49, %v3830_v62  ;;  %v3900_v63 = vadd.f32 %v11464_v25, %v3876_v44  ;;  %v9948_v34 = vmul.f32 0.008163127, %v9935_v60  ;;  %v9950_v44 = vld [vmem:[#allocation2 + $0x2c] sm:$0xff]  ;;  %v11484_v49 = vld [vmem:[#allocation12_spill] sm:$0xff] }
 0x716   : > { %4512 = vrot.lane.b32.xlu1 %v11453_v30, %s5230_s13  ;;  %4514 = vrot.lane.b32.xlu0 %v11454_v13, %s5230_s13  ;;  %v9929_v13 = vld [vmem:[#allocation2 + $0xc] sm:$0xff] }
 0x717   : > { %v3904_v21 = vadd.f32 %v11461_v3, %v3880_v2  ;;  %v3878_v37 = vadd.f32 %v11467_v24, %v3854_v33  ;;  %v3924_v54 = vadd.f32 %v11468_v52, %v3900_v63  ;;  %v9932_v42 = vmul.f32 0.008163127, %v9929_v13  ;;  %v11480_v2 = vld [vmem:[#allocation15_spill] sm:$0xff]  ;;  %11481 = vst [vmem:[#allocation124_spill] sm:$0xff] %v9948_v34  ;;  %v11485_v25 = vld [vmem:[#allocation22_spill] sm:$0xff]  ;;  %v11488_v52 = vld [vmem:[#allocation65_spill] sm:$0xff] }
 0x718   : > { %v9880_v40 = vpop.permute.xlu1 %4256  ;;  %v9882_v18 = vpop.permute.xlu0 %4258  ;;  %v9953_v3 = vmul.f32 0.008163127, %v9950_v44  ;;  %v9971_v24 = vld [vmem:[#allocation2 + $0x4c] sm:$0xff] }
 0x719   : > { %v3928_v45 = vadd.f32 %v11465_v11, %v3904_v21  ;;  %v3902_v23 = vadd.f32 %v11470_v36, %v3878_v37  ;;  %v3954_v6 = vadd.f32 %v11471_v53, %v3924_v54  ;;  %11477 = vst [vmem:[#allocation146_spill] sm:$0xff] %v9932_v42  ;;  %v9974_v37 = vmul.f32 0.008163127, %v9971_v24 }
 0x71a   : > { %4516 = vrot.lane.b32.xlu1 %v11462_v55, %s5230_s13  ;;  %4536 = vrot.lane.b32.xlu0 %v9878_v17, %s5231_s14  ;;  %11482 = vst [vmem:[#allocation51_spill] sm:$0xff] %v9953_v3  ;;  %v9956_v55 = vld [vmem:[#allocation2 + $0x34] sm:$0xff] }
 0x71b   : > { %v3958_v48 = vadd.f32 %v11469_v56, %v3928_v45  ;;  %v3926_v0 = vadd.f32 %v11473_v20, %v3902_v23  ;;  %v9969_v47 = vmul.f32 0.008163127, %v9956_v55  ;;  %11487 = vst [vmem:[#allocation135_spill] sm:$0xff] %v9974_v37  ;;  %v9977_v56 = vld [vmem:[#allocation2 + $0x54] sm:$0xff]  ;;  %v11490_v23 = vld [vmem:[#allocation14_spill] sm:$0xff] }
 0x71c   : > { %v9897_v59 = vpop.permute.xlu1 %4260  ;;  %v9899_v4 = vpop.permute.xlu0 %4262  ;;  %v9990_v20 = vmul.f32 0.008163127, %v9977_v56 }
 0x71d   : > { %v3970_v27 = vadd.f32 %v3958_v48, %v11474_v51  ;;  %v3956_v16 = vadd.f32 %v11476_v29, %v3926_v0  ;;  %11486 = vst [vmem:[#allocation78_spill] sm:$0xff] %v9969_v47  ;;  %v11489_v48 = vld [vmem:[#allocation56_spill] sm:$0xff]  ;;  %v9993_v0 = vmul.f32 0.0078077544, %v9929_v13 }
 0x71e   : > { %4538 = vrot.lane.b32.xlu1 %v9800_v61, %s5231_s14  ;;  %4540 = vrot.lane.b32.xlu0 %v9895_v9, %s5231_s14  ;;  %v11475_v61 = vld [vmem:[#allocation45_spill] sm:$0xff]  ;;  %11491 = vst [vmem:[#allocation122_spill] sm:$0xff] %v9990_v20  ;;  %v11493_v51 = vld [vmem:[#allocation76_spill] sm:$0xff] }
 0x71f   : > { %v3966_v43 = vadd.f32 %v3954_v6, %v11475_v61  ;;  %v3991_v10 = vadd.f32 %v3970_v27, %v11478_v31  ;;  %v3968_v38 = vadd.f32 %v3956_v16, %v11480_v2  ;;  %11492 = vst [vmem:[#allocation85_spill] sm:$0xff] %v9993_v0  ;;  %v11494_v61 = vld [vmem:[#allocation68_spill] sm:$0xff]  ;;  %v11498_v2 = vld [vmem:[#allocation87_spill] sm:$0xff] }
 0x720   : > { %v9913_v58 = vpop.permute.xlu1 %4264  ;;  %v9915_v28 = vpop.permute.xlu0 %4284  ;;  %v11495_v29 = vld [vmem:[#allocation60_spill] sm:$0xff] }
 0x721   : > { %v3989_v63 = vadd.f32 %v3968_v38, %v11485_v25 }
 0x722   : > { %4542 = vrot.lane.b32.xlu1 %v9803_v15, %s5231_s14  ;;  %4544 = vrot.lane.b32.xlu0 %v9911_v19, %s5231_s14  ;;  %v11479_v15 = vld [vmem:[#allocation54_spill] sm:$0xff] }
 0x723   : > { %v3987_v57 = vadd.f32 %v3966_v43, %v11479_v15  ;;  %v4010_v53 = vadd.f32 %v3989_v63, %v11490_v23  ;;  %v10007_v15 = vmul.f32 0.0078077544, %v9935_v60  ;;  %v11504_v23 = vld [vmem:[#allocation91_spill] sm:$0xff] }
 0x724   : > { %v9925_v35 = vpop.permute.xlu1 %4286  ;;  %v9927_v30 = vpop.permute.xlu0 %4288 }
 0x725   : > { %v4008_v33 = vadd.f32 %v3987_v57, %v11484_v49  ;;  %v4031_v16 = vadd.f32 %v4010_v53, %v11495_v29  ;;  %11496 = vst [vmem:[#allocation27_spill] sm:$0xff] %v10007_v15  ;;  %v10010_v57 = vmul.f32 0.0078077544, %v9950_v44  ;;  %v11500_v49 = vld [vmem:[#allocation72_spill] sm:$0xff]  ;;  %v10041_v29 = vmul.f32 0.0078077544, %v9977_v56 }
 0x726   : > { %4546 = vrot.lane.b32.xlu1 %v9823_v41, %s5231_s14  ;;  %4587 = vrot.lane.b32.xlu0 %v9932_v42, %s5220_s16  ;;  %v11483_v41 = vld [vmem:[#allocation18_spill] sm:$0xff] }
 0x727   : > { %v4012_v21 = vadd.f32 %v3991_v10, %v11483_v41  ;;  %v4029_v36 = vadd.f32 %v4008_v33, %v11489_v48  ;;  %11497 = vst [vmem:[#allocation21_spill] sm:$0xff] %v10010_v57  ;;  %v11499_v41 = vld [vmem:[#allocation79_spill] sm:$0xff]  ;;  %v4052_v33 = vadd.f32 %v4031_v16, %v11500_v49  ;;  %v11503_v48 = vld [vmem:[#allocation96_spill] sm:$0xff]  ;;  %11506 = vst [vmem:[#allocation132_spill] sm:$0xff] %v10041_v29  ;;  %v10044_v16 = vmul.f32 0.007481702, %v9929_v13 }
 0x728   : > { %v9943_v39 = vpop.permute.xlu1 %4290  ;;  %v9945_v62 = vpop.permute.xlu0 %4292  ;;  %v11510_v49 = vld [vmem:[#allocation100_spill] sm:$0xff] }
 0x729   : > { %v4033_v54 = vadd.f32 %v4012_v21, %v11488_v52  ;;  %v4050_v43 = vadd.f32 %v4029_v36, %v11494_v61  ;;  %v10024_v52 = vmul.f32 0.0078077544, %v9956_v55  ;;  %11507 = vst [vmem:[#allocation53_spill] sm:$0xff] %v10044_v16 }
 0x72a   : > { %4589 = vrot.lane.b32.xlu1 %v9948_v34, %s5220_s16  ;;  %4591 = vrot.lane.b32.xlu0 %v9953_v3, %s5220_s16  ;;  %v10075_v3 = vmul.f32 0.007481702, %v9956_v55  ;;  %v10078_v34 = vmul.f32 0.007481702, %v9971_v24 }
 0x72b   : > { %v4054_v27 = vadd.f32 %v4033_v54, %v11493_v51  ;;  %v4071_v21 = vadd.f32 %v4050_v43, %v11499_v41  ;;  %11501 = vst [vmem:[#allocation120_spill] sm:$0xff] %v10024_v52  ;;  %v10027_v54 = vmul.f32 0.0078077544, %v9971_v24  ;;  %v11505_v51 = vld [vmem:[#allocation83_spill] sm:$0xff]  ;;  %v11509_v41 = vld [vmem:[#allocation94_spill] sm:$0xff] }
 0x72c   : > { %v9964_v11 = vpop.permute.xlu1 %4294  ;;  %v9966_v45 = vpop.permute.xlu0 %4320  ;;  %11516 = vst [vmem:[#allocation134_spill] sm:$0xff] %v10075_v3  ;;  %11517 = vst [vmem:[#allocation143_spill] sm:$0xff] %v10078_v34 }
 0x72d   : > { %v4075_v38 = vadd.f32 %v4054_v27, %v11498_v2  ;;  %11502 = vst [vmem:[#allocation127_spill] sm:$0xff] %v10027_v54  ;;  %v4092_v53 = vadd.f32 %v4071_v21, %v11504_v23  ;;  %v4073_v27 = vadd.f32 %v4052_v33, %v11505_v51  ;;  %v11508_v2 = vld [vmem:[#allocation105_spill] sm:$0xff]  ;;  %v10058_v51 = vmul.f32 0.007481702, %v9935_v60 }
 0x72e   : > { %4593 = vrot.lane.b32.xlu1 %v9969_v47, %s5220_s16  ;;  %4595 = vrot.lane.b32.xlu0 %v9974_v37, %s5220_s16 }
 0x72f   : > { %v4096_v36 = vadd.f32 %v4075_v38, %v11503_v48  ;;  %v4094_v21 = vadd.f32 %v4073_v27, %v11509_v41  ;;  %v4107_v33 = vadd.f32 %v4092_v53, %v11510_v49  ;;  %11511 = vst [vmem:[#allocation126_spill] sm:$0xff] %v10058_v51  ;;  %v11514_v27 = vld [vmem:[#allocation31_spill] sm:$0xff] }
 0x730   : > { %v9985_v6 = vpop.permute.xlu1 %4322  ;;  %v9987_v50 = vpop.permute.xlu0 %4324  ;;  %v11515_v41 = vld [vmem:[#allocation103_spill] sm:$0xff] }
 0x731   : > { %v4111_v38 = vadd.f32 %v4096_v36, %v11508_v2  ;;  %v11513_v36 = vld [vmem:[#allocation38_spill] sm:$0xff]  ;;  %v4122_v53 = vadd.f32 %v4107_v33, %v11514_v27  ;;  %v4109_v49 = vadd.f32 %v4094_v21, %v11515_v41  ;;  %v11519_v33 = vld [vmem:[#allocation33_spill] sm:$0xff] }
 0x732   : > { %4597 = vrot.lane.b32.xlu1 %v9990_v20, %s5220_s16  ;;  %4623 = vrot.lane.b32.xlu0 %v9993_v0, %s5221_s25  ;;  %v10061_v20 = vmul.f32 0.007481702, %v9950_v44  ;;  %v11520_v27 = vld [vmem:[#allocation46_spill] sm:$0xff]  ;;  %v10104_v0 = vmul.f32 0.007215096, %v9935_v60  ;;  %s5232_s16 = smov [#allocation6]  }
 0x733   : > { %v4126_v2 = vadd.f32 %v4111_v38, %v11513_v36  ;;  %v11518_v38 = vld [vmem:[#allocation24_spill] sm:$0xff]  ;;  %v4137_v21 = vadd.f32 %v4122_v53, %v11519_v33  ;;  %v4124_v41 = vadd.f32 %v4109_v49, %v11520_v27  ;;  %v11525_v53 = vld [vmem:[#allocation34_spill] sm:$0xff] }
 0x734   : > { %v10002_v31 = vpop.permute.xlu1 %4326  ;;  %v10004_v10 = vpop.permute.xlu0 %4328  ;;  %11512 = vst [vmem:[#allocation98_spill] sm:$0xff] %v10061_v20  ;;  %11526 = vst [vmem:[#allocation141_spill] sm:$0xff] %v10104_v0 }
 0x735   : > { %v4141_v36 = vadd.f32 %v4126_v2, %v11518_v38  ;;  %v11523_v2 = vld [vmem:[#allocation71_spill] sm:$0xff]  ;;  %v11524_v38 = vld [vmem:[#allocation42_spill] sm:$0xff]  ;;  %v4139_v33 = vadd.f32 %v4124_v41, %v11525_v53  ;;  %v10118_v53 = vmul.f32 0.007215096, %v9956_v55 }
 0x736   : > { %4625 = vrot.lane.b32.xlu1 %v10007_v15, %s5221_s25  ;;  %4627 = vrot.lane.b32.xlu0 %v10010_v57, %s5221_s25  ;;  %v4152_v15 = vadd.f32 %v4137_v21, %v11524_v38 }
 0x737   : > { %11531 = vst [vmem:[#allocation61_spill] sm:$0xff] %v10118_v53 }
 0x738   : > { %v10019_v25 = vpop.permute.xlu1 %4330  ;;  %v10021_v63 = vpop.permute.xlu0 %4356 }
 0x73a   : > { %4629 = vrot.lane.b32.xlu1 %v10024_v52, %s5221_s25  ;;  %4631 = vrot.lane.b32.xlu0 %v10027_v54, %s5221_s25  ;;  %v10092_v54 = vmul.f32 0.007481702, %v9977_v56  ;;  %v11522_v52 = vld [vmem:[#allocation47_spill] sm:$0xff] }
 0x73b   : > { %v4156_v57 = vadd.f32 %v4141_v36, %v11522_v52  ;;  %v11528_v52 = vld [vmem:[#allocation64_spill] sm:$0xff]  ;;  %v11529_v36 = vld [vmem:[#allocation26_spill] sm:$0xff] }
 0x73c   : > { %v10036_v61 = vpop.permute.xlu1 %4358  ;;  %v10038_v43 = vpop.permute.xlu0 %4360  ;;  %11521 = vst [vmem:[#allocation140_spill] sm:$0xff] %v10092_v54 }
 0x73e   : > { %4633 = vrot.lane.b32.xlu1 %v10041_v29, %s5221_s25  ;;  %4659 = vrot.lane.b32.xlu0 %v10044_v16, %s5222_s27  ;;  %s5151_s25 = sshll.u32 %s5232_s16, 4  ;;  %s5152_s25 = int_to_ptr.vmem [resolvable:$false] %s5151_s25 }
 0x73f   : > { %p5154_p8 = scmp.lt.s32.totalorder %s10304_s20, %s5152_s25 }
 0x740   : > { %v10053_v48 = vpop.permute.xlu1 %4362  ;;  %v10055_v23 = vpop.permute.xlu0 %4364 }
 0x742   : > { %4661 = vrot.lane.b32.xlu1 %v10058_v51, %s5222_s27  ;;  %4663 = vrot.lane.b32.xlu0 %v10061_v20, %s5222_s27  ;;  %v11530_v20 = vld [vmem:[#allocation39_spill] sm:$0xff]  ;;  %v11532_v51 = vld [vmem:[#allocation25_spill] sm:$0xff] }
 0x743   : > { %v4154_v21 = vadd.f32 %v4139_v33, %v11530_v20 }
 0x744   : > { %v10070_v37 = vpop.permute.xlu1 %4366  ;;  %v10072_v47 = vpop.permute.xlu0 %4386 }
 0x746   : > { %4665 = vrot.lane.b32.xlu1 %v10075_v3, %s5222_s27  ;;  %4667 = vrot.lane.b32.xlu0 %v10078_v34, %s5222_s27  ;;  %v11527_v34 = vld [vmem:[#allocation19_spill] sm:$0xff] }
 0x747   : > { %v4171_v3 = vadd.f32 %v4156_v57, %v11527_v34  ;;  %v11533_v34 = vld [vmem:[#allocation57_spill] sm:$0xff]  ;;  %v11534_v57 = vld [vmem:[#allocation30_spill] sm:$0xff] }
 0x748   : > { %v10087_v42 = vpop.permute.xlu1 %4388  ;;  %v10089_v29 = vpop.permute.xlu0 %4390 }
 0x749   : > { %v4189_v16 = vadd.f32 %v4171_v3, %v11532_v51  ;;  %v11537_v51 = vld [vmem:[#allocation28_spill] sm:$0xff] }
 0x74a   : > { %4669 = vrot.lane.b32.xlu1 %v10092_v54, %s5222_s27  ;;  %4689 = vrot.lane.b32.xlu0 %v11523_v2, %s5223_s28  ;;  %v4167_v54 = vadd.f32 %v4152_v15, %v11529_v36  ;;  %v11535_v15 = vld [vmem:[#allocation43_spill] sm:$0xff]  ;;  %v10135_v2 = vmul.f32 0.0070388336, %v9929_v13  ;;  %s5153_s27 = scalar_lea.vmem %s5152_s25, 1536 }
 0x74b   : > { %v4169_v36 = vadd.f32 %v4154_v21, %v11535_v15  ;;  %v4204_v3 = vadd.f32 %v9911_v19, %v4189_v16  ;;  %v10151_v19 = vmul.f32 0.0070388336, %v9950_v44  ;;  %p5155_p10 = scmp.lt.s32.totalorder %s5153_s27, %s5147_s24 }
 0x74c   : > { %v10101_v49 = vpop.permute.xlu1 %4392  ;;  %v4395_v27 = vpop.permute.xlu0 %4394 }
 0x74d   : > { %v4187_v21 = vadd.f32 %v4169_v36, %v11537_v51  ;;  %v10170_v51 = vmul.f32 0.0070388336, %v9971_v24  ;;  %p5156_p0 = por %p5155_p10, %p5154_p8 }
 0x74e   : > { %4691 = vrot.lane.b32.xlu1 %v10104_v0, %s5223_s28  ;;  %4693 = vrot.lane.b32.xlu0 %v11528_v52, %s5223_s28  ;;  %v4185_v52 = vadd.f32 %v4167_v54, %v11534_v57  ;;  %v10132_v0 = vmul.f32 0.007215096, %v9977_v56  ;;  %v4240_v57 = vadd.f32 %v9851_v12, %v4204_v3 }
 0x74f   : > { %v4202_v12 = vadd.f32 %v9895_v9, %v4187_v21  ;;  %p5157_p2 = pnand %p5156_p0, %p5150_p13 }
 0x750   : > { %v10113_v38 = vpop.permute.xlu1 %4396  ;;  %v10115_v41 = vpop.permute.xlu0 %4410  ;;  %11536 = vst [vmem:[#allocation112_spill] sm:$0xff] %v10132_v0  ;;  %v4200_v54 = vadd.f32 %v9878_v17, %v4185_v52  ;;  %v4241_v17 = vadd.f32 %v9863_v5, %v9832_v46 }
 0x751   : > { %v4238_v9 = vadd.f32 %v9836_v8, %v4202_v12 }
 0x752   : > { %4695 = vrot.lane.b32.xlu1 %v10118_v53, %s5223_s28  ;;  %4697 = vrot.lane.b32.xlu0 %v11533_v34, %s5223_s28  ;;  %v10148_v53 = vmul.f32 0.0070388336, %v9935_v60  ;;  %v4236_v16 = vadd.f32 %v9817_v32, %v4200_v54  ;;  %v4237_v32 = vadd.f32 %v9834_v14, %v9812_v26  ;;  %v10167_v54 = vmul.f32 0.0070388336, %v9956_v55 }
 0x753   : > { %v4277_v21 = vadd.f32 %v9913_v58, %v4241_v17  ;;  %v4274_v26 = vadd.f32 %v9882_v18, %v4238_v9  ;;  %v4751_v17 = vmul.f32 0.006977006, %v9950_v44 }
 0x754   : > { %v10127_v20 = vpop.permute.xlu1 %4412  ;;  %v10129_v33 = vpop.permute.xlu0 %4414  ;;  %v4272_v52 = vadd.f32 %v9865_v22, %v4236_v16  ;;  %v4273_v22 = vadd.f32 %v9880_v40, %v4237_v32 }
 0x755   : > { %v4307_v14 = vadd.f32 %v9964_v11, %v4277_v21  ;;  %v4304_v18 = vadd.f32 %v9927_v30, %v4274_v26  ;;  %v4754_v26 = vmul.f32 0.006977006, %v9977_v56 }
 0x756   : > { %4699 = vrot.lane.b32.xlu1 %v10132_v0, %s5223_s28  ;;  %4725 = vrot.lane.b32.xlu0 %v10135_v2, %s5224_s30  ;;  %v4276_v0 = vadd.f32 %v9899_v4, %v4240_v57  ;;  %v4302_v46 = vadd.f32 %v9915_v28, %v4272_v52  ;;  %v4239_v28 = vadd.f32 %v9849_v1, %v9815_v7  ;;  %v4749_v57 = vmul.f32 0.006977006, %v9929_v13 }
 0x757   : > { %v4343_v11 = vadd.f32 %v10019_v25, %v4307_v14  ;;  %v4340_v1 = vadd.f32 %v9987_v50, %v4304_v18 }
 0x758   : > { %v10145_v15 = vpop.permute.xlu1 %4416  ;;  %v4419_v34 = vpop.permute.xlu0 %4418  ;;  %v4306_v36 = vadd.f32 %v9945_v62, %v4276_v0  ;;  %v4338_v8 = vadd.f32 %v9966_v45, %v4302_v46  ;;  %v4303_v62 = vadd.f32 %v9925_v35, %v4273_v22 }
 0x759   : > { %v4379_v35 = vadd.f32 %v10070_v37, %v4343_v11  ;;  %v4376_v52 = vadd.f32 %v10038_v43, %v4340_v1  ;;  %v11539_v1 = vld [vmem:[#allocation141_spill] sm:$0xff] }
 0x75a   : > { %4727 = vrot.lane.b32.xlu1 %v10148_v53, %s5224_s30  ;;  %4729 = vrot.lane.b32.xlu0 %v10151_v19, %s5224_s30  ;;  %v4342_v5 = vadd.f32 %v10004_v10, %v4306_v36  ;;  %v10189_v10 = vmul.f32 0.0070388336, %v9977_v56  ;;  %v4374_v45 = vadd.f32 %v10021_v63, %v4338_v8  ;;  %v4339_v7 = vadd.f32 %v9985_v6, %v4303_v62 }
 0x75b   : > { %v4750_v6 = vmul.f32 0.006977006, %v9935_v60  ;;  %v4409_v36 = vadd.f32 %v10113_v38, %v4379_v35  ;;  %v4752_v38 = vmul.f32 0.006977006, %v9956_v55 }
 0x75c   : > { %v4421_v3 = vpop.permute.xlu1 %4420  ;;  %v4435_v4 = vpop.permute.xlu0 %4434  ;;  %v4378_v58 = vadd.f32 %v10055_v23, %v4342_v5  ;;  %v4275_v23 = vadd.f32 %v9897_v59, %v4239_v28  ;;  %v4404_v30 = vadd.f32 %v10072_v47, %v4374_v45  ;;  %v4375_v63 = vadd.f32 %v10036_v61, %v4339_v7 }
 0x75d   : > { %v4406_v61 = vadd.f32 %v10089_v29, %v4376_v52  ;;  %v11544_v52 = vld [vmem:[#allocation53_spill] sm:$0xff] }
 0x75e   : > { %4731 = vrot.lane.b32.xlu1 %v10167_v54, %s5224_s30  ;;  %4733 = vrot.lane.b32.xlu0 %v10170_v51, %s5224_s30  ;;  %v4408_v16 = vadd.f32 %v4395_v27, %v4378_v58  ;;  %v4305_v25 = vadd.f32 %v9943_v39, %v4275_v23  ;;  %v4428_v50 = vadd.f32 %v10115_v41, %v4404_v30  ;;  %v4753_v41 = vmul.f32 0.006977006, %v9971_v24 }
 0x75f   : > { %v4405_v39 = vadd.f32 %v10087_v42, %v4375_v63  ;;  %v4430_v46 = vadd.f32 %v10129_v33, %v4406_v61  ;;  %v11546_v61 = vld [vmem:[#allocation98_spill] sm:$0xff] }
 0x760   : > { %v4437_v40 = vpop.permute.xlu1 %4436  ;;  %v4439_v0 = vpop.permute.xlu0 %4438  ;;  %v4432_v12 = vadd.f32 %v4419_v34, %v4408_v16  ;;  %v4341_v47 = vadd.f32 %v10002_v31, %v4305_v25  ;;  %v4433_v34 = vadd.f32 %v4421_v3, %v4409_v36  ;;  %v4452_v32 = vadd.f32 %v4435_v4, %v4428_v50  ;;  %v11541_v25 = vld [vmem:[#allocation61_spill] sm:$0xff] }
 0x761   : > { %v4429_v31 = vadd.f32 %v10127_v20, %v4405_v39  ;;  %v11545_v39 = vld [vmem:[#allocation126_spill] sm:$0xff] }
 0x762   : > { %4735 = vrot.lane.b32.xlu1 %v10189_v10, %s5224_s30  ;;  %4761 = vrot.lane.b32.xlu0 %v4749_v57, %s5225_s2  ;;  %v4377_v9 = vadd.f32 %v10053_v48, %v4341_v47  ;;  %v4454_v48 = vadd.f32 %v4439_v0, %v4430_v46 }
 0x763   : > { %v4453_v29 = vadd.f32 %v4437_v40, %v4429_v31 }
 0x764   : > { %v4441_v27 = vpop.permute.xlu1 %4440  ;;  %v4443_v59 = vpop.permute.xlu0 %4442  ;;  %v4407_v42 = vadd.f32 %v10101_v49, %v4377_v9 }
 0x765   : > { %v4456_v37 = vadd.f32 %v4443_v59, %v4432_v12 }
 0x766   : > { %4763 = vrot.lane.b32.xlu1 %v4750_v6, %s5225_s2  ;;  %4765 = vrot.lane.b32.xlu0 %v4751_v17, %s5225_s2  ;;  %v4431_v14 = vadd.f32 %v10145_v15, %v4407_v42  ;;  %v11543_v17 = vld [vmem:[#allocation112_spill] sm:$0xff] }
 0x768   : > { %v4445_v43 = vpop.permute.xlu1 %4444  ;;  %v4459_v21 = vpop.permute.xlu0 %4458  ;;  %v4455_v33 = vadd.f32 %v4441_v27, %v4431_v14 }
 0x769   : > { %v4457_v5 = vadd.f32 %v4445_v43, %v4433_v34  ;;  %v4476_v22 = vadd.f32 %v4459_v21, %v4452_v32  ;;  %v4563_v21 = vmul.f32 0.008522817, %v9929_v13  ;;  %v11550_v13 = vld [vmem:[#allocation85_spill] sm:$0xff] }
 0x76a   : > { %4767 = vrot.lane.b32.xlu1 %v4752_v38, %s5225_s2  ;;  %4769 = vrot.lane.b32.xlu0 %v4753_v41, %s5225_s2  ;;  %v11547_v38 = vld [vmem:[#allocation134_spill] sm:$0xff]  ;;  %v11548_v41 = vld [vmem:[#allocation143_spill] sm:$0xff] }
 0x76c   : > { %v4461_v3 = vpop.permute.xlu1 %4460  ;;  %v4463_v4 = vpop.permute.xlu0 %4462 }
 0x76d   : > { %v4477_v8 = vadd.f32 %v4461_v3, %v4453_v29  ;;  %v4478_v20 = vadd.f32 %v4463_v4, %v4454_v48  ;;  %v4564_v29 = vmul.f32 0.008522817, %v9935_v60  ;;  %v4565_v48 = vmul.f32 0.008522817, %v9950_v44  ;;  %v11549_v3 = vld [vmem:[#allocation140_spill] sm:$0xff]  ;;  %v11551_v60 = vld [vmem:[#allocation27_spill] sm:$0xff] }
 0x76e   : > { %4771 = vrot.lane.b32.xlu1 %v4754_v26, %s5225_s2  ;;  %4785 = vrot.lane.b32.xlu0 %v10135_v2, %s5226_s3  ;;  %v11552_v44 = vld [vmem:[#allocation21_spill] sm:$0xff] }
 0x770   : > { %v4465_v58 = vpop.permute.xlu1 %4464  ;;  %v4467_v28 = vpop.permute.xlu0 %4466 }
 0x771   : > { %v4479_v62 = vadd.f32 %v4465_v58, %v4455_v33  ;;  %v4480_v49 = vadd.f32 %v4467_v28, %v4456_v37  ;;  %v4566_v58 = vmul.f32 0.008522817, %v9956_v55  ;;  %v4567_v28 = vmul.f32 0.008522817, %v9971_v24  ;;  %v11554_v55 = vld [vmem:[#allocation127_spill] sm:$0xff] }
 0x772   : > { %4787 = vrot.lane.b32.xlu1 %v10148_v53, %s5226_s3  ;;  %4789 = vrot.lane.b32.xlu0 %v10151_v19, %s5226_s3  ;;  %v11538_v53 = vld [vmem:[#allocation71_spill] sm:$0xff] }
 0x774   : > { %v4469_v40 = vpop.permute.xlu1 %4468  ;;  %v4483_v15 = vpop.permute.xlu0 %4482 }
 0x775   : > { %v4481_v0 = vadd.f32 %v4469_v40, %v4457_v5  ;;  %v4500_v57 = vadd.f32 %v4483_v15, %v4476_v22 }
 0x776   : > { %4791 = vrot.lane.b32.xlu1 %v10167_v54, %s5226_s3  ;;  %4793 = vrot.lane.b32.xlu0 %v10170_v51, %s5226_s3  ;;  %v11540_v54 = vld [vmem:[#allocation64_spill] sm:$0xff] }
 0x778   : > { %v4485_v2 = vpop.permute.xlu1 %4484  ;;  %v4487_v18 = vpop.permute.xlu0 %4486 }
 0x779   : > { %v4501_v11 = vadd.f32 %v4485_v2, %v4477_v8  ;;  %v4502_v45 = vadd.f32 %v4487_v18, %v4478_v20  ;;  %v4568_v2 = vmul.f32 0.008522817, %v9977_v56  ;;  %v11553_v18 = vld [vmem:[#allocation120_spill] sm:$0xff] }
 0x77a   : > { %4795 = vrot.lane.b32.xlu1 %v10189_v10, %s5226_s3  ;;  %4809 = vrot.lane.b32.xlu0 %v11538_v53, %s5227_s4  ;;  %v11542_v10 = vld [vmem:[#allocation57_spill] sm:$0xff] }
 0x77c   : > { %v4489_v19 = vpop.permute.xlu1 %4488  ;;  %v4491_v16 = vpop.permute.xlu0 %4490 }
 0x77d   : > { %v4503_v23 = vadd.f32 %v4489_v19, %v4479_v62  ;;  %v4504_v7 = vadd.f32 %v4491_v16, %v4480_v49  ;;  %v11555_v16 = vld [vmem:[#allocation132_spill] sm:$0xff] }
 0x77e   : > { %4811 = vrot.lane.b32.xlu1 %v11539_v1, %s5227_s4  ;;  %4813 = vrot.lane.b32.xlu0 %v11540_v54, %s5227_s4 }
 0x780   : > { %v4493_v51 = vpop.permute.xlu1 %4492  ;;  %v4507_v35 = vpop.permute.xlu0 %4506 }
 0x781   : > { %v4505_v30 = vadd.f32 %v4493_v51, %v4481_v0  ;;  %v4524_v12 = vadd.f32 %v4507_v35, %v4500_v57  ;;  %v11557_v51 = vld [vmem:[#allocation124_spill] sm:$0xff]  ;;  %v11558_v35 = vld [vmem:[#allocation51_spill] sm:$0xff] }
 0x782   : > { %4815 = vrot.lane.b32.xlu1 %v11541_v25, %s5227_s4  ;;  %4817 = vrot.lane.b32.xlu0 %v11542_v10, %s5227_s4 }
 0x784   : > { %v4509_v63 = vpop.permute.xlu1 %4508  ;;  %v4511_v27 = vpop.permute.xlu0 %4510 }
 0x785   : > { %v4525_v59 = vadd.f32 %v4509_v63, %v4501_v11  ;;  %v4526_v6 = vadd.f32 %v4511_v27, %v4502_v45  ;;  %v11559_v63 = vld [vmem:[#allocation78_spill] sm:$0xff]  ;;  %v11560_v27 = vld [vmem:[#allocation135_spill] sm:$0xff] }
 0x786   : > { %4819 = vrot.lane.b32.xlu1 %v11543_v17, %s5227_s4  ;;  %4833 = vrot.lane.b32.xlu0 %v11544_v52, %s5228_s5 }
 0x788   : > { %v4513_v36 = vpop.permute.xlu1 %4512  ;;  %v4515_v50 = vpop.permute.xlu0 %4514 }
 0x789   : > { %v4527_v37 = vadd.f32 %v4513_v36, %v4503_v23  ;;  %v4528_v47 = vadd.f32 %v4515_v50, %v4504_v7  ;;  %v11556_v23 = vld [vmem:[#allocation146_spill] sm:$0xff] }
 0x78a   : > { %4835 = vrot.lane.b32.xlu1 %v11545_v39, %s5228_s5  ;;  %4837 = vrot.lane.b32.xlu0 %v11546_v61, %s5228_s5  ;;  %v11561_v36 = vld [vmem:[#allocation122_spill] sm:$0xff] }
 0x78c   : > { %v4517_v34 = vpop.permute.xlu1 %4516  ;;  %v4537_v32 = vpop.permute.xlu0 %4536 }
 0x78d   : > { %v4529_v9 = vadd.f32 %v4517_v34, %v4505_v30  ;;  %v4554_v43 = vadd.f32 %v4537_v32, %v4524_v12 }
 0x78e   : > { %4839 = vrot.lane.b32.xlu1 %v11547_v38, %s5228_s5  ;;  %4841 = vrot.lane.b32.xlu0 %v11548_v41, %s5228_s5 }
 0x78f   : > { %v4569_v31 = vadd.f32 %v4563_v21, %v4554_v43 }
 0x790   : > { %v4539_v46 = vpop.permute.xlu1 %4538  ;;  %v4541_v5 = vpop.permute.xlu0 %4540 }
 0x791   : > { %v4555_v22 = vadd.f32 %v4539_v46, %v4525_v59  ;;  %v4556_v42 = vadd.f32 %v4541_v5, %v4526_v6 }
 0x792   : > { %4843 = vrot.lane.b32.xlu1 %v11549_v3, %s5228_s5  ;;  %4857 = vrot.lane.b32.xlu0 %v11550_v13, %s5229_s11 }
 0x793   : > { %v4570_v4 = vadd.f32 %v4564_v29, %v4555_v22  ;;  %v4571_v26 = vadd.f32 %v4565_v48, %v4556_v42 }
 0x794   : > { %v4543_v14 = vpop.permute.xlu1 %4542  ;;  %v4545_v8 = vpop.permute.xlu0 %4544 }
 0x795   : > { %v4557_v20 = vadd.f32 %v4543_v14, %v4527_v37  ;;  %v4558_v33 = vadd.f32 %v4545_v8, %v4528_v47 }
 0x796   : > { %4859 = vrot.lane.b32.xlu1 %v11551_v60, %s5229_s11  ;;  %4861 = vrot.lane.b32.xlu0 %v11552_v44, %s5229_s11 }
 0x797   : > { %v4572_v62 = vadd.f32 %v4566_v58, %v4557_v20  ;;  %v4573_v49 = vadd.f32 %v4567_v28, %v4558_v33 }
 0x798   : > { %v4547_v40 = vpop.permute.xlu1 %4546  ;;  %v4588_v15 = vpop.permute.xlu0 %4587 }
 0x799   : > { %v4559_v0 = vadd.f32 %v4547_v40, %v4529_v9  ;;  %v4605_v57 = vadd.f32 %v4588_v15, %v4569_v31 }
 0x79a   : > { %4863 = vrot.lane.b32.xlu1 %v11553_v18, %s5229_s11  ;;  %4865 = vrot.lane.b32.xlu0 %v11554_v55, %s5229_s11 }
 0x79b   : > { %v4574_v24 = vadd.f32 %v4568_v2, %v4559_v0 }
 0x79c   : > { %v4590_v11 = vpop.permute.xlu1 %4589  ;;  %v4592_v45 = vpop.permute.xlu0 %4591 }
 0x79d   : > { %v4606_v53 = vadd.f32 %v4590_v11, %v4570_v4  ;;  %v4607_v19 = vadd.f32 %v4592_v45, %v4571_v26 }
 0x79e   : > { %4867 = vrot.lane.b32.xlu1 %v11555_v16, %s5229_s11  ;;  %4881 = vrot.lane.b32.xlu0 %v11556_v23, %s5230_s13 }
 0x7a0   : > { %v4594_v7 = vpop.permute.xlu1 %4593  ;;  %v4596_v1 = vpop.permute.xlu0 %4595 }
 0x7a1   : > { %v4608_v56 = vadd.f32 %v4594_v7, %v4572_v62  ;;  %v4609_v54 = vadd.f32 %v4596_v1, %v4573_v49 }
 0x7a2   : > { %4883 = vrot.lane.b32.xlu1 %v11557_v51, %s5230_s13  ;;  %4885 = vrot.lane.b32.xlu0 %v11558_v35, %s5230_s13 }
 0x7a4   : > { %v4598_v30 = vpop.permute.xlu1 %4597  ;;  %v4624_v12 = vpop.permute.xlu0 %4623 }
 0x7a5   : > { %v4610_v25 = vadd.f32 %v4598_v30, %v4574_v24  ;;  %v4641_v10 = vadd.f32 %v4624_v12, %v4605_v57 }
 0x7a6   : > { %4887 = vrot.lane.b32.xlu1 %v11559_v63, %s5230_s13  ;;  %4889 = vrot.lane.b32.xlu0 %v11560_v27, %s5230_s13 }
 0x7a8   : > { %v4626_v59 = vpop.permute.xlu1 %4625  ;;  %v4628_v6 = vpop.permute.xlu0 %4627 }
 0x7a9   : > { %v4642_v17 = vadd.f32 %v4626_v59, %v4606_v53  ;;  %v4643_v52 = vadd.f32 %v4628_v6, %v4607_v19 }
 0x7aa   : > { %4891 = vrot.lane.b32.xlu1 %v11561_v36, %s5230_s13  ;;  %4911 = vrot.lane.b32.xlu0 %v4563_v21, %s5231_s14 }
 0x7ac   : > { %v4630_v50 = vpop.permute.xlu1 %4629  ;;  %v4632_v37 = vpop.permute.xlu0 %4631 }
 0x7ad   : > { %v4644_v47 = vadd.f32 %v4630_v50, %v4608_v56  ;;  %v4645_v39 = vadd.f32 %v4632_v37, %v4609_v54 }
 0x7ae   : > { %4913 = vrot.lane.b32.xlu1 %v4564_v29, %s5231_s14  ;;  %4915 = vrot.lane.b32.xlu0 %v4565_v48, %s5231_s14 }
 0x7b0   : > { %v4634_v61 = vpop.permute.xlu1 %4633  ;;  %v4660_v34 = vpop.permute.xlu0 %4659 }
 0x7b1   : > { %v4646_v32 = vadd.f32 %v4634_v61, %v4610_v25  ;;  %v4677_v9 = vadd.f32 %v4660_v34, %v4641_v10 }
 0x7b2   : > { %4917 = vrot.lane.b32.xlu1 %v4566_v58, %s5231_s14  ;;  %4919 = vrot.lane.b32.xlu0 %v4567_v28, %s5231_s14 }
 0x7b4   : > { %v4662_v43 = vpop.permute.xlu1 %4661  ;;  %v4664_v38 = vpop.permute.xlu0 %4663 }
 0x7b5   : > { %v4678_v41 = vadd.f32 %v4662_v43, %v4642_v17  ;;  %v4679_v21 = vadd.f32 %v4664_v38, %v4643_v52 }
 0x7b6   : > { %4921 = vrot.lane.b32.xlu1 %v4568_v2, %s5231_s14 }
 0x7b8   : > { %v4666_v31 = vpop.permute.xlu1 %4665  ;;  %v4668_v46 = vpop.permute.xlu0 %4667 }
 0x7b9   : > { %v4680_v5 = vadd.f32 %v4666_v31, %v4644_v47  ;;  %v4681_v22 = vadd.f32 %v4668_v46, %v4645_v39 }
 0x7bc   : > { %v4670_v42 = vpop.permute.xlu1 %4669  ;;  %v4690_v29 = vpop.permute.xlu0 %4689 }
 0x7bd   : > { %v4682_v48 = vadd.f32 %v4670_v42, %v4646_v32  ;;  %v4707_v3 = vadd.f32 %v4690_v29, %v4677_v9 }
 0x7c0   : > { %v4692_v13 = vpop.permute.xlu1 %4691  ;;  %v4694_v4 = vpop.permute.xlu0 %4693 }
 0x7c1   : > { %v4708_v26 = vadd.f32 %v4692_v13, %v4678_v41  ;;  %v4709_v14 = vadd.f32 %v4694_v4, %v4679_v21 }
 0x7c4   : > { %v4696_v8 = vpop.permute.xlu1 %4695  ;;  %v4698_v20 = vpop.permute.xlu0 %4697 }
 0x7c5   : > { %v4710_v33 = vadd.f32 %v4696_v8, %v4680_v5  ;;  %v4711_v58 = vadd.f32 %v4698_v20, %v4681_v22 }
 0x7c8   : > { %v4700_v28 = vpop.permute.xlu1 %4699  ;;  %v4726_v60 = vpop.permute.xlu0 %4725 }
 0x7c9   : > { %v4712_v44 = vadd.f32 %v4700_v28, %v4682_v48  ;;  %v4743_v62 = vadd.f32 %v4726_v60, %v4707_v3 }
 0x7cc   : > { %v4728_v49 = vpop.permute.xlu1 %4727  ;;  %v4730_v40 = vpop.permute.xlu0 %4729 }
 0x7cd   : > { %v4744_v15 = vadd.f32 %v4728_v49, %v4708_v26  ;;  %v4745_v0 = vadd.f32 %v4730_v40, %v4709_v14 }
 0x7d0   : > { %v4732_v57 = vpop.permute.xlu1 %4731  ;;  %v4734_v2 = vpop.permute.xlu0 %4733 }
 0x7d1   : > { %v4746_v18 = vadd.f32 %v4732_v57, %v4710_v33  ;;  %v4747_v55 = vadd.f32 %v4734_v2, %v4711_v58 }
 0x7d4   : > { %v4736_v24 = vpop.permute.xlu1 %4735  ;;  %v4762_v11 = vpop.permute.xlu0 %4761 }
 0x7d5   : > { %v4748_v45 = vadd.f32 %v4736_v24, %v4712_v44  ;;  %v4779_v38 = vadd.f32 %v4762_v11, %v4743_v62 }
 0x7d8   : > { %v4764_v53 = vpop.permute.xlu1 %4763  ;;  %v4766_v19 = vpop.permute.xlu0 %4765 }
 0x7d9   : > { %v4780_v46 = vadd.f32 %v4764_v53, %v4744_v15  ;;  %v4781_v5 = vadd.f32 %v4766_v19, %v4745_v0 }
 0x7dc   : > { %v4768_v16 = vpop.permute.xlu1 %4767  ;;  %v4770_v23 = vpop.permute.xlu0 %4769 }
 0x7dd   : > { %v4782_v3 = vadd.f32 %v4768_v16, %v4746_v18  ;;  %v4783_v26 = vadd.f32 %v4770_v23, %v4747_v55 }
 0x7e0   : > { %v4772_v7 = vpop.permute.xlu1 %4771  ;;  %v4786_v1 = vpop.permute.xlu0 %4785 }
 0x7e1   : > { %v4803_v41 = vadd.f32 %v4786_v1, %v4779_v38  ;;  %v4784_v62 = vadd.f32 %v4772_v7, %v4748_v45 }
 0x7e4   : > { %v4788_v56 = vpop.permute.xlu1 %4787  ;;  %v4790_v54 = vpop.permute.xlu0 %4789 }
 0x7e5   : > { %v4804_v42 = vadd.f32 %v4788_v56, %v4780_v46  ;;  %v4805_v29 = vadd.f32 %v4790_v54, %v4781_v5 }
 0x7e8   : > { %v4792_v51 = vpop.permute.xlu1 %4791  ;;  %v4794_v35 = vpop.permute.xlu0 %4793 }
 0x7e9   : > { %v4806_v33 = vadd.f32 %v4792_v51, %v4782_v3  ;;  %v4807_v58 = vadd.f32 %v4794_v35, %v4783_v26 }
 0x7ec   : > { %v4796_v30 = vpop.permute.xlu1 %4795  ;;  %v4810_v12 = vpop.permute.xlu0 %4809 }
 0x7ed   : > { %v4827_v22 = vadd.f32 %v4810_v12, %v4803_v41  ;;  %v4808_v24 = vadd.f32 %v4796_v30, %v4784_v62 }
 0x7f0   : > { %v4812_v25 = vpop.permute.xlu1 %4811  ;;  %v4814_v10 = vpop.permute.xlu0 %4813 }
 0x7f1   : > { %v4828_v14 = vadd.f32 %v4812_v25, %v4804_v42  ;;  %v4829_v8 = vadd.f32 %v4814_v10, %v4805_v29 }
 0x7f4   : > { %v4816_v63 = vpop.permute.xlu1 %4815  ;;  %v4818_v27 = vpop.permute.xlu0 %4817 }
 0x7f5   : > { %v4830_v49 = vadd.f32 %v4816_v63, %v4806_v33  ;;  %v4831_v0 = vadd.f32 %v4818_v27, %v4807_v58 }
 0x7f8   : > { %v4820_v59 = vpop.permute.xlu1 %4819  ;;  %v4834_v6 = vpop.permute.xlu0 %4833 }
 0x7f9   : > { %v4851_v48 = vadd.f32 %v4834_v6, %v4827_v22  ;;  %v4832_v16 = vadd.f32 %v4820_v59, %v4808_v24 }
 0x7fc   : > { %v4836_v17 = vpop.permute.xlu1 %4835  ;;  %v4838_v52 = vpop.permute.xlu0 %4837 }
 0x7fd   : > { %v4852_v28 = vadd.f32 %v4836_v17, %v4828_v14  ;;  %v4853_v60 = vadd.f32 %v4838_v52, %v4829_v8 }
 0x800   : > { %v4840_v36 = vpop.permute.xlu1 %4839  ;;  %v4842_v50 = vpop.permute.xlu0 %4841 }
 0x801   : > { %v4854_v55 = vadd.f32 %v4840_v36, %v4830_v49  ;;  %v4855_v11 = vadd.f32 %v4842_v50, %v4831_v0 }
 0x804   : > { %v4844_v37 = vpop.permute.xlu1 %4843  ;;  %v4858_v47 = vpop.permute.xlu0 %4857 }
 0x805   : > { %v4875_v20 = vadd.f32 %v4858_v47, %v4851_v48  ;;  %v4856_v51 = vadd.f32 %v4844_v37, %v4832_v16 }
 0x808   : > { %v4860_v39 = vpop.permute.xlu1 %4859  ;;  %v4862_v61 = vpop.permute.xlu0 %4861 }
 0x809   : > { %v4876_v57 = vadd.f32 %v4860_v39, %v4852_v28  ;;  %v4877_v2 = vadd.f32 %v4862_v61, %v4853_v60 }
 0x80c   : > { %v4864_v34 = vpop.permute.xlu1 %4863  ;;  %v4866_v32 = vpop.permute.xlu0 %4865 }
 0x80d   : > { %v4878_v7 = vadd.f32 %v4864_v34, %v4854_v55  ;;  %v4879_v1 = vadd.f32 %v4866_v32, %v4855_v11 }
 0x810   : > { %v4868_v9 = vpop.permute.xlu1 %4867  ;;  %v4882_v43 = vpop.permute.xlu0 %4881 }
 0x811   : > { %v4899_v44 = vadd.f32 %v4882_v43, %v4875_v20  ;;  %v4880_v10 = vadd.f32 %v4868_v9, %v4856_v51 }
 0x814   : > { %v4884_v21 = vpop.permute.xlu1 %4883  ;;  %v4886_v31 = vpop.permute.xlu0 %4885 }
 0x815   : > { %v4900_v53 = vadd.f32 %v4884_v21, %v4876_v57  ;;  %v4901_v19 = vadd.f32 %v4886_v31, %v4877_v2 }
 0x818   : > { %v4888_v13 = vpop.permute.xlu1 %4887  ;;  %v4890_v4 = vpop.permute.xlu0 %4889 }
 0x819   : > { %v4902_v35 = vadd.f32 %v4888_v13, %v4878_v7  ;;  %v4903_v12 = vadd.f32 %v4890_v4, %v4879_v1 }
 0x81c   : > { %v4892_v40 = vpop.permute.xlu1 %4891  ;;  %v4912_v15 = vpop.permute.xlu0 %4911 }
 0x81d   : > { %v4929_v18 = vadd.f32 %v4912_v15, %v4899_v44  ;;  %v4904_v59 = vadd.f32 %v4892_v40, %v4880_v10 }
 0x81f   : > { %4936 = vst.msk [vmem:[%s134_s19] sm:$0xff] %vm4935_vm3, %v4929_v18 }
 0x820   : > { %v4914_v23 = vpop.permute.xlu1 %4913  ;;  %v4916_v45 = vpop.permute.xlu0 %4915 }
 0x821   : > { %v4930_v56 = vadd.f32 %v4914_v23, %v4900_v53  ;;  %v4931_v54 = vadd.f32 %v4916_v45, %v4901_v19 }
 0x823   : > { %4937 = vst.msk [vmem:[%s134_s19 + $0x8] sm:$0xff] %vm4935_vm3, %v4930_v56  ;;  %4938 = vst.msk [vmem:[%s134_s19 + $0x10] sm:$0xff] %vm4935_vm3, %v4931_v54 }
 0x824   : > { %v4918_v30 = vpop.permute.xlu1 %4917  ;;  %v4920_v25 = vpop.permute.xlu0 %4919 }
 0x825   : > { %v4932_v63 = vadd.f32 %v4918_v30, %v4902_v35  ;;  %v4933_v27 = vadd.f32 %v4920_v25, %v4903_v12 }
 0x827   : > { %4939 = vst.msk [vmem:[%s134_s19 + $0x18] sm:$0xff] %vm4935_vm3, %v4932_v63  ;;  %4940 = vst.msk [vmem:[%s134_s19 + $0x20] sm:$0xff] %vm4935_vm3, %v4933_v27 }
 0x828   : > { %v4922_v6 = vpop.permute.xlu1 %4921 }
 0x829   : > { %v4934_v17 = vadd.f32 %v4922_v6, %v4904_v59 }
 0x82b   : > { %4941 = vst.msk [vmem:[%s134_s19 + $0x28] sm:$0xff] %vm4935_vm3, %v4934_v17 }
 0x82c   : > { %5160 = shalt.err (!%p5157_p2)
}
 0x82d   : > { %s5161_s28 = scalar_lea.hbm %s10311_s29, 768  ;;  %s5165_s3 = scalar_lea.hbm %s10357_s1, 1536 }
 0x82e   : > { %p5162_p4 = scmp.ne.s32.totalorder %s10311_s29, %s5161_s28  ;;  %p5166_p9 = scmp.lt.u32.totalorder %s10311_s29, %s10357_s1 }
 0x82f   : > { %p5167_p1 = scmp.lt.u32.totalorder %s5165_s3, %s5161_s28  ;;  %p5169_p6 = scmp.lt.u32.totalorder %s5161_s28, %s10311_s29 }
 0x830   : > { %p5163_p5 = pnand %p5162_p4, %p11562_p11 }
 0x831   : > { %p5168_p3 = por %p5167_p1, %p5166_p9 }
 0x832   : > { %p5164_p7 = pneg %p5163_p5 }
 0x833   : > { %p5170_p12 = por %p5169_p6, %p5168_p3 }
 0x835   : > { %p5171_p13 = pnand %p5170_p12, %p5164_p7 }
 0x837   : > { %5174 = shalt.err (!%p5171_p13)
}
 0x838   : > { %s5233_s11 = smov 128   ;;  %s5234_s13 = smov 8  }
 0x839   : > { %5043 = dma.vmem_to_hbm [thread:$0]  (%p11562_p11), %s10304_s20, 768, %s10311_s29, %s4943_s10, %s5233_s11, %s5233_s11, %s5234_s13  }
 0x83a PF: > { %s4971_s14 = sand.u32 1, %s5201_s6   ;;  %p11563_p8 = scmp.ne.s32.totalorder %s10610_s18, 0 }
 0x83b   : > { %p11564_p10 = scmp.ge.s32.totalorder %s5213_s9, 2  ;;  %s4972_s19 = scalar_lea.sflag [#allocation5], %s4971_s14 }
 0x83d   : > { %p5050_p0 = pnand %p11564_p10, %p11563_p8 }
 0x83f   : > { %5196 = dma.done.wait (!%p5050_p0), %s4972_s19, 768  }
 0x840   : > { %5198 = vsyncadd (!%p5050_p0), %s4972_s19, 4294966528  ;;  %p14_p2 = scmp.ge.s32.totalorder %s5270_s12, 4   ;;  %s11565_s6 = smov %s5205_s7 }
 0x841   : > { %s11566_s7 = smov %s5209_s8  ;;  %s11567_s8 = smov %s5282_s15 }
 0x842   : > { %s11568_s9 = smov %s5270_s12  ;;  %16 = sbr.rel (!%p14_p2) target bundleno = 5 (0x5), region = 69 }
 0x849   :  { %4977 = vsyncpa [#allocation4], 1 }
 0x84a   :  { %4979 = vsyncpa [#allocation4 + $0x1], 1 }
 0x84b   :  { %4980 = vsyncpa [#allocation5], 1 }
 0x84c   :  { %4982 = vsyncpa [#allocation5 + $0x1], 1 }

</bundles_post_ra>
